<compile_context>
chip_gen: v7x
topology: tpu7x:2x2x1
jax: 0.10.0
libtpu: 0.0.40
codegen_flags: <defaults>
</compile_context>

<pallas_src>
import math

import jax
import jax.numpy as jnp
from jax.experimental import pallas as pl
from jax.experimental.pallas import tpu as pltpu

L_IN = 130
NEG_SLOPE = 0.01              # nn.LeakyReLU() default negative_slope
TB = 128                      # batch lanes per grid step

# Position padding plan (computed / stored positions per stage).
L_IN_STORE = 136              # input positions stored (needs >= 134, 8-aligned)
P1, G1 = 8, 8                 # conv1+pool1: 64 pooled computed (62 valid)
P1_PAD = 4                    # zero positions appended -> p1 stores 68
P2, G2 = 8, 8                 # conv2: 64 computed (58 valid), stores 64
P3, G3 = 8, 7                 # conv3: 56 computed (54 valid)
P3_PAD = 4                    # zero positions appended -> y3 stores 60
P4, G4 = 8, 7                 # conv4+pool4: 28 pooled computed (25 valid)


def _leaky(v):
    return jnp.where(v > 0, v, NEG_SLOPE * v)


def net_kernel(x_ref,
               w1_ref, b1_ref, w2_ref, b2_ref, w3_ref, b3_ref, w4_ref, b4_ref,
               w5_ref, b5_ref, w6_ref, b6_ref,
               o_ref):
    f32 = jnp.float32
    tb = x_ref.shape[-1]
    xin = x_ref[...]                                        # (136, tb)

    # ---- conv1 (k=7) + bias + LeakyReLU with MaxPool1d(2) folded in -------
    # One block-Toeplitz matmul per group of 8 pooled outputs; rows 0..127 of
    # w1 hold the even-offset taps, rows 128..255 the odd-offset taps.
    w1 = w1_ref[...]                                        # (256, 22)
    b1 = b1_ref[...]                                        # (128, 1)
    parts = []
    for g in range(G1):
        xs = xin[2 * P1 * g: 2 * P1 * g + 2 * P1 + 6, :]    # (22, tb)
        yg = jnp.dot(w1, xs, preferred_element_type=f32)    # (256, tb)
        pg = jnp.maximum(yg[:P1 * 16], yg[P1 * 16:]) + b1   # pool1 + bias
        parts.append(_leaky(pg))                            # (128, tb)
    parts.append(jnp.zeros((P1_PAD * 16, tb), f32))         # zero tail
    p1 = jnp.concatenate(parts, axis=0)                     # (1088, tb)

    # ---- conv2 / conv3: position-blocked (P=8) block-Toeplitz matmuls ------
    def conv(x, w_ref, b_ref, groups, pad_positions):
        w = w_ref[...]                                      # (128, 192)
        b = b_ref[...]                                      # (128, 1)
        outs = []
        for g in range(groups):
            xs = x[g * 128: g * 128 + 192, :]               # contiguous rows
            yg = jnp.dot(w, xs, preferred_element_type=f32) + b
            outs.append(_leaky(yg))                         # (128, tb)
        if pad_positions:
            outs.append(jnp.zeros((pad_positions * 16, x.shape[-1]), f32))
        return jnp.concatenate(outs, axis=0)

    y2 = conv(p1, w2_ref, b2_ref, G2, 0)                    # (1024, tb)
    y3 = conv(y2, w3_ref, b3_ref, G3, P3_PAD)               # (960, tb)

    # ---- conv4 with MaxPool1d(2) folded (even|odd row halves per group) ----
    w4 = w4_ref[...]                                        # (128, 192)
    b4 = b4_ref[...]                                        # (64, 1)
    zp = []
    for g in range(G4):
        xs = y3[g * 128: g * 128 + 192, :]                  # (192, tb)
        yg = jnp.dot(w4, xs, preferred_element_type=f32)    # (128, tb)
        pg = _leaky(jnp.maximum(yg[:64], yg[64:]) + b4)     # 4 pooled positions
        zp.append(pg)                                       # (64, tb)
    z = jnp.concatenate(zp, axis=0)[:400, :]                # (400, tb), row l*16+c

    # ---- linear5 + LeakyReLU, linear6, softmax over the 5 classes ----------
    h = _leaky(jnp.dot(w5_ref[...], z, preferred_element_type=f32)
               + b5_ref[...])                               # (128, tb)
    logits = jnp.dot(w6_ref[...], h, preferred_element_type=f32) + b6_ref[...]
    m = jnp.max(logits, axis=0, keepdims=True)              # (1, tb)
    e = jnp.exp(logits - m)
    o_ref[...] = e / jnp.sum(e, axis=0, keepdims=True)      # (5, tb)


# --------------------------- weight re-packing -------------------------------

def _conv1_pool_weight(w1):
    """(16,1,7) -> (256, 22): block-Toeplitz, even offsets in rows 0..127 and
    odd offsets in rows 128..255, so MaxPool1d(2) is one slab max."""
    K = 7
    win = 2 * P1 + K - 1                                    # 22
    blocks = []
    for parity in (0, 1):
        rows = []
        for p in range(P1):
            q = 2 * p + parity
            blk = jnp.zeros((16, win), w1.dtype)
            blk = blk.at[:, q:q + K].set(w1[:, 0, :])
            rows.append(blk)
        blocks.append(jnp.concatenate(rows, axis=0))
    return jnp.concatenate(blocks, axis=0)


def _block_toeplitz(w, P, pooled=False):
    """(Cout,Cin,K) -> (Cout*P, Cin*(P+K-1)).  Row block order is 0..P-1, or
    (even offsets | odd offsets) when `pooled` so MaxPool1d(2) folds in."""
    Cout, Cin, K = w.shape
    win = P + K - 1
    wk = jnp.transpose(w, (0, 2, 1)).reshape(Cout, K * Cin)  # col = k*Cin+ci
    order = (list(range(0, P, 2)) + list(range(1, P, 2))) if pooled else range(P)
    rows = []
    for p in order:
        blk = jnp.zeros((Cout, Cin * win), w.dtype)
        blk = blk.at[:, p * Cin:(p + K) * Cin].set(wk)
        rows.append(blk)
    return jnp.concatenate(rows, axis=0)


# ------------------------------- wrapper -------------------------------------

def net_forward(x, params):
    """x: (B, 1, 130) float32 -> (B, 5) class probabilities."""
    B = x.shape[0]
    w1, b1, w2, b2, w3, b3, w4, b4, w5, b5, w6, b6 = params

    nb = pl.cdiv(B, TB)
    b_pad = nb * TB

    # (positions, batch) slab, zero-padded on both axes.
    xp = x.reshape(B, L_IN).astype(jnp.float32)
    xp = jnp.pad(xp, ((0, b_pad - B), (0, L_IN_STORE - L_IN)))
    xT = xp.T                                               # (136, b_pad)

    # Weight / bias repacks (pure-JAX layout plumbing).
    w1p = _conv1_pool_weight(w1)                            # (256, 22)
    w2p = _block_toeplitz(w2, P2)                           # (128, 192)
    w3p = _block_toeplitz(w3, P3)                           # (128, 192)
    w4p = _block_toeplitz(w4, P4, pooled=True)              # (128, 192)
    # linear5 expects row index l*16 + c; PyTorch flatten index is c*25 + l.
    w5p = jnp.transpose(w5.reshape(128, 16, 25), (0, 2, 1)).reshape(128, 400)

    b1t = jnp.tile(b1, P1).reshape(P1 * 16, 1)              # (128, 1)
    b2t = jnp.tile(b2, P2).reshape(P2 * 16, 1)              # (128, 1)
    b3t = jnp.tile(b3, P3).reshape(P3 * 16, 1)              # (128, 1)
    b4t = jnp.tile(b4, P4 // 2).reshape(P4 // 2 * 16, 1)    # (64, 1) (pooled)
    b5c = b5.reshape(128, 1)
    b6c = b6.reshape(5, 1)

    weights = [w1p, b1t, w2p, b2t, w3p, b3t, w4p, b4t, w5p, b5c, w6, b6c]

    in_specs = [pl.BlockSpec((L_IN_STORE, TB), lambda i: (0, i))]
    in_specs += [pl.BlockSpec(w.shape, lambda i: (0, 0)) for w in weights]

    out = pl.pallas_call(
        net_kernel,
        out_shape=jax.ShapeDtypeStruct((5, b_pad), jnp.float32),
        grid_spec=pltpu.PrefetchScalarGridSpec(
            num_scalar_prefetch=0,
            grid=(nb,),
            in_specs=in_specs,
            out_specs=pl.BlockSpec((5, TB), lambda i: (0, i))),
        compiler_params=pltpu.CompilerParams(
            dimension_semantics=("parallel",)),
    )(xT, *weights)

    return out[:, :B].T                                     # (B, 5)


# --------------------------- init & reference --------------------------------

def init_params(key):
    """Deterministic PyTorch-style U(-1/sqrt(fan_in), 1/sqrt(fan_in)) init."""
    def uniform(k, shape, fan_in):
        bound = 1.0 / math.sqrt(fan_in)
        return jax.random.uniform(k, shape, jnp.float32, -bound, bound)

    ks = jax.random.split(key, 12)
    w1 = uniform(ks[0], (16, 1, 7), 1 * 7);    b1 = uniform(ks[1], (16,), 1 * 7)
    w2 = uniform(ks[2], (16, 16, 5), 16 * 5);  b2 = uniform(ks[3], (16,), 16 * 5)
    w3 = uniform(ks[4], (16, 16, 5), 16 * 5);  b3 = uniform(ks[5], (16,), 16 * 5)
    w4 = uniform(ks[6], (16, 16, 5), 16 * 5);  b4 = uniform(ks[7], (16,), 16 * 5)
    w5 = uniform(ks[8], (128, 400), 400);      b5 = uniform(ks[9], (128,), 400)
    w6 = uniform(ks[10], (5, 128), 128);       b6 = uniform(ks[11], (5,), 128)
    return (w1, b1, w2, b2, w3, b3, w4, b4, w5, b5, w6, b6)


def net_reference(x, params):
    """Pure-JAX reference of the PyTorch forward pass (for validation)."""
    w1, b1, w2, b2, w3, b3, w4, b4, w5, b5, w6, b6 = params

    def conv1d(y, w, b):
        k = w.shape[-1]
        lo = y.shape[-1] - k + 1
        acc = sum(jnp.einsum('oi,bil->bol', w[:, :, t], y[:, :, t:t + lo])
                  for t in range(k))
        return acc + b[None, :, None]

    def pool2(y):
        return jnp.maximum(y[..., 0::2], y[..., 1::2])

    y = pool2(_leaky(conv1d(x, w1, b1)))
    y = _leaky(conv1d(y, w2, b2))
    y = _leaky(conv1d(y, w3, b3))
    y = pool2(_leaky(conv1d(y, w4, b4)))
    y = y.reshape(y.shape[0], -1)                  # channel-major flatten
    h = _leaky(y @ w5.T + b5)
    logits = h @ w6.T + b6
    e = jnp.exp(logits - logits.max(axis=1, keepdims=True))
    return e / e.sum(axis=1, keepdims=True)


if __name__ == "__main__":
    key = jax.random.PRNGKey(0)
    k_param, k_x = jax.random.split(key)
    params = init_params(k_param)
    x = jax.random.normal(k_x, (2, 1, L_IN), jnp.float32)   # (B=2, C=1, L=130)

    probs = jax.block_until_ready(jax.jit(net_forward)(x, params))
    ref = net_reference(x, params)

    assert probs.shape == (2, 5)
    assert bool(jnp.all(jnp.isfinite(probs)))
    assert bool(jnp.allclose(jnp.sum(probs, axis=1), 1.0, atol=1e-3))
    assert bool(jnp.allclose(probs, ref, atol=1e-3)), \
        float(jnp.max(jnp.abs(probs - ref)))
    print("KERNEL_OK")
</pallas_src>

<mosaic_0001>
module attributes {stable_mosaic.version = 11 : i64} {
  func.func @net_kernel(%arg0: i32, %arg1: memref<136x128xf32, #tpu.memory_space<vmem>>, %arg2: memref<256x22xf32, #tpu.memory_space<vmem>>, %arg3: memref<128x1xf32, #tpu.memory_space<vmem>>, %arg4: memref<128x192xf32, #tpu.memory_space<vmem>>, %arg5: memref<128x1xf32, #tpu.memory_space<vmem>>, %arg6: memref<128x192xf32, #tpu.memory_space<vmem>>, %arg7: memref<128x1xf32, #tpu.memory_space<vmem>>, %arg8: memref<128x192xf32, #tpu.memory_space<vmem>>, %arg9: memref<64x1xf32, #tpu.memory_space<vmem>>, %arg10: memref<128x400xf32, #tpu.memory_space<vmem>>, %arg11: memref<128x1xf32, #tpu.memory_space<vmem>>, %arg12: memref<5x128xf32, #tpu.memory_space<vmem>>, %arg13: memref<5x1xf32, #tpu.memory_space<vmem>>, %arg14: memref<5x128xf32, #tpu.memory_space<vmem>>) attributes {dimension_semantics = [#tpu.dimension_semantics<parallel>], iteration_bounds = array<i64: 1>, scalar_prefetch = 0 : i64, scratch_operands = 0 : i64, tpu.core_type = #tpu.core_type<tc>, window_params = [{transform_indices = @transform_0, window_bounds = array<i64: 136, 128>}, {pipeline_mode = #tpu.pipeline_mode<synchronous>, transform_indices = @transform_1, window_bounds = array<i64: 256, 22>}, {pipeline_mode = #tpu.pipeline_mode<synchronous>, transform_indices = @transform_2, window_bounds = array<i64: 128, 1>}, {pipeline_mode = #tpu.pipeline_mode<synchronous>, transform_indices = @transform_3, window_bounds = array<i64: 128, 192>}, {pipeline_mode = #tpu.pipeline_mode<synchronous>, transform_indices = @transform_4, window_bounds = array<i64: 128, 1>}, {pipeline_mode = #tpu.pipeline_mode<synchronous>, transform_indices = @transform_5, window_bounds = array<i64: 128, 192>}, {pipeline_mode = #tpu.pipeline_mode<synchronous>, transform_indices = @transform_6, window_bounds = array<i64: 128, 1>}, {pipeline_mode = #tpu.pipeline_mode<synchronous>, transform_indices = @transform_7, window_bounds = array<i64: 128, 192>}, {pipeline_mode = #tpu.pipeline_mode<synchronous>, transform_indices = @transform_8, window_bounds = array<i64: 64, 1>}, {pipeline_mode = #tpu.pipeline_mode<synchronous>, transform_indices = @transform_9, window_bounds = array<i64: 128, 400>}, {pipeline_mode = #tpu.pipeline_mode<synchronous>, transform_indices = @transform_10, window_bounds = array<i64: 128, 1>}, {pipeline_mode = #tpu.pipeline_mode<synchronous>, transform_indices = @transform_11, window_bounds = array<i64: 5, 128>}, {pipeline_mode = #tpu.pipeline_mode<synchronous>, transform_indices = @transform_12, window_bounds = array<i64: 5, 1>}, {transform_indices = @transform_13, window_bounds = array<i64: 5, 128>}]} {
    %c0 = arith.constant 0 : index
    %c0_0 = arith.constant 0 : index
    %0 = vector.load %arg1[%c0, %c0_0] : memref<136x128xf32, #tpu.memory_space<vmem>>, vector<136x128xf32>
    %c0_1 = arith.constant 0 : index
    %c0_2 = arith.constant 0 : index
    %1 = vector.load %arg2[%c0_1, %c0_2] : memref<256x22xf32, #tpu.memory_space<vmem>>, vector<256x22xf32>
    %c0_3 = arith.constant 0 : index
    %c0_4 = arith.constant 0 : index
    %2 = vector.load %arg3[%c0_3, %c0_4] : memref<128x1xf32, #tpu.memory_space<vmem>>, vector<128x1xf32>
    %3 = vector.extract_strided_slice %0 {offsets = [0, 0], sizes = [22, 128], strides = [1, 1]} : vector<136x128xf32> to vector<22x128xf32>
    %cst = arith.constant dense<0.000000e+00> : vector<256x128xf32>
    %4 = tpu.matmul %1, %3, %cst {dimension_numbers = #tpu.dot_dimension_numbers<[1], [0], [0], [1], [0, 0, 1, 1], [], []>} : vector<256x22xf32>, vector<22x128xf32>, vector<256x128xf32> -> vector<256x128xf32>
    %5 = vector.extract_strided_slice %4 {offsets = [0, 0], sizes = [128, 128], strides = [1, 1]} : vector<256x128xf32> to vector<128x128xf32>
    %6 = vector.extract_strided_slice %4 {offsets = [128, 0], sizes = [128, 128], strides = [1, 1]} : vector<256x128xf32> to vector<128x128xf32>
    %7 = arith.maximumf %5, %6 : vector<128x128xf32>
    %8 = vector.broadcast %2 : vector<128x1xf32> to vector<128x128xf32>
    %9 = arith.addf %7, %8 : vector<128x128xf32>
    %cst_5 = arith.constant 0.000000e+00 : f32
    %10 = vector.broadcast %cst_5 : f32 to vector<128x128xf32>
    %11 = arith.cmpf ogt, %9, %10 : vector<128x128xf32>
    %cst_6 = arith.constant 0.00999999977 : f32
    %12 = vector.broadcast %cst_6 : f32 to vector<128x128xf32>
    %13 = arith.mulf %12, %9 : vector<128x128xf32>
    %14 = arith.select %11, %9, %13 : vector<128x128xi1>, vector<128x128xf32>
    %15 = vector.extract_strided_slice %0 {offsets = [16, 0], sizes = [22, 128], strides = [1, 1]} : vector<136x128xf32> to vector<22x128xf32>
    %cst_7 = arith.constant dense<0.000000e+00> : vector<256x128xf32>
    %16 = tpu.matmul %1, %15, %cst_7 {dimension_numbers = #tpu.dot_dimension_numbers<[1], [0], [0], [1], [0, 0, 1, 1], [], []>} : vector<256x22xf32>, vector<22x128xf32>, vector<256x128xf32> -> vector<256x128xf32>
    %17 = vector.extract_strided_slice %16 {offsets = [0, 0], sizes = [128, 128], strides = [1, 1]} : vector<256x128xf32> to vector<128x128xf32>
    %18 = vector.extract_strided_slice %16 {offsets = [128, 0], sizes = [128, 128], strides = [1, 1]} : vector<256x128xf32> to vector<128x128xf32>
    %19 = arith.maximumf %17, %18 : vector<128x128xf32>
    %20 = vector.broadcast %2 : vector<128x1xf32> to vector<128x128xf32>
    %21 = arith.addf %19, %20 : vector<128x128xf32>
    %cst_8 = arith.constant 0.000000e+00 : f32
    %22 = vector.broadcast %cst_8 : f32 to vector<128x128xf32>
    %23 = arith.cmpf ogt, %21, %22 : vector<128x128xf32>
    %cst_9 = arith.constant 0.00999999977 : f32
    %24 = vector.broadcast %cst_9 : f32 to vector<128x128xf32>
    %25 = arith.mulf %24, %21 : vector<128x128xf32>
    %26 = arith.select %23, %21, %25 : vector<128x128xi1>, vector<128x128xf32>
    %27 = vector.extract_strided_slice %0 {offsets = [32, 0], sizes = [22, 128], strides = [1, 1]} : vector<136x128xf32> to vector<22x128xf32>
    %cst_10 = arith.constant dense<0.000000e+00> : vector<256x128xf32>
    %28 = tpu.matmul %1, %27, %cst_10 {dimension_numbers = #tpu.dot_dimension_numbers<[1], [0], [0], [1], [0, 0, 1, 1], [], []>} : vector<256x22xf32>, vector<22x128xf32>, vector<256x128xf32> -> vector<256x128xf32>
    %29 = vector.extract_strided_slice %28 {offsets = [0, 0], sizes = [128, 128], strides = [1, 1]} : vector<256x128xf32> to vector<128x128xf32>
    %30 = vector.extract_strided_slice %28 {offsets = [128, 0], sizes = [128, 128], strides = [1, 1]} : vector<256x128xf32> to vector<128x128xf32>
    %31 = arith.maximumf %29, %30 : vector<128x128xf32>
    %32 = vector.broadcast %2 : vector<128x1xf32> to vector<128x128xf32>
    %33 = arith.addf %31, %32 : vector<128x128xf32>
    %cst_11 = arith.constant 0.000000e+00 : f32
    %34 = vector.broadcast %cst_11 : f32 to vector<128x128xf32>
    %35 = arith.cmpf ogt, %33, %34 : vector<128x128xf32>
    %cst_12 = arith.constant 0.00999999977 : f32
    %36 = vector.broadcast %cst_12 : f32 to vector<128x128xf32>
    %37 = arith.mulf %36, %33 : vector<128x128xf32>
    %38 = arith.select %35, %33, %37 : vector<128x128xi1>, vector<128x128xf32>
    %39 = vector.extract_strided_slice %0 {offsets = [48, 0], sizes = [22, 128], strides = [1, 1]} : vector<136x128xf32> to vector<22x128xf32>
    %cst_13 = arith.constant dense<0.000000e+00> : vector<256x128xf32>
    %40 = tpu.matmul %1, %39, %cst_13 {dimension_numbers = #tpu.dot_dimension_numbers<[1], [0], [0], [1], [0, 0, 1, 1], [], []>} : vector<256x22xf32>, vector<22x128xf32>, vector<256x128xf32> -> vector<256x128xf32>
    %41 = vector.extract_strided_slice %40 {offsets = [0, 0], sizes = [128, 128], strides = [1, 1]} : vector<256x128xf32> to vector<128x128xf32>
    %42 = vector.extract_strided_slice %40 {offsets = [128, 0], sizes = [128, 128], strides = [1, 1]} : vector<256x128xf32> to vector<128x128xf32>
    %43 = arith.maximumf %41, %42 : vector<128x128xf32>
    %44 = vector.broadcast %2 : vector<128x1xf32> to vector<128x128xf32>
    %45 = arith.addf %43, %44 : vector<128x128xf32>
    %cst_14 = arith.constant 0.000000e+00 : f32
    %46 = vector.broadcast %cst_14 : f32 to vector<128x128xf32>
    %47 = arith.cmpf ogt, %45, %46 : vector<128x128xf32>
    %cst_15 = arith.constant 0.00999999977 : f32
    %48 = vector.broadcast %cst_15 : f32 to vector<128x128xf32>
    %49 = arith.mulf %48, %45 : vector<128x128xf32>
    %50 = arith.select %47, %45, %49 : vector<128x128xi1>, vector<128x128xf32>
    %51 = vector.extract_strided_slice %0 {offsets = [64, 0], sizes = [22, 128], strides = [1, 1]} : vector<136x128xf32> to vector<22x128xf32>
    %cst_16 = arith.constant dense<0.000000e+00> : vector<256x128xf32>
    %52 = tpu.matmul %1, %51, %cst_16 {dimension_numbers = #tpu.dot_dimension_numbers<[1], [0], [0], [1], [0, 0, 1, 1], [], []>} : vector<256x22xf32>, vector<22x128xf32>, vector<256x128xf32> -> vector<256x128xf32>
    %53 = vector.extract_strided_slice %52 {offsets = [0, 0], sizes = [128, 128], strides = [1, 1]} : vector<256x128xf32> to vector<128x128xf32>
    %54 = vector.extract_strided_slice %52 {offsets = [128, 0], sizes = [128, 128], strides = [1, 1]} : vector<256x128xf32> to vector<128x128xf32>
    %55 = arith.maximumf %53, %54 : vector<128x128xf32>
    %56 = vector.broadcast %2 : vector<128x1xf32> to vector<128x128xf32>
    %57 = arith.addf %55, %56 : vector<128x128xf32>
    %cst_17 = arith.constant 0.000000e+00 : f32
    %58 = vector.broadcast %cst_17 : f32 to vector<128x128xf32>
    %59 = arith.cmpf ogt, %57, %58 : vector<128x128xf32>
    %cst_18 = arith.constant 0.00999999977 : f32
    %60 = vector.broadcast %cst_18 : f32 to vector<128x128xf32>
    %61 = arith.mulf %60, %57 : vector<128x128xf32>
    %62 = arith.select %59, %57, %61 : vector<128x128xi1>, vector<128x128xf32>
    %63 = vector.extract_strided_slice %0 {offsets = [80, 0], sizes = [22, 128], strides = [1, 1]} : vector<136x128xf32> to vector<22x128xf32>
    %cst_19 = arith.constant dense<0.000000e+00> : vector<256x128xf32>
    %64 = tpu.matmul %1, %63, %cst_19 {dimension_numbers = #tpu.dot_dimension_numbers<[1], [0], [0], [1], [0, 0, 1, 1], [], []>} : vector<256x22xf32>, vector<22x128xf32>, vector<256x128xf32> -> vector<256x128xf32>
    %65 = vector.extract_strided_slice %64 {offsets = [0, 0], sizes = [128, 128], strides = [1, 1]} : vector<256x128xf32> to vector<128x128xf32>
    %66 = vector.extract_strided_slice %64 {offsets = [128, 0], sizes = [128, 128], strides = [1, 1]} : vector<256x128xf32> to vector<128x128xf32>
    %67 = arith.maximumf %65, %66 : vector<128x128xf32>
    %68 = vector.broadcast %2 : vector<128x1xf32> to vector<128x128xf32>
    %69 = arith.addf %67, %68 : vector<128x128xf32>
    %cst_20 = arith.constant 0.000000e+00 : f32
    %70 = vector.broadcast %cst_20 : f32 to vector<128x128xf32>
    %71 = arith.cmpf ogt, %69, %70 : vector<128x128xf32>
    %cst_21 = arith.constant 0.00999999977 : f32
    %72 = vector.broadcast %cst_21 : f32 to vector<128x128xf32>
    %73 = arith.mulf %72, %69 : vector<128x128xf32>
    %74 = arith.select %71, %69, %73 : vector<128x128xi1>, vector<128x128xf32>
    %75 = vector.extract_strided_slice %0 {offsets = [96, 0], sizes = [22, 128], strides = [1, 1]} : vector<136x128xf32> to vector<22x128xf32>
    %cst_22 = arith.constant dense<0.000000e+00> : vector<256x128xf32>
    %76 = tpu.matmul %1, %75, %cst_22 {dimension_numbers = #tpu.dot_dimension_numbers<[1], [0], [0], [1], [0, 0, 1, 1], [], []>} : vector<256x22xf32>, vector<22x128xf32>, vector<256x128xf32> -> vector<256x128xf32>
    %77 = vector.extract_strided_slice %76 {offsets = [0, 0], sizes = [128, 128], strides = [1, 1]} : vector<256x128xf32> to vector<128x128xf32>
    %78 = vector.extract_strided_slice %76 {offsets = [128, 0], sizes = [128, 128], strides = [1, 1]} : vector<256x128xf32> to vector<128x128xf32>
    %79 = arith.maximumf %77, %78 : vector<128x128xf32>
    %80 = vector.broadcast %2 : vector<128x1xf32> to vector<128x128xf32>
    %81 = arith.addf %79, %80 : vector<128x128xf32>
    %cst_23 = arith.constant 0.000000e+00 : f32
    %82 = vector.broadcast %cst_23 : f32 to vector<128x128xf32>
    %83 = arith.cmpf ogt, %81, %82 : vector<128x128xf32>
    %cst_24 = arith.constant 0.00999999977 : f32
    %84 = vector.broadcast %cst_24 : f32 to vector<128x128xf32>
    %85 = arith.mulf %84, %81 : vector<128x128xf32>
    %86 = arith.select %83, %81, %85 : vector<128x128xi1>, vector<128x128xf32>
    %87 = vector.extract_strided_slice %0 {offsets = [112, 0], sizes = [22, 128], strides = [1, 1]} : vector<136x128xf32> to vector<22x128xf32>
    %cst_25 = arith.constant dense<0.000000e+00> : vector<256x128xf32>
    %88 = tpu.matmul %1, %87, %cst_25 {dimension_numbers = #tpu.dot_dimension_numbers<[1], [0], [0], [1], [0, 0, 1, 1], [], []>} : vector<256x22xf32>, vector<22x128xf32>, vector<256x128xf32> -> vector<256x128xf32>
    %89 = vector.extract_strided_slice %88 {offsets = [0, 0], sizes = [128, 128], strides = [1, 1]} : vector<256x128xf32> to vector<128x128xf32>
    %90 = vector.extract_strided_slice %88 {offsets = [128, 0], sizes = [128, 128], strides = [1, 1]} : vector<256x128xf32> to vector<128x128xf32>
    %91 = arith.maximumf %89, %90 : vector<128x128xf32>
    %92 = vector.broadcast %2 : vector<128x1xf32> to vector<128x128xf32>
    %93 = arith.addf %91, %92 : vector<128x128xf32>
    %cst_26 = arith.constant 0.000000e+00 : f32
    %94 = vector.broadcast %cst_26 : f32 to vector<128x128xf32>
    %95 = arith.cmpf ogt, %93, %94 : vector<128x128xf32>
    %cst_27 = arith.constant 0.00999999977 : f32
    %96 = vector.broadcast %cst_27 : f32 to vector<128x128xf32>
    %97 = arith.mulf %96, %93 : vector<128x128xf32>
    %98 = arith.select %95, %93, %97 : vector<128x128xi1>, vector<128x128xf32>
    %cst_28 = arith.constant 0.000000e+00 : f32
    %99 = vector.broadcast %cst_28 : f32 to vector<64x128xf32>
    %100 = tpu.concatenate %14, %26, %38, %50, %62, %74, %86, %98, %99 in 0 : vector<128x128xf32>, vector<128x128xf32>, vector<128x128xf32>, vector<128x128xf32>, vector<128x128xf32>, vector<128x128xf32>, vector<128x128xf32>, vector<128x128xf32>, vector<64x128xf32> -> vector<1088x128xf32>
    %c0_29 = arith.constant 0 : index
    %c0_30 = arith.constant 0 : index
    %101 = vector.load %arg4[%c0_29, %c0_30] : memref<128x192xf32, #tpu.memory_space<vmem>>, vector<128x192xf32>
    %c0_31 = arith.constant 0 : index
    %c0_32 = arith.constant 0 : index
    %102 = vector.load %arg5[%c0_31, %c0_32] : memref<128x1xf32, #tpu.memory_space<vmem>>, vector<128x1xf32>
    %103 = vector.extract_strided_slice %100 {offsets = [0, 0], sizes = [192, 128], strides = [1, 1]} : vector<1088x128xf32> to vector<192x128xf32>
    %cst_33 = arith.constant dense<0.000000e+00> : vector<128x128xf32>
    %104 = tpu.matmul %101, %103, %cst_33 {dimension_numbers = #tpu.dot_dimension_numbers<[1], [0], [0], [1], [0, 0, 1, 1], [], []>} : vector<128x192xf32>, vector<192x128xf32>, vector<128x128xf32> -> vector<128x128xf32>
    %105 = vector.broadcast %102 : vector<128x1xf32> to vector<128x128xf32>
    %106 = arith.addf %104, %105 : vector<128x128xf32>
    %cst_34 = arith.constant 0.000000e+00 : f32
    %107 = vector.broadcast %cst_34 : f32 to vector<128x128xf32>
    %108 = arith.cmpf ogt, %106, %107 : vector<128x128xf32>
    %cst_35 = arith.constant 0.00999999977 : f32
    %109 = vector.broadcast %cst_35 : f32 to vector<128x128xf32>
    %110 = arith.mulf %109, %106 : vector<128x128xf32>
    %111 = arith.select %108, %106, %110 : vector<128x128xi1>, vector<128x128xf32>
    %112 = vector.extract_strided_slice %100 {offsets = [128, 0], sizes = [192, 128], strides = [1, 1]} : vector<1088x128xf32> to vector<192x128xf32>
    %cst_36 = arith.constant dense<0.000000e+00> : vector<128x128xf32>
    %113 = tpu.matmul %101, %112, %cst_36 {dimension_numbers = #tpu.dot_dimension_numbers<[1], [0], [0], [1], [0, 0, 1, 1], [], []>} : vector<128x192xf32>, vector<192x128xf32>, vector<128x128xf32> -> vector<128x128xf32>
    %114 = vector.broadcast %102 : vector<128x1xf32> to vector<128x128xf32>
    %115 = arith.addf %113, %114 : vector<128x128xf32>
    %cst_37 = arith.constant 0.000000e+00 : f32
    %116 = vector.broadcast %cst_37 : f32 to vector<128x128xf32>
    %117 = arith.cmpf ogt, %115, %116 : vector<128x128xf32>
    %cst_38 = arith.constant 0.00999999977 : f32
    %118 = vector.broadcast %cst_38 : f32 to vector<128x128xf32>
    %119 = arith.mulf %118, %115 : vector<128x128xf32>
    %120 = arith.select %117, %115, %119 : vector<128x128xi1>, vector<128x128xf32>
    %121 = vector.extract_strided_slice %100 {offsets = [256, 0], sizes = [192, 128], strides = [1, 1]} : vector<1088x128xf32> to vector<192x128xf32>
    %cst_39 = arith.constant dense<0.000000e+00> : vector<128x128xf32>
    %122 = tpu.matmul %101, %121, %cst_39 {dimension_numbers = #tpu.dot_dimension_numbers<[1], [0], [0], [1], [0, 0, 1, 1], [], []>} : vector<128x192xf32>, vector<192x128xf32>, vector<128x128xf32> -> vector<128x128xf32>
    %123 = vector.broadcast %102 : vector<128x1xf32> to vector<128x128xf32>
    %124 = arith.addf %122, %123 : vector<128x128xf32>
    %cst_40 = arith.constant 0.000000e+00 : f32
    %125 = vector.broadcast %cst_40 : f32 to vector<128x128xf32>
    %126 = arith.cmpf ogt, %124, %125 : vector<128x128xf32>
    %cst_41 = arith.constant 0.00999999977 : f32
    %127 = vector.broadcast %cst_41 : f32 to vector<128x128xf32>
    %128 = arith.mulf %127, %124 : vector<128x128xf32>
    %129 = arith.select %126, %124, %128 : vector<128x128xi1>, vector<128x128xf32>
    %130 = vector.extract_strided_slice %100 {offsets = [384, 0], sizes = [192, 128], strides = [1, 1]} : vector<1088x128xf32> to vector<192x128xf32>
    %cst_42 = arith.constant dense<0.000000e+00> : vector<128x128xf32>
    %131 = tpu.matmul %101, %130, %cst_42 {dimension_numbers = #tpu.dot_dimension_numbers<[1], [0], [0], [1], [0, 0, 1, 1], [], []>} : vector<128x192xf32>, vector<192x128xf32>, vector<128x128xf32> -> vector<128x128xf32>
    %132 = vector.broadcast %102 : vector<128x1xf32> to vector<128x128xf32>
    %133 = arith.addf %131, %132 : vector<128x128xf32>
    %cst_43 = arith.constant 0.000000e+00 : f32
    %134 = vector.broadcast %cst_43 : f32 to vector<128x128xf32>
    %135 = arith.cmpf ogt, %133, %134 : vector<128x128xf32>
    %cst_44 = arith.constant 0.00999999977 : f32
    %136 = vector.broadcast %cst_44 : f32 to vector<128x128xf32>
    %137 = arith.mulf %136, %133 : vector<128x128xf32>
    %138 = arith.select %135, %133, %137 : vector<128x128xi1>, vector<128x128xf32>
    %139 = vector.extract_strided_slice %100 {offsets = [512, 0], sizes = [192, 128], strides = [1, 1]} : vector<1088x128xf32> to vector<192x128xf32>
    %cst_45 = arith.constant dense<0.000000e+00> : vector<128x128xf32>
    %140 = tpu.matmul %101, %139, %cst_45 {dimension_numbers = #tpu.dot_dimension_numbers<[1], [0], [0], [1], [0, 0, 1, 1], [], []>} : vector<128x192xf32>, vector<192x128xf32>, vector<128x128xf32> -> vector<128x128xf32>
    %141 = vector.broadcast %102 : vector<128x1xf32> to vector<128x128xf32>
    %142 = arith.addf %140, %141 : vector<128x128xf32>
    %cst_46 = arith.constant 0.000000e+00 : f32
    %143 = vector.broadcast %cst_46 : f32 to vector<128x128xf32>
    %144 = arith.cmpf ogt, %142, %143 : vector<128x128xf32>
    %cst_47 = arith.constant 0.00999999977 : f32
    %145 = vector.broadcast %cst_47 : f32 to vector<128x128xf32>
    %146 = arith.mulf %145, %142 : vector<128x128xf32>
    %147 = arith.select %144, %142, %146 : vector<128x128xi1>, vector<128x128xf32>
    %148 = vector.extract_strided_slice %100 {offsets = [640, 0], sizes = [192, 128], strides = [1, 1]} : vector<1088x128xf32> to vector<192x128xf32>
    %cst_48 = arith.constant dense<0.000000e+00> : vector<128x128xf32>
    %149 = tpu.matmul %101, %148, %cst_48 {dimension_numbers = #tpu.dot_dimension_numbers<[1], [0], [0], [1], [0, 0, 1, 1], [], []>} : vector<128x192xf32>, vector<192x128xf32>, vector<128x128xf32> -> vector<128x128xf32>
    %150 = vector.broadcast %102 : vector<128x1xf32> to vector<128x128xf32>
    %151 = arith.addf %149, %150 : vector<128x128xf32>
    %cst_49 = arith.constant 0.000000e+00 : f32
    %152 = vector.broadcast %cst_49 : f32 to vector<128x128xf32>
    %153 = arith.cmpf ogt, %151, %152 : vector<128x128xf32>
    %cst_50 = arith.constant 0.00999999977 : f32
    %154 = vector.broadcast %cst_50 : f32 to vector<128x128xf32>
    %155 = arith.mulf %154, %151 : vector<128x128xf32>
    %156 = arith.select %153, %151, %155 : vector<128x128xi1>, vector<128x128xf32>
    %157 = vector.extract_strided_slice %100 {offsets = [768, 0], sizes = [192, 128], strides = [1, 1]} : vector<1088x128xf32> to vector<192x128xf32>
    %cst_51 = arith.constant dense<0.000000e+00> : vector<128x128xf32>
    %158 = tpu.matmul %101, %157, %cst_51 {dimension_numbers = #tpu.dot_dimension_numbers<[1], [0], [0], [1], [0, 0, 1, 1], [], []>} : vector<128x192xf32>, vector<192x128xf32>, vector<128x128xf32> -> vector<128x128xf32>
    %159 = vector.broadcast %102 : vector<128x1xf32> to vector<128x128xf32>
    %160 = arith.addf %158, %159 : vector<128x128xf32>
    %cst_52 = arith.constant 0.000000e+00 : f32
    %161 = vector.broadcast %cst_52 : f32 to vector<128x128xf32>
    %162 = arith.cmpf ogt, %160, %161 : vector<128x128xf32>
    %cst_53 = arith.constant 0.00999999977 : f32
    %163 = vector.broadcast %cst_53 : f32 to vector<128x128xf32>
    %164 = arith.mulf %163, %160 : vector<128x128xf32>
    %165 = arith.select %162, %160, %164 : vector<128x128xi1>, vector<128x128xf32>
    %166 = vector.extract_strided_slice %100 {offsets = [896, 0], sizes = [192, 128], strides = [1, 1]} : vector<1088x128xf32> to vector<192x128xf32>
    %cst_54 = arith.constant dense<0.000000e+00> : vector<128x128xf32>
    %167 = tpu.matmul %101, %166, %cst_54 {dimension_numbers = #tpu.dot_dimension_numbers<[1], [0], [0], [1], [0, 0, 1, 1], [], []>} : vector<128x192xf32>, vector<192x128xf32>, vector<128x128xf32> -> vector<128x128xf32>
    %168 = vector.broadcast %102 : vector<128x1xf32> to vector<128x128xf32>
    %169 = arith.addf %167, %168 : vector<128x128xf32>
    %cst_55 = arith.constant 0.000000e+00 : f32
    %170 = vector.broadcast %cst_55 : f32 to vector<128x128xf32>
    %171 = arith.cmpf ogt, %169, %170 : vector<128x128xf32>
    %cst_56 = arith.constant 0.00999999977 : f32
    %172 = vector.broadcast %cst_56 : f32 to vector<128x128xf32>
    %173 = arith.mulf %172, %169 : vector<128x128xf32>
    %174 = arith.select %171, %169, %173 : vector<128x128xi1>, vector<128x128xf32>
    %175 = tpu.concatenate %111, %120, %129, %138, %147, %156, %165, %174 in 0 : vector<128x128xf32>, vector<128x128xf32>, vector<128x128xf32>, vector<128x128xf32>, vector<128x128xf32>, vector<128x128xf32>, vector<128x128xf32>, vector<128x128xf32> -> vector<1024x128xf32>
    %c0_57 = arith.constant 0 : index
    %c0_58 = arith.constant 0 : index
    %176 = vector.load %arg6[%c0_57, %c0_58] : memref<128x192xf32, #tpu.memory_space<vmem>>, vector<128x192xf32>
    %c0_59 = arith.constant 0 : index
    %c0_60 = arith.constant 0 : index
    %177 = vector.load %arg7[%c0_59, %c0_60] : memref<128x1xf32, #tpu.memory_space<vmem>>, vector<128x1xf32>
    %178 = vector.extract_strided_slice %175 {offsets = [0, 0], sizes = [192, 128], strides = [1, 1]} : vector<1024x128xf32> to vector<192x128xf32>
    %cst_61 = arith.constant dense<0.000000e+00> : vector<128x128xf32>
    %179 = tpu.matmul %176, %178, %cst_61 {dimension_numbers = #tpu.dot_dimension_numbers<[1], [0], [0], [1], [0, 0, 1, 1], [], []>} : vector<128x192xf32>, vector<192x128xf32>, vector<128x128xf32> -> vector<128x128xf32>
    %180 = vector.broadcast %177 : vector<128x1xf32> to vector<128x128xf32>
    %181 = arith.addf %179, %180 : vector<128x128xf32>
    %cst_62 = arith.constant 0.000000e+00 : f32
    %182 = vector.broadcast %cst_62 : f32 to vector<128x128xf32>
    %183 = arith.cmpf ogt, %181, %182 : vector<128x128xf32>
    %cst_63 = arith.constant 0.00999999977 : f32
    %184 = vector.broadcast %cst_63 : f32 to vector<128x128xf32>
    %185 = arith.mulf %184, %181 : vector<128x128xf32>
    %186 = arith.select %183, %181, %185 : vector<128x128xi1>, vector<128x128xf32>
    %187 = vector.extract_strided_slice %175 {offsets = [128, 0], sizes = [192, 128], strides = [1, 1]} : vector<1024x128xf32> to vector<192x128xf32>
    %cst_64 = arith.constant dense<0.000000e+00> : vector<128x128xf32>
    %188 = tpu.matmul %176, %187, %cst_64 {dimension_numbers = #tpu.dot_dimension_numbers<[1], [0], [0], [1], [0, 0, 1, 1], [], []>} : vector<128x192xf32>, vector<192x128xf32>, vector<128x128xf32> -> vector<128x128xf32>
    %189 = vector.broadcast %177 : vector<128x1xf32> to vector<128x128xf32>
    %190 = arith.addf %188, %189 : vector<128x128xf32>
    %cst_65 = arith.constant 0.000000e+00 : f32
    %191 = vector.broadcast %cst_65 : f32 to vector<128x128xf32>
    %192 = arith.cmpf ogt, %190, %191 : vector<128x128xf32>
    %cst_66 = arith.constant 0.00999999977 : f32
    %193 = vector.broadcast %cst_66 : f32 to vector<128x128xf32>
    %194 = arith.mulf %193, %190 : vector<128x128xf32>
    %195 = arith.select %192, %190, %194 : vector<128x128xi1>, vector<128x128xf32>
    %196 = vector.extract_strided_slice %175 {offsets = [256, 0], sizes = [192, 128], strides = [1, 1]} : vector<1024x128xf32> to vector<192x128xf32>
    %cst_67 = arith.constant dense<0.000000e+00> : vector<128x128xf32>
    %197 = tpu.matmul %176, %196, %cst_67 {dimension_numbers = #tpu.dot_dimension_numbers<[1], [0], [0], [1], [0, 0, 1, 1], [], []>} : vector<128x192xf32>, vector<192x128xf32>, vector<128x128xf32> -> vector<128x128xf32>
    %198 = vector.broadcast %177 : vector<128x1xf32> to vector<128x128xf32>
    %199 = arith.addf %197, %198 : vector<128x128xf32>
    %cst_68 = arith.constant 0.000000e+00 : f32
    %200 = vector.broadcast %cst_68 : f32 to vector<128x128xf32>
    %201 = arith.cmpf ogt, %199, %200 : vector<128x128xf32>
    %cst_69 = arith.constant 0.00999999977 : f32
    %202 = vector.broadcast %cst_69 : f32 to vector<128x128xf32>
    %203 = arith.mulf %202, %199 : vector<128x128xf32>
    %204 = arith.select %201, %199, %203 : vector<128x128xi1>, vector<128x128xf32>
    %205 = vector.extract_strided_slice %175 {offsets = [384, 0], sizes = [192, 128], strides = [1, 1]} : vector<1024x128xf32> to vector<192x128xf32>
    %cst_70 = arith.constant dense<0.000000e+00> : vector<128x128xf32>
    %206 = tpu.matmul %176, %205, %cst_70 {dimension_numbers = #tpu.dot_dimension_numbers<[1], [0], [0], [1], [0, 0, 1, 1], [], []>} : vector<128x192xf32>, vector<192x128xf32>, vector<128x128xf32> -> vector<128x128xf32>
    %207 = vector.broadcast %177 : vector<128x1xf32> to vector<128x128xf32>
    %208 = arith.addf %206, %207 : vector<128x128xf32>
    %cst_71 = arith.constant 0.000000e+00 : f32
    %209 = vector.broadcast %cst_71 : f32 to vector<128x128xf32>
    %210 = arith.cmpf ogt, %208, %209 : vector<128x128xf32>
    %cst_72 = arith.constant 0.00999999977 : f32
    %211 = vector.broadcast %cst_72 : f32 to vector<128x128xf32>
    %212 = arith.mulf %211, %208 : vector<128x128xf32>
    %213 = arith.select %210, %208, %212 : vector<128x128xi1>, vector<128x128xf32>
    %214 = vector.extract_strided_slice %175 {offsets = [512, 0], sizes = [192, 128], strides = [1, 1]} : vector<1024x128xf32> to vector<192x128xf32>
    %cst_73 = arith.constant dense<0.000000e+00> : vector<128x128xf32>
    %215 = tpu.matmul %176, %214, %cst_73 {dimension_numbers = #tpu.dot_dimension_numbers<[1], [0], [0], [1], [0, 0, 1, 1], [], []>} : vector<128x192xf32>, vector<192x128xf32>, vector<128x128xf32> -> vector<128x128xf32>
    %216 = vector.broadcast %177 : vector<128x1xf32> to vector<128x128xf32>
    %217 = arith.addf %215, %216 : vector<128x128xf32>
    %cst_74 = arith.constant 0.000000e+00 : f32
    %218 = vector.broadcast %cst_74 : f32 to vector<128x128xf32>
    %219 = arith.cmpf ogt, %217, %218 : vector<128x128xf32>
    %cst_75 = arith.constant 0.00999999977 : f32
    %220 = vector.broadcast %cst_75 : f32 to vector<128x128xf32>
    %221 = arith.mulf %220, %217 : vector<128x128xf32>
    %222 = arith.select %219, %217, %221 : vector<128x128xi1>, vector<128x128xf32>
    %223 = vector.extract_strided_slice %175 {offsets = [640, 0], sizes = [192, 128], strides = [1, 1]} : vector<1024x128xf32> to vector<192x128xf32>
    %cst_76 = arith.constant dense<0.000000e+00> : vector<128x128xf32>
    %224 = tpu.matmul %176, %223, %cst_76 {dimension_numbers = #tpu.dot_dimension_numbers<[1], [0], [0], [1], [0, 0, 1, 1], [], []>} : vector<128x192xf32>, vector<192x128xf32>, vector<128x128xf32> -> vector<128x128xf32>
    %225 = vector.broadcast %177 : vector<128x1xf32> to vector<128x128xf32>
    %226 = arith.addf %224, %225 : vector<128x128xf32>
    %cst_77 = arith.constant 0.000000e+00 : f32
    %227 = vector.broadcast %cst_77 : f32 to vector<128x128xf32>
    %228 = arith.cmpf ogt, %226, %227 : vector<128x128xf32>
    %cst_78 = arith.constant 0.00999999977 : f32
    %229 = vector.broadcast %cst_78 : f32 to vector<128x128xf32>
    %230 = arith.mulf %229, %226 : vector<128x128xf32>
    %231 = arith.select %228, %226, %230 : vector<128x128xi1>, vector<128x128xf32>
    %232 = vector.extract_strided_slice %175 {offsets = [768, 0], sizes = [192, 128], strides = [1, 1]} : vector<1024x128xf32> to vector<192x128xf32>
    %cst_79 = arith.constant dense<0.000000e+00> : vector<128x128xf32>
    %233 = tpu.matmul %176, %232, %cst_79 {dimension_numbers = #tpu.dot_dimension_numbers<[1], [0], [0], [1], [0, 0, 1, 1], [], []>} : vector<128x192xf32>, vector<192x128xf32>, vector<128x128xf32> -> vector<128x128xf32>
    %234 = vector.broadcast %177 : vector<128x1xf32> to vector<128x128xf32>
    %235 = arith.addf %233, %234 : vector<128x128xf32>
    %cst_80 = arith.constant 0.000000e+00 : f32
    %236 = vector.broadcast %cst_80 : f32 to vector<128x128xf32>
    %237 = arith.cmpf ogt, %235, %236 : vector<128x128xf32>
    %cst_81 = arith.constant 0.00999999977 : f32
    %238 = vector.broadcast %cst_81 : f32 to vector<128x128xf32>
    %239 = arith.mulf %238, %235 : vector<128x128xf32>
    %240 = arith.select %237, %235, %239 : vector<128x128xi1>, vector<128x128xf32>
    %cst_82 = arith.constant 0.000000e+00 : f32
    %241 = vector.broadcast %cst_82 : f32 to vector<64x128xf32>
    %242 = tpu.concatenate %186, %195, %204, %213, %222, %231, %240, %241 in 0 : vector<128x128xf32>, vector<128x128xf32>, vector<128x128xf32>, vector<128x128xf32>, vector<128x128xf32>, vector<128x128xf32>, vector<128x128xf32>, vector<64x128xf32> -> vector<960x128xf32>
    %c0_83 = arith.constant 0 : index
    %c0_84 = arith.constant 0 : index
    %243 = vector.load %arg8[%c0_83, %c0_84] : memref<128x192xf32, #tpu.memory_space<vmem>>, vector<128x192xf32>
    %c0_85 = arith.constant 0 : index
    %c0_86 = arith.constant 0 : index
    %244 = vector.load %arg9[%c0_85, %c0_86] : memref<64x1xf32, #tpu.memory_space<vmem>>, vector<64x1xf32>
    %245 = vector.extract_strided_slice %242 {offsets = [0, 0], sizes = [192, 128], strides = [1, 1]} : vector<960x128xf32> to vector<192x128xf32>
    %cst_87 = arith.constant dense<0.000000e+00> : vector<128x128xf32>
    %246 = tpu.matmul %243, %245, %cst_87 {dimension_numbers = #tpu.dot_dimension_numbers<[1], [0], [0], [1], [0, 0, 1, 1], [], []>} : vector<128x192xf32>, vector<192x128xf32>, vector<128x128xf32> -> vector<128x128xf32>
    %247 = vector.extract_strided_slice %246 {offsets = [0, 0], sizes = [64, 128], strides = [1, 1]} : vector<128x128xf32> to vector<64x128xf32>
    %248 = vector.extract_strided_slice %246 {offsets = [64, 0], sizes = [64, 128], strides = [1, 1]} : vector<128x128xf32> to vector<64x128xf32>
    %249 = arith.maximumf %247, %248 : vector<64x128xf32>
    %250 = vector.broadcast %244 : vector<64x1xf32> to vector<64x128xf32>
    %251 = arith.addf %249, %250 : vector<64x128xf32>
    %cst_88 = arith.constant 0.000000e+00 : f32
    %252 = vector.broadcast %cst_88 : f32 to vector<64x128xf32>
    %253 = arith.cmpf ogt, %251, %252 : vector<64x128xf32>
    %cst_89 = arith.constant 0.00999999977 : f32
    %254 = vector.broadcast %cst_89 : f32 to vector<64x128xf32>
    %255 = arith.mulf %254, %251 : vector<64x128xf32>
    %256 = arith.select %253, %251, %255 : vector<64x128xi1>, vector<64x128xf32>
    %257 = vector.extract_strided_slice %242 {offsets = [128, 0], sizes = [192, 128], strides = [1, 1]} : vector<960x128xf32> to vector<192x128xf32>
    %cst_90 = arith.constant dense<0.000000e+00> : vector<128x128xf32>
    %258 = tpu.matmul %243, %257, %cst_90 {dimension_numbers = #tpu.dot_dimension_numbers<[1], [0], [0], [1], [0, 0, 1, 1], [], []>} : vector<128x192xf32>, vector<192x128xf32>, vector<128x128xf32> -> vector<128x128xf32>
    %259 = vector.extract_strided_slice %258 {offsets = [0, 0], sizes = [64, 128], strides = [1, 1]} : vector<128x128xf32> to vector<64x128xf32>
    %260 = vector.extract_strided_slice %258 {offsets = [64, 0], sizes = [64, 128], strides = [1, 1]} : vector<128x128xf32> to vector<64x128xf32>
    %261 = arith.maximumf %259, %260 : vector<64x128xf32>
    %262 = vector.broadcast %244 : vector<64x1xf32> to vector<64x128xf32>
    %263 = arith.addf %261, %262 : vector<64x128xf32>
    %cst_91 = arith.constant 0.000000e+00 : f32
    %264 = vector.broadcast %cst_91 : f32 to vector<64x128xf32>
    %265 = arith.cmpf ogt, %263, %264 : vector<64x128xf32>
    %cst_92 = arith.constant 0.00999999977 : f32
    %266 = vector.broadcast %cst_92 : f32 to vector<64x128xf32>
    %267 = arith.mulf %266, %263 : vector<64x128xf32>
    %268 = arith.select %265, %263, %267 : vector<64x128xi1>, vector<64x128xf32>
    %269 = vector.extract_strided_slice %242 {offsets = [256, 0], sizes = [192, 128], strides = [1, 1]} : vector<960x128xf32> to vector<192x128xf32>
    %cst_93 = arith.constant dense<0.000000e+00> : vector<128x128xf32>
    %270 = tpu.matmul %243, %269, %cst_93 {dimension_numbers = #tpu.dot_dimension_numbers<[1], [0], [0], [1], [0, 0, 1, 1], [], []>} : vector<128x192xf32>, vector<192x128xf32>, vector<128x128xf32> -> vector<128x128xf32>
    %271 = vector.extract_strided_slice %270 {offsets = [0, 0], sizes = [64, 128], strides = [1, 1]} : vector<128x128xf32> to vector<64x128xf32>
    %272 = vector.extract_strided_slice %270 {offsets = [64, 0], sizes = [64, 128], strides = [1, 1]} : vector<128x128xf32> to vector<64x128xf32>
    %273 = arith.maximumf %271, %272 : vector<64x128xf32>
    %274 = vector.broadcast %244 : vector<64x1xf32> to vector<64x128xf32>
    %275 = arith.addf %273, %274 : vector<64x128xf32>
    %cst_94 = arith.constant 0.000000e+00 : f32
    %276 = vector.broadcast %cst_94 : f32 to vector<64x128xf32>
    %277 = arith.cmpf ogt, %275, %276 : vector<64x128xf32>
    %cst_95 = arith.constant 0.00999999977 : f32
    %278 = vector.broadcast %cst_95 : f32 to vector<64x128xf32>
    %279 = arith.mulf %278, %275 : vector<64x128xf32>
    %280 = arith.select %277, %275, %279 : vector<64x128xi1>, vector<64x128xf32>
    %281 = vector.extract_strided_slice %242 {offsets = [384, 0], sizes = [192, 128], strides = [1, 1]} : vector<960x128xf32> to vector<192x128xf32>
    %cst_96 = arith.constant dense<0.000000e+00> : vector<128x128xf32>
    %282 = tpu.matmul %243, %281, %cst_96 {dimension_numbers = #tpu.dot_dimension_numbers<[1], [0], [0], [1], [0, 0, 1, 1], [], []>} : vector<128x192xf32>, vector<192x128xf32>, vector<128x128xf32> -> vector<128x128xf32>
    %283 = vector.extract_strided_slice %282 {offsets = [0, 0], sizes = [64, 128], strides = [1, 1]} : vector<128x128xf32> to vector<64x128xf32>
    %284 = vector.extract_strided_slice %282 {offsets = [64, 0], sizes = [64, 128], strides = [1, 1]} : vector<128x128xf32> to vector<64x128xf32>
    %285 = arith.maximumf %283, %284 : vector<64x128xf32>
    %286 = vector.broadcast %244 : vector<64x1xf32> to vector<64x128xf32>
    %287 = arith.addf %285, %286 : vector<64x128xf32>
    %cst_97 = arith.constant 0.000000e+00 : f32
    %288 = vector.broadcast %cst_97 : f32 to vector<64x128xf32>
    %289 = arith.cmpf ogt, %287, %288 : vector<64x128xf32>
    %cst_98 = arith.constant 0.00999999977 : f32
    %290 = vector.broadcast %cst_98 : f32 to vector<64x128xf32>
    %291 = arith.mulf %290, %287 : vector<64x128xf32>
    %292 = arith.select %289, %287, %291 : vector<64x128xi1>, vector<64x128xf32>
    %293 = vector.extract_strided_slice %242 {offsets = [512, 0], sizes = [192, 128], strides = [1, 1]} : vector<960x128xf32> to vector<192x128xf32>
    %cst_99 = arith.constant dense<0.000000e+00> : vector<128x128xf32>
    %294 = tpu.matmul %243, %293, %cst_99 {dimension_numbers = #tpu.dot_dimension_numbers<[1], [0], [0], [1], [0, 0, 1, 1], [], []>} : vector<128x192xf32>, vector<192x128xf32>, vector<128x128xf32> -> vector<128x128xf32>
    %295 = vector.extract_strided_slice %294 {offsets = [0, 0], sizes = [64, 128], strides = [1, 1]} : vector<128x128xf32> to vector<64x128xf32>
    %296 = vector.extract_strided_slice %294 {offsets = [64, 0], sizes = [64, 128], strides = [1, 1]} : vector<128x128xf32> to vector<64x128xf32>
    %297 = arith.maximumf %295, %296 : vector<64x128xf32>
    %298 = vector.broadcast %244 : vector<64x1xf32> to vector<64x128xf32>
    %299 = arith.addf %297, %298 : vector<64x128xf32>
    %cst_100 = arith.constant 0.000000e+00 : f32
    %300 = vector.broadcast %cst_100 : f32 to vector<64x128xf32>
    %301 = arith.cmpf ogt, %299, %300 : vector<64x128xf32>
    %cst_101 = arith.constant 0.00999999977 : f32
    %302 = vector.broadcast %cst_101 : f32 to vector<64x128xf32>
    %303 = arith.mulf %302, %299 : vector<64x128xf32>
    %304 = arith.select %301, %299, %303 : vector<64x128xi1>, vector<64x128xf32>
    %305 = vector.extract_strided_slice %242 {offsets = [640, 0], sizes = [192, 128], strides = [1, 1]} : vector<960x128xf32> to vector<192x128xf32>
    %cst_102 = arith.constant dense<0.000000e+00> : vector<128x128xf32>
    %306 = tpu.matmul %243, %305, %cst_102 {dimension_numbers = #tpu.dot_dimension_numbers<[1], [0], [0], [1], [0, 0, 1, 1], [], []>} : vector<128x192xf32>, vector<192x128xf32>, vector<128x128xf32> -> vector<128x128xf32>
    %307 = vector.extract_strided_slice %306 {offsets = [0, 0], sizes = [64, 128], strides = [1, 1]} : vector<128x128xf32> to vector<64x128xf32>
    %308 = vector.extract_strided_slice %306 {offsets = [64, 0], sizes = [64, 128], strides = [1, 1]} : vector<128x128xf32> to vector<64x128xf32>
    %309 = arith.maximumf %307, %308 : vector<64x128xf32>
    %310 = vector.broadcast %244 : vector<64x1xf32> to vector<64x128xf32>
    %311 = arith.addf %309, %310 : vector<64x128xf32>
    %cst_103 = arith.constant 0.000000e+00 : f32
    %312 = vector.broadcast %cst_103 : f32 to vector<64x128xf32>
    %313 = arith.cmpf ogt, %311, %312 : vector<64x128xf32>
    %cst_104 = arith.constant 0.00999999977 : f32
    %314 = vector.broadcast %cst_104 : f32 to vector<64x128xf32>
    %315 = arith.mulf %314, %311 : vector<64x128xf32>
    %316 = arith.select %313, %311, %315 : vector<64x128xi1>, vector<64x128xf32>
    %317 = vector.extract_strided_slice %242 {offsets = [768, 0], sizes = [192, 128], strides = [1, 1]} : vector<960x128xf32> to vector<192x128xf32>
    %cst_105 = arith.constant dense<0.000000e+00> : vector<128x128xf32>
    %318 = tpu.matmul %243, %317, %cst_105 {dimension_numbers = #tpu.dot_dimension_numbers<[1], [0], [0], [1], [0, 0, 1, 1], [], []>} : vector<128x192xf32>, vector<192x128xf32>, vector<128x128xf32> -> vector<128x128xf32>
    %319 = vector.extract_strided_slice %318 {offsets = [0, 0], sizes = [64, 128], strides = [1, 1]} : vector<128x128xf32> to vector<64x128xf32>
    %320 = vector.extract_strided_slice %318 {offsets = [64, 0], sizes = [64, 128], strides = [1, 1]} : vector<128x128xf32> to vector<64x128xf32>
    %321 = arith.maximumf %319, %320 : vector<64x128xf32>
    %322 = vector.broadcast %244 : vector<64x1xf32> to vector<64x128xf32>
    %323 = arith.addf %321, %322 : vector<64x128xf32>
    %cst_106 = arith.constant 0.000000e+00 : f32
    %324 = vector.broadcast %cst_106 : f32 to vector<64x128xf32>
    %325 = arith.cmpf ogt, %323, %324 : vector<64x128xf32>
    %cst_107 = arith.constant 0.00999999977 : f32
    %326 = vector.broadcast %cst_107 : f32 to vector<64x128xf32>
    %327 = arith.mulf %326, %323 : vector<64x128xf32>
    %328 = arith.select %325, %323, %327 : vector<64x128xi1>, vector<64x128xf32>
    %329 = tpu.concatenate %256, %268, %280, %292, %304, %316, %328 in 0 : vector<64x128xf32>, vector<64x128xf32>, vector<64x128xf32>, vector<64x128xf32>, vector<64x128xf32>, vector<64x128xf32>, vector<64x128xf32> -> vector<448x128xf32>
    %330 = vector.extract_strided_slice %329 {offsets = [0, 0], sizes = [400, 128], strides = [1, 1]} : vector<448x128xf32> to vector<400x128xf32>
    %c0_108 = arith.constant 0 : index
    %c0_109 = arith.constant 0 : index
    %331 = vector.load %arg10[%c0_108, %c0_109] : memref<128x400xf32, #tpu.memory_space<vmem>>, vector<128x400xf32>
    %cst_110 = arith.constant dense<0.000000e+00> : vector<128x128xf32>
    %332 = tpu.matmul %331, %330, %cst_110 {dimension_numbers = #tpu.dot_dimension_numbers<[1], [0], [0], [1], [0, 0, 1, 1], [], []>} : vector<128x400xf32>, vector<400x128xf32>, vector<128x128xf32> -> vector<128x128xf32>
    %c0_111 = arith.constant 0 : index
    %c0_112 = arith.constant 0 : index
    %333 = vector.load %arg11[%c0_111, %c0_112] : memref<128x1xf32, #tpu.memory_space<vmem>>, vector<128x1xf32>
    %334 = vector.broadcast %333 : vector<128x1xf32> to vector<128x128xf32>
    %335 = arith.addf %332, %334 : vector<128x128xf32>
    %cst_113 = arith.constant 0.000000e+00 : f32
    %336 = vector.broadcast %cst_113 : f32 to vector<128x128xf32>
    %337 = arith.cmpf ogt, %335, %336 : vector<128x128xf32>
    %cst_114 = arith.constant 0.00999999977 : f32
    %338 = vector.broadcast %cst_114 : f32 to vector<128x128xf32>
    %339 = arith.mulf %338, %335 : vector<128x128xf32>
    %340 = arith.select %337, %335, %339 : vector<128x128xi1>, vector<128x128xf32>
    %c0_115 = arith.constant 0 : index
    %c0_116 = arith.constant 0 : index
    %341 = vector.load %arg12[%c0_115, %c0_116] : memref<5x128xf32, #tpu.memory_space<vmem>>, vector<5x128xf32>
    %cst_117 = arith.constant dense<0.000000e+00> : vector<5x128xf32>
    %342 = tpu.matmul %341, %340, %cst_117 {dimension_numbers = #tpu.dot_dimension_numbers<[1], [0], [0], [1], [0, 0, 1, 1], [], []>} : vector<5x128xf32>, vector<128x128xf32>, vector<5x128xf32> -> vector<5x128xf32>
    %c0_118 = arith.constant 0 : index
    %c0_119 = arith.constant 0 : index
    %343 = vector.load %arg13[%c0_118, %c0_119] : memref<5x1xf32, #tpu.memory_space<vmem>>, vector<5x1xf32>
    %344 = vector.broadcast %343 : vector<5x1xf32> to vector<5x128xf32>
    %345 = arith.addf %342, %344 : vector<5x128xf32>
    %cst_120 = arith.constant dense<0xFF800000> : vector<128xf32>
    %346 = vector.multi_reduction <maximumf>, %345, %cst_120 [0] : vector<5x128xf32> to vector<128xf32>
    %347 = vector.shape_cast %346 : vector<128xf32> to vector<1x128xf32>
    %348 = vector.broadcast %347 : vector<1x128xf32> to vector<5x128xf32>
    %349 = arith.subf %345, %348 : vector<5x128xf32>
    %350 = math.exp %349 : vector<5x128xf32>
    %cst_121 = arith.constant dense<0.000000e+00> : vector<128xf32>
    %351 = vector.multi_reduction <add>, %350, %cst_121 [0] : vector<5x128xf32> to vector<128xf32>
    %352 = vector.shape_cast %351 : vector<128xf32> to vector<1x128xf32>
    %353 = vector.broadcast %352 : vector<1x128xf32> to vector<5x128xf32>
    %354 = arith.divf %350, %353 : vector<5x128xf32>
    %c0_122 = arith.constant 0 : index
    %c0_123 = arith.constant 0 : index
    %355 = vector.load %arg14[%c0_122, %c0_123] : memref<5x128xf32, #tpu.memory_space<vmem>>, vector<5x128xf32>
    tpu.vector_store %arg14[%c0_122, %c0_123], %354 {strides = array<i32>} : memref<5x128xf32, #tpu.memory_space<vmem>>, vector<5x128xf32>,
    return
  }
  func.func @transform_0(%arg0: i32) -> (i32, i32) {
    %c0_i32 = arith.constant 0 : i32
    %c0_i32_0 = arith.constant 0 : i32
    return %c0_i32, %arg0 : i32, i32
  }
  func.func @transform_1(%arg0: i32) -> (i32, i32) {
    %c0_i32 = arith.constant 0 : i32
    %c0_i32_0 = arith.constant 0 : i32
    %c0_i32_1 = arith.constant 0 : i32
    return %c0_i32, %c0_i32_0 : i32, i32
  }
  func.func @transform_2(%arg0: i32) -> (i32, i32) {
    %c0_i32 = arith.constant 0 : i32
    %c0_i32_0 = arith.constant 0 : i32
    %c0_i32_1 = arith.constant 0 : i32
    return %c0_i32, %c0_i32_0 : i32, i32
  }
  func.func @transform_3(%arg0: i32) -> (i32, i32) {
    %c0_i32 = arith.constant 0 : i32
    %c0_i32_0 = arith.constant 0 : i32
    %c0_i32_1 = arith.constant 0 : i32
    return %c0_i32, %c0_i32_0 : i32, i32
  }
  func.func @transform_4(%arg0: i32) -> (i32, i32) {
    %c0_i32 = arith.constant 0 : i32
    %c0_i32_0 = arith.constant 0 : i32
    %c0_i32_1 = arith.constant 0 : i32
    return %c0_i32, %c0_i32_0 : i32, i32
  }
  func.func @transform_5(%arg0: i32) -> (i32, i32) {
    %c0_i32 = arith.constant 0 : i32
    %c0_i32_0 = arith.constant 0 : i32
    %c0_i32_1 = arith.constant 0 : i32
    return %c0_i32, %c0_i32_0 : i32, i32
  }
  func.func @transform_6(%arg0: i32) -> (i32, i32) {
    %c0_i32 = arith.constant 0 : i32
    %c0_i32_0 = arith.constant 0 : i32
    %c0_i32_1 = arith.constant 0 : i32
    return %c0_i32, %c0_i32_0 : i32, i32
  }
  func.func @transform_7(%arg0: i32) -> (i32, i32) {
    %c0_i32 = arith.constant 0 : i32
    %c0_i32_0 = arith.constant 0 : i32
    %c0_i32_1 = arith.constant 0 : i32
    return %c0_i32, %c0_i32_0 : i32, i32
  }
  func.func @transform_8(%arg0: i32) -> (i32, i32) {
    %c0_i32 = arith.constant 0 : i32
    %c0_i32_0 = arith.constant 0 : i32
    %c0_i32_1 = arith.constant 0 : i32
    return %c0_i32, %c0_i32_0 : i32, i32
  }
  func.func @transform_9(%arg0: i32) -> (i32, i32) {
    %c0_i32 = arith.constant 0 : i32
    %c0_i32_0 = arith.constant 0 : i32
    %c0_i32_1 = arith.constant 0 : i32
    return %c0_i32, %c0_i32_0 : i32, i32
  }
  func.func @transform_10(%arg0: i32) -> (i32, i32) {
    %c0_i32 = arith.constant 0 : i32
    %c0_i32_0 = arith.constant 0 : i32
    %c0_i32_1 = arith.constant 0 : i32
    return %c0_i32, %c0_i32_0 : i32, i32
  }
  func.func @transform_11(%arg0: i32) -> (i32, i32) {
    %c0_i32 = arith.constant 0 : i32
    %c0_i32_0 = arith.constant 0 : i32
    %c0_i32_1 = arith.constant 0 : i32
    return %c0_i32, %c0_i32_0 : i32, i32
  }
  func.func @transform_12(%arg0: i32) -> (i32, i32) {
    %c0_i32 = arith.constant 0 : i32
    %c0_i32_0 = arith.constant 0 : i32
    %c0_i32_1 = arith.constant 0 : i32
    return %c0_i32, %c0_i32_0 : i32, i32
  }
  func.func @transform_13(%arg0: i32) -> (i32, i32) {
    %c0_i32 = arith.constant 0 : i32
    %c0_i32_0 = arith.constant 0 : i32
    return %c0_i32, %arg0 : i32, i32
  }
}

</mosaic_0001>

<bundles_post_ra>
// kernel: tile.23
= control target key start
LH: loop header
LB: loop body
LE: loop exit
PB: predicated region body
PF: predicated region fallthrough
CT: control target
= control target key end

     0   :  { %s22_s0 = inlined_call_operand.vmem [shape: f32[16], index: 0, kind: input, shape index: {}]   ;;  %s23_s1 = inlined_call_operand.vmem [shape: f32[8,16], index: 1, kind: output, shape index: {}]  }
   0x1   :  { %v4_v0 = vld [vmem:[%s22_s0] ss:$0 sm:$0xff] }
   0x2   :  { %5 = vst [vmem:[%s23_s1] sm:$0xff] %v4_v0 }

// kernel: tile.0
= control target key start
LH: loop header
LB: loop body
LE: loop exit
PB: predicated region body
PF: predicated region fallthrough
CT: control target
= control target key end

     0   :  { %vm3_vm0 = vcmask 7168   ;;  %s264_s8 = smov 125   ;;  %s265_s17 = smov 126   ;;  %s547_s0 = inlined_call_operand.vmem [shape: f32[8,16], index: 0, kind: input, shape index: {}]   ;;  %s548_s1 = inlined_call_operand.vmem [shape: f32[128,1], index: 1, kind: output, shape index: {}]  }
   0x1   :  { %v8_v0 = vld [vmem:[%s547_s0] sm:$0xff]   ;;  %s263_s0 = smov 127   ;;  %s266_s18 = smov 124  }
   0x2   :  { %9 = vrot.lane.b32.xlu0 %v8_v0, %s263_s0  ;;  %33 = vrot.lane.b32.xlu1 %v8_v0, %s264_s8  ;;  %4 = vst.msk [vmem:[%s548_s1] ss:$16 sm:$0x3] %vm3_vm0, %v8_v0   ;;  %5 = vst.msk [vmem:[%s548_s1] ss:$16 sm:$0xc] %vm3_vm0, %v8_v0  }
   0x3   :  { %6 = vst.msk [vmem:[%s548_s1] ss:$16 sm:$0x30] %vm3_vm0, %v8_v0   ;;  %7 = vst.msk [vmem:[%s548_s1] ss:$16 sm:$0xc0] %vm3_vm0, %v8_v0  }
   0x4   :  { %s267_s19 = smov 123   ;;  %s268_s20 = smov 122  }
   0x5   :  { %s269_s21 = smov 121   ;;  %s270_s22 = smov 120  }
   0x6   :  { %21 = vrot.lane.b32.xlu0 %v8_v0, %s265_s17  ;;  %45 = vrot.lane.b32.xlu1 %v8_v0, %s266_s18  ;;  %s271_s23 = smov 119   ;;  %s272_s24 = smov 118  }
   0x7   :  { %s273_s25 = smov 117   ;;  %s274_s26 = smov 116  }
   0x8   :  { %s275_s27 = smov 115   ;;  %s276_s28 = smov 114  }
   0x9   :  { %s277_s29 = smov 113  }
   0xa   :  { %57 = vrot.lane.b32.xlu0 %v8_v0, %s267_s19  ;;  %69 = vrot.lane.b32.xlu1 %v8_v0, %s268_s20 }
   0xe   :  { %81 = vrot.lane.b32.xlu0 %v8_v0, %s269_s21  ;;  %93 = vrot.lane.b32.xlu1 %v8_v0, %s270_s22 }
  0x12   :  { %105 = vrot.lane.b32.xlu0 %v8_v0, %s271_s23  ;;  %117 = vrot.lane.b32.xlu1 %v8_v0, %s272_s24 }
  0x16   :  { %129 = vrot.lane.b32.xlu0 %v8_v0, %s273_s25  ;;  %141 = vrot.lane.b32.xlu1 %v8_v0, %s274_s26 }
  0x1a   :  { %153 = vrot.lane.b32.xlu0 %v8_v0, %s275_s27  ;;  %165 = vrot.lane.b32.xlu1 %v8_v0, %s276_s28 }
  0x1e   :  { %177 = vrot.lane.b32.xlu0 %v8_v0, %s277_s29 }
  0x74   :  { %v10_v1 = vpop.permute.xlu0 %9   ;;  %v34_v2 = vpop.permute.xlu1 %33  }
  0x75   :  { %188 = vst.msk [vmem:[%s548_s1 + $0x1] ss:$16 sm:$0x3] %vm3_vm0, %v10_v1   ;;  %189 = vst.msk [vmem:[%s548_s1 + $0x1] ss:$16 sm:$0xc] %vm3_vm0, %v10_v1  }
  0x76   :  { %190 = vst.msk [vmem:[%s548_s1 + $0x1] ss:$16 sm:$0x30] %vm3_vm0, %v10_v1   ;;  %191 = vst.msk [vmem:[%s548_s1 + $0x1] ss:$16 sm:$0xc0] %vm3_vm0, %v10_v1  }
  0x77   :  { %196 = vst.msk [vmem:[%s548_s1 + $0x3] ss:$16 sm:$0x3] %vm3_vm0, %v34_v2   ;;  %197 = vst.msk [vmem:[%s548_s1 + $0x3] ss:$16 sm:$0xc] %vm3_vm0, %v34_v2  }
  0x78   :  { %198 = vst.msk [vmem:[%s548_s1 + $0x3] ss:$16 sm:$0x30] %vm3_vm0, %v34_v2   ;;  %199 = vst.msk [vmem:[%s548_s1 + $0x3] ss:$16 sm:$0xc0] %vm3_vm0, %v34_v2   ;;  %v22_v3 = vpop.permute.xlu0 %21   ;;  %v46_v4 = vpop.permute.xlu1 %45  }
  0x79   :  { %192 = vst.msk [vmem:[%s548_s1 + $0x2] ss:$16 sm:$0x3] %vm3_vm0, %v22_v3   ;;  %193 = vst.msk [vmem:[%s548_s1 + $0x2] ss:$16 sm:$0xc] %vm3_vm0, %v22_v3  }
  0x7a   :  { %194 = vst.msk [vmem:[%s548_s1 + $0x2] ss:$16 sm:$0x30] %vm3_vm0, %v22_v3   ;;  %195 = vst.msk [vmem:[%s548_s1 + $0x2] ss:$16 sm:$0xc0] %vm3_vm0, %v22_v3  }
  0x7b   :  { %200 = vst.msk [vmem:[%s548_s1 + $0x4] ss:$16 sm:$0x3] %vm3_vm0, %v46_v4   ;;  %201 = vst.msk [vmem:[%s548_s1 + $0x4] ss:$16 sm:$0xc] %vm3_vm0, %v46_v4  }
  0x7c   :  { %202 = vst.msk [vmem:[%s548_s1 + $0x4] ss:$16 sm:$0x30] %vm3_vm0, %v46_v4   ;;  %203 = vst.msk [vmem:[%s548_s1 + $0x4] ss:$16 sm:$0xc0] %vm3_vm0, %v46_v4   ;;  %v58_v5 = vpop.permute.xlu0 %57   ;;  %v70_v6 = vpop.permute.xlu1 %69  }
  0x7d   :  { %204 = vst.msk [vmem:[%s548_s1 + $0x5] ss:$16 sm:$0x3] %vm3_vm0, %v58_v5   ;;  %205 = vst.msk [vmem:[%s548_s1 + $0x5] ss:$16 sm:$0xc] %vm3_vm0, %v58_v5  }
  0x7e   :  { %206 = vst.msk [vmem:[%s548_s1 + $0x5] ss:$16 sm:$0x30] %vm3_vm0, %v58_v5   ;;  %207 = vst.msk [vmem:[%s548_s1 + $0x5] ss:$16 sm:$0xc0] %vm3_vm0, %v58_v5  }
  0x7f   :  { %208 = vst.msk [vmem:[%s548_s1 + $0x6] ss:$16 sm:$0x3] %vm3_vm0, %v70_v6   ;;  %209 = vst.msk [vmem:[%s548_s1 + $0x6] ss:$16 sm:$0xc] %vm3_vm0, %v70_v6  }
  0x80   :  { %210 = vst.msk [vmem:[%s548_s1 + $0x6] ss:$16 sm:$0x30] %vm3_vm0, %v70_v6   ;;  %211 = vst.msk [vmem:[%s548_s1 + $0x6] ss:$16 sm:$0xc0] %vm3_vm0, %v70_v6   ;;  %v82_v7 = vpop.permute.xlu0 %81   ;;  %v94_v8 = vpop.permute.xlu1 %93  }
  0x81   :  { %212 = vst.msk [vmem:[%s548_s1 + $0x7] ss:$16 sm:$0x3] %vm3_vm0, %v82_v7   ;;  %213 = vst.msk [vmem:[%s548_s1 + $0x7] ss:$16 sm:$0xc] %vm3_vm0, %v82_v7  }
  0x82   :  { %214 = vst.msk [vmem:[%s548_s1 + $0x7] ss:$16 sm:$0x30] %vm3_vm0, %v82_v7   ;;  %215 = vst.msk [vmem:[%s548_s1 + $0x7] ss:$16 sm:$0xc0] %vm3_vm0, %v82_v7  }
  0x83   :  { %216 = vst.msk [vmem:[%s548_s1 + $0x8] ss:$16 sm:$0x3] %vm3_vm0, %v94_v8   ;;  %217 = vst.msk [vmem:[%s548_s1 + $0x8] ss:$16 sm:$0xc] %vm3_vm0, %v94_v8  }
  0x84   :  { %218 = vst.msk [vmem:[%s548_s1 + $0x8] ss:$16 sm:$0x30] %vm3_vm0, %v94_v8   ;;  %219 = vst.msk [vmem:[%s548_s1 + $0x8] ss:$16 sm:$0xc0] %vm3_vm0, %v94_v8   ;;  %v106_v9 = vpop.permute.xlu0 %105   ;;  %v118_v10 = vpop.permute.xlu1 %117  }
  0x85   :  { %220 = vst.msk [vmem:[%s548_s1 + $0x9] ss:$16 sm:$0x3] %vm3_vm0, %v106_v9   ;;  %221 = vst.msk [vmem:[%s548_s1 + $0x9] ss:$16 sm:$0xc] %vm3_vm0, %v106_v9  }
  0x86   :  { %222 = vst.msk [vmem:[%s548_s1 + $0x9] ss:$16 sm:$0x30] %vm3_vm0, %v106_v9   ;;  %223 = vst.msk [vmem:[%s548_s1 + $0x9] ss:$16 sm:$0xc0] %vm3_vm0, %v106_v9  }
  0x87   :  { %224 = vst.msk [vmem:[%s548_s1 + $0xa] ss:$16 sm:$0x3] %vm3_vm0, %v118_v10   ;;  %225 = vst.msk [vmem:[%s548_s1 + $0xa] ss:$16 sm:$0xc] %vm3_vm0, %v118_v10  }
  0x88   :  { %226 = vst.msk [vmem:[%s548_s1 + $0xa] ss:$16 sm:$0x30] %vm3_vm0, %v118_v10   ;;  %227 = vst.msk [vmem:[%s548_s1 + $0xa] ss:$16 sm:$0xc0] %vm3_vm0, %v118_v10   ;;  %v130_v11 = vpop.permute.xlu0 %129   ;;  %v142_v12 = vpop.permute.xlu1 %141  }
  0x89   :  { %228 = vst.msk [vmem:[%s548_s1 + $0xb] ss:$16 sm:$0x3] %vm3_vm0, %v130_v11   ;;  %229 = vst.msk [vmem:[%s548_s1 + $0xb] ss:$16 sm:$0xc] %vm3_vm0, %v130_v11  }
  0x8a   :  { %230 = vst.msk [vmem:[%s548_s1 + $0xb] ss:$16 sm:$0x30] %vm3_vm0, %v130_v11   ;;  %231 = vst.msk [vmem:[%s548_s1 + $0xb] ss:$16 sm:$0xc0] %vm3_vm0, %v130_v11  }
  0x8b   :  { %232 = vst.msk [vmem:[%s548_s1 + $0xc] ss:$16 sm:$0x3] %vm3_vm0, %v142_v12   ;;  %233 = vst.msk [vmem:[%s548_s1 + $0xc] ss:$16 sm:$0xc] %vm3_vm0, %v142_v12  }
  0x8c   :  { %234 = vst.msk [vmem:[%s548_s1 + $0xc] ss:$16 sm:$0x30] %vm3_vm0, %v142_v12   ;;  %235 = vst.msk [vmem:[%s548_s1 + $0xc] ss:$16 sm:$0xc0] %vm3_vm0, %v142_v12   ;;  %v154_v13 = vpop.permute.xlu0 %153   ;;  %v166_v14 = vpop.permute.xlu1 %165  }
  0x8d   :  { %236 = vst.msk [vmem:[%s548_s1 + $0xd] ss:$16 sm:$0x3] %vm3_vm0, %v154_v13   ;;  %237 = vst.msk [vmem:[%s548_s1 + $0xd] ss:$16 sm:$0xc] %vm3_vm0, %v154_v13  }
  0x8e   :  { %238 = vst.msk [vmem:[%s548_s1 + $0xd] ss:$16 sm:$0x30] %vm3_vm0, %v154_v13   ;;  %239 = vst.msk [vmem:[%s548_s1 + $0xd] ss:$16 sm:$0xc0] %vm3_vm0, %v154_v13  }
  0x8f   :  { %240 = vst.msk [vmem:[%s548_s1 + $0xe] ss:$16 sm:$0x3] %vm3_vm0, %v166_v14   ;;  %241 = vst.msk [vmem:[%s548_s1 + $0xe] ss:$16 sm:$0xc] %vm3_vm0, %v166_v14  }
  0x90   :  { %242 = vst.msk [vmem:[%s548_s1 + $0xe] ss:$16 sm:$0x30] %vm3_vm0, %v166_v14   ;;  %243 = vst.msk [vmem:[%s548_s1 + $0xe] ss:$16 sm:$0xc0] %vm3_vm0, %v166_v14   ;;  %v178_v15 = vpop.permute.xlu0 %177  }
  0x91   :  { %244 = vst.msk [vmem:[%s548_s1 + $0xf] ss:$16 sm:$0x3] %vm3_vm0, %v178_v15   ;;  %245 = vst.msk [vmem:[%s548_s1 + $0xf] ss:$16 sm:$0xc] %vm3_vm0, %v178_v15  }
  0x92   :  { %246 = vst.msk [vmem:[%s548_s1 + $0xf] ss:$16 sm:$0x30] %vm3_vm0, %v178_v15   ;;  %247 = vst.msk [vmem:[%s548_s1 + $0xf] ss:$16 sm:$0xc0] %vm3_vm0, %v178_v15  }

// kernel: tile.38
= control target key start
LH: loop header
LB: loop body
LE: loop exit
PB: predicated region body
PF: predicated region fallthrough
CT: control target
= control target key end

     0   :  { %s22_s0 = inlined_call_operand.vmem [shape: f32[16], index: 0, kind: input, shape index: {}]   ;;  %s23_s1 = inlined_call_operand.vmem [shape: f32[4,16], index: 1, kind: output, shape index: {}]  }
   0x1   :  { %v4_v0 = vld [vmem:[%s22_s0] ss:$0 sm:$0xff] }
   0x2   :  { %5 = vst [vmem:[%s23_s1] sm:$0xf] %v4_v0 }

// kernel: tile.3
= control target key start
LH: loop header
LB: loop body
LE: loop exit
PB: predicated region body
PF: predicated region fallthrough
CT: control target
= control target key end

     0   :  { %s176_s8 = smov 125   ;;  %s177_s9 = smov 126   ;;  %vm7_vm0 = vcmask 7168   ;;  %s331_s0 = inlined_call_operand.vmem [shape: f32[4,16], index: 0, kind: input, shape index: {}]   ;;  %s332_s1 = inlined_call_operand.vmem [shape: f32[64,1], index: 1, kind: output, shape index: {}]  }
   0x1   :  { %v4_v0 = vld [vmem:[%s331_s0] sm:$0xf]  ;;  %s175_s0 = smov 127   ;;  %s178_s10 = smov 124  }
   0x2   :  { %5 = vst [vmem:[#allocation0] sm:$0xf] %v4_v0  ;;  %s179_s11 = smov 123   ;;  %s180_s12 = smov 122  }
   0x3   :  { %s181_s13 = smov 121   ;;  %s182_s14 = smov 120  }
   0x4   :  { %s183_s19 = smov 119   ;;  %s184_s20 = smov 118  }
   0x5   :  { %s185_s21 = smov 117   ;;  %s186_s22 = smov 116  }
   0x6   :  { %s187_s23 = smov 115   ;;  %s188_s24 = smov 114  }
   0x7   :  { %s189_s25 = smov 113  }
   0x9   :  { %v10_v1 = vld [vmem:[#allocation0] sm:$0xf]  }
   0xa   :  { %v26_v2 = vld [vmem:[#allocation0] sm:$0xf]   ;;  %11 = vrot.lane.b32.xlu0 %v10_v1, %s175_s0 }
   0xb   :  { %27 = vrot.lane.b32.xlu1 %v26_v2, %s176_s8  ;;  %v18_v3 = vld [vmem:[#allocation0] sm:$0xf]  }
   0xc   :  { %v34_v4 = vld [vmem:[#allocation0] sm:$0xf]  }
   0xd   :  { %v42_v5 = vld [vmem:[#allocation0] sm:$0xf]  }
   0xe   :  { %19 = vrot.lane.b32.xlu0 %v18_v3, %s177_s9  ;;  %v50_v6 = vld [vmem:[#allocation0] sm:$0xf]  }
   0xf   :  { %35 = vrot.lane.b32.xlu1 %v34_v4, %s178_s10  ;;  %v58_v7 = vld [vmem:[#allocation0] sm:$0xf]  }
  0x10   :  { %v66_v8 = vld [vmem:[#allocation0] sm:$0xf]  }
  0x11   :  { %v74_v9 = vld [vmem:[#allocation0] sm:$0xf]  }
  0x12   :  { %43 = vrot.lane.b32.xlu0 %v42_v5, %s179_s11  ;;  %v82_v10 = vld [vmem:[#allocation0] sm:$0xf]  }
  0x13   :  { %51 = vrot.lane.b32.xlu1 %v50_v6, %s180_s12  ;;  %v6_v11 = vld [vmem:[#allocation0] sm:$0xf]  }
  0x14   :  { %8 = vst.msk [vmem:[%s332_s1] ss:$16 sm:$0x3] %vm7_vm0, %v6_v11   ;;  %9 = vst.msk [vmem:[%s332_s1] ss:$16 sm:$0xc] %vm7_vm0, %v6_v11  }
  0x15   :  { %v90_v12 = vld [vmem:[#allocation0] sm:$0xf]  }
  0x16   :  { %59 = vrot.lane.b32.xlu0 %v58_v7, %s181_s13  ;;  %v98_v13 = vld [vmem:[#allocation0] sm:$0xf]  }
  0x17   :  { %67 = vrot.lane.b32.xlu1 %v66_v8, %s182_s14  ;;  %v106_v14 = vld [vmem:[#allocation0] sm:$0xf]  }
  0x18   :  { %v114_v15 = vld [vmem:[#allocation0] sm:$0xf]  }
  0x19   :  { %v122_v16 = vld [vmem:[#allocation0] sm:$0xf]  }
  0x1a   :  { %75 = vrot.lane.b32.xlu0 %v74_v9, %s183_s19 }
  0x1b   :  { %83 = vrot.lane.b32.xlu1 %v82_v10, %s184_s20 }
  0x1e   :  { %91 = vrot.lane.b32.xlu0 %v90_v12, %s185_s21 }
  0x1f   :  { %99 = vrot.lane.b32.xlu1 %v98_v13, %s186_s22 }
  0x22   :  { %107 = vrot.lane.b32.xlu0 %v106_v14, %s187_s23 }
  0x23   :  { %115 = vrot.lane.b32.xlu1 %v114_v15, %s188_s24 }
  0x26   :  { %123 = vrot.lane.b32.xlu0 %v122_v16, %s189_s25 }
  0x7c   :  { %v12_v17 = vpop.permute.xlu0 %11  }
  0x7d   :  { %v28_v18 = vpop.permute.xlu1 %27   ;;  %130 = vst.msk [vmem:[%s332_s1 + $0x1] ss:$16 sm:$0x3] %vm7_vm0, %v12_v17   ;;  %131 = vst.msk [vmem:[%s332_s1 + $0x1] ss:$16 sm:$0xc] %vm7_vm0, %v12_v17  }
  0x7e   :  { %134 = vst.msk [vmem:[%s332_s1 + $0x3] ss:$16 sm:$0x3] %vm7_vm0, %v28_v18   ;;  %135 = vst.msk [vmem:[%s332_s1 + $0x3] ss:$16 sm:$0xc] %vm7_vm0, %v28_v18  }
  0x80   :  { %v20_v19 = vpop.permute.xlu0 %19  }
  0x81   :  { %v36_v20 = vpop.permute.xlu1 %35   ;;  %132 = vst.msk [vmem:[%s332_s1 + $0x2] ss:$16 sm:$0x3] %vm7_vm0, %v20_v19   ;;  %133 = vst.msk [vmem:[%s332_s1 + $0x2] ss:$16 sm:$0xc] %vm7_vm0, %v20_v19  }
  0x82   :  { %136 = vst.msk [vmem:[%s332_s1 + $0x4] ss:$16 sm:$0x3] %vm7_vm0, %v36_v20   ;;  %137 = vst.msk [vmem:[%s332_s1 + $0x4] ss:$16 sm:$0xc] %vm7_vm0, %v36_v20  }
  0x84   :  { %v44_v21 = vpop.permute.xlu0 %43  }
  0x85   :  { %v52_v22 = vpop.permute.xlu1 %51   ;;  %138 = vst.msk [vmem:[%s332_s1 + $0x5] ss:$16 sm:$0x3] %vm7_vm0, %v44_v21   ;;  %139 = vst.msk [vmem:[%s332_s1 + $0x5] ss:$16 sm:$0xc] %vm7_vm0, %v44_v21  }
  0x86   :  { %140 = vst.msk [vmem:[%s332_s1 + $0x6] ss:$16 sm:$0x3] %vm7_vm0, %v52_v22   ;;  %141 = vst.msk [vmem:[%s332_s1 + $0x6] ss:$16 sm:$0xc] %vm7_vm0, %v52_v22  }
  0x88   :  { %v60_v23 = vpop.permute.xlu0 %59  }
  0x89   :  { %v68_v24 = vpop.permute.xlu1 %67   ;;  %142 = vst.msk [vmem:[%s332_s1 + $0x7] ss:$16 sm:$0x3] %vm7_vm0, %v60_v23   ;;  %143 = vst.msk [vmem:[%s332_s1 + $0x7] ss:$16 sm:$0xc] %vm7_vm0, %v60_v23  }
  0x8a   :  { %144 = vst.msk [vmem:[%s332_s1 + $0x8] ss:$16 sm:$0x3] %vm7_vm0, %v68_v24   ;;  %145 = vst.msk [vmem:[%s332_s1 + $0x8] ss:$16 sm:$0xc] %vm7_vm0, %v68_v24  }
  0x8c   :  { %v76_v25 = vpop.permute.xlu0 %75  }
  0x8d   :  { %v84_v26 = vpop.permute.xlu1 %83   ;;  %146 = vst.msk [vmem:[%s332_s1 + $0x9] ss:$16 sm:$0x3] %vm7_vm0, %v76_v25   ;;  %147 = vst.msk [vmem:[%s332_s1 + $0x9] ss:$16 sm:$0xc] %vm7_vm0, %v76_v25  }
  0x8e   :  { %148 = vst.msk [vmem:[%s332_s1 + $0xa] ss:$16 sm:$0x3] %vm7_vm0, %v84_v26   ;;  %149 = vst.msk [vmem:[%s332_s1 + $0xa] ss:$16 sm:$0xc] %vm7_vm0, %v84_v26  }
  0x90   :  { %v92_v27 = vpop.permute.xlu0 %91  }
  0x91   :  { %v100_v28 = vpop.permute.xlu1 %99   ;;  %150 = vst.msk [vmem:[%s332_s1 + $0xb] ss:$16 sm:$0x3] %vm7_vm0, %v92_v27   ;;  %151 = vst.msk [vmem:[%s332_s1 + $0xb] ss:$16 sm:$0xc] %vm7_vm0, %v92_v27  }
  0x92   :  { %152 = vst.msk [vmem:[%s332_s1 + $0xc] ss:$16 sm:$0x3] %vm7_vm0, %v100_v28   ;;  %153 = vst.msk [vmem:[%s332_s1 + $0xc] ss:$16 sm:$0xc] %vm7_vm0, %v100_v28  }
  0x94   :  { %v108_v29 = vpop.permute.xlu0 %107  }
  0x95   :  { %v116_v30 = vpop.permute.xlu1 %115   ;;  %154 = vst.msk [vmem:[%s332_s1 + $0xd] ss:$16 sm:$0x3] %vm7_vm0, %v108_v29   ;;  %155 = vst.msk [vmem:[%s332_s1 + $0xd] ss:$16 sm:$0xc] %vm7_vm0, %v108_v29  }
  0x96   :  { %156 = vst.msk [vmem:[%s332_s1 + $0xe] ss:$16 sm:$0x3] %vm7_vm0, %v116_v30   ;;  %157 = vst.msk [vmem:[%s332_s1 + $0xe] ss:$16 sm:$0xc] %vm7_vm0, %v116_v30  }
  0x98   :  { %v124_v31 = vpop.permute.xlu0 %123  }
  0x99   :  { %158 = vst.msk [vmem:[%s332_s1 + $0xf] ss:$16 sm:$0x3] %vm7_vm0, %v124_v31   ;;  %159 = vst.msk [vmem:[%s332_s1 + $0xf] ss:$16 sm:$0xc] %vm7_vm0, %v124_v31  }

// kernel: net_forward.1
= control target key start
LH: loop header
LB: loop body
LE: loop exit
PB: predicated region body
PF: predicated region fallthrough
CT: control target
= control target key end

     0   :  { %v10467_v0 = vmov 0   ;;  %vm206_vm0 = vcmask 1045504   ;;  %vm109_vm1 = vcmask 179200   ;;  %vm2879_vm3 = vcmask 523264   ;;  %s16401_s2 = inlined_call_operand.vmem [shape: f32[128,1], index: 2, kind: input, shape index: {}]   ;;  %s16402_s0 = inlined_call_operand.vmem [shape: f32[136,128], index: 0, kind: input, shape index: {}]   ;;  %s16403_s1 = inlined_call_operand.vmem [shape: f32[256,22], index: 1, kind: input, shape index: {}]   ;;  %s16404_s4 = inlined_call_operand.vmem [shape: f32[128,1], index: 4, kind: input, shape index: {}]   ;;  %s16405_s6 = inlined_call_operand.vmem [shape: f32[128,1], index: 6, kind: input, shape index: {}]   ;;  %s16406_s8 = inlined_call_operand.vmem [shape: f32[64,1], index: 8, kind: input, shape index: {}]   ;;  %s16407_s10 = inlined_call_operand.vmem [shape: f32[128,1], index: 10, kind: input, shape index: {}]   ;;  %s16408_s12 = inlined_call_operand.vmem [shape: f32[5,1], index: 12, kind: input, shape index: {}]   ;;  %s16409_s3 = inlined_call_operand.vmem [shape: f32[128,192], index: 3, kind: input, shape index: {}]   ;;  %s16410_s5 = inlined_call_operand.vmem [shape: f32[128,192], index: 5, kind: input, shape index: {}]   ;;  %s16411_s7 = inlined_call_operand.vmem [shape: f32[128,192], index: 7, kind: input, shape index: {}]   ;;  %s16412_s9 = inlined_call_operand.vmem [shape: f32[128,400], index: 9, kind: input, shape index: {}]   ;;  %s16413_s11 = inlined_call_operand.vmem [shape: f32[5,128], index: 11, kind: input, shape index: {}]   ;;  %s16414_s13 = inlined_call_operand.vmem [shape: f32[5,128], index: 13, kind: output, shape index: {}]  }
   0x1   :  { %10361 = vset.pattern.permute.xlu1 %v10467_v0  ;;  %10360 = vset.pattern.permute.xlu0 %v10467_v0  ;;  %v95_v1 = vld [vmem:[%s16401_s2 + $0x10] sm:$0xff]  ;;  %v93_v2 = vld [vmem:[%s16401_s2] sm:$0xff]  ;;  %v45_v4 = vld [vmem:[%s16402_s0 + $0x8] sm:$0xff] }
   0x2   :  { %v44_v3 = vld [vmem:[%s16402_s0] sm:$0xff]  ;;  %463 = vperm.xlu1 %10361, %v95_v1   ;;  %453 = vperm.xlu0 %10360, %v93_v2   ;;  %v46_v5 = vld [vmem:[%s16402_s0 + $0x10] sm:$0xff]  ;;  %v47_v6 = vld [vmem:[%s16402_s0 + $0x18] sm:$0xff] }
   0x3   :  { %v9473_v7 = vpack.c.bf16 %v45_v4, %v44_v3  ;;  %v9477_v8 = vpack.c.bf16 %v47_v6, %v46_v5  ;;  %v96_v9 = vld [vmem:[%s16401_s2 + $0x18] sm:$0xff]  ;;  %v94_v10 = vld [vmem:[%s16401_s2 + $0x8] sm:$0xff]  ;;  %v48_v11 = vld [vmem:[%s16402_s0 + $0x20] sm:$0xff] }
   0x4   :  { %v10571_v12 = vld [vmem:[%s16403_s1] sm:$0xff]  ;;  %v98_v13 = vld [vmem:[%s16401_s2 + $0x28] sm:$0xff]  ;;  %v10595_v16 = vld [vmem:[%s16403_s1 + $0x10] sm:$0xff] }
   0x5   :  { %9474 = vmatprep.subr.bf16.mxu0 %v9473_v7  ;;  %9478 = vmatprep.subr.bf16.mxu1 %v9477_v8  ;;  %v97_v14 = vld [vmem:[%s16401_s2 + $0x20] sm:$0xff]  ;;  %v10588_v15 = vld [vmem:[%s16403_s1 + $0x8] sm:$0xff]  ;;  %v100_v19 = vld [vmem:[%s16401_s2 + $0x38] sm:$0xff] }
   0x6   :  { %9476 = vmatpush3.bf16.msra.mxu0 %v9473_v7  ;;  %9480 = vmatpush3.bf16.msra.mxu1 %v9477_v8  ;;  %v49_v17 = vld [vmem:[%s16402_s0 + $0x28] sm:$0xff]  ;;  %v99_v20 = vld [vmem:[%s16401_s2 + $0x30] sm:$0xff]  ;;  %v10617_v21 = vld [vmem:[%s16403_s1 + $0x18] sm:$0xff] }
   0x7   :  { %468 = vperm.xlu1 %10361, %v96_v9   ;;  %458 = vperm.xlu0 %10360, %v94_v10   ;;  %v9481_v18 = vpack.c.bf16 %v49_v17, %v48_v11  ;;  %v10622_v22 = vld [vmem:[%s16403_s1 + $0x20] sm:$0xff]  ;;  %v102_v23 = vld [vmem:[%s16401_s2 + $0x48] sm:$0xff]  ;;  %v10646_v26 = vld [vmem:[%s16403_s1 + $0x30] sm:$0xff] }
   0x8   :  { %9010 = vmatprep.subr.msk.mxu0 %vm206_vm0, %v46_v5  ;;  %9064 = vmatprep.subr.msk.mxu1 %vm206_vm0, %v48_v11  ;;  %v101_v24 = vld [vmem:[%s16401_s2 + $0x40] sm:$0xff]  ;;  %v10641_v25 = vld [vmem:[%s16403_s1 + $0x28] sm:$0xff]  ;;  %v104_v27 = vld [vmem:[%s16401_s2 + $0x58] sm:$0xff] }
   0x9   :  { %9012 = vmatprep.mubr.msk.f32.mxu0 %vm109_vm1, %v10571_v12  ;;  %9066 = vmatprep.mubr.msk.f32.mxu1 %vm109_vm1, %v10571_v12  ;;  %v103_v28 = vld [vmem:[%s16401_s2 + $0x50] sm:$0xff]  ;;  %v10665_v29 = vld [vmem:[%s16403_s1 + $0x38] sm:$0xff]  ;;  %v10673_v31 = vld [vmem:[%s16403_s1 + $0x40] sm:$0xff] }
   0xa   :  { %9011 = vmatpush3.msk.msra.mxu0 %vm206_vm0, %v46_v5  ;;  %9065 = vmatpush3.msk.msra.mxu1 %vm206_vm0, %v48_v11  ;;  %v50_v30 = vld [vmem:[%s16402_s0 + $0x30] sm:$0xff]  ;;  %v51_v32 = vld [vmem:[%s16402_s0 + $0x38] sm:$0xff]  ;;  %v106_v34 = vld [vmem:[%s16401_s2 + $0x68] sm:$0xff] }
   0xb   :  { %478 = vperm.xlu1 %10361, %v98_v13   ;;  %473 = vperm.xlu0 %10360, %v97_v14   ;;  %v9485_v33 = vpack.c.bf16 %v51_v32, %v50_v30  ;;  %v105_v35 = vld [vmem:[%s16401_s2 + $0x60] sm:$0xff]  ;;  %v10696_v36 = vld [vmem:[%s16403_s1 + $0x48] sm:$0xff]  ;;  %v10701_v37 = vld [vmem:[%s16403_s1 + $0x50] sm:$0xff] }
   0xc   :  { %9013 = vmatmul.mubr.msk.f32.vlgmr.msra.gmra.mrb[0].mxu0 %vm109_vm1, %v10588_v15  ;;  %9067 = vmatmul.mubr.msk.f32.vlgmr.msra.gmra.mrb[0].mxu1 %vm109_vm1, %v10588_v15  ;;  %v108_v38 = vld [vmem:[%s16401_s2 + $0x78] sm:$0xff]  ;;  %v107_v39 = vld [vmem:[%s16401_s2 + $0x70] sm:$0xff]  ;;  %v10726_v41 = vld [vmem:[%s16403_s1 + $0x60] sm:$0xff] }
   0xd   :  { %9015 = vmatprep.mubr.msk.f32.mxu0 %vm109_vm1, %v10595_v16  ;;  %9069 = vmatprep.mubr.msk.f32.mxu1 %vm109_vm1, %v10595_v16  ;;  %v10721_v40 = vld [vmem:[%s16403_s1 + $0x58] sm:$0xff]  ;;  %v52_v42 = vld [vmem:[%s16402_s0 + $0x40] sm:$0xff]  ;;  %v53_v43 = vld [vmem:[%s16402_s0 + $0x48] sm:$0xff] }
   0xe   :  { %9482 = vmatprep.subr.bf16.mxu0 %v9481_v18  ;;  %9486 = vmatprep.subr.bf16.mxu1 %v9485_v33  ;;  %v10734_v44 = vpack.c.bf16 %v53_v43, %v52_v42  ;;  %v2784_v45 = vld [vmem:[%s16404_s4 + $0x8] sm:$0xff]  ;;  %v2783_v46 = vld [vmem:[%s16404_s4] sm:$0xff]  ;;  %v10758_v48 = vld [vmem:[%s16403_s1 + $0x70] sm:$0xff] }
   0xf   :  { %488 = vperm.xlu1 %10361, %v100_v19   ;;  %483 = vperm.xlu0 %10360, %v99_v20   ;;  %v10753_v47 = vld [vmem:[%s16403_s1 + $0x68] sm:$0xff]  ;;  %v10765_v49 = vld [vmem:[%s16402_s0 + $0x50] sm:$0xff]  ;;  %v2786_v50 = vld [vmem:[%s16404_s4 + $0x18] sm:$0xff] }
  0x10   :  { %9016 = vmatmul.mubr.msk.f32.gmra.mrb[2].mxu0 %vm109_vm1, %v10617_v21  ;;  %9070 = vmatmul.mubr.msk.f32.gmra.mrb[2].mxu1 %vm109_vm1, %v10617_v21  ;;  %v2785_v51 = vld [vmem:[%s16404_s4 + $0x10] sm:$0xff]  ;;  %v55_v52 = vld [vmem:[%s16402_s0 + $0x58] sm:$0xff]  ;;  %v10792_v54 = vld [vmem:[%s16403_s1 + $0x80] sm:$0xff] }
  0x11   :  { %9018 = vmatprep.mubr.msk.f32.mxu0 %vm109_vm1, %v10622_v22  ;;  %9072 = vmatprep.mubr.msk.f32.mxu1 %vm109_vm1, %v10622_v22  ;;  %v10787_v53 = vld [vmem:[%s16403_s1 + $0x78] sm:$0xff]  ;;  %v10796_v55 = vpack.c.bf16 %v55_v52, %v10765_v49  ;;  %v2788_v56 = vld [vmem:[%s16404_s4 + $0x28] sm:$0xff]  ;;  %v2787_v57 = vld [vmem:[%s16404_s4 + $0x20] sm:$0xff] }
  0x12   :  { %9484 = vmatpush3.bf16.msra.mxu0 %v9481_v18  ;;  %9488 = vmatpush3.bf16.msra.mxu1 %v9485_v33  ;;  %v10815_v58 = vld [vmem:[%s16403_s1 + $0x88] sm:$0xff]  ;;  %v10820_v59 = vld [vmem:[%s16403_s1 + $0x90] sm:$0xff]  ;;  %v2790_v60 = vld [vmem:[%s16404_s4 + $0x38] sm:$0xff] }
  0x13   :  { %498 = vperm.xlu1 %10361, %v102_v23   ;;  %493 = vperm.xlu0 %10360, %v101_v24   ;;  %v2789_v61 = vld [vmem:[%s16404_s4 + $0x30] sm:$0xff]  ;;  %v10840_v62 = vld [vmem:[%s16403_s1 + $0x98] sm:$0xff]  ;;  %v10845_v63 = vld [vmem:[%s16403_s1 + $0xa0] sm:$0xff] }
  0x14   :  { %9019 = vmatmul.mubr.msk.f32.gmra.mrb[4].mxu0 %vm109_vm1, %v10641_v25  ;;  %9073 = vmatmul.mubr.msk.f32.gmra.mrb[4].mxu1 %vm109_vm1, %v10641_v25  ;;  %v2792_v0 = vld [vmem:[%s16404_s4 + $0x48] sm:$0xff]  ;;  %v2791_v1 = vld [vmem:[%s16404_s4 + $0x40] sm:$0xff]  ;;  %v10869_v3 = vld [vmem:[%s16403_s1 + $0xb0] sm:$0xff] }
  0x15   :  { %9021 = vmatprep.mubr.msk.f32.mxu0 %vm109_vm1, %v10646_v26  ;;  %9075 = vmatprep.mubr.msk.f32.mxu1 %vm109_vm1, %v10646_v26  ;;  %v10864_v2 = vld [vmem:[%s16403_s1 + $0xa8] sm:$0xff]  ;;  %v2794_v4 = vld [vmem:[%s16404_s4 + $0x58] sm:$0xff]  ;;  %v2793_v5 = vld [vmem:[%s16404_s4 + $0x50] sm:$0xff] }
  0x16   :  { %9118 = vmatprep.subr.msk.mxu0 %vm206_vm0, %v50_v30  ;;  %9172 = vmatprep.subr.msk.mxu1 %vm206_vm0, %v52_v42  ;;  %v10888_v6 = vld [vmem:[%s16403_s1 + $0xb8] sm:$0xff]  ;;  %v10893_v7 = vld [vmem:[%s16403_s1 + $0xc0] sm:$0xff]  ;;  %v2796_v8 = vld [vmem:[%s16404_s4 + $0x68] sm:$0xff] }
  0x17   :  { %508 = vperm.xlu1 %10361, %v104_v27   ;;  %503 = vperm.xlu0 %10360, %v103_v28   ;;  %v2795_v9 = vld [vmem:[%s16404_s4 + $0x60] sm:$0xff]  ;;  %v10912_v10 = vld [vmem:[%s16403_s1 + $0xc8] sm:$0xff]  ;;  %v10917_v11 = vld [vmem:[%s16403_s1 + $0xd0] sm:$0xff] }
  0x18   :  { %9022 = vmatmul.mubr.msk.f32.gmra.mrb[6].mxu0 %vm109_vm1, %v10665_v29  ;;  %9076 = vmatmul.mubr.msk.f32.gmra.mrb[6].mxu1 %vm109_vm1, %v10665_v29  ;;  %v2798_v13 = vld [vmem:[%s16404_s4 + $0x78] sm:$0xff]  ;;  %v2797_v14 = vld [vmem:[%s16404_s4 + $0x70] sm:$0xff]  ;;  %v10941_v18 = vld [vmem:[%s16403_s1 + $0xe0] sm:$0xff] }
  0x19   :  { %9024 = vmatprep.mubr.msk.f32.mxu0 %vm109_vm1, %v10673_v31  ;;  %9078 = vmatprep.mubr.msk.f32.mxu1 %vm109_vm1, %v10673_v31  ;;  %v10936_v17 = vld [vmem:[%s16403_s1 + $0xd8] sm:$0xff]  ;;  %v4473_v19 = vld [vmem:[%s16405_s6 + $0x8] sm:$0xff]  ;;  %v4472_v20 = vld [vmem:[%s16405_s6] sm:$0xff] }
  0x1a   :  { %9119 = vmatpush3.msk.msra.mxu0 %vm206_vm0, %v50_v30  ;;  %9173 = vmatpush3.msk.msra.mxu1 %vm206_vm0, %v52_v42  ;;  %v10960_v23 = vld [vmem:[%s16403_s1 + $0xe8] sm:$0xff]  ;;  %v10965_v24 = vld [vmem:[%s16403_s1 + $0xf0] sm:$0xff]  ;;  %v4475_v27 = vld [vmem:[%s16405_s6 + $0x18] sm:$0xff] }
  0x1b   :  { %518 = vperm.xlu1 %10361, %v106_v34   ;;  %513 = vperm.xlu0 %10360, %v105_v35   ;;  %v4474_v28 = vld [vmem:[%s16405_s6 + $0x10] sm:$0xff]  ;;  %v10984_v30 = vld [vmem:[%s16403_s1 + $0xf8] sm:$0xff]  ;;  %v4477_v32 = vld [vmem:[%s16405_s6 + $0x28] sm:$0xff] }
  0x1c   :  { %9025 = vmatmul.mubr.msk.f32.gmra.mrb[8].mxu0 %vm109_vm1, %v10696_v36  ;;  %9079 = vmatmul.mubr.msk.f32.gmra.mrb[8].mxu1 %vm109_vm1, %v10696_v36  ;;  %v4476_v33 = vld [vmem:[%s16405_s6 + $0x20] sm:$0xff]  ;;  %v4479_v34 = vld [vmem:[%s16405_s6 + $0x38] sm:$0xff]  ;;  %v4478_v35 = vld [vmem:[%s16405_s6 + $0x30] sm:$0xff] }
  0x1d   :  { %9027 = vmatprep.mubr.msk.f32.mxu0 %vm109_vm1, %v10701_v37  ;;  %9081 = vmatprep.mubr.msk.f32.mxu1 %vm109_vm1, %v10701_v37  ;;  %v4480_v42 = vld [vmem:[%s16405_s6 + $0x40] sm:$0xff]  ;;  %v57_v43 = vld [vmem:[%s16402_s0 + $0x68] sm:$0xff] }
  0x1e   :  { %9490 = vmatprep.subr.bf16.mxu0 %v10734_v44  ;;  %9494 = vmatprep.subr.bf16.mxu1 %v10796_v55 }
  0x1f   :  { %528 = vperm.xlu1 %10361, %v108_v38   ;;  %523 = vperm.xlu0 %10360, %v107_v39   ;;  %v56_v38 = vld [vmem:[%s16402_s0 + $0x60] sm:$0xff]  ;;  %v4481_v39 = vld [vmem:[%s16405_s6 + $0x48] sm:$0xff] }
  0x20   :  { %9028 = vmatmul.mubr.msk.f32.gmra.mrb[10].mxu0 %vm109_vm1, %v10721_v40  ;;  %9082 = vmatmul.mubr.msk.f32.gmra.mrb[10].mxu1 %vm109_vm1, %v10721_v40 }
  0x21   :  { %9030 = vmatprep.mubr.msk.f32.mxu0 %vm109_vm1, %v10726_v41  ;;  %9084 = vmatprep.mubr.msk.f32.mxu1 %vm109_vm1, %v10726_v41 }
  0x23   :  { %2806 = vperm.xlu1 %10361, %v2784_v45   ;;  %2801 = vperm.xlu0 %10360, %v2783_v46   ;;  %v59_v45 = vld [vmem:[%s16402_s0 + $0x78] sm:$0xff] }
  0x24   :  { %9031 = vmatmul.mubr.msk.f32.gmra.mrb[12].mxu0 %vm109_vm1, %v10753_v47  ;;  %9085 = vmatmul.mubr.msk.f32.gmra.mrb[12].mxu1 %vm109_vm1, %v10753_v47  ;;  %v4483_v46 = vld [vmem:[%s16405_s6 + $0x58] sm:$0xff] }
  0x25   :  { %9033 = vmatprep.mubr.msk.f32.mxu0 %vm109_vm1, %v10758_v48  ;;  %9087 = vmatprep.mubr.msk.f32.mxu1 %vm109_vm1, %v10758_v48 }
  0x27   :  { %2816 = vperm.xlu1 %10361, %v2786_v50   ;;  %2811 = vperm.xlu0 %10360, %v2785_v51   ;;  %v4482_v50 = vld [vmem:[%s16405_s6 + $0x50] sm:$0xff]  ;;  %v11064_v51 = vpack.c.bf16 %v57_v43, %v56_v38  ;;  %v7424_v43 = vld [vmem:[%s16407_s10 + $0x60] sm:$0xff] }
  0x28   :  { %9034 = vmatmul.mubr.msk.f32.gmra.mrb[14].mxu0 %vm109_vm1, %v10787_v53  ;;  %9088 = vmatmul.mubr.msk.f32.gmra.mrb[14].mxu1 %vm109_vm1, %v10787_v53 }
  0x29   :  { %9036 = vmatprep.mubr.msk.f32.mxu0 %vm109_vm1, %v10792_v54  ;;  %9090 = vmatprep.mubr.msk.f32.mxu1 %vm109_vm1, %v10792_v54 }
  0x2b   :  { %2826 = vperm.xlu1 %10361, %v2788_v56   ;;  %2821 = vperm.xlu0 %10360, %v2787_v57   ;;  %v4487_v56 = vld [vmem:[%s16405_s6 + $0x78] sm:$0xff]  ;;  %v4486_v57 = vld [vmem:[%s16405_s6 + $0x70] sm:$0xff] }
  0x2c   :  { %9037 = vmatmul.mubr.msk.f32.gmra.mrb[16].mxu0 %vm109_vm1, %v10815_v58  ;;  %9091 = vmatmul.mubr.msk.f32.gmra.mrb[16].mxu1 %vm109_vm1, %v10815_v58 }
  0x2d   :  { %9039 = vmatprep.mubr.msk.f32.mxu0 %vm109_vm1, %v10820_v59  ;;  %9093 = vmatprep.mubr.msk.f32.mxu1 %vm109_vm1, %v10820_v59 }
  0x2f   :  { %2836 = vperm.xlu1 %10361, %v2790_v60   ;;  %2831 = vperm.xlu0 %10360, %v2789_v61   ;;  %v6000_v60 = vld [vmem:[%s16406_s8 + $0x8] sm:$0xff]  ;;  %v5999_v61 = vld [vmem:[%s16406_s8] sm:$0xff] }
  0x30   :  { %9040 = vmatmul.mubr.msk.f32.gmra.mrb[18].mxu0 %vm109_vm1, %v10840_v62  ;;  %9094 = vmatmul.mubr.msk.f32.gmra.mrb[18].mxu1 %vm109_vm1, %v10840_v62 }
  0x31   :  { %9042 = vmatprep.mubr.msk.f32.mxu0 %vm109_vm1, %v10845_v63  ;;  %9096 = vmatprep.mubr.msk.f32.mxu1 %vm109_vm1, %v10845_v63 }
  0x33   :  { %2846 = vperm.xlu1 %10361, %v2792_v0   ;;  %2841 = vperm.xlu0 %10360, %v2791_v1   ;;  %v6002_v0 = vld [vmem:[%s16406_s8 + $0x18] sm:$0xff]  ;;  %v6001_v1 = vld [vmem:[%s16406_s8 + $0x10] sm:$0xff] }
  0x34   :  { %9043 = vmatmul.mubr.msk.f32.gmra.mrb[20].mxu0 %vm109_vm1, %v10864_v2  ;;  %9097 = vmatmul.mubr.msk.f32.gmra.mrb[20].mxu1 %vm109_vm1, %v10864_v2 }
  0x35   :  { %9045 = vmatprep.mubr.msk.f32.mxu0 %vm109_vm1, %v10869_v3  ;;  %9099 = vmatprep.mubr.msk.f32.mxu1 %vm109_vm1, %v10869_v3 }
  0x37   :  { %2856 = vperm.xlu1 %10361, %v2794_v4   ;;  %2851 = vperm.xlu0 %10360, %v2793_v5   ;;  %v6004_v4 = vld [vmem:[%s16406_s8 + $0x28] sm:$0xff]  ;;  %v6003_v5 = vld [vmem:[%s16406_s8 + $0x20] sm:$0xff] }
  0x38   :  { %9046 = vmatmul.mubr.msk.f32.gmra.mrb[22].mxu0 %vm109_vm1, %v10888_v6  ;;  %9100 = vmatmul.mubr.msk.f32.gmra.mrb[22].mxu1 %vm109_vm1, %v10888_v6 }
  0x39   :  { %9048 = vmatprep.mubr.msk.f32.mxu0 %vm109_vm1, %v10893_v7  ;;  %9102 = vmatprep.mubr.msk.f32.mxu1 %vm109_vm1, %v10893_v7 }
  0x3b   :  { %2866 = vperm.xlu1 %10361, %v2796_v8   ;;  %2861 = vperm.xlu0 %10360, %v2795_v9   ;;  %v6006_v8 = vld [vmem:[%s16406_s8 + $0x38] sm:$0xff]  ;;  %v6005_v9 = vld [vmem:[%s16406_s8 + $0x30] sm:$0xff] }
  0x3c   :  { %9049 = vmatmul.mubr.msk.f32.gmra.mrb[24].mxu0 %vm109_vm1, %v10912_v10  ;;  %9103 = vmatmul.mubr.msk.f32.gmra.mrb[24].mxu1 %vm109_vm1, %v10912_v10 }
  0x3d   :  { %9051 = vmatprep.mubr.msk.f32.mxu0 %vm109_vm1, %v10917_v11  ;;  %9105 = vmatprep.mubr.msk.f32.mxu1 %vm109_vm1, %v10917_v11 }
  0x3f   :  { %2876 = vperm.xlu1 %10361, %v2798_v13   ;;  %2871 = vperm.xlu0 %10360, %v2797_v14   ;;  %v7413_v13 = vld [vmem:[%s16407_s10 + $0x8] sm:$0xff]  ;;  %v7412_v14 = vld [vmem:[%s16407_s10] sm:$0xff] }
  0x40   :  { %9052 = vmatmul.mubr.msk.f32.gmra.mrb[26].mxu0 %vm109_vm1, %v10936_v17  ;;  %9106 = vmatmul.mubr.msk.f32.gmra.mrb[26].mxu1 %vm109_vm1, %v10936_v17 }
  0x41   :  { %9054 = vmatprep.mubr.msk.f32.mxu0 %vm109_vm1, %v10941_v18  ;;  %9108 = vmatprep.mubr.msk.f32.mxu1 %vm109_vm1, %v10941_v18 }
  0x43   :  { %4495 = vperm.xlu1 %10361, %v4473_v19   ;;  %4490 = vperm.xlu0 %10360, %v4472_v20   ;;  %v7415_v19 = vld [vmem:[%s16407_s10 + $0x18] sm:$0xff]  ;;  %v7414_v20 = vld [vmem:[%s16407_s10 + $0x10] sm:$0xff] }
  0x44   :  { %9055 = vmatmul.mubr.msk.f32.gmra.mrb[28].mxu0 %vm109_vm1, %v10960_v23  ;;  %9109 = vmatmul.mubr.msk.f32.gmra.mrb[28].mxu1 %vm109_vm1, %v10960_v23 }
  0x45   :  { %9057 = vmatprep.mubr.msk.f32.mxu0 %vm109_vm1, %v10965_v24  ;;  %9111 = vmatprep.mubr.msk.f32.mxu1 %vm109_vm1, %v10965_v24 }
  0x47   :  { %4505 = vperm.xlu1 %10361, %v4475_v27   ;;  %4500 = vperm.xlu0 %10360, %v4474_v28   ;;  %v7417_v27 = vld [vmem:[%s16407_s10 + $0x28] sm:$0xff]  ;;  %v7416_v28 = vld [vmem:[%s16407_s10 + $0x20] sm:$0xff] }
  0x48   :  { %9058 = vmatmul.mubr.msk.f32.gmra.mrb[30].mxu0 %vm109_vm1, %v10984_v30  ;;  %9112 = vmatmul.mubr.msk.f32.gmra.mrb[30].mxu1 %vm109_vm1, %v10984_v30 }
  0x49   :  { %9120 = vmatprep.mubr.msk.f32.mxu0 %vm109_vm1, %v10571_v12  ;;  %9174 = vmatprep.mubr.msk.f32.mxu1 %vm109_vm1, %v10571_v12 }
  0x4b   :  { %4515 = vperm.xlu1 %10361, %v4477_v32   ;;  %4510 = vperm.xlu0 %10360, %v4476_v33   ;;  %v7419_v32 = vld [vmem:[%s16407_s10 + $0x38] sm:$0xff]  ;;  %v7418_v33 = vld [vmem:[%s16407_s10 + $0x30] sm:$0xff] }
  0x4c   :  { %9121 = vmatmul.mubr.msk.f32.vlgmr.msra.gmra.mrb[32].mxu0 %vm109_vm1, %v10588_v15  ;;  %9175 = vmatmul.mubr.msk.f32.vlgmr.msra.gmra.mrb[32].mxu1 %vm109_vm1, %v10588_v15 }
  0x4d   :  { %9123 = vmatprep.mubr.msk.f32.mxu0 %vm109_vm1, %v10595_v16  ;;  %9177 = vmatprep.mubr.msk.f32.mxu1 %vm109_vm1, %v10595_v16 }
  0x4e   :  { %9492 = vmatpush3.bf16.msra.mxu0 %v10734_v44  ;;  %9496 = vmatpush3.bf16.msra.mxu1 %v10796_v55  ;;  %v11042_v44 = vld [vmem:[%s16402_s0 + $0x70] sm:$0xff]  ;;  %v4485_v55 = vld [vmem:[%s16405_s6 + $0x68] sm:$0xff] }
  0x4f   :  { %4525 = vperm.xlu1 %10361, %v4479_v34   ;;  %4520 = vperm.xlu0 %10360, %v4478_v35   ;;  %v11067_v52 = vpack.c.bf16 %v59_v45, %v11042_v44  ;;  %v7421_v34 = vld [vmem:[%s16407_s10 + $0x48] sm:$0xff]  ;;  %v7420_v35 = vld [vmem:[%s16407_s10 + $0x40] sm:$0xff]  ;;  %v7427_v45 = vld [vmem:[%s16407_s10 + $0x78] sm:$0xff] }
  0x50   :  { %9124 = vmatmul.mubr.msk.f32.gmra.mrb[34].mxu0 %vm109_vm1, %v10617_v21  ;;  %9178 = vmatmul.mubr.msk.f32.gmra.mrb[34].mxu1 %vm109_vm1, %v10617_v21 }
  0x51   :  { %9126 = vmatprep.mubr.msk.f32.mxu0 %vm109_vm1, %v10622_v22  ;;  %9180 = vmatprep.mubr.msk.f32.mxu1 %vm109_vm1, %v10622_v22 }
  0x52   :  { %9226 = vmatprep.subr.msk.mxu0 %vm206_vm0, %v10765_v49  ;;  %9280 = vmatprep.subr.msk.mxu1 %vm206_vm0, %v56_v38 }
  0x53   :  { %4535 = vperm.xlu1 %10361, %v4481_v39   ;;  %4530 = vperm.xlu0 %10360, %v4480_v42   ;;  %v7422_v39 = vld [vmem:[%s16407_s10 + $0x50] sm:$0xff]  ;;  %v7425_v42 = vld [vmem:[%s16407_s10 + $0x68] sm:$0xff] }
  0x54   :  { %9127 = vmatmul.mubr.msk.f32.gmra.mrb[36].mxu0 %vm109_vm1, %v10641_v25  ;;  %9181 = vmatmul.mubr.msk.f32.gmra.mrb[36].mxu1 %vm109_vm1, %v10641_v25 }
  0x55   :  { %9129 = vmatprep.mubr.msk.f32.mxu0 %vm109_vm1, %v10646_v26  ;;  %9183 = vmatprep.mubr.msk.f32.mxu1 %vm109_vm1, %v10646_v26 }
  0x56   :  { %9227 = vmatpush3.msk.msra.mxu0 %vm206_vm0, %v10765_v49  ;;  %9281 = vmatpush3.msk.msra.mxu1 %vm206_vm0, %v56_v38  ;;  %v4484_v49 = vld [vmem:[%s16405_s6 + $0x60] sm:$0xff]  ;;  %v7423_v38 = vld [vmem:[%s16407_s10 + $0x58] sm:$0xff] }
  0x57   :  { %4545 = vperm.xlu1 %10361, %v4483_v46   ;;  %4540 = vperm.xlu0 %10360, %v4482_v50   ;;  %v7426_v46 = vld [vmem:[%s16407_s10 + $0x70] sm:$0xff]  ;;  %v60_v50 = vld [vmem:[%s16402_s0 + $0x80] sm:$0xff] }
  0x58   :  { %9130 = vmatmul.mubr.msk.f32.gmra.mrb[38].mxu0 %vm109_vm1, %v10665_v29  ;;  %9184 = vmatmul.mubr.msk.f32.gmra.mrb[38].mxu1 %vm109_vm1, %v10665_v29 }
  0x59   :  { %9132 = vmatprep.mubr.msk.f32.mxu0 %vm109_vm1, %v10673_v31  ;;  %9186 = vmatprep.mubr.msk.f32.mxu1 %vm109_vm1, %v10673_v31 }
  0x5a   :  { %9498 = vmatprep.subr.bf16.mxu0 %v11064_v51  ;;  %9502 = vmatprep.subr.bf16.mxu1 %v11067_v52 }
  0x5b   :  { %4555 = vperm.xlu1 %10361, %v4485_v55   ;;  %4550 = vperm.xlu0 %10360, %v4484_v49   ;;  %v7896_v55 = vld [vmem:[%s16408_s12] sm:$0x1f] }
  0x5c   :  { %9133 = vmatmul.mubr.msk.f32.gmra.mrb[40].mxu0 %vm109_vm1, %v10696_v36  ;;  %9187 = vmatmul.mubr.msk.f32.gmra.mrb[40].mxu1 %vm109_vm1, %v10696_v36 }
  0x5d   :  { %9135 = vmatprep.mubr.msk.f32.mxu0 %vm109_vm1, %v10701_v37  ;;  %9189 = vmatprep.mubr.msk.f32.mxu1 %vm109_vm1, %v10701_v37 }
  0x5f   :  { %4565 = vperm.xlu1 %10361, %v4487_v56   ;;  %4560 = vperm.xlu0 %10360, %v4486_v57  }
  0x60   :  { %9136 = vmatmul.mubr.msk.f32.gmra.mrb[42].mxu0 %vm109_vm1, %v10721_v40  ;;  %9190 = vmatmul.mubr.msk.f32.gmra.mrb[42].mxu1 %vm109_vm1, %v10721_v40 }
  0x61   :  { %9138 = vmatprep.mubr.msk.f32.mxu0 %vm109_vm1, %v10726_v41  ;;  %9192 = vmatprep.mubr.msk.f32.mxu1 %vm109_vm1, %v10726_v41 }
  0x63   :  { %6215 = vperm.xlu1 %10361, %v6000_v60   ;;  %6210 = vperm.xlu0 %10360, %v5999_v61  }
  0x64   :  { %9139 = vmatmul.mubr.msk.f32.gmra.mrb[44].mxu0 %vm109_vm1, %v10753_v47  ;;  %9193 = vmatmul.mubr.msk.f32.gmra.mrb[44].mxu1 %vm109_vm1, %v10753_v47 }
  0x65   :  { %9141 = vmatprep.mubr.msk.f32.mxu0 %vm109_vm1, %v10758_v48  ;;  %9195 = vmatprep.mubr.msk.f32.mxu1 %vm109_vm1, %v10758_v48 }
  0x67   :  { %6225 = vperm.xlu1 %10361, %v6002_v0   ;;  %6220 = vperm.xlu0 %10360, %v6001_v1  }
  0x68   :  { %9142 = vmatmul.mubr.msk.f32.gmra.mrb[46].mxu0 %vm109_vm1, %v10787_v53  ;;  %9196 = vmatmul.mubr.msk.f32.gmra.mrb[46].mxu1 %vm109_vm1, %v10787_v53 }
  0x69   :  { %9144 = vmatprep.mubr.msk.f32.mxu0 %vm109_vm1, %v10792_v54  ;;  %9198 = vmatprep.mubr.msk.f32.mxu1 %vm109_vm1, %v10792_v54 }
  0x6b   :  { %6235 = vperm.xlu1 %10361, %v6004_v4   ;;  %6230 = vperm.xlu0 %10360, %v6003_v5  }
  0x6c   :  { %9145 = vmatmul.mubr.msk.f32.gmra.mrb[48].mxu0 %vm109_vm1, %v10815_v58  ;;  %9199 = vmatmul.mubr.msk.f32.gmra.mrb[48].mxu1 %vm109_vm1, %v10815_v58 }
  0x6d   :  { %9147 = vmatprep.mubr.msk.f32.mxu0 %vm109_vm1, %v10820_v59  ;;  %9201 = vmatprep.mubr.msk.f32.mxu1 %vm109_vm1, %v10820_v59 }
  0x6f   :  { %6245 = vperm.xlu1 %10361, %v6006_v8   ;;  %6240 = vperm.xlu0 %10360, %v6005_v9  }
  0x70   :  { %9148 = vmatmul.mubr.msk.f32.gmra.mrb[50].mxu0 %vm109_vm1, %v10840_v62  ;;  %9202 = vmatmul.mubr.msk.f32.gmra.mrb[50].mxu1 %vm109_vm1, %v10840_v62 }
  0x71   :  { %9150 = vmatprep.mubr.msk.f32.mxu0 %vm109_vm1, %v10845_v63  ;;  %9204 = vmatprep.mubr.msk.f32.mxu1 %vm109_vm1, %v10845_v63 }
  0x73   :  { %7435 = vperm.xlu1 %10361, %v7413_v13   ;;  %7430 = vperm.xlu0 %10360, %v7412_v14  }
  0x74   :  { %9151 = vmatmul.mubr.msk.f32.gmra.mrb[52].mxu0 %vm109_vm1, %v10864_v2  ;;  %9205 = vmatmul.mubr.msk.f32.gmra.mrb[52].mxu1 %vm109_vm1, %v10864_v2 }
  0x75   :  { %9153 = vmatprep.mubr.msk.f32.mxu0 %vm109_vm1, %v10869_v3  ;;  %9207 = vmatprep.mubr.msk.f32.mxu1 %vm109_vm1, %v10869_v3 }
  0x77   :  { %7445 = vperm.xlu1 %10361, %v7415_v19   ;;  %7440 = vperm.xlu0 %10360, %v7414_v20  }
  0x78   :  { %9154 = vmatmul.mubr.msk.f32.gmra.mrb[54].mxu0 %vm109_vm1, %v10888_v6  ;;  %9208 = vmatmul.mubr.msk.f32.gmra.mrb[54].mxu1 %vm109_vm1, %v10888_v6 }
  0x79   :  { %9156 = vmatprep.mubr.msk.f32.mxu0 %vm109_vm1, %v10893_v7  ;;  %9210 = vmatprep.mubr.msk.f32.mxu1 %vm109_vm1, %v10893_v7 }
  0x7b   :  { %7455 = vperm.xlu1 %10361, %v7417_v27   ;;  %7450 = vperm.xlu0 %10360, %v7416_v28  }
  0x7c   :  { %9157 = vmatmul.mubr.msk.f32.gmra.mrb[56].mxu0 %vm109_vm1, %v10912_v10  ;;  %9211 = vmatmul.mubr.msk.f32.gmra.mrb[56].mxu1 %vm109_vm1, %v10912_v10 }
  0x7d   :  { %9159 = vmatprep.mubr.msk.f32.mxu0 %vm109_vm1, %v10917_v11  ;;  %9213 = vmatprep.mubr.msk.f32.mxu1 %vm109_vm1, %v10917_v11 }
  0x7f   :  { %7465 = vperm.xlu1 %10361, %v7419_v32   ;;  %7460 = vperm.xlu0 %10360, %v7418_v33  }
  0x80   :  { %9160 = vmatmul.mubr.msk.f32.gmra.mrb[58].mxu0 %vm109_vm1, %v10936_v17  ;;  %9214 = vmatmul.mubr.msk.f32.gmra.mrb[58].mxu1 %vm109_vm1, %v10936_v17 }
  0x81   :  { %9162 = vmatprep.mubr.msk.f32.mxu0 %vm109_vm1, %v10941_v18  ;;  %9216 = vmatprep.mubr.msk.f32.mxu1 %vm109_vm1, %v10941_v18  ;;  %v11541_v57 = vpop.permute.xlu0 %453 }
  0x82   :  { %16538 = vst [vmem:[#allocation3_spill] sm:$0xff] %v11541_v57 }
  0x83   :  { %7475 = vperm.xlu1 %10361, %v7421_v34   ;;  %7470 = vperm.xlu0 %10360, %v7420_v35  }
  0x84   :  { %9163 = vmatmul.mubr.msk.f32.gmra.mrb[60].mxu0 %vm109_vm1, %v10960_v23  ;;  %9217 = vmatmul.mubr.msk.f32.gmra.mrb[60].mxu1 %vm109_vm1, %v10960_v23 }
  0x85   :  { %9165 = vmatprep.mubr.msk.f32.mxu0 %vm109_vm1, %v10965_v24  ;;  %9219 = vmatprep.mubr.msk.f32.mxu1 %vm109_vm1, %v10965_v24 }
  0x86   :  { %v11577_v5 = vpop.permute.xlu0 %458 }
  0x87   :  { %7485 = vperm.xlu1 %10361, %v7423_v38   ;;  %7480 = vperm.xlu0 %10360, %v7422_v39   ;;  %16540 = vst [vmem:[#allocation5_spill] sm:$0xff] %v11577_v5 }
  0x88   :  { %9166 = vmatmul.mubr.msk.f32.gmra.mrb[62].mxu0 %vm109_vm1, %v10984_v30  ;;  %9220 = vmatmul.mubr.msk.f32.gmra.mrb[62].mxu1 %vm109_vm1, %v10984_v30 }
  0x89   :  { %9228 = vmatprep.mubr.msk.f32.mxu0 %vm109_vm1, %v10571_v12  ;;  %9282 = vmatprep.mubr.msk.f32.mxu1 %vm109_vm1, %v10571_v12 }
  0x8a   :  { %v11601_v38 = vpop.permute.xlu0 %473 }
  0x8b   :  { %7495 = vperm.xlu1 %10361, %v7425_v42   ;;  %7490 = vperm.xlu0 %10360, %v7424_v43   ;;  %16542 = vst [vmem:[#allocation7_spill] sm:$0xff] %v11601_v38 }
  0x8c   :  { %9229 = vmatmul.mubr.msk.f32.vlgmr.msra.gmra.mrb[64].mxu0 %vm109_vm1, %v10588_v15  ;;  %9283 = vmatmul.mubr.msk.f32.vlgmr.msra.gmra.mrb[64].mxu1 %vm109_vm1, %v10588_v15 }
  0x8d   :  { %9231 = vmatprep.mubr.msk.f32.mxu0 %vm109_vm1, %v10595_v16  ;;  %9285 = vmatprep.mubr.msk.f32.mxu1 %vm109_vm1, %v10595_v16 }
  0x8e   :  { %9500 = vmatpush3.bf16.msra.mxu0 %v11064_v51  ;;  %9504 = vmatpush3.bf16.msra.mxu1 %v11067_v52  ;;  %v16415_v51 = vmov 0.0|0.0  }
  0x8f   :  { %7505 = vperm.xlu1 %10361, %v7427_v45   ;;  %7500 = vperm.xlu0 %10360, %v7426_v46  }
  0x90   :  { %9232 = vmatmul.mubr.msk.f32.gmra.mrb[66].mxu0 %vm109_vm1, %v10617_v21  ;;  %9286 = vmatmul.mubr.msk.f32.gmra.mrb[66].mxu1 %vm109_vm1, %v10617_v21 }
  0x91   :  { %9234 = vmatprep.mubr.msk.f32.mxu0 %vm109_vm1, %v10622_v22  ;;  %9288 = vmatprep.mubr.msk.f32.mxu1 %vm109_vm1, %v10622_v22 }
  0x92   :  { %9334 = vmatprep.subr.msk.mxu0 %vm206_vm0, %v11042_v44  ;;  %9388 = vmatprep.subr.msk.mxu1 %vm206_vm0, %v60_v50 }
  0x93   :  { %7899 = vperm.xlu0 %10360, %v7896_v55   ;;  %9335 = vmatpush3.msk.msra.mxu0 %vm206_vm0, %v11042_v44 }
  0x94   :  { %9235 = vmatmul.mubr.msk.f32.gmra.mrb[68].mxu0 %vm109_vm1, %v10641_v25  ;;  %9289 = vmatmul.mubr.msk.f32.gmra.mrb[68].mxu1 %vm109_vm1, %v10641_v25 }
  0x95   :  { %9237 = vmatprep.mubr.msk.f32.mxu0 %vm109_vm1, %v10646_v26  ;;  %9291 = vmatprep.mubr.msk.f32.mxu1 %vm109_vm1, %v10646_v26 }
  0x96   :  { %9389 = vmatpush3.msk.msra.mxu1 %vm206_vm0, %v60_v50  ;;  %9505 = vmatprep.subr.bf16.mxu0 %v16415_v51 }
  0x97   :  { %9541 = vmatprep.subr.bf16.mxu1 %v16415_v51 }
  0x98   :  { %9238 = vmatmul.mubr.msk.f32.gmra.mrb[70].mxu0 %vm109_vm1, %v10665_v29  ;;  %9292 = vmatmul.mubr.msk.f32.gmra.mrb[70].mxu1 %vm109_vm1, %v10665_v29 }
  0x99   :  { %9240 = vmatprep.mubr.msk.f32.mxu0 %vm109_vm1, %v10673_v31  ;;  %9294 = vmatprep.mubr.msk.f32.mxu1 %vm109_vm1, %v10673_v31 }
  0x9c   :  { %9241 = vmatmul.mubr.msk.f32.gmra.mrb[72].mxu0 %vm109_vm1, %v10696_v36  ;;  %9295 = vmatmul.mubr.msk.f32.gmra.mrb[72].mxu1 %vm109_vm1, %v10696_v36 }
  0x9d   :  { %9243 = vmatprep.mubr.msk.f32.mxu0 %vm109_vm1, %v10701_v37  ;;  %9297 = vmatprep.mubr.msk.f32.mxu1 %vm109_vm1, %v10701_v37 }
  0xa0   :  { %9244 = vmatmul.mubr.msk.f32.gmra.mrb[74].mxu0 %vm109_vm1, %v10721_v40  ;;  %9298 = vmatmul.mubr.msk.f32.gmra.mrb[74].mxu1 %vm109_vm1, %v10721_v40 }
  0xa1   :  { %9246 = vmatprep.mubr.msk.f32.mxu0 %vm109_vm1, %v10726_v41  ;;  %9300 = vmatprep.mubr.msk.f32.mxu1 %vm109_vm1, %v10726_v41 }
  0xa4   :  { %9247 = vmatmul.mubr.msk.f32.gmra.mrb[76].mxu0 %vm109_vm1, %v10753_v47  ;;  %9301 = vmatmul.mubr.msk.f32.gmra.mrb[76].mxu1 %vm109_vm1, %v10753_v47 }
  0xa5   :  { %9249 = vmatprep.mubr.msk.f32.mxu0 %vm109_vm1, %v10758_v48  ;;  %9303 = vmatprep.mubr.msk.f32.mxu1 %vm109_vm1, %v10758_v48 }
  0xa8   :  { %9250 = vmatmul.mubr.msk.f32.gmra.mrb[78].mxu0 %vm109_vm1, %v10787_v53  ;;  %9304 = vmatmul.mubr.msk.f32.gmra.mrb[78].mxu1 %vm109_vm1, %v10787_v53 }
  0xa9   :  { %9252 = vmatprep.mubr.msk.f32.mxu0 %vm109_vm1, %v10792_v54  ;;  %9306 = vmatprep.mubr.msk.f32.mxu1 %vm109_vm1, %v10792_v54 }
  0xac   :  { %9253 = vmatmul.mubr.msk.f32.gmra.mrb[80].mxu0 %vm109_vm1, %v10815_v58  ;;  %9307 = vmatmul.mubr.msk.f32.gmra.mrb[80].mxu1 %vm109_vm1, %v10815_v58 }
  0xad   :  { %9255 = vmatprep.mubr.msk.f32.mxu0 %vm109_vm1, %v10820_v59  ;;  %9309 = vmatprep.mubr.msk.f32.mxu1 %vm109_vm1, %v10820_v59 }
  0xb0   :  { %9256 = vmatmul.mubr.msk.f32.gmra.mrb[82].mxu0 %vm109_vm1, %v10840_v62  ;;  %9310 = vmatmul.mubr.msk.f32.gmra.mrb[82].mxu1 %vm109_vm1, %v10840_v62 }
  0xb1   :  { %9258 = vmatprep.mubr.msk.f32.mxu0 %vm109_vm1, %v10845_v63  ;;  %9312 = vmatprep.mubr.msk.f32.mxu1 %vm109_vm1, %v10845_v63 }
  0xb4   :  { %9259 = vmatmul.mubr.msk.f32.gmra.mrb[84].mxu0 %vm109_vm1, %v10864_v2  ;;  %9313 = vmatmul.mubr.msk.f32.gmra.mrb[84].mxu1 %vm109_vm1, %v10864_v2 }
  0xb5   :  { %9261 = vmatprep.mubr.msk.f32.mxu0 %vm109_vm1, %v10869_v3  ;;  %9315 = vmatprep.mubr.msk.f32.mxu1 %vm109_vm1, %v10869_v3 }
  0xb8   :  { %9262 = vmatmul.mubr.msk.f32.gmra.mrb[86].mxu0 %vm109_vm1, %v10888_v6  ;;  %9316 = vmatmul.mubr.msk.f32.gmra.mrb[86].mxu1 %vm109_vm1, %v10888_v6 }
  0xb9   :  { %9264 = vmatprep.mubr.msk.f32.mxu0 %vm109_vm1, %v10893_v7  ;;  %9318 = vmatprep.mubr.msk.f32.mxu1 %vm109_vm1, %v10893_v7 }
  0xbc   :  { %9265 = vmatmul.mubr.msk.f32.gmra.mrb[88].mxu0 %vm109_vm1, %v10912_v10  ;;  %9319 = vmatmul.mubr.msk.f32.gmra.mrb[88].mxu1 %vm109_vm1, %v10912_v10 }
  0xbd   :  { %9267 = vmatprep.mubr.msk.f32.mxu0 %vm109_vm1, %v10917_v11  ;;  %9321 = vmatprep.mubr.msk.f32.mxu1 %vm109_vm1, %v10917_v11 }
  0xc0   :  { %9268 = vmatmul.mubr.msk.f32.gmra.mrb[90].mxu0 %vm109_vm1, %v10936_v17  ;;  %9322 = vmatmul.mubr.msk.f32.gmra.mrb[90].mxu1 %vm109_vm1, %v10936_v17 }
  0xc1   :  { %9270 = vmatprep.mubr.msk.f32.mxu0 %vm109_vm1, %v10941_v18  ;;  %9324 = vmatprep.mubr.msk.f32.mxu1 %vm109_vm1, %v10941_v18 }
  0xc4   :  { %9271 = vmatmul.mubr.msk.f32.gmra.mrb[92].mxu0 %vm109_vm1, %v10960_v23  ;;  %9325 = vmatmul.mubr.msk.f32.gmra.mrb[92].mxu1 %vm109_vm1, %v10960_v23 }
  0xc5   :  { %9273 = vmatprep.mubr.msk.f32.mxu0 %vm109_vm1, %v10965_v24  ;;  %9327 = vmatprep.mubr.msk.f32.mxu1 %vm109_vm1, %v10965_v24 }
  0xc8   :  { %9274 = vmatmul.mubr.msk.f32.gmra.mrb[94].mxu0 %vm109_vm1, %v10984_v30  ;;  %9328 = vmatmul.mubr.msk.f32.gmra.mrb[94].mxu1 %vm109_vm1, %v10984_v30 }
  0xc9   :  { %9336 = vmatprep.mubr.msk.f32.mxu0 %vm109_vm1, %v10571_v12  ;;  %9390 = vmatprep.mubr.msk.f32.mxu1 %vm109_vm1, %v10571_v12 }
  0xcc   :  { %9337 = vmatmul.mubr.msk.f32.vlgmr.msra.gmra.mrb[96].mxu0 %vm109_vm1, %v10588_v15  ;;  %9391 = vmatmul.mubr.msk.f32.vlgmr.msra.gmra.mrb[96].mxu1 %vm109_vm1, %v10588_v15 }
  0xcd   :  { %9339 = vmatprep.mubr.msk.f32.mxu0 %vm109_vm1, %v10595_v16  ;;  %9393 = vmatprep.mubr.msk.f32.mxu1 %vm109_vm1, %v10595_v16 }
  0xd0   :  { %9340 = vmatmul.mubr.msk.f32.gmra.mrb[98].mxu0 %vm109_vm1, %v10617_v21  ;;  %9394 = vmatmul.mubr.msk.f32.gmra.mrb[98].mxu1 %vm109_vm1, %v10617_v21 }
  0xd1   :  { %9342 = vmatprep.mubr.msk.f32.mxu0 %vm109_vm1, %v10622_v22  ;;  %9396 = vmatprep.mubr.msk.f32.mxu1 %vm109_vm1, %v10622_v22 }
  0xd4   :  { %9343 = vmatmul.mubr.msk.f32.gmra.mrb[100].mxu0 %vm109_vm1, %v10641_v25  ;;  %9397 = vmatmul.mubr.msk.f32.gmra.mrb[100].mxu1 %vm109_vm1, %v10641_v25 }
  0xd5   :  { %9345 = vmatprep.mubr.msk.f32.mxu0 %vm109_vm1, %v10646_v26  ;;  %9399 = vmatprep.mubr.msk.f32.mxu1 %vm109_vm1, %v10646_v26 }
  0xd8   :  { %9346 = vmatmul.mubr.msk.f32.gmra.mrb[102].mxu0 %vm109_vm1, %v10665_v29  ;;  %9400 = vmatmul.mubr.msk.f32.gmra.mrb[102].mxu1 %vm109_vm1, %v10665_v29 }
  0xd9   :  { %9348 = vmatprep.mubr.msk.f32.mxu0 %vm109_vm1, %v10673_v31  ;;  %9402 = vmatprep.mubr.msk.f32.mxu1 %vm109_vm1, %v10673_v31 }
  0xdc   :  { %9349 = vmatmul.mubr.msk.f32.gmra.mrb[104].mxu0 %vm109_vm1, %v10696_v36  ;;  %9403 = vmatmul.mubr.msk.f32.gmra.mrb[104].mxu1 %vm109_vm1, %v10696_v36 }
  0xdd   :  { %9351 = vmatprep.mubr.msk.f32.mxu0 %vm109_vm1, %v10701_v37  ;;  %9405 = vmatprep.mubr.msk.f32.mxu1 %vm109_vm1, %v10701_v37 }
  0xdf   :  { %v11443_v12 = vpop.f32.mrb[0].mxu0  ;;  %v11445_v15 = vpop.f32.mrb[0].mxu1 }
  0xe0   :  { %v11447_v16 = vpop.f32.mrb[1].mxu0  ;;  %9352 = vmatmul.mubr.msk.f32.gmra.mrb[106].mxu0 %vm109_vm1, %v10721_v40  ;;  %9406 = vmatmul.mubr.msk.f32.gmra.mrb[106].mxu1 %vm109_vm1, %v10721_v40  ;;  %v11453_v21 = vpop.f32.mrb[1].mxu1 }
  0xe1   :  { %9354 = vmatprep.mubr.msk.f32.mxu0 %vm109_vm1, %v10726_v41  ;;  %9408 = vmatprep.mubr.msk.f32.mxu1 %vm109_vm1, %v10726_v41 }
  0xe3   :  { %v11459_v22 = vpop.f32.mrb[2].mxu0  ;;  %v11461_v25 = vpop.f32.mrb[2].mxu1 }
  0xe4   :  { %v11463_v26 = vpop.f32.mrb[3].mxu0  ;;  %9355 = vmatmul.mubr.msk.f32.gmra.mrb[108].mxu0 %vm109_vm1, %v10753_v47  ;;  %9409 = vmatmul.mubr.msk.f32.gmra.mrb[108].mxu1 %vm109_vm1, %v10753_v47  ;;  %v11469_v29 = vpop.f32.mrb[3].mxu1 }
  0xe5   :  { %9357 = vmatprep.mubr.msk.f32.mxu0 %vm109_vm1, %v10758_v48  ;;  %9411 = vmatprep.mubr.msk.f32.mxu1 %vm109_vm1, %v10758_v48 }
  0xe7   :  { %v11475_v31 = vpop.f32.mrb[4].mxu0  ;;  %v11477_v36 = vpop.f32.mrb[4].mxu1 }
  0xe8   :  { %v11479_v37 = vpop.f32.mrb[5].mxu0  ;;  %9358 = vmatmul.mubr.msk.f32.gmra.mrb[110].mxu0 %vm109_vm1, %v10787_v53  ;;  %9412 = vmatmul.mubr.msk.f32.gmra.mrb[110].mxu1 %vm109_vm1, %v10787_v53  ;;  %v11485_v40 = vpop.f32.mrb[5].mxu1 }
  0xe9   :  { %9360 = vmatprep.mubr.msk.f32.mxu0 %vm109_vm1, %v10792_v54  ;;  %9414 = vmatprep.mubr.msk.f32.mxu1 %vm109_vm1, %v10792_v54 }
  0xeb   :  { %v11491_v41 = vpop.f32.mrb[6].mxu0  ;;  %v11493_v47 = vpop.f32.mrb[6].mxu1 }
  0xec   :  { %v11495_v48 = vpop.f32.mrb[7].mxu0  ;;  %9361 = vmatmul.mubr.msk.f32.gmra.mrb[112].mxu0 %vm109_vm1, %v10815_v58  ;;  %9415 = vmatmul.mubr.msk.f32.gmra.mrb[112].mxu1 %vm109_vm1, %v10815_v58  ;;  %v11501_v53 = vpop.f32.mrb[7].mxu1 }
  0xed   :  { %9363 = vmatprep.mubr.msk.f32.mxu0 %vm109_vm1, %v10820_v59  ;;  %9417 = vmatprep.mubr.msk.f32.mxu1 %vm109_vm1, %v10820_v59 }
  0xef   :  { %v11507_v54 = vpop.f32.mrb[8].mxu0  ;;  %v11509_v44 = vpop.f32.mrb[8].mxu1 }
  0xf0   :  { %v11511_v52 = vpop.f32.mrb[9].mxu0  ;;  %9364 = vmatmul.mubr.msk.f32.gmra.mrb[114].mxu0 %vm109_vm1, %v10840_v62  ;;  %9418 = vmatmul.mubr.msk.f32.gmra.mrb[114].mxu1 %vm109_vm1, %v10840_v62  ;;  %v11517_v58 = vpop.f32.mrb[9].mxu1 }
  0xf1   :  { %9366 = vmatprep.mubr.msk.f32.mxu0 %vm109_vm1, %v10845_v63  ;;  %9420 = vmatprep.mubr.msk.f32.mxu1 %vm109_vm1, %v10845_v63  ;;  %v11539_v63 = vpop.permute.xlu1 %463 }
  0xf2   :  { %16537 = vst [vmem:[#allocation2_spill] sm:$0xff] %v11539_v63 }
  0xf3   :  { %v11523_v59 = vpop.f32.mrb[10].mxu0  ;;  %v11525_v49 = vpop.f32.mrb[10].mxu1 }
  0xf4   :  { %v11527_v56 = vpop.f32.mrb[11].mxu0  ;;  %9367 = vmatmul.mubr.msk.f32.gmra.mrb[116].mxu0 %vm109_vm1, %v10864_v2  ;;  %9421 = vmatmul.mubr.msk.f32.gmra.mrb[116].mxu1 %vm109_vm1, %v10864_v2  ;;  %v11533_v62 = vpop.f32.mrb[11].mxu1 }
  0xf5   :  { %9369 = vmatprep.mubr.msk.f32.mxu0 %vm109_vm1, %v10869_v3  ;;  %9423 = vmatprep.mubr.msk.f32.mxu1 %vm109_vm1, %v10869_v3 }
  0xf7   :  { %v11543_v60 = vpop.f32.mrb[12].mxu0  ;;  %v11545_v61 = vpop.f32.mrb[12].mxu1 }
  0xf8   :  { %v11547_v0 = vpop.f32.mrb[13].mxu0  ;;  %9370 = vmatmul.mubr.msk.f32.gmra.mrb[118].mxu0 %vm109_vm1, %v10888_v6  ;;  %9424 = vmatmul.mubr.msk.f32.gmra.mrb[118].mxu1 %vm109_vm1, %v10888_v6  ;;  %v11553_v2 = vpop.f32.mrb[13].mxu1 }
  0xf9   :  { %9372 = vmatprep.mubr.msk.f32.mxu0 %vm109_vm1, %v10893_v7  ;;  %9426 = vmatprep.mubr.msk.f32.mxu1 %vm109_vm1, %v10893_v7  ;;  %v11575_v7 = vpop.permute.xlu1 %468 }
  0xfa   :  { %16539 = vst [vmem:[#allocation4_spill] sm:$0xff] %v11575_v7 }
  0xfb   :  { %v11559_v3 = vpop.f32.mrb[14].mxu0  ;;  %v11561_v1 = vpop.f32.mrb[14].mxu1 }
  0xfc   :  { %v11563_v4 = vpop.f32.mrb[15].mxu0  ;;  %9373 = vmatmul.mubr.msk.f32.gmra.mrb[120].mxu0 %vm109_vm1, %v10912_v10  ;;  %9427 = vmatmul.mubr.msk.f32.gmra.mrb[120].mxu1 %vm109_vm1, %v10912_v10  ;;  %v11569_v6 = vpop.f32.mrb[15].mxu1 }
  0xfd   :  { %9375 = vmatprep.mubr.msk.f32.mxu0 %vm109_vm1, %v10917_v11  ;;  %9429 = vmatprep.mubr.msk.f32.mxu1 %vm109_vm1, %v10917_v11 }
  0xff   :  { %v9038_v8 = vpop.f32.mrb[16].mxu0  ;;  %v9092_v9 = vpop.f32.mrb[16].mxu1 }
 0x100   :  { %v436_v13 = vmax.f32 %v11443_v12, %v9038_v8  ;;  %v824_v14 = vmax.f32 %v11445_v15, %v9092_v9  ;;  %v356_v19 = vpop.f32.mrb[17].mxu0  ;;  %v744_v10 = vpop.f32.mrb[17].mxu1  ;;  %9376 = vmatmul.mubr.msk.f32.gmra.mrb[122].mxu0 %vm109_vm1, %v10936_v17  ;;  %9430 = vmatmul.mubr.msk.f32.gmra.mrb[122].mxu1 %vm109_vm1, %v10936_v17  ;;  %v2752_v12 = vld [vmem:[%s16409_s3 + $0x8] sm:$0xff] }
 0x101   :  { %v435_v11 = vmax.f32 %v11447_v16, %v356_v19  ;;  %v823_v20 = vmax.f32 %v11453_v21, %v744_v10  ;;  %9378 = vmatprep.mubr.msk.f32.mxu0 %vm109_vm1, %v10941_v18  ;;  %9432 = vmatprep.mubr.msk.f32.mxu1 %vm109_vm1, %v10941_v18  ;;  %v11599_v18 = vpop.permute.xlu1 %478 }
 0x102   :  { %v532_v27 = vadd.f32 %v11577_v5, %v436_v13  ;;  %v840_v28 = vadd.f32 %v824_v14, %v11577_v5  ;;  %16541 = vst [vmem:[#allocation6_spill] sm:$0xff] %v11599_v18 }
 0x103   :  { %v531_v32 = vadd.f32 %v11541_v57, %v435_v11  ;;  %v839_v33 = vadd.f32 %v823_v20, %v11541_v57  ;;  %v9041_v34 = vpop.f32.mrb[18].mxu0  ;;  %v9095_v17 = vpop.f32.mrb[18].mxu1 }
 0x104   :  { %vm548_vm2 = vcmp.gt.f32.partialorder %v532_v27, 0.0  ;;  %v564_v35 = vmul.f32 0.01, %v532_v27  ;;  %9379 = vmatmul.mubr.msk.f32.gmra.mrb[124].mxu0 %vm109_vm1, %v10960_v23  ;;  %9433 = vmatmul.mubr.msk.f32.gmra.mrb[124].mxu1 %vm109_vm1, %v10960_v23  ;;  %vm856_vm4 = vcmp.gt.f32.partialorder %v840_v28, 0.0  ;;  %v872_v39 = vmul.f32 0.01, %v840_v28 }
 0x105   :  { %vm547_vm5 = vcmp.gt.f32.partialorder %v531_v32, 0.0  ;;  %v563_v42 = vmul.f32 0.01, %v531_v32  ;;  %9381 = vmatprep.mubr.msk.f32.mxu0 %vm109_vm1, %v10965_v24  ;;  %9435 = vmatprep.mubr.msk.f32.mxu1 %vm109_vm1, %v10965_v24  ;;  %v871_v43 = vmul.f32 0.01, %v839_v33  ;;  %v438_v45 = vmax.f32 %v11459_v22, %v9041_v34  ;;  %v366_v46 = vpop.f32.mrb[19].mxu0  ;;  %v11629_v20 = vpop.permute.xlu1 %488 }
 0x106   :  { %v826_v23 = vmax.f32 %v11461_v25, %v9095_v17  ;;  %v754_v50 = vpop.f32.mrb[19].mxu1  ;;  %v580_v55 = vsel %vm548_vm2, %v532_v27, %v564_v35  ;;  %vm855_vm6 = vcmp.gt.f32.partialorder %v839_v33, 0.0  ;;  %v437_v15 = vmax.f32 %v11463_v26, %v366_v46  ;;  %16543 = vst [vmem:[#allocation8_spill] sm:$0xff] %v11629_v20  ;;  %v11631_v27 = vpop.permute.xlu0 %483 }
 0x107   :  { %v825_v16 = vmax.f32 %v11469_v29, %v754_v50  ;;  %v579_v21 = vsel %vm547_vm5, %v531_v32, %v563_v42  ;;  %v534_v24 = vadd.f32 %v11575_v7, %v438_v45  ;;  %v9044_v8 = vpop.f32.mrb[20].mxu0  ;;  %v9098_v22 = vpop.f32.mrb[20].mxu1  ;;  %v887_v11 = vsel %vm855_vm6, %v839_v33, %v871_v43  ;;  %16544 = vst [vmem:[#allocation9_spill] sm:$0xff] %v11631_v27 }
 0x108   :  { %9382 = vmatmul.mubr.msk.f32.gmra.mrb[126].mxu0 %vm109_vm1, %v10984_v30  ;;  %9436 = vmatmul.mubr.msk.f32.gmra.mrb[126].mxu1 %vm109_vm1, %v10984_v30  ;;  %v9506_v25 = vpack.c.bf16 %v580_v55, %v579_v21  ;;  %v533_v9 = vadd.f32 %v11539_v63, %v437_v15  ;;  %v440_v26 = vmax.f32 %v11475_v31, %v9044_v8  ;;  %v376_v14 = vpop.f32.mrb[21].mxu0  ;;  %v764_v19 = vpop.f32.mrb[21].mxu1 }
 0x109   :  { %v841_v13 = vadd.f32 %v825_v16, %v11539_v63  ;;  %v828_v29 = vmax.f32 %v11477_v36, %v9098_v22  ;;  %8261 = vmatprep.mubr.msk.f32.mxu0 %vm2879_vm3, %v2752_v12  ;;  %v842_v10 = vadd.f32 %v826_v23, %v11575_v7  ;;  %v888_v30 = vsel %vm856_vm4, %v840_v28, %v872_v39 }
 0x10a   :  { %9507 = vmatpush1.bf16.msra.mxu0 %v9506_v25  ;;  %8277 = vmatprep.mubr.msk.f32.mxu1 %vm2879_vm3, %v2752_v12  ;;  %vm550_vm7 = vcmp.gt.f32.partialorder %v534_v24, 0.0  ;;  %v566_v31 = vmul.f32 0.01, %v534_v24  ;;  %vm549_vm8 = vcmp.gt.f32.partialorder %v533_v9, 0.0  ;;  %v565_v36 = vmul.f32 0.01, %v533_v9 }
 0x10b   :  { %9508 = vmatprep.subr.bf16.mxu0 %v16415_v51  ;;  %v11635_v32 = vadd.f32 %v11599_v18, %v440_v26  ;;  %v11638_v34 = vadd.f32 %v828_v29, %v11599_v18  ;;  %v439_v28 = vmax.f32 %v11479_v37, %v376_v14  ;;  %v827_v33 = vmax.f32 %v11485_v40, %v764_v19  ;;  %v9047_v17 = vpop.f32.mrb[22].mxu0  ;;  %v9101_v35 = vpop.f32.mrb[22].mxu1 }
 0x10c   :  { %v873_v39 = vmul.f32 0.01, %v841_v13  ;;  %v11642_v42 = vpack.c.bf16 %v888_v30, %v887_v11  ;;  %v442_v43 = vmax.f32 %v11491_v41, %v9047_v17  ;;  %v830_v45 = vmax.f32 %v11493_v47, %v9101_v35  ;;  %v386_v23 = vpop.f32.mrb[23].mxu0  ;;  %v774_v46 = vpop.f32.mrb[23].mxu1 }
 0x10d   :  { %vm858_vm9 = vcmp.gt.f32.partialorder %v842_v10, 0.0  ;;  %v874_v50 = vmul.f32 0.01, %v842_v10  ;;  %vm857_vm10 = vcmp.gt.f32.partialorder %v841_v13, 0.0  ;;  %v581_v55 = vsel %vm549_vm8, %v533_v9, %v565_v36  ;;  %v11665_v26 = vpop.permute.xlu1 %498 }
 0x10e   :  { %vm552_vm11 = vcmp.gt.f32.partialorder %v11635_v32, 0.0  ;;  %v568_v37 = vmul.f32 0.01, %v11635_v32  ;;  %v535_v40 = vadd.f32 %v11601_v38, %v439_v28  ;;  %v843_v12 = vadd.f32 %v827_v33, %v11601_v38  ;;  %9543 = vmatpush1.bf16.msra.mxu1 %v11642_v42  ;;  %16545 = vst [vmem:[#allocation10_spill] sm:$0xff] %v11665_v26 }
 0x10f   :  { %vm860_vm12 = vcmp.gt.f32.partialorder %v11638_v34, 0.0  ;;  %v441_v41 = vmax.f32 %v11495_v48, %v386_v23  ;;  %v829_v47 = vmax.f32 %v11501_v53, %v774_v46  ;;  %9544 = vmatprep.subr.bf16.mxu1 %v16415_v51  ;;  %v582_v15 = vsel %vm550_vm7, %v534_v24, %v566_v31  ;;  %v9050_v16 = vpop.f32.mrb[24].mxu0  ;;  %v9104_v21 = vpop.f32.mrb[24].mxu1 }
 0x110   :  { %v876_v8 = vmul.f32 0.01, %v11638_v34  ;;  %v11659_v22 = vadd.f32 %v11629_v20, %v442_v43  ;;  %v11662_v25 = vadd.f32 %v830_v45, %v11629_v20  ;;  %v889_v9 = vsel %vm857_vm10, %v841_v13, %v873_v39  ;;  %v11667_v48 = vpop.permute.xlu0 %493  ;;  %v396_v30 = vpop.f32.mrb[25].mxu0 }
 0x111   :  { %16546 = vst [vmem:[#allocation11_spill] sm:$0xff] %v11667_v48  ;;  %vm551_vm13 = vcmp.gt.f32.partialorder %v535_v40, 0.0  ;;  %v567_v53 = vmul.f32 0.01, %v535_v40  ;;  %vm859_vm14 = vcmp.gt.f32.partialorder %v843_v12, 0.0  ;;  %v11670_v29 = vadd.f32 %v11631_v27, %v441_v41  ;;  %v784_v31 = vpop.f32.mrb[25].mxu1 }
 0x112   :  { %v875_v24 = vmul.f32 0.01, %v843_v12  ;;  %v11673_v14 = vadd.f32 %v829_v47, %v11631_v27  ;;  %v9509_v19 = vpack.c.bf16 %v582_v15, %v581_v55  ;;  %v890_v11 = vsel %vm858_vm9, %v842_v10, %v874_v50 }
 0x113   :  { %v11676_v13 = vpack.c.bf16 %v890_v11, %v889_v9  ;;  %v444_v36 = vmax.f32 %v11507_v54, %v9050_v16  ;;  %v832_v28 = vmax.f32 %v11509_v44, %v9104_v21  ;;  %v443_v33 = vmax.f32 %v11511_v52, %v396_v30  ;;  %v9053_v17 = vpop.f32.mrb[26].mxu0  ;;  %v9107_v10 = vpop.f32.mrb[26].mxu1 }
 0x114   :  { %vm554_vm15 = vcmp.gt.f32.partialorder %v11659_v22, 0.0  ;;  %v570_v35 = vmul.f32 0.01, %v11659_v22  ;;  %vm862_vm0 = vcmp.gt.f32.partialorder %v11662_v25, 0.0  ;;  %v878_v39 = vmul.f32 0.01, %v11662_v25  ;;  %9510 = vmatpush1.bf16.msra.mxu0 %v9509_v19  ;;  %v11708_v47 = vpop.permute.xlu0 %503 }
 0x115   :  { %vm553_vm1 = vcmp.gt.f32.partialorder %v11670_v29, 0.0  ;;  %9546 = vmatpush1.bf16.msra.mxu1 %v11676_v13  ;;  %v11688_v54 = vadd.f32 %v11665_v26, %v444_v36  ;;  %v11691_v44 = vadd.f32 %v832_v28, %v11665_v26  ;;  %v831_v52 = vmax.f32 %v11517_v58, %v784_v31  ;;  %v406_v43 = vpop.f32.mrb[27].mxu0  ;;  %9511 = vmatprep.subr.bf16.mxu0 %v16415_v51  ;;  %v794_v55 = vpop.f32.mrb[27].mxu1 }
 0x116   :  { %v569_v45 = vmul.f32 0.01, %v11670_v29  ;;  %v11696_v23 = vadd.f32 %v11667_v48, %v443_v33  ;;  %9547 = vmatprep.subr.bf16.mxu1 %v16415_v51  ;;  %v583_v46 = vsel %vm551_vm13, %v535_v40, %v567_v53  ;;  %v584_v50 = vsel %vm552_vm11, %v11635_v32, %v568_v37  ;;  %v11706_v58 = vpop.permute.xlu1 %508  ;;  %16548 = vst [vmem:[#allocation13_spill] sm:$0xff] %v11708_v47 }
 0x117   :  { %v11704_v41 = vpop.f32.mrb[28].mxu0  ;;  %16547 = vst [vmem:[#allocation12_spill] sm:$0xff] %v11706_v58  ;;  %vm861_vm2 = vcmp.gt.f32.partialorder %v11673_v14, 0.0  ;;  %v877_v15 = vmul.f32 0.01, %v11673_v14  ;;  %vm556_vm4 = vcmp.gt.f32.partialorder %v11688_v54, 0.0  ;;  %v891_v16 = vsel %vm859_vm14, %v843_v12, %v875_v24 }
 0x118   :  { %v572_v40 = vmul.f32 0.01, %v11688_v54  ;;  %v11716_v21 = vmul.f32 0.01, %v11691_v44  ;;  %v11719_v32 = vadd.f32 %v831_v52, %v11667_v48  ;;  %v9512_v37 = vpack.c.bf16 %v584_v50, %v583_v46  ;;  %v9110_v9 = vpop.f32.mrb[28].mxu1  ;;  %v416_v53 = vpop.f32.mrb[29].mxu0 }
 0x119   :  { %v892_v19 = vsel %vm860_vm12, %v11638_v34, %v876_v8  ;;  %v446_v11 = vmax.f32 %v11523_v59, %v9053_v17  ;;  %v834_v30 = vmax.f32 %v11525_v49, %v9107_v10  ;;  %v445_v12 = vmax.f32 %v11527_v56, %v406_v43  ;;  %v804_v24 = vpop.f32.mrb[29].mxu1 }
 0x11a   :  { %vm864_vm5 = vcmp.gt.f32.partialorder %v11691_v44, 0.0  ;;  %vm555_vm6 = vcmp.gt.f32.partialorder %v11696_v23, 0.0  ;;  %v571_v31 = vmul.f32 0.01, %v11696_v23  ;;  %9513 = vmatpush1.bf16.msra.mxu0 %v9512_v37  ;;  %v11730_v36 = vpack.c.bf16 %v892_v19, %v891_v16 }
 0x11b   :  { %v833_v28 = vmax.f32 %v11533_v62, %v794_v55  ;;  %v11733_v33 = vpop.f32.mrb[30].mxu0  ;;  %v11735_v34 = vpop.f32.mrb[30].mxu1  ;;  %vm863_vm7 = vcmp.gt.f32.partialorder %v11719_v32, 0.0  ;;  %v11739_v59 = vadd.f32 %v11706_v58, %v446_v11  ;;  %v11742_v49 = vadd.f32 %v834_v30, %v11706_v58  ;;  %9514 = vmatprep.subr.bf16.mxu0 %v16415_v51 }
 0x11c   :  { %v11745_v56 = vadd.f32 %v11708_v47, %v445_v12  ;;  %v11748_v8 = vpop.f32.mrb[31].mxu0  ;;  %v11750_v62 = vpop.f32.mrb[31].mxu1  ;;  %9549 = vmatpush1.bf16.msra.mxu1 %v11730_v36  ;;  %v585_v17 = vsel %vm553_vm1, %v11670_v29, %v569_v45  ;;  %v586_v52 = vsel %vm554_vm15, %v11659_v22, %v570_v35  ;;  %v893_v10 = vsel %vm861_vm2, %v11673_v14, %v877_v15 }
 0x11d   :  { %v894_v43 = vsel %vm862_vm0, %v11662_v25, %v878_v39  ;;  %v879_v46 = vmul.f32 0.01, %v11719_v32  ;;  %vm558_vm8 = vcmp.gt.f32.partialorder %v11739_v59, 0.0  ;;  %v574_v50 = vmul.f32 0.01, %v11739_v59  ;;  %9550 = vmatprep.subr.bf16.mxu1 %v16415_v51  ;;  %v11772_v22 = vpop.permute.xlu1 %518  ;;  %v11774_v35 = vpop.permute.xlu0 %513 }
 0x11e   :  { %v11769_v29 = vadd.f32 %v833_v28, %v11708_v47  ;;  %16549 = vst [vmem:[#allocation14_spill] sm:$0xff] %v11772_v22  ;;  %16550 = vst [vmem:[#allocation15_spill] sm:$0xff] %v11774_v35  ;;  %vm866_vm9 = vcmp.gt.f32.partialorder %v11742_v49, 0.0  ;;  %v11778_v14 = vmul.f32 0.01, %v11742_v49  ;;  %vm557_vm10 = vcmp.gt.f32.partialorder %v11745_v56, 0.0 }
 0x11f   :  { %v573_v25 = vmul.f32 0.01, %v11745_v56  ;;  %v9515_v39 = vpack.c.bf16 %v586_v52, %v585_v17  ;;  %v11782_v45 = vpack.c.bf16 %v894_v43, %v893_v10  ;;  %v448_v55 = vmax.f32 %v11543_v60, %v11704_v41  ;;  %v11787_v16 = vpop.f32.mrb[32].mxu0  ;;  %v11789_v37 = vpop.f32.mrb[32].mxu1 }
 0x120   :  { %v836_v15 = vmax.f32 %v11545_v61, %v9110_v9  ;;  %v447_v19 = vmax.f32 %v11547_v0, %v416_v53  ;;  %v835_v11 = vmax.f32 %v11553_v2, %v804_v24  ;;  %v587_v30 = vsel %vm555_vm6, %v11696_v23, %v571_v31  ;;  %v11799_v28 = vpop.f32.mrb[33].mxu0  ;;  %v11801_v60 = vpop.f32.mrb[33].mxu1 }
 0x121   :  { %v588_v12 = vsel %vm556_vm4, %v11688_v54, %v572_v40  ;;  %vm865_vm11 = vcmp.gt.f32.partialorder %v11769_v29, 0.0  ;;  %9516 = vmatpush1.bf16.msra.mxu0 %v9515_v39  ;;  %9552 = vmatpush1.bf16.msra.mxu1 %v11782_v45  ;;  %v544_v61 = vadd.f32 %v11772_v22, %v448_v55  ;;  %v881_v23 = vmul.f32 0.01, %v11769_v29  ;;  %v11819_v17 = vpop.permute.xlu1 %528  ;;  %v11821_v52 = vpop.permute.xlu0 %523 }
 0x122   :  { %v852_v0 = vadd.f32 %v836_v15, %v11772_v22  ;;  %v9518_v2 = vpack.c.bf16 %v588_v12, %v587_v30  ;;  %v543_v41 = vadd.f32 %v11774_v35, %v447_v19  ;;  %v851_v54 = vadd.f32 %v835_v11, %v11774_v35  ;;  %9517 = vmatprep.subr.bf16.mxu0 %v16415_v51 }
 0x123   :  { %9553 = vmatprep.subr.bf16.mxu1 %v16415_v51  ;;  %v895_v40 = vsel %vm863_vm7, %v11719_v32, %v879_v46  ;;  %v11815_v9 = vpop.f32.mrb[34].mxu0  ;;  %v11817_v53 = vpop.f32.mrb[34].mxu1  ;;  %vm560_vm12 = vcmp.gt.f32.partialorder %v544_v61, 0.0  ;;  %v576_v24 = vmul.f32 0.01, %v544_v61  ;;  %16551 = vst [vmem:[#allocation16_spill] sm:$0xff] %v11819_v17  ;;  %v896_v32 = vsel %vm864_vm5, %v11691_v44, %v11716_v21 }
 0x124   :  { %vm868_vm13 = vcmp.gt.f32.partialorder %v852_v0, 0.0  ;;  %v884_v31 = vmul.f32 0.01, %v852_v0  ;;  %16552 = vst [vmem:[#allocation17_spill] sm:$0xff] %v11821_v52  ;;  %vm559_vm14 = vcmp.gt.f32.partialorder %v543_v41, 0.0  ;;  %vm867_vm15 = vcmp.gt.f32.partialorder %v851_v54, 0.0 }
 0x125   :  { %v575_v10 = vmul.f32 0.01, %v543_v41  ;;  %v883_v43 = vmul.f32 0.01, %v851_v54  ;;  %9519 = vmatpush1.bf16.msra.mxu0 %v9518_v2  ;;  %v450_v46 = vmax.f32 %v11559_v3, %v11733_v33  ;;  %v838_v39 = vmax.f32 %v11561_v1, %v11735_v34  ;;  %v11833_v15 = vpop.f32.mrb[35].mxu0  ;;  %v11835_v19 = vpop.f32.mrb[35].mxu1 }
 0x126   :  { %v449_v55 = vmax.f32 %v11563_v4, %v11748_v8  ;;  %v9554_v11 = vpack.c.bf16 %v896_v32, %v895_v40  ;;  %v837_v30 = vmax.f32 %v11569_v6, %v11750_v62  ;;  %9520 = vmatprep.subr.bf16.mxu0 %v16415_v51  ;;  %v589_v3 = vsel %vm557_vm10, %v11745_v56, %v573_v25 }
 0x127   :  { %v590_v1 = vsel %vm558_vm8, %v11739_v59, %v574_v50  ;;  %v11846_v44 = vpop.f32.mrb[36].mxu0  ;;  %v11848_v4 = vpop.f32.mrb[36].mxu1  ;;  %v546_v21 = vadd.f32 %v11819_v17, %v450_v46  ;;  %v854_v33 = vadd.f32 %v838_v39, %v11819_v17  ;;  %v897_v59 = vsel %vm865_vm11, %v11769_v29, %v881_v23 }
 0x128   :  { %v545_v6 = vadd.f32 %v11821_v52, %v449_v55  ;;  %v9521_v34 = vpack.c.bf16 %v590_v1, %v589_v3  ;;  %v11853_v8 = vpop.f32.mrb[37].mxu0  ;;  %v11855_v62 = vpop.f32.mrb[37].mxu1  ;;  %9555 = vmatpush1.bf16.msra.mxu1 %v9554_v11  ;;  %v853_v56 = vadd.f32 %v837_v30, %v11821_v52  ;;  %v898_v50 = vsel %vm866_vm9, %v11742_v49, %v11778_v14 }
 0x129   :  { %v591_v25 = vsel %vm559_vm14, %v543_v41, %v575_v10  ;;  %vm562_vm0 = vcmp.gt.f32.partialorder %v546_v21, 0.0  ;;  %v578_v12 = vmul.f32 0.01, %v546_v21  ;;  %vm870_vm1 = vcmp.gt.f32.partialorder %v854_v33, 0.0  ;;  %9556 = vmatprep.subr.bf16.mxu1 %v16415_v51 }
 0x12a   :  { %v886_v2 = vmul.f32 0.01, %v854_v33  ;;  %9522 = vmatpush1.bf16.msra.mxu0 %v9521_v34  ;;  %vm561_vm2 = vcmp.gt.f32.partialorder %v545_v6, 0.0  ;;  %v577_v40 = vmul.f32 0.01, %v545_v6  ;;  %vm869_vm4 = vcmp.gt.f32.partialorder %v853_v56, 0.0 }
 0x12b   :  { %v885_v32 = vmul.f32 0.01, %v853_v56  ;;  %9523 = vmatprep.subr.bf16.mxu0 %v16415_v51  ;;  %v9557_v29 = vpack.c.bf16 %v898_v50, %v897_v59  ;;  %v592_v23 = vsel %vm560_vm12, %v544_v61, %v576_v24  ;;  %v899_v49 = vsel %vm867_vm15, %v851_v54, %v883_v43  ;;  %v11871_v41 = vpop.f32.mrb[38].mxu0  ;;  %v11873_v10 = vpop.f32.mrb[38].mxu1 }
 0x12c   :  { %v900_v14 = vsel %vm868_vm13, %v852_v0, %v884_v31  ;;  %v9524_v46 = vpack.c.bf16 %v592_v23, %v591_v25  ;;  %v593_v55 = vsel %vm561_vm2, %v545_v6, %v577_v40  ;;  %v594_v11 = vsel %vm562_vm0, %v546_v21, %v578_v12  ;;  %v11876_v30 = vpop.f32.mrb[39].mxu0  ;;  %v11878_v3 = vpop.f32.mrb[39].mxu1 }
 0x12d   :  { %v9560_v39 = vpack.c.bf16 %v900_v14, %v899_v49  ;;  %9558 = vmatpush1.bf16.msra.mxu1 %v9557_v29  ;;  %v9527_v1 = vpack.c.bf16 %v594_v11, %v593_v55  ;;  %v901_v61 = vsel %vm869_vm4, %v853_v56, %v885_v32  ;;  %v902_v54 = vsel %vm870_vm1, %v854_v33, %v886_v2 }
 0x12e   :  { %9559 = vmatprep.subr.bf16.mxu1 %v16415_v51  ;;  %9525 = vmatpush1.bf16.msra.mxu0 %v9524_v46  ;;  %v9563_v0 = vpack.c.bf16 %v902_v54, %v901_v61 }
 0x12f   :  { %v11883_v24 = vpop.f32.mrb[40].mxu0  ;;  %v11885_v31 = vpop.f32.mrb[40].mxu1  ;;  %9526 = vmatprep.subr.bf16.mxu0 %v16415_v51 }
 0x130   :  { %v11888_v43 = vpop.f32.mrb[41].mxu0  ;;  %v11890_v21 = vpop.f32.mrb[41].mxu1 }
 0x131   :  { %9561 = vmatpush1.bf16.msra.mxu1 %v9560_v39 }
 0x132   :  { %9562 = vmatprep.subr.bf16.mxu1 %v16415_v51  ;;  %9528 = vmatpush1.bf16.msra.mxu0 %v9527_v1 }
 0x133   :  { %v11893_v6 = vpop.f32.mrb[42].mxu0  ;;  %v11895_v33 = vpop.f32.mrb[42].mxu1  ;;  %9529 = vmatprep.subr.bf16.mxu0 %v16415_v51 }
 0x134   :  { %v11898_v34 = vpop.f32.mrb[43].mxu0  ;;  %v11900_v56 = vpop.f32.mrb[43].mxu1 }
 0x135   :  { %9564 = vmatpush1.bf16.msra.mxu1 %v9563_v0 }
 0x136   :  { %9531 = vmatpush1.bf16.msra.mxu0 %v11642_v42  ;;  %9565 = vmatprep.subr.bf16.mxu1 %v16415_v51 }
 0x137   :  { %v11903_v59 = vpop.f32.mrb[44].mxu0  ;;  %v11905_v50 = vpop.f32.mrb[44].mxu1  ;;  %9532 = vmatprep.subr.bf16.mxu0 %v16415_v51 }
 0x138   :  { %v11909_v25 = vpop.f32.mrb[45].mxu0  ;;  %v11911_v12 = vpop.f32.mrb[45].mxu1 }
 0x13a   :  { %9534 = vmatpush1.bf16.msra.mxu0 %v11676_v13 }
 0x13b   :  { %v11914_v2 = vpop.f32.mrb[46].mxu0  ;;  %v11916_v40 = vpop.f32.mrb[46].mxu1  ;;  %9535 = vmatprep.subr.bf16.mxu0 %v16415_v51 }
 0x13c   :  { %v11919_v42 = vpop.f32.mrb[47].mxu0  ;;  %v11921_v32 = vpop.f32.mrb[47].mxu1 }
 0x13e   :  { %9537 = vmatpush1.bf16.msra.mxu0 %v11730_v36  ;;  %v11934_v36 = vld [vmem:[%s16409_s3] sm:$0xff] }
 0x13f   :  { %v9146_v29 = vpop.f32.mrb[48].mxu0  ;;  %v9200_v23 = vpop.f32.mrb[48].mxu1  ;;  %9538 = vmatprep.subr.bf16.mxu0 %v16415_v51 }
 0x140   :  { %v1132_v49 = vmax.f32 %v11787_v16, %v9146_v29  ;;  %v1440_v13 = vmax.f32 %v11789_v37, %v9200_v23  ;;  %v1052_v14 = vpop.f32.mrb[49].mxu0  ;;  %v1360_v46 = vpop.f32.mrb[49].mxu1  ;;  %v11942_v37 = vld [vmem:[%s16409_s3 + $0x18] sm:$0xff]  ;;  %v11956_v23 = vld [vmem:[%s16409_s3 + $0x10] sm:$0xff] }
 0x141   :  { %v1131_v39 = vmax.f32 %v11799_v28, %v1052_v14  ;;  %v1439_v55 = vmax.f32 %v11801_v60, %v1360_v46  ;;  %16553 = vst [vmem:[#allocation18_spill] sm:$0xff] %v11942_v37  ;;  %16554 = vst [vmem:[#allocation19_spill] sm:$0xff] %v11956_v23 }
 0x142   :  { %v1148_v11 = vadd.f32 %v1132_v49, %v11577_v5  ;;  %9540 = vmatpush1.bf16.msra.mxu0 %v11782_v45 }
 0x143   :  { %v1147_v1 = vadd.f32 %v1131_v39, %v11541_v57  ;;  %v9149_v16 = vpop.f32.mrb[50].mxu0  ;;  %v11937_v61 = vpop.f32.mrb[50].mxu1  ;;  %9577 = vmatprep.subr.bf16.mxu0 %v16415_v51  ;;  %v11966_v39 = vld [vmem:[%s16409_s3 + $0x28] sm:$0xff] }
 0x144   :  { %v1180_v45 = vmul.f32 0.01, %v1148_v11  ;;  %v1134_v60 = vmax.f32 %v11815_v9, %v9149_v16  ;;  %v1062_v0 = vpop.f32.mrb[51].mxu0  ;;  %v11949_v29 = vpop.f32.mrb[51].mxu1  ;;  %vm1164_vm5 = vcmp.gt.f32.partialorder %v1148_v11, 0.0  ;;  %16555 = vst [vmem:[#allocation20_spill] sm:$0xff] %v11966_v39 }
 0x145   :  { %2993 = vmatmul.mubr.f32.vlgmr.msra.gmra.mrb[128].mxu0 %v11934_v36  ;;  %v1179_v28 = vmul.f32 0.01, %v1147_v1  ;;  %vm1163_vm6 = vcmp.gt.f32.partialorder %v1147_v1, 0.0  ;;  %v1133_v49 = vmax.f32 %v11833_v15, %v1062_v0  ;;  %v1441_v9 = vmax.f32 %v11835_v19, %v11949_v29 }
 0x146   :  { %8262 = vmatprep.mubr.msk.f32.mxu0 %vm2879_vm3, %v11942_v37  ;;  %v1150_v16 = vadd.f32 %v1134_v60, %v11575_v7  ;;  %v1456_v37 = vadd.f32 %v1440_v13, %v11577_v5  ;;  %v11995_v13 = vld [vmem:[%s16409_s3 + $0x38] sm:$0xff] }
 0x147   :  { %v9152_v14 = vpop.f32.mrb[52].mxu0  ;;  %v11961_v46 = vpop.f32.mrb[52].mxu1  ;;  %v1149_v19 = vadd.f32 %v1133_v49, %v11539_v63  ;;  %v1195_v60 = vsel %vm1163_vm6, %v1147_v1, %v1179_v28  ;;  %v11987_v49 = vld [vmem:[%s16409_s3 + $0x20] sm:$0xff]  ;;  %16557 = vst [vmem:[#allocation22_spill] sm:$0xff] %v11995_v13 }
 0x148   :  { %v1136_v54 = vmax.f32 %v11846_v44, %v9152_v14  ;;  %v1072_v52 = vpop.f32.mrb[53].mxu0  ;;  %v11972_v15 = vpop.f32.mrb[53].mxu1  ;;  %v1196_v44 = vsel %vm1164_vm5, %v1148_v11, %v1180_v45  ;;  %16556 = vst [vmem:[#allocation21_spill] sm:$0xff] %v11987_v49  ;;  %vm1166_vm8 = vcmp.gt.f32.partialorder %v1150_v16, 0.0  ;;  %vm1472_vm9 = vcmp.gt.f32.partialorder %v1456_v37, 0.0 }
 0x149   :  { %v1135_v0 = vmax.f32 %v11853_v8, %v1072_v52  ;;  %2998 = vmatmul.mubr.f32.gmra.mrb[130].mxu0 %v11956_v23  ;;  %v1182_v52 = vmul.f32 0.01, %v1150_v16  ;;  %v11990_v8 = vadd.f32 %v1439_v55, %v11541_v57  ;;  %vm1165_vm7 = vcmp.gt.f32.partialorder %v1149_v19, 0.0  ;;  %v12006_v57 = vld [vmem:[%s16409_s3 + $0x30] sm:$0xff] }
 0x14a   :  { %8263 = vmatprep.mubr.msk.f32.mxu0 %vm2879_vm3, %v11966_v39  ;;  %v1181_v14 = vmul.f32 0.01, %v1149_v19  ;;  %v9566_v28 = vpack.c.bf16 %v1196_v44, %v1195_v60  ;;  %v1488_v55 = vmul.f32 0.01, %v1456_v37 }
 0x14b   :  { %v9155_v11 = vpop.f32.mrb[54].mxu0  ;;  %v9209_v1 = vpop.f32.mrb[54].mxu1  ;;  %v1151_v45 = vadd.f32 %v1135_v0, %v11601_v38  ;;  %v1152_v0 = vadd.f32 %v1136_v54, %v11599_v18  ;;  %vm1471_vm10 = vcmp.gt.f32.partialorder %v11990_v8, 0.0  ;;  %v16558_v54 = vmov 0.0|0.0  }
 0x14c   :  { %v1138_v29 = vmax.f32 %v11871_v41, %v9155_v11  ;;  %v1446_v51 = vmax.f32 %v11873_v10, %v9209_v1  ;;  %v1082_v5 = vpop.f32.mrb[55].mxu0  ;;  %v1390_v39 = vpop.f32.mrb[55].mxu1  ;;  %9567 = vmatpush1.bf16.msra.mxu1 %v9566_v28  ;;  %v12013_v41 = vld [vmem:[%s16409_s3 + $0x48] sm:$0xff]  ;;  %9579 = vmatpush1.bf16.msra.mxu0 %v9566_v28  ;;  %v1197_v44 = vsel %vm1165_vm7, %v1149_v19, %v1181_v14 }
 0x14d   :  { %3003 = vmatmul.mubr.f32.gmra.mrb[132].mxu0 %v11987_v49  ;;  %v1137_v10 = vmax.f32 %v11876_v30, %v1082_v5  ;;  %v1445_v60 = vmax.f32 %v11878_v3, %v1390_v39  ;;  %9568 = vmatprep.subr.bf16.mxu1 %v16558_v54  ;;  %v1198_v49 = vsel %vm1166_vm8, %v1150_v16, %v1182_v52  ;;  %vm1167_vm11 = vcmp.gt.f32.partialorder %v1151_v45, 0.0 }
 0x14e   :  { %8264 = vmatprep.mubr.msk.f32.mxu0 %vm2879_vm3, %v11995_v13  ;;  %v1183_v13 = vmul.f32 0.01, %v1151_v45  ;;  %9580 = vmatprep.subr.bf16.mxu0 %v16558_v54  ;;  %v16559_v3 = vmax.f32 %v11817_v53, %v11937_v61  ;;  %v12036_v19 = vadd.f32 %v1138_v29, %v11629_v20  ;;  %v1184_v16 = vmul.f32 0.01, %v1152_v0  ;;  %v12049_v53 = vld [vmem:[%s16409_s3 + $0x40] sm:$0xff] }
 0x14f   :  { %v9158_v11 = vpop.f32.mrb[56].mxu0  ;;  %v12018_v1 = vpop.f32.mrb[56].mxu1  ;;  %v1153_v61 = vadd.f32 %v1137_v10, %v11631_v27  ;;  %v9569_v52 = vpack.c.bf16 %v1198_v49, %v1197_v44  ;;  %vm1168_vm12 = vcmp.gt.f32.partialorder %v1152_v0, 0.0 }
 0x150   :  { %v1140_v23 = vmax.f32 %v11883_v24, %v9158_v11  ;;  %v1448_v28 = vmax.f32 %v11885_v31, %v12018_v1  ;;  %v1092_v5 = vpop.f32.mrb[57].mxu0  ;;  %v12026_v30 = vpop.f32.mrb[57].mxu1  ;;  %v12032_v39 = vadd.f32 %v16559_v3, %v11575_v7  ;;  %v12039_v24 = vsel %vm1472_vm9, %v1456_v37, %v1488_v55  ;;  %v12063_v55 = vld [vmem:[%s16409_s3 + $0x58] sm:$0xff] }
 0x151   :  { %3008 = vmatmul.mubr.f32.gmra.mrb[134].mxu0 %v12006_v57  ;;  %v12042_v31 = vadd.f32 %v1441_v9, %v11539_v63  ;;  %v16560_v37 = vmax.f32 %v11848_v4, %v11961_v46  ;;  %v1139_v11 = vmax.f32 %v11888_v43, %v1092_v5  ;;  %v1447_v49 = vmax.f32 %v11890_v21, %v12026_v30  ;;  %v12104_v30 = vld [vmem:[%s16409_s3 + $0x68] sm:$0xff] }
 0x152   :  { %8265 = vmatprep.mubr.msk.f32.mxu0 %vm2879_vm3, %v12013_v41  ;;  %v1487_v1 = vmul.f32 0.01, %v11990_v8  ;;  %v16561_v4 = vmax.f32 %v11855_v62, %v11972_v15  ;;  %v12078_v3 = vadd.f32 %v1446_v51, %v11629_v20  ;;  %9570 = vmatpush1.bf16.msra.mxu1 %v9569_v52  ;;  %v1199_v43 = vsel %vm1167_vm11, %v1151_v45, %v1183_v13  ;;  %v12096_v15 = vld [vmem:[%s16409_s3 + $0x50] sm:$0xff] }
 0x153   :  { %v9161_v29 = vpop.f32.mrb[58].mxu0  ;;  %v12052_v14 = vpop.f32.mrb[58].mxu1  ;;  %v12058_v9 = vadd.f32 %v16560_v37, %v11599_v18  ;;  %9582 = vmatpush1.bf16.msra.mxu0 %v9569_v52  ;;  %vm1170_vm13 = vcmp.gt.f32.partialorder %v12036_v19, 0.0  ;;  %v1186_v21 = vmul.f32 0.01, %v12036_v19  ;;  %v12085_v5 = vadd.f32 %v1445_v60, %v11631_v27  ;;  %9571 = vmatprep.subr.bf16.mxu1 %v16558_v54 }
 0x154   :  { %v1102_v10 = vpop.f32.mrb[59].mxu0  ;;  %v12068_v44 = vpop.f32.mrb[59].mxu1  ;;  %v12075_v46 = vadd.f32 %v16561_v4, %v11601_v38  ;;  %v12088_v62 = vadd.f32 %v1140_v23, %v11665_v26  ;;  %vm1169_vm14 = vcmp.gt.f32.partialorder %v1153_v61, 0.0  ;;  %v1185_v51 = vmul.f32 0.01, %v1153_v61  ;;  %9583 = vmatprep.subr.bf16.mxu0 %v16558_v54 }
 0x155   :  { %3013 = vmatmul.mubr.f32.gmra.mrb[136].mxu0 %v12049_v53  ;;  %v1155_v13 = vadd.f32 %v1139_v11, %v11667_v48  ;;  %v1200_v45 = vsel %vm1168_vm12, %v1152_v0, %v1184_v16  ;;  %v1142_v37 = vmax.f32 %v11893_v6, %v9161_v29  ;;  %v1450_v4 = vmax.f32 %v11895_v33, %v12052_v14 }
 0x156   :  { %8266 = vmatprep.mubr.msk.f32.mxu0 %vm2879_vm3, %v12063_v55  ;;  %v9572_v52 = vpack.c.bf16 %v1200_v45, %v1199_v43  ;;  %v1141_v27 = vmax.f32 %v11898_v34, %v1102_v10  ;;  %v12113_v0 = vmul.f32 0.01, %v12032_v39  ;;  %v12116_v16 = vmul.f32 0.01, %v12042_v31 }
 0x157   :  { %v9164_v23 = vpop.f32.mrb[60].mxu0  ;;  %v9218_v60 = vpop.f32.mrb[60].mxu1  ;;  %v12119_v38 = vmul.f32 0.01, %v12058_v9  ;;  %v1503_v6 = vsel %vm1471_vm10, %v11990_v8, %v1487_v1  ;;  %v12125_v33 = vmul.f32 0.01, %v12075_v46  ;;  %v12133_v14 = vadd.f32 %v1448_v28, %v11665_v26 }
 0x158   :  { %v1112_v11 = vpop.f32.mrb[61].mxu0  ;;  %v12110_v20 = vpop.f32.mrb[61].mxu1  ;;  %v12128_v34 = vmul.f32 0.01, %v12078_v3  ;;  %v1188_v29 = vmul.f32 0.01, %v12088_v62  ;;  %9573 = vmatpush1.bf16.msra.mxu1 %v9572_v52  ;;  %9585 = vmatpush1.bf16.msra.mxu0 %v9572_v52  ;;  %v1449_v1 = vmax.f32 %v11900_v56, %v12068_v44  ;;  %v1201_v43 = vsel %vm1169_vm14, %v1153_v61, %v1185_v51 }
 0x159   :  { %3018 = vmatmul.mubr.f32.gmra.mrb[138].mxu0 %v12096_v15  ;;  %vm1473_vm15 = vcmp.gt.f32.partialorder %v12042_v31, 0.0  ;;  %v1187_v10 = vmul.f32 0.01, %v1155_v13  ;;  %v12141_v8 = vld [vmem:[%s16409_s3 + $0x60] sm:$0xff]  ;;  %v1202_v28 = vsel %vm1170_vm13, %v12036_v19, %v1186_v21  ;;  %vm1474_vm0 = vcmp.gt.f32.partialorder %v12032_v39, 0.0  ;;  %v12164_v61 = vld [vmem:[%s16409_s3 + $0x78] sm:$0xff]  ;;  %9574 = vmatprep.subr.bf16.mxu1 %v16558_v54 }
 0x15a   :  { %8267 = vmatprep.mubr.msk.f32.mxu0 %vm2879_vm3, %v12104_v30  ;;  %v12155_v18 = vmul.f32 0.01, %v12085_v5  ;;  %vm1172_vm1 = vcmp.gt.f32.partialorder %v12088_v62, 0.0  ;;  %vm1171_vm2 = vcmp.gt.f32.partialorder %v1155_v13, 0.0  ;;  %v12159_v56 = vadd.f32 %v1142_v37, %v11706_v58  ;;  %16562 = vst [vmem:[#allocation23_spill] sm:$0xff] %v12164_v61  ;;  %9586 = vmatprep.subr.bf16.mxu0 %v16558_v54 }
 0x15b   :  { %v12149_v45 = vpop.f32.mrb[62].mxu0  ;;  %v12151_v26 = vpop.f32.mrb[62].mxu1  ;;  %v12169_v19 = vadd.f32 %v1447_v49, %v11667_v48  ;;  %v12172_v44 = vadd.f32 %v1450_v4, %v11706_v58  ;;  %v12175_v21 = vadd.f32 %v1141_v27, %v11708_v47  ;;  %v9575_v51 = vpack.c.bf16 %v1202_v28, %v1201_v43  ;;  %v16569_v58 = vld [vmem:[#allocation17_spill] sm:$0xff] }
 0x15c   :  { %v12177_v52 = vpop.f32.mrb[63].mxu0  ;;  %v12179_v37 = vpop.f32.mrb[63].mxu1  ;;  %v1144_v63 = vmax.f32 %v11903_v59, %v9164_v23  ;;  %v1452_v7 = vmax.f32 %v11905_v50, %v9218_v60  ;;  %v1143_v49 = vmax.f32 %v11909_v25, %v1112_v11  ;;  %v1451_v4 = vmax.f32 %v11911_v12, %v12110_v20  ;;  %v12200_v59 = vld [vmem:[%s16409_s3 + $0x70] sm:$0xff] }
 0x15d   :  { %3023 = vmatmul.mubr.f32.gmra.mrb[140].mxu0 %v12141_v8  ;;  %vm1476_vm4 = vcmp.gt.f32.partialorder %v12058_v9, 0.0  ;;  %vm1475_vm5 = vcmp.gt.f32.partialorder %v12075_v46, 0.0  ;;  %v12190_v27 = vmul.f32 0.01, %v12133_v14  ;;  %v12193_v43 = vadd.f32 %v1449_v1, %v11708_v47  ;;  %16563 = vst [vmem:[#allocation24_spill] sm:$0xff] %v12200_v59  ;;  %9576 = vmatpush1.bf16.msra.mxu1 %v9575_v51 }
 0x15e   :  { %8268 = vmatprep.mubr.msk.f32.mxu0 %vm2879_vm3, %v12164_v61  ;;  %v1203_v20 = vsel %vm1171_vm2, %v1155_v13, %v1187_v10  ;;  %v1204_v50 = vsel %vm1172_vm1, %v12088_v62, %v1188_v29  ;;  %v1190_v23 = vmul.f32 0.01, %v12159_v56  ;;  %9588 = vmatpush1.bf16.msra.mxu0 %v9575_v51  ;;  %v12212_v60 = vadd.f32 %v1144_v63, %v11772_v22  ;;  %v12223_v62 = vld [vmem:[%s16409_s3 + $0x88] sm:$0xff] }
 0x15f   :  { %v12206_v25 = vpop.f32.mrb[64].mxu0  ;;  %v12208_v12 = vpop.f32.mrb[64].mxu1  ;;  %v12215_v11 = vadd.f32 %v1452_v7, %v11772_v22  ;;  %v12218_v1 = vadd.f32 %v1143_v49, %v11774_v35  ;;  %16564 = vst [vmem:[#allocation25_spill] sm:$0xff] %v12223_v62  ;;  %vm1478_vm6 = vcmp.gt.f32.partialorder %v12078_v3, 0.0  ;;  %vm1477_vm7 = vcmp.gt.f32.partialorder %v12085_v5, 0.0  ;;  %9589 = vmatprep.subr.bf16.mxu0 %v16558_v54  ;;  %9613 = vmatprep.subr.bf16.mxu1 %v16558_v54  ;;  %v12281_v22 = vld [vmem:[%s16409_s3 + $0x98] sm:$0xff] }
 0x160   :  { %v12225_v13 = vpop.f32.mrb[65].mxu0  ;;  %v12227_v29 = vpop.f32.mrb[65].mxu1  ;;  %v1189_v63 = vmul.f32 0.01, %v12175_v21  ;;  %v9590_v7 = vpack.c.bf16 %v1204_v50, %v1203_v20  ;;  %v12235_v10 = vpack.c.bf16 %v12039_v24, %v1503_v6  ;;  %v1146_v28 = vmax.f32 %v11914_v2, %v12149_v45  ;;  %3186 = vmatmul.mubr.f32.vlgmr.msra.gmra.mrb[128].mxu1 %v11934_v36  ;;  %v12266_v45 = vld [vmem:[%s16409_s3 + $0x80] sm:$0xff]  ;;  %16566 = vst [vmem:[#allocation27_spill] sm:$0xff] %v12281_v22 }
 0x161   :  { %vm1479_vm8 = vcmp.gt.f32.partialorder %v12169_v19, 0.0  ;;  %v12241_v51 = vmul.f32 0.01, %v12169_v19  ;;  %vm1174_vm9 = vcmp.gt.f32.partialorder %v12159_v56, 0.0  ;;  %v12245_v49 = vmul.f32 0.01, %v12172_v44  ;;  %3028 = vmatmul.mubr.f32.gmra.mrb[142].mxu0 %v12200_v59 }
 0x162   :  { %vm1173_vm10 = vcmp.gt.f32.partialorder %v12175_v21, 0.0  ;;  %vm1480_vm11 = vcmp.gt.f32.partialorder %v12133_v14, 0.0  ;;  %vm1482_vm12 = vcmp.gt.f32.partialorder %v12172_v44, 0.0  ;;  %vm1481_vm13 = vcmp.gt.f32.partialorder %v12193_v43, 0.0  ;;  %8269 = vmatprep.mubr.msk.f32.mxu0 %vm2879_vm3, %v12223_v62  ;;  %16565 = vst [vmem:[#allocation26_spill] sm:$0xff] %v12266_v45  ;;  %9615 = vmatpush1.bf16.msra.mxu1 %v12235_v10 }
 0x163   :  { %v12254_v2 = vmul.f32 0.01, %v12193_v43  ;;  %vm1176_vm14 = vcmp.gt.f32.partialorder %v12212_v60, 0.0  ;;  %v1192_v24 = vmul.f32 0.01, %v12212_v60  ;;  %v12259_v6 = vadd.f32 %v1451_v4, %v11774_v35  ;;  %9591 = vmatpush1.bf16.msra.mxu0 %v9590_v7  ;;  %v12283_v47 = vpop.f32.mrb[66].mxu0  ;;  %9616 = vmatprep.subr.bf16.mxu1 %v16558_v54 }
 0x164   :  { %v12270_v20 = vadd.f32 %v1146_v28, %v11819_v17  ;;  %v1454_v50 = vmax.f32 %v11916_v40, %v12151_v26  ;;  %v1145_v4 = vmax.f32 %v11919_v42, %v12177_v52  ;;  %v1453_v35 = vmax.f32 %v11921_v32, %v12179_v37  ;;  %v12285_v7 = vpop.f32.mrb[66].mxu1  ;;  %v16567_v26 = vld [vmem:[#allocation18_spill] sm:$0xff]  ;;  %9592 = vmatprep.subr.bf16.mxu0 %v16558_v54  ;;  %v12298_v32 = vpop.f32.mrb[67].mxu0 }
 0x165   :  { %vm1484_vm1 = vcmp.gt.f32.partialorder %v12215_v11, 0.0  ;;  %v1191_v28 = vmul.f32 0.01, %v12218_v1  ;;  %8278 = vmatprep.mubr.msk.f32.mxu1 %vm2879_vm3, %v16567_v26  ;;  %v1205_v40 = vsel %vm1173_vm10, %v12175_v21, %v1189_v63  ;;  %v1206_v42 = vsel %vm1174_vm9, %v12159_v56, %v1190_v23  ;;  %v12300_v52 = vpop.f32.mrb[67].mxu1  ;;  %3033 = vmatmul.mubr.f32.gmra.mrb[144].mxu0 %v12266_v45  ;;  %v16570_v26 = vld [vmem:[#allocation19_spill] sm:$0xff]  ;;  %v12322_v23 = vld [vmem:[%s16409_s3 + $0x90] sm:$0xff] }
 0x166   :  { %16568 = vst [vmem:[#allocation28_spill] sm:$0xff] %v12300_v52  ;;  %vm1175_vm2 = vcmp.gt.f32.partialorder %v12218_v1, 0.0  ;;  %v12305_v37 = vadd.f32 %v1454_v50, %v11819_v17  ;;  %v1161_v48 = vadd.f32 %v1145_v4, %v16569_v58  ;;  %3191 = vmatmul.mubr.f32.gmra.mrb[130].mxu1 %v16570_v26  ;;  %v1505_v56 = vsel %vm1473_vm15, %v12042_v31, %v12116_v16  ;;  %v12338_v52 = vld [vmem:[%s16409_s3 + $0xa8] sm:$0xff] }
 0x167   :  { %v12314_v21 = vmul.f32 0.01, %v12215_v11  ;;  %vm1483_vm9 = vcmp.gt.f32.partialorder %v12259_v6, 0.0  ;;  %8270 = vmatprep.mubr.msk.f32.mxu0 %vm2879_vm3, %v12281_v22  ;;  %16571 = vst [vmem:[#allocation29_spill] sm:$0xff] %v12322_v23  ;;  %v9593_v63 = vpack.c.bf16 %v1206_v42, %v1205_v40  ;;  %v1506_v31 = vsel %vm1474_vm0, %v12032_v39, %v12113_v0  ;;  %v12329_v16 = vpop.f32.mrb[68].mxu0  ;;  %v12331_v50 = vpop.f32.mrb[68].mxu1 }
 0x168   :  { %v1194_v4 = vmul.f32 0.01, %v12270_v20  ;;  %vm1177_vm15 = vcmp.gt.f32.partialorder %v1161_v48, 0.0  ;;  %v1193_v17 = vmul.f32 0.01, %v1161_v48  ;;  %v1469_v26 = vadd.f32 %v1453_v35, %v16569_v58  ;;  %16572 = vst [vmem:[#allocation30_spill] sm:$0xff] %v12338_v52 }
 0x169   :  { %v16573_v40 = vld [vmem:[#allocation20_spill] sm:$0xff]  ;;  %v1499_v39 = vmul.f32 0.01, %v12259_v6  ;;  %vm1178_vm0 = vcmp.gt.f32.partialorder %v12270_v20, 0.0  ;;  %9594 = vmatpush1.bf16.msra.mxu0 %v9593_v63  ;;  %v12344_v0 = vpack.c.bf16 %v1506_v31, %v1505_v56  ;;  %v1207_v42 = vsel %vm1175_vm2, %v12218_v1, %v1191_v28  ;;  %v12349_v35 = vpop.f32.mrb[69].mxu0  ;;  %v12351_v58 = vpop.f32.mrb[69].mxu1 }
 0x16a   :  { %8279 = vmatprep.mubr.msk.f32.mxu1 %vm2879_vm3, %v16573_v40  ;;  %vm1486_vm10 = vcmp.gt.f32.partialorder %v12305_v37, 0.0  ;;  %3038 = vmatmul.mubr.f32.gmra.mrb[146].mxu0 %v12322_v23  ;;  %v16574_v40 = vld [vmem:[#allocation21_spill] sm:$0xff]  ;;  %v1208_v63 = vsel %vm1176_vm14, %v12212_v60, %v1192_v24  ;;  %v1507_v56 = vsel %vm1475_vm5, %v12075_v46, %v12125_v33  ;;  %v1508_v1 = vsel %vm1476_vm4, %v12058_v9, %v12119_v38  ;;  %v12374_v60 = vld [vmem:[%s16409_s3 + $0xa0] sm:$0xff] }
 0x16b   :  { %3196 = vmatmul.mubr.f32.gmra.mrb[132].mxu1 %v16574_v40  ;;  %v1502_v28 = vmul.f32 0.01, %v12305_v37  ;;  %8271 = vmatprep.mubr.msk.f32.mxu0 %vm2879_vm3, %v12338_v52  ;;  %16575 = vst [vmem:[#allocation31_spill] sm:$0xff] %v12374_v60  ;;  %v9596_v24 = vpack.c.bf16 %v1208_v63, %v1207_v42  ;;  %v12376_v31 = vpack.c.bf16 %v1508_v1, %v1507_v56  ;;  %v12379_v33 = vpop.f32.mrb[70].mxu0  ;;  %v12381_v38 = vpop.f32.mrb[70].mxu1  ;;  %v12388_v40 = vld [vmem:[%s16409_s3 + $0xb8] sm:$0xff] }
 0x16c   :  { %9618 = vmatpush1.bf16.msra.mxu1 %v12344_v0  ;;  %v1209_v46 = vsel %vm1177_vm15, %v1161_v48, %v1193_v17  ;;  %v1501_v9 = vmul.f32 0.01, %v1469_v26  ;;  %9595 = vmatprep.subr.bf16.mxu0 %v16558_v54  ;;  %16576 = vst [vmem:[#allocation32_spill] sm:$0xff] %v12388_v40  ;;  %v1210_v42 = vsel %vm1178_vm0, %v12270_v20, %v1194_v4  ;;  %v12401_v63 = vpop.f32.mrb[71].mxu0  ;;  %v12403_v56 = vpop.f32.mrb[71].mxu1  ;;  %vm1485_vm4 = vcmp.gt.f32.partialorder %v1469_v26, 0.0 }
 0x16d   :  { %9619 = vmatprep.subr.bf16.mxu1 %v16558_v54  ;;  %v1509_v48 = vsel %vm1477_vm7, %v12085_v5, %v12155_v18  ;;  %v1510_v17 = vsel %vm1478_vm6, %v12078_v3, %v12128_v34  ;;  %9597 = vmatpush1.bf16.msra.mxu0 %v9596_v24  ;;  %v16577_v1 = vld [vmem:[#allocation22_spill] sm:$0xff]  ;;  %v9599_v20 = vpack.c.bf16 %v1210_v42, %v1209_v46 }
 0x16e   :  { %8280 = vmatprep.mubr.msk.f32.mxu1 %vm2879_vm3, %v16577_v1  ;;  %v12407_v4 = vpack.c.bf16 %v1510_v17, %v1509_v48  ;;  %v1511_v18 = vsel %vm1479_vm8, %v12169_v19, %v12241_v51  ;;  %3043 = vmatmul.mubr.f32.gmra.mrb[148].mxu0 %v12374_v60  ;;  %v1512_v3 = vsel %vm1480_vm11, %v12133_v14, %v12190_v27  ;;  %v12433_v19 = vld [vmem:[%s16409_s3 + $0xb0] sm:$0xff] }
 0x16f   :  { %3201 = vmatmul.mubr.f32.gmra.mrb[134].mxu1 %v12006_v57  ;;  %v1513_v5 = vsel %vm1481_vm13, %v12193_v43, %v12254_v2  ;;  %v1514_v34 = vsel %vm1482_vm12, %v12172_v44, %v12245_v49  ;;  %8272 = vmatprep.mubr.msk.f32.mxu0 %vm2879_vm3, %v12388_v40  ;;  %v9626_v14 = vpack.c.bf16 %v1512_v3, %v1511_v18  ;;  %v12435_v51 = vpop.f32.mrb[72].mxu0  ;;  %v12440_v2 = vpop.f32.mrb[72].mxu1  ;;  %v12447_v44 = vld [vmem:[%s16409_s3 + $0xc8] sm:$0xff]  ;;  %v12504_v17 = vld [vmem:[%s16409_s3 + $0xd0] sm:$0xff] }
 0x170   :  { %9621 = vmatpush1.bf16.msra.mxu1 %v12376_v31  ;;  %v9629_v27 = vpack.c.bf16 %v1514_v34, %v1513_v5  ;;  %v1515_v43 = vsel %vm1483_vm9, %v12259_v6, %v1499_v39  ;;  %9598 = vmatprep.subr.bf16.mxu0 %v16558_v54  ;;  %v12449_v49 = vpop.f32.mrb[73].mxu0  ;;  %v1516_v24 = vsel %vm1484_vm1, %v12215_v11, %v12314_v21  ;;  %v12463_v46 = vpop.f32.mrb[73].mxu1  ;;  %v12477_v11 = vld [vmem:[%s16409_s3 + $0xc0] sm:$0xff]  ;;  %v12488_v21 = vld [vmem:[%s16409_s3 + $0xd8] sm:$0xff]  ;;  %v12558_v48 = vld [vmem:[%s16409_s3 + $0xf0] sm:$0xff] }
 0x171   :  { %9622 = vmatprep.subr.bf16.mxu1 %v16558_v54  ;;  %v12456_v6 = vsel %vm1485_vm4, %v1469_v26, %v1501_v9  ;;  %v12461_v39 = vsel %vm1486_vm10, %v12305_v37, %v1502_v28  ;;  %9600 = vmatpush1.bf16.msra.mxu0 %v9599_v20  ;;  %v9632_v42 = vpack.c.bf16 %v1516_v24, %v1515_v43  ;;  %v12531_v34 = vld [vmem:[%s16409_s3 + $0xe0] sm:$0xff] }
 0x172   :  { %8281 = vmatprep.mubr.msk.f32.mxu1 %vm2879_vm3, %v12013_v41  ;;  %3048 = vmatmul.mubr.f32.gmra.mrb[150].mxu0 %v12433_v19  ;;  %16585 = vst [vmem:[#allocation39_spill] sm:$0xff] %v12558_v48 }
 0x173   :  { %3206 = vmatmul.mubr.f32.gmra.mrb[136].mxu1 %v12049_v53  ;;  %8273 = vmatprep.mubr.msk.f32.mxu0 %vm2879_vm3, %v12447_v44  ;;  %v12479_v26 = vpop.f32.mrb[74].mxu0  ;;  %v12481_v37 = vpop.f32.mrb[74].mxu1 }
 0x174   :  { %9624 = vmatpush1.bf16.msra.mxu1 %v12407_v4  ;;  %9601 = vmatprep.subr.bf16.mxu0 %v16558_v54  ;;  %v12490_v28 = vpop.f32.mrb[75].mxu0  ;;  %v12492_v9 = vpop.f32.mrb[75].mxu1 }
 0x175   :  { %9625 = vmatprep.subr.bf16.mxu1 %v16558_v54  ;;  %9603 = vmatpush1.bf16.msra.mxu0 %v12235_v10  ;;  %v12515_v10 = vld [vmem:[%s16409_s3 + $0xe8] sm:$0xff] }
 0x176   :  { %8282 = vmatprep.mubr.msk.f32.mxu1 %vm2879_vm3, %v12063_v55  ;;  %3053 = vmatmul.mubr.f32.gmra.mrb[152].mxu0 %v12477_v11 }
 0x177   :  { %3211 = vmatmul.mubr.f32.gmra.mrb[138].mxu1 %v12096_v15  ;;  %8274 = vmatprep.mubr.msk.f32.mxu0 %vm2879_vm3, %v12488_v21  ;;  %v12506_v20 = vpop.f32.mrb[76].mxu0  ;;  %v12508_v18 = vpop.f32.mrb[76].mxu1 }
 0x178   :  { %9627 = vmatpush1.bf16.msra.mxu1 %v9626_v14  ;;  %16578 = vst [vmem:[#allocation22_spill] sm:$0xff] %v12508_v18  ;;  %9604 = vmatprep.subr.bf16.mxu0 %v16558_v54  ;;  %v12517_v3 = vpop.f32.mrb[77].mxu0  ;;  %v12519_v5 = vpop.f32.mrb[77].mxu1 }
 0x179   :  { %9628 = vmatprep.subr.bf16.mxu1 %v16558_v54  ;;  %16579 = vst [vmem:[#allocation33_spill] sm:$0xff] %v12517_v3  ;;  %16580 = vst [vmem:[#allocation34_spill] sm:$0xff] %v12519_v5  ;;  %9606 = vmatpush1.bf16.msra.mxu0 %v12344_v0  ;;  %v12542_v0 = vld [vmem:[%s16409_s3 + $0xf8] sm:$0xff] }
 0x17a   :  { %8283 = vmatprep.mubr.msk.f32.mxu1 %vm2879_vm3, %v12104_v30  ;;  %3058 = vmatmul.mubr.f32.gmra.mrb[154].mxu0 %v12504_v17 }
 0x17b   :  { %3216 = vmatmul.mubr.f32.gmra.mrb[140].mxu1 %v12141_v8  ;;  %8275 = vmatprep.mubr.msk.f32.mxu0 %vm2879_vm3, %v12515_v10  ;;  %v12533_v14 = vpop.f32.mrb[78].mxu0  ;;  %v12535_v43 = vpop.f32.mrb[78].mxu1 }
 0x17c   :  { %9630 = vmatpush1.bf16.msra.mxu1 %v9629_v27  ;;  %16581 = vst [vmem:[#allocation35_spill] sm:$0xff] %v12533_v14  ;;  %16582 = vst [vmem:[#allocation36_spill] sm:$0xff] %v12535_v43  ;;  %9607 = vmatprep.subr.bf16.mxu0 %v16558_v54  ;;  %v12544_v27 = vpop.f32.mrb[79].mxu0  ;;  %v12546_v24 = vpop.f32.mrb[79].mxu1 }
 0x17d   :  { %9631 = vmatprep.subr.bf16.mxu1 %v16558_v54  ;;  %16583 = vst [vmem:[#allocation37_spill] sm:$0xff] %v12544_v27  ;;  %16584 = vst [vmem:[#allocation38_spill] sm:$0xff] %v12546_v24  ;;  %9609 = vmatpush1.bf16.msra.mxu0 %v12376_v31 }
 0x17e   :  { %8284 = vmatprep.mubr.msk.f32.mxu1 %vm2879_vm3, %v12164_v61  ;;  %3063 = vmatmul.mubr.f32.gmra.mrb[156].mxu0 %v12531_v34 }
 0x17f   :  { %3221 = vmatmul.mubr.f32.gmra.mrb[142].mxu1 %v12200_v59  ;;  %8276 = vmatprep.mubr.msk.f32.mxu0 %vm2879_vm3, %v12542_v0  ;;  %v9254_v27 = vpop.f32.mrb[80].mxu0  ;;  %v12560_v24 = vpop.f32.mrb[80].mxu1 }
 0x180   :  { %9633 = vmatpush1.bf16.msra.mxu1 %v9632_v42  ;;  %9610 = vmatprep.subr.bf16.mxu0 %v16558_v54  ;;  %v1748_v31 = vmax.f32 %v12206_v25, %v9254_v27  ;;  %v1668_v43 = vpop.f32.mrb[81].mxu0  ;;  %v12567_v14 = vpop.f32.mrb[81].mxu1  ;;  %v16586_v25 = vld [vmem:[#allocation5_spill] sm:$0xff]  ;;  %v16587_v42 = vpack.c.bf16 %v12461_v39, %v12456_v6 }
 0x181   :  { %9634 = vmatprep.subr.bf16.mxu1 %v16558_v54  ;;  %9612 = vmatpush1.bf16.msra.mxu0 %v12407_v4  ;;  %v1747_v59 = vmax.f32 %v12225_v13, %v1668_v43  ;;  %v12584_v4 = vld [vmem:[%s16409_s3 + $0x8] sm:$0xff] }
 0x182   :  { %8285 = vmatprep.mubr.msk.f32.mxu1 %vm2879_vm3, %v12223_v62  ;;  %3068 = vmatmul.mubr.f32.gmra.mrb[158].mxu0 %v12558_v48  ;;  %v1764_v27 = vadd.f32 %v1748_v31, %v16586_v25  ;;  %16588 = vst [vmem:[#allocation5_spill] sm:$0xff] %v12584_v4  ;;  %v16589_v13 = vld [vmem:[#allocation3_spill] sm:$0xff]  ;;  %v16593_v48 = vld [vmem:[#allocation2_spill] sm:$0xff] }
 0x183   :  { %3226 = vmatmul.mubr.f32.gmra.mrb[144].mxu1 %v12266_v45  ;;  %8293 = vmatprep.mubr.msk.f32.mxu0 %vm2879_vm3, %v12584_v4  ;;  %v1763_v43 = vadd.f32 %v1747_v59, %v16589_v13  ;;  %v9257_v5 = vpop.f32.mrb[82].mxu0  ;;  %v12589_v62 = vpop.f32.mrb[82].mxu1  ;;  %v16590_v4 = vld [vmem:[#allocation18_spill] sm:$0xff] }
 0x184   :  { %9636 = vmatpush1.bf16.msra.mxu1 %v16587_v42  ;;  %8286 = vmatprep.mubr.msk.f32.mxu1 %vm2879_vm3, %v12281_v22  ;;  %v1796_v6 = vmul.f32 0.01, %v1764_v27  ;;  %v1750_v31 = vmax.f32 %v12283_v47, %v9257_v5  ;;  %v2058_v59 = vmax.f32 %v12285_v7, %v12589_v62  ;;  %v1678_v42 = vpop.f32.mrb[83].mxu0  ;;  %v12600_v45 = vpop.f32.mrb[83].mxu1  ;;  %vm1780_vm5 = vcmp.gt.f32.partialorder %v1764_v27, 0.0  ;;  %v16592_v62 = vld [vmem:[#allocation4_spill] sm:$0xff] }
 0x185   :  { %9637 = vmatprep.subr.bf16.mxu1 %v16558_v54  ;;  %9649 = vmatprep.subr.bf16.mxu0 %v16558_v54  ;;  %v1795_v39 = vmul.f32 0.01, %v1763_v43  ;;  %vm1779_vm6 = vcmp.gt.f32.partialorder %v1763_v43, 0.0  ;;  %v16594_v22 = vld [vmem:[#allocation19_spill] sm:$0xff] }
 0x186   :  { %3379 = vmatmul.mubr.f32.vlgmr.msra.gmra.mrb[160].mxu0 %v11934_v36  ;;  %v1749_v36 = vmax.f32 %v12298_v32, %v1678_v42  ;;  %v1766_v7 = vadd.f32 %v1750_v31, %v16592_v62 }
 0x187   :  { %3231 = vmatmul.mubr.f32.gmra.mrb[146].mxu1 %v12322_v23  ;;  %8294 = vmatprep.mubr.msk.f32.mxu0 %vm2879_vm3, %v16590_v4  ;;  %v16591_v23 = vld [vmem:[#allocation28_spill] sm:$0xff]  ;;  %v9260_v47 = vpop.f32.mrb[84].mxu0  ;;  %v12609_v5 = vpop.f32.mrb[84].mxu1  ;;  %v1811_v31 = vsel %vm1779_vm6, %v1763_v43, %v1795_v39 }
 0x188   :  { %8287 = vmatprep.mubr.msk.f32.mxu1 %vm2879_vm3, %v12338_v52  ;;  %v1752_v3 = vmax.f32 %v12329_v16, %v9260_v47  ;;  %v1688_v18 = vpop.f32.mrb[85].mxu0  ;;  %v12615_v61 = vpop.f32.mrb[85].mxu1  ;;  %v1765_v52 = vadd.f32 %v1749_v36, %v16593_v48  ;;  %v1812_v16 = vsel %vm1780_vm5, %v1764_v27, %v1796_v6  ;;  %v16595_v47 = vld [vmem:[#allocation20_spill] sm:$0xff]  ;;  %v1798_v36 = vmul.f32 0.01, %v1766_v7  ;;  %v16596_v6 = vld [vmem:[#allocation21_spill] sm:$0xff] }
 0x189   :  { %v1751_v32 = vmax.f32 %v12349_v35, %v1688_v18  ;;  %v9638_v42 = vpack.c.bf16 %v1812_v16, %v1811_v31  ;;  %vm1782_vm8 = vcmp.gt.f32.partialorder %v1766_v7, 0.0 }
 0x18a   :  { %3384 = vmatmul.mubr.f32.gmra.mrb[162].mxu0 %v16594_v22  ;;  %v1797_v4 = vmul.f32 0.01, %v1765_v52  ;;  %vm1781_vm7 = vcmp.gt.f32.partialorder %v1765_v52, 0.0 }
 0x18b   :  { %3236 = vmatmul.mubr.f32.gmra.mrb[148].mxu1 %v12374_v60  ;;  %8295 = vmatprep.mubr.msk.f32.mxu0 %vm2879_vm3, %v16595_v47  ;;  %v9263_v35 = vpop.f32.mrb[86].mxu0  ;;  %v12629_v18 = vpop.f32.mrb[86].mxu1  ;;  %v16597_v47 = vld [vmem:[#allocation6_spill] sm:$0xff]  ;;  %v16598_v60 = vld [vmem:[#allocation7_spill] sm:$0xff] }
 0x18c   :  { %8288 = vmatprep.mubr.msk.f32.mxu1 %vm2879_vm3, %v12388_v40  ;;  %v1754_v22 = vmax.f32 %v12379_v33, %v9263_v35  ;;  %v1698_v39 = vpop.f32.mrb[87].mxu0  ;;  %v12634_v27 = vpop.f32.mrb[87].mxu1  ;;  %v1768_v40 = vadd.f32 %v1752_v3, %v16597_v47  ;;  %v1767_v31 = vadd.f32 %v1751_v32, %v16598_v60  ;;  %v16599_v33 = vmax.f32 %v12208_v12, %v12560_v24 }
 0x18d   :  { %9639 = vmatpush1.bf16.msra.mxu1 %v9638_v42  ;;  %9651 = vmatpush1.bf16.msra.mxu0 %v9638_v42  ;;  %v1753_v35 = vmax.f32 %v12401_v63, %v1698_v39  ;;  %v1813_v3 = vsel %vm1781_vm7, %v1765_v52, %v1797_v4  ;;  %v1814_v12 = vsel %vm1782_vm8, %v1766_v7, %v1798_v36 }
 0x18e   :  { %3389 = vmatmul.mubr.f32.gmra.mrb[164].mxu0 %v16596_v6  ;;  %v12648_v16 = vadd.f32 %v16599_v33, %v16586_v25  ;;  %9640 = vmatprep.subr.bf16.mxu1 %v16558_v54  ;;  %v16600_v52 = vmax.f32 %v12227_v29, %v12567_v14  ;;  %v12669_v4 = vadd.f32 %v2058_v59, %v16592_v62  ;;  %vm1784_vm11 = vcmp.gt.f32.partialorder %v1768_v40, 0.0  ;;  %v16602_v33 = vld [vmem:[#allocation9_spill] sm:$0xff] }
 0x18f   :  { %3241 = vmatmul.mubr.f32.gmra.mrb[150].mxu1 %v12433_v19  ;;  %8296 = vmatprep.mubr.msk.f32.mxu0 %vm2879_vm3, %v16577_v1  ;;  %v9266_v6 = vpop.f32.mrb[88].mxu0  ;;  %v12652_v43 = vpop.f32.mrb[88].mxu1  ;;  %v1800_v39 = vmul.f32 0.01, %v1768_v40  ;;  %v1799_v7 = vmul.f32 0.01, %v1767_v31  ;;  %v9641_v29 = vpack.c.bf16 %v1814_v12, %v1813_v3  ;;  %v16603_v3 = vmax.f32 %v16591_v23, %v12600_v45 }
 0x190   :  { %8289 = vmatprep.mubr.msk.f32.mxu1 %vm2879_vm3, %v12447_v44  ;;  %9652 = vmatprep.subr.bf16.mxu0 %v16558_v54  ;;  %v1756_v24 = vmax.f32 %v12435_v51, %v9266_v6  ;;  %v1708_v32 = vpop.f32.mrb[89].mxu0  ;;  %v12660_v42 = vpop.f32.mrb[89].mxu1  ;;  %v12666_v63 = vadd.f32 %v16600_v52, %v16589_v13  ;;  %v16601_v51 = vld [vmem:[#allocation8_spill] sm:$0xff]  ;;  %v1769_v6 = vadd.f32 %v1753_v35, %v16602_v33  ;;  %vm1783_vm12 = vcmp.gt.f32.partialorder %v1767_v31, 0.0 }
 0x191   :  { %v1770_v36 = vadd.f32 %v1754_v22, %v16601_v51  ;;  %v1755_v52 = vmax.f32 %v12449_v49, %v1708_v32  ;;  %v12693_v1 = vmul.f32 0.01, %v12648_v16  ;;  %v12699_v12 = vadd.f32 %v16603_v3, %v16593_v48  ;;  %9642 = vmatpush1.bf16.msra.mxu1 %v9641_v29  ;;  %9654 = vmatpush1.bf16.msra.mxu0 %v9641_v29  ;;  %v16626_v48 = vld [vmem:[#allocation35_spill] sm:$0xff] }
 0x192   :  { %3394 = vmatmul.mubr.f32.gmra.mrb[166].mxu0 %v12006_v57  ;;  %v2064_v57 = vmax.f32 %v12440_v2, %v12652_v43  ;;  %v12702_v2 = vmul.f32 0.01, %v12666_v63  ;;  %v12705_v49 = vmul.f32 0.01, %v12669_v4  ;;  %v16605_v45 = vmax.f32 %v12351_v58, %v12615_v61  ;;  %9643 = vmatprep.subr.bf16.mxu1 %v16558_v54 }
 0x193   :  { %3246 = vmatmul.mubr.f32.gmra.mrb[152].mxu1 %v12477_v11  ;;  %8297 = vmatprep.mubr.msk.f32.mxu0 %vm2879_vm3, %v12013_v41  ;;  %v12679_v14 = vpop.f32.mrb[90].mxu0  ;;  %v12681_v59 = vpop.f32.mrb[90].mxu1  ;;  %v2063_v41 = vmax.f32 %v12463_v46, %v12660_v42  ;;  %v16604_v46 = vmax.f32 %v12331_v50, %v12609_v5  ;;  %v1802_v32 = vmul.f32 0.01, %v1770_v36  ;;  %v1801_v42 = vmul.f32 0.01, %v1769_v6 }
 0x194   :  { %8290 = vmatprep.mubr.msk.f32.mxu1 %vm2879_vm3, %v12488_v21  ;;  %v12688_v22 = vpop.f32.mrb[91].mxu0  ;;  %v12690_v35 = vpop.f32.mrb[91].mxu1  ;;  %v12717_v23 = vadd.f32 %v16605_v45, %v16598_v60  ;;  %v1815_v50 = vsel %vm1783_vm12, %v1767_v31, %v1799_v7  ;;  %v1816_v5 = vsel %vm1784_vm11, %v1768_v40, %v1800_v39  ;;  %vm2088_vm13 = vcmp.gt.f32.partialorder %v12648_v16, 0.0  ;;  %9655 = vmatprep.subr.bf16.mxu0 %v16558_v54  ;;  %v12868_v60 = vld [vmem:[%s16409_s3] sm:$0xff] }
 0x195   :  { %v12711_v43 = vadd.f32 %v16604_v46, %v16597_v47  ;;  %vm2087_vm14 = vcmp.gt.f32.partialorder %v12666_v63, 0.0  ;;  %vm1786_vm1 = vcmp.gt.f32.partialorder %v1770_v36, 0.0  ;;  %vm1785_vm2 = vcmp.gt.f32.partialorder %v1769_v6, 0.0  ;;  %16621 = vst [vmem:[#allocation3_spill] sm:$0xff] %v12868_v60 }
 0x196   :  { %3399 = vmatmul.mubr.f32.gmra.mrb[168].mxu0 %v12049_v53  ;;  %v16606_v53 = vld [vmem:[#allocation10_spill] sm:$0xff]  ;;  %v12738_v40 = vmul.f32 0.01, %v12699_v12  ;;  %v16608_v31 = vmax.f32 %v12381_v38, %v12629_v18  ;;  %v9644_v7 = vpack.c.bf16 %v1816_v5, %v1815_v50  ;;  %v2066_v38 = vmax.f32 %v12481_v37, %v12681_v59 }
 0x197   :  { %3251 = vmatmul.mubr.f32.gmra.mrb[154].mxu1 %v12504_v17  ;;  %8298 = vmatprep.mubr.msk.f32.mxu0 %vm2879_vm3, %v12063_v55  ;;  %v9272_v29 = vpop.f32.mrb[92].mxu0  ;;  %v12727_v58 = vpop.f32.mrb[92].mxu1  ;;  %v12732_v61 = vadd.f32 %v1756_v24, %v16606_v53  ;;  %v16607_v55 = vld [vmem:[#allocation11_spill] sm:$0xff]  ;;  %v1758_v24 = vmax.f32 %v12479_v26, %v12679_v14  ;;  %v12753_v45 = vmul.f32 0.01, %v12711_v43  ;;  %v1757_v18 = vmax.f32 %v12490_v28, %v12688_v22 }
 0x198   :  { %8291 = vmatprep.mubr.msk.f32.mxu1 %vm2879_vm3, %v12515_v10  ;;  %v1771_v3 = vadd.f32 %v1755_v52, %v16607_v55  ;;  %v12744_v39 = vadd.f32 %v16608_v31, %v16601_v51  ;;  %v12748_v46 = vpop.f32.mrb[93].mxu0  ;;  %v12750_v52 = vpop.f32.mrb[93].mxu1  ;;  %v2065_v26 = vmax.f32 %v12492_v9, %v12690_v35  ;;  %v12764_v14 = vmul.f32 0.01, %v12717_v23  ;;  %9645 = vmatpush1.bf16.msra.mxu1 %v9644_v7  ;;  %v16611_v31 = vld [vmem:[#allocation13_spill] sm:$0xff] }
 0x199   :  { %v16609_v50 = vmax.f32 %v12403_v56, %v12634_v27  ;;  %v1818_v37 = vsel %vm1786_vm1, %v1770_v36, %v1802_v32  ;;  %v1804_v59 = vmul.f32 0.01, %v12732_v61  ;;  %v12782_v22 = vadd.f32 %v2064_v57, %v16606_v53  ;;  %9657 = vmatpush1.bf16.msra.mxu0 %v9644_v7  ;;  %9646 = vmatprep.subr.bf16.mxu1 %v16558_v54 }
 0x19a   :  { %3404 = vmatmul.mubr.f32.gmra.mrb[170].mxu0 %v12096_v15  ;;  %v1817_v15 = vsel %vm1785_vm2, %v1769_v6, %v1801_v42  ;;  %v1803_v56 = vmul.f32 0.01, %v1771_v3  ;;  %v12785_v27 = vadd.f32 %v2063_v41, %v16607_v55  ;;  %vm2090_vm9 = vcmp.gt.f32.partialorder %v12669_v4, 0.0  ;;  %v16610_v6 = vld [vmem:[#allocation12_spill] sm:$0xff]  ;;  %9658 = vmatprep.subr.bf16.mxu0 %v16558_v54 }
 0x19b   :  { %3256 = vmatmul.mubr.f32.gmra.mrb[156].mxu1 %v12531_v34  ;;  %v12770_v5 = vadd.f32 %v16609_v50, %v16602_v33  ;;  %8299 = vmatprep.mubr.msk.f32.mxu0 %vm2879_vm3, %v12104_v30  ;;  %v12776_v28 = vpop.f32.mrb[94].mxu0  ;;  %v12778_v9 = vpop.f32.mrb[94].mxu1  ;;  %vm2089_vm15 = vcmp.gt.f32.partialorder %v12699_v12, 0.0  ;;  %vm1787_vm0 = vcmp.gt.f32.partialorder %v1771_v3, 0.0  ;;  %v12796_v57 = vadd.f32 %v1758_v24, %v16610_v6  ;;  %v16612_v24 = vld [vmem:[#allocation39_spill] sm:$0xff]  ;;  %v16618_v33 = vld [vmem:[#allocation5_spill] sm:$0xff] }
 0x19c   :  { %8292 = vmatprep.mubr.msk.f32.mxu1 %vm2879_vm3, %v12542_v0  ;;  %v12789_v30 = vpop.f32.mrb[95].mxu0  ;;  %v12791_v36 = vpop.f32.mrb[95].mxu1  ;;  %v9647_v41 = vpack.c.bf16 %v1818_v37, %v1817_v15  ;;  %v1760_v35 = vmax.f32 %v12506_v20, %v9272_v29  ;;  %v12802_v32 = vmul.f32 0.01, %v12744_v39  ;;  %vm1788_vm10 = vcmp.gt.f32.partialorder %v12732_v61, 0.0  ;;  %v16613_v29 = vld [vmem:[#allocation23_spill] sm:$0xff] }
 0x19d   :  { %v12807_v42 = vadd.f32 %v2066_v38, %v16610_v6  ;;  %v12810_v7 = vadd.f32 %v1757_v18, %v16611_v31  ;;  %v12814_v50 = vmul.f32 0.01, %v12770_v5  ;;  %v12817_v20 = vadd.f32 %v2065_v26, %v16611_v31  ;;  %v16614_v15 = vld [vmem:[#allocation14_spill] sm:$0xff]  ;;  %v16616_v26 = vld [vmem:[#allocation33_spill] sm:$0xff] }
 0x19e   :  { %3409 = vmatmul.mubr.f32.gmra.mrb[172].mxu0 %v12141_v8  ;;  %9648 = vmatpush1.bf16.msra.mxu1 %v9647_v41  ;;  %v12822_v8 = vadd.f32 %v1760_v35, %v16614_v15  ;;  %v16615_v38 = vld [vmem:[#allocation22_spill] sm:$0xff]  ;;  %v12831_v55 = vmul.f32 0.01, %v12782_v22  ;;  %v1759_v31 = vmax.f32 %v16616_v26, %v12748_v46  ;;  %v1819_v35 = vsel %vm1787_vm0, %v1771_v3, %v1803_v56  ;;  %v16619_v26 = vld [vmem:[#allocation24_spill] sm:$0xff] }
 0x19f   :  { %3261 = vmatmul.mubr.f32.gmra.mrb[158].mxu1 %v16612_v24  ;;  %8300 = vmatprep.mubr.msk.f32.mxu0 %vm2879_vm3, %v16613_v29  ;;  %v2068_v37 = vmax.f32 %v16615_v38, %v12727_v58  ;;  %v12826_v18 = vpop.f32.mrb[96].mxu0  ;;  %v12828_v6 = vpop.f32.mrb[96].mxu1  ;;  %v16617_v29 = vld [vmem:[#allocation34_spill] sm:$0xff]  ;;  %vm2092_vm4 = vcmp.gt.f32.partialorder %v12711_v43, 0.0  ;;  %vm2091_vm5 = vcmp.gt.f32.partialorder %v12717_v23, 0.0  ;;  %vm1790_vm6 = vcmp.gt.f32.partialorder %v12796_v57, 0.0 }
 0x1a0   :  { %9660 = vmatpush1.bf16.msra.mxu0 %v9647_v41  ;;  %v2067_v53 = vmax.f32 %v16617_v29, %v12750_v52  ;;  %8309 = vmatprep.mubr.msk.f32.mxu1 %vm2879_vm3, %v16618_v33  ;;  %v12840_v58 = vpop.f32.mrb[97].mxu0  ;;  %v12842_v38 = vpop.f32.mrb[97].mxu1  ;;  %v12847_v41 = vmul.f32 0.01, %v12785_v27  ;;  %v1806_v46 = vmul.f32 0.01, %v12796_v57  ;;  %v1820_v3 = vsel %vm1788_vm10, %v12732_v61, %v1804_v59 }
 0x1a1   :  { %9661 = vmatprep.subr.bf16.mxu0 %v16558_v54  ;;  %9685 = vmatprep.subr.bf16.mxu1 %v16558_v54  ;;  %vm2093_vm7 = vcmp.gt.f32.partialorder %v12770_v5, 0.0  ;;  %v12858_v52 = vmul.f32 0.01, %v12807_v42  ;;  %v1805_v56 = vmul.f32 0.01, %v12810_v7  ;;  %v16620_v29 = vld [vmem:[#allocation15_spill] sm:$0xff]  ;;  %v9662_v61 = vpack.c.bf16 %v1820_v3, %v1819_v35 }
 0x1a2   :  { %3414 = vmatmul.mubr.f32.gmra.mrb[174].mxu0 %v16619_v26  ;;  %v12863_v51 = vadd.f32 %v1759_v31, %v16620_v29  ;;  %vm2094_vm8 = vcmp.gt.f32.partialorder %v12744_v39, 0.0  ;;  %vm2095_vm11 = vcmp.gt.f32.partialorder %v12785_v27, 0.0  ;;  %vm1789_vm12 = vcmp.gt.f32.partialorder %v12810_v7, 0.0  ;;  %v16622_v26 = vld [vmem:[#allocation25_spill] sm:$0xff] }
 0x1a3   :  { %3572 = vmatmul.mubr.f32.vlgmr.msra.gmra.mrb[160].mxu1 %v12868_v60  ;;  %v12875_v59 = vmul.f32 0.01, %v12817_v20  ;;  %8301 = vmatprep.mubr.msk.f32.mxu0 %vm2879_vm3, %v16622_v26  ;;  %v2119_v31 = vsel %vm2087_vm14, %v12666_v63, %v12702_v2  ;;  %v2120_v35 = vsel %vm2088_vm13, %v12648_v16, %v12693_v1  ;;  %v12890_v3 = vld [vmem:[%s16409_s3 + $0x18] sm:$0xff]  ;;  %v12894_v47 = vpop.f32.mrb[98].mxu0  ;;  %v12896_v26 = vpop.f32.mrb[98].mxu1  ;;  %vm2096_vm1 = vcmp.gt.f32.partialorder %v12782_v22, 0.0 }
 0x1a4   :  { %16623 = vst [vmem:[#allocation18_spill] sm:$0xff] %v12890_v3  ;;  %8310 = vmatprep.mubr.msk.f32.mxu1 %vm2879_vm3, %v12890_v3  ;;  %16624 = vst [vmem:[#allocation28_spill] sm:$0xff] %v12894_v47  ;;  %vm2097_vm14 = vcmp.gt.f32.partialorder %v12817_v20, 0.0  ;;  %vm1792_vm2 = vcmp.gt.f32.partialorder %v12822_v8, 0.0  ;;  %v1808_v16 = vmul.f32 0.01, %v12822_v8  ;;  %v12903_v1 = vadd.f32 %v2068_v37, %v16614_v15  ;;  %9663 = vmatpush1.bf16.msra.mxu0 %v9662_v61 }
 0x1a5   :  { %16625 = vst [vmem:[#allocation19_spill] sm:$0xff] %v12896_v26  ;;  %v12906_v63 = vadd.f32 %v2067_v53, %v16620_v29  ;;  %vm2098_vm13 = vcmp.gt.f32.partialorder %v12807_v42, 0.0  ;;  %v12909_v2 = vpack.c.bf16 %v2120_v35, %v2119_v31  ;;  %v1762_v62 = vmax.f32 %v16626_v48, %v12776_v28  ;;  %v16627_v3 = vld [vmem:[#allocation36_spill] sm:$0xff]  ;;  %v16628_v47 = vld [vmem:[#allocation37_spill] sm:$0xff]  ;;  %9664 = vmatprep.subr.bf16.mxu0 %v16558_v54  ;;  %v12918_v37 = vpop.f32.mrb[99].mxu0  ;;  %v12920_v53 = vpop.f32.mrb[99].mxu1 }
 0x1a6   :  { %v2070_v26 = vmax.f32 %v16627_v3, %v12778_v9  ;;  %v1761_v60 = vmax.f32 %v16628_v47, %v12789_v30  ;;  %vm1791_vm0 = vcmp.gt.f32.partialorder %v12863_v51, 0.0  ;;  %v16629_v61 = vld [vmem:[#allocation26_spill] sm:$0xff]  ;;  %v12929_v48 = vld [vmem:[%s16409_s3 + $0x10] sm:$0xff]  ;;  %v1821_v47 = vsel %vm1789_vm12, %v12810_v7, %v1805_v56  ;;  %v16634_v29 = vld [vmem:[#allocation27_spill] sm:$0xff] }
 0x1a7   :  { %3419 = vmatmul.mubr.f32.gmra.mrb[176].mxu0 %v16629_v61  ;;  %v16630_v31 = vld [vmem:[#allocation38_spill] sm:$0xff]  ;;  %16631 = vst [vmem:[#allocation20_spill] sm:$0xff] %v12929_v48  ;;  %3577 = vmatmul.mubr.f32.gmra.mrb[162].mxu1 %v12929_v48  ;;  %v1822_v28 = vsel %vm1790_vm6, %v12796_v57, %v1806_v46  ;;  %v1807_v9 = vmul.f32 0.01, %v12863_v51  ;;  %v16632_v30 = vld [vmem:[#allocation16_spill] sm:$0xff]  ;;  %v16633_v61 = vld [vmem:[#allocation17_spill] sm:$0xff]  ;;  %v1824_v48 = vsel %vm1792_vm2, %v12822_v8, %v1808_v16 }
 0x1a8   :  { %v2069_v35 = vmax.f32 %v16630_v31, %v12791_v36  ;;  %9687 = vmatpush1.bf16.msra.mxu1 %v12909_v2  ;;  %v1778_v36 = vadd.f32 %v1762_v62, %v16632_v30  ;;  %v12942_v3 = vadd.f32 %v2070_v26, %v16632_v30  ;;  %v1777_v31 = vadd.f32 %v1761_v60, %v16633_v61  ;;  %v12947_v15 = vpop.f32.mrb[100].mxu0  ;;  %v12949_v7 = vpop.f32.mrb[100].mxu1  ;;  %v16640_v30 = vld [vmem:[#allocation30_spill] sm:$0xff]  ;;  %v13013_v8 = vld [vmem:[%s16409_s3 + $0x38] sm:$0xff] }
 0x1a9   :  { %8302 = vmatprep.mubr.msk.f32.mxu0 %vm2879_vm3, %v16634_v29  ;;  %9688 = vmatprep.subr.bf16.mxu1 %v16558_v54  ;;  %v9665_v46 = vpack.c.bf16 %v1822_v28, %v1821_v47  ;;  %v2121_v62 = vsel %vm2089_vm15, %v12699_v12, %v12738_v40  ;;  %v2122_v60 = vsel %vm2090_vm9, %v12669_v4, %v12705_v49  ;;  %v12963_v56 = vpop.f32.mrb[101].mxu0  ;;  %v12965_v29 = vpop.f32.mrb[101].mxu1  ;;  %vm2100_vm10 = vcmp.gt.f32.partialorder %v12903_v1, 0.0  ;;  %v12973_v12 = vld [vmem:[%s16409_s3 + $0x28] sm:$0xff]  ;;  %v16638_v40 = vld [vmem:[#allocation29_spill] sm:$0xff]  ;;  %v12982_v47 = vld [vmem:[%s16409_s3 + $0x20] sm:$0xff] }
 0x1aa   :  { %v12952_v57 = vadd.f32 %v2069_v35, %v16633_v61  ;;  %16635 = vst [vmem:[#allocation21_spill] sm:$0xff] %v12963_v56  ;;  %16636 = vst [vmem:[#allocation39_spill] sm:$0xff] %v12965_v29  ;;  %v2116_v26 = vmul.f32 0.01, %v12903_v1  ;;  %vm2099_vm6 = vcmp.gt.f32.partialorder %v12906_v63, 0.0  ;;  %8311 = vmatprep.mubr.msk.f32.mxu1 %vm2879_vm3, %v12973_v12  ;;  %vm1794_vm9 = vcmp.gt.f32.partialorder %v1778_v36, 0.0 }
 0x1ab   :  { %v1810_v35 = vmul.f32 0.01, %v1778_v36  ;;  %16637 = vst [vmem:[#allocation23_spill] sm:$0xff] %v12973_v12  ;;  %v2115_v4 = vmul.f32 0.01, %v12906_v63  ;;  %vm1793_vm15 = vcmp.gt.f32.partialorder %v1777_v31, 0.0  ;;  %3424 = vmatmul.mubr.f32.gmra.mrb[178].mxu0 %v16638_v40  ;;  %3582 = vmatmul.mubr.f32.gmra.mrb[164].mxu1 %v12982_v47  ;;  %v12986_v61 = vpack.c.bf16 %v2122_v60, %v2121_v62 }
 0x1ac   :  { %v1809_v49 = vmul.f32 0.01, %v1777_v31  ;;  %16639 = vst [vmem:[#allocation22_spill] sm:$0xff] %v12982_v47  ;;  %v2118_v28 = vmul.f32 0.01, %v12942_v3  ;;  %9666 = vmatpush1.bf16.msra.mxu0 %v9665_v46  ;;  %8303 = vmatprep.mubr.msk.f32.mxu0 %vm2879_vm3, %v16640_v30  ;;  %v1823_v12 = vsel %vm1791_vm0, %v12863_v51, %v1807_v9  ;;  %v12996_v29 = vpop.f32.mrb[102].mxu0  ;;  %v2123_v62 = vsel %vm2091_vm5, %v12717_v23, %v12764_v14 }
 0x1ad   :  { %v12998_v56 = vpop.f32.mrb[102].mxu1  ;;  %v2117_v47 = vmul.f32 0.01, %v12952_v57  ;;  %9667 = vmatprep.subr.bf16.mxu0 %v16558_v54  ;;  %v9668_v46 = vpack.c.bf16 %v1824_v48, %v1823_v12  ;;  %v2124_v51 = vsel %vm2092_vm4, %v12711_v43, %v12753_v45  ;;  %8312 = vmatprep.mubr.msk.f32.mxu1 %vm2879_vm3, %v13013_v8  ;;  %v13017_v16 = vpop.f32.mrb[103].mxu0  ;;  %v1826_v43 = vsel %vm1794_vm9, %v1778_v36, %v1810_v35  ;;  %v16641_v9 = vld [vmem:[#allocation31_spill] sm:$0xff] }
 0x1ae   :  { %v13019_v48 = vpop.f32.mrb[103].mxu1  ;;  %9690 = vmatpush1.bf16.msra.mxu1 %v12986_v61  ;;  %v13022_v23 = vpack.c.bf16 %v2124_v51, %v2123_v62  ;;  %v1825_v14 = vsel %vm1793_vm15, %v1777_v31, %v1809_v49  ;;  %v2125_v45 = vsel %vm2093_vm7, %v12770_v5, %v12814_v50  ;;  %vm2101_vm4 = vcmp.gt.f32.partialorder %v12952_v57, 0.0  ;;  %v16642_v5 = vld [vmem:[#allocation32_spill] sm:$0xff]  ;;  %v13082_v49 = vld [vmem:[%s16409_s3 + $0x48] sm:$0xff]  ;;  %v13125_v62 = vld [vmem:[%s16409_s3 + $0x58] sm:$0xff] }
 0x1af   :  { %3429 = vmatmul.mubr.f32.gmra.mrb[180].mxu0 %v16641_v9  ;;  %9691 = vmatprep.subr.bf16.mxu1 %v16558_v54  ;;  %v9671_v60 = vpack.c.bf16 %v1826_v43, %v1825_v14  ;;  %v2126_v12 = vsel %vm2094_vm8, %v12744_v39, %v12802_v32  ;;  %v2127_v36 = vsel %vm2095_vm11, %v12785_v27, %v12847_v41  ;;  %vm2102_vm5 = vcmp.gt.f32.partialorder %v12942_v3, 0.0  ;;  %v13054_v32 = vpop.f32.mrb[104].mxu0  ;;  %v13056_v27 = vpop.f32.mrb[104].mxu1  ;;  %v13061_v41 = vld [vmem:[%s16409_s3 + $0x30] sm:$0xff] }
 0x1b0   :  { %9669 = vmatpush1.bf16.msra.mxu0 %v9668_v46  ;;  %8304 = vmatprep.mubr.msk.f32.mxu0 %vm2879_vm3, %v16642_v5  ;;  %v13044_v50 = vpack.c.bf16 %v2126_v12, %v2125_v45  ;;  %v2128_v31 = vsel %vm2096_vm1, %v12782_v22, %v12831_v55  ;;  %v2129_v39 = vsel %vm2097_vm14, %v12817_v20, %v12875_v59  ;;  %v13074_v20 = vpop.f32.mrb[105].mxu0  ;;  %v13076_v59 = vpop.f32.mrb[105].mxu1  ;;  %v13141_v43 = vld [vmem:[%s16409_s3 + $0x50] sm:$0xff] }
 0x1b1   :  { %3587 = vmatmul.mubr.f32.gmra.mrb[166].mxu1 %v13061_v41  ;;  %9670 = vmatprep.subr.bf16.mxu0 %v16558_v54  ;;  %v9698_v35 = vpack.c.bf16 %v2128_v31, %v2127_v36  ;;  %v2130_v55 = vsel %vm2098_vm13, %v12807_v42, %v12858_v52  ;;  %v13072_v22 = vsel %vm2099_vm6, %v12906_v63, %v2115_v4  ;;  %v13168_v31 = vld [vmem:[%s16409_s3 + $0x60] sm:$0xff] }
 0x1b2   :  { %9693 = vmatpush1.bf16.msra.mxu1 %v13022_v23  ;;  %8313 = vmatprep.mubr.msk.f32.mxu1 %vm2879_vm3, %v13082_v49  ;;  %v9701_v42 = vpack.c.bf16 %v2130_v55, %v2129_v39  ;;  %v2132_v52 = vsel %vm2100_vm10, %v12903_v1, %v2116_v26  ;;  %v13092_v63 = vsel %vm2101_vm4, %v12952_v57, %v2117_v47  ;;  %v13113_v47 = vld [vmem:[%s16409_s3 + $0x40] sm:$0xff] }
 0x1b3   :  { %3434 = vmatmul.mubr.f32.gmra.mrb[182].mxu0 %v12433_v19  ;;  %9694 = vmatprep.subr.bf16.mxu1 %v16558_v54  ;;  %v9704_v4 = vpack.c.bf16 %v2132_v52, %v13072_v22  ;;  %v13100_v46 = vsel %vm2102_vm5, %v12942_v3, %v2118_v28  ;;  %v13106_v57 = vpop.f32.mrb[106].mxu0  ;;  %v13108_v26 = vpop.f32.mrb[106].mxu1 }
 0x1b4   :  { %9672 = vmatpush1.bf16.msra.mxu0 %v9671_v60  ;;  %8305 = vmatprep.mubr.msk.f32.mxu0 %vm2879_vm3, %v12447_v44  ;;  %v13117_v3 = vpop.f32.mrb[107].mxu0  ;;  %v13119_v28 = vpop.f32.mrb[107].mxu1 }
 0x1b5   :  { %3592 = vmatmul.mubr.f32.gmra.mrb[168].mxu1 %v13113_v47  ;;  %9673 = vmatprep.subr.bf16.mxu0 %v16558_v54 }
 0x1b6   :  { %9696 = vmatpush1.bf16.msra.mxu1 %v13044_v50  ;;  %8314 = vmatprep.mubr.msk.f32.mxu1 %vm2879_vm3, %v13125_v62 }
 0x1b7   :  { %3439 = vmatmul.mubr.f32.gmra.mrb[184].mxu0 %v12477_v11  ;;  %9697 = vmatprep.subr.bf16.mxu1 %v16558_v54  ;;  %v13134_v51 = vpop.f32.mrb[108].mxu0  ;;  %v13136_v14 = vpop.f32.mrb[108].mxu1 }
 0x1b8   :  { %9675 = vmatpush1.bf16.msra.mxu0 %v12909_v2  ;;  %8306 = vmatprep.mubr.msk.f32.mxu0 %vm2879_vm3, %v12488_v21  ;;  %v13145_v45 = vpop.f32.mrb[109].mxu0  ;;  %v13147_v60 = vpop.f32.mrb[109].mxu1  ;;  %v13152_v2 = vld [vmem:[%s16409_s3 + $0x68] sm:$0xff] }
 0x1b9   :  { %3597 = vmatmul.mubr.f32.gmra.mrb[170].mxu1 %v13141_v43  ;;  %9676 = vmatprep.subr.bf16.mxu0 %v16558_v54  ;;  %16643 = vst [vmem:[#allocation33_spill] sm:$0xff] %v13145_v45  ;;  %16644 = vst [vmem:[#allocation34_spill] sm:$0xff] %v13147_v60  ;;  %v16662_v60 = vld [vmem:[#allocation20_spill] sm:$0xff] }
 0x1ba   :  { %9699 = vmatpush1.bf16.msra.mxu1 %v9698_v35  ;;  %8315 = vmatprep.mubr.msk.f32.mxu1 %vm2879_vm3, %v13152_v2 }
 0x1bb   :  { %3444 = vmatmul.mubr.f32.gmra.mrb[186].mxu0 %v12504_v17  ;;  %9700 = vmatprep.subr.bf16.mxu1 %v16558_v54  ;;  %v13161_v12 = vpop.f32.mrb[110].mxu0  ;;  %v13163_v36 = vpop.f32.mrb[110].mxu1 }
 0x1bc   :  { %9678 = vmatpush1.bf16.msra.mxu0 %v12986_v61  ;;  %8307 = vmatprep.mubr.msk.f32.mxu0 %vm2879_vm3, %v12515_v10  ;;  %16645 = vst [vmem:[#allocation5_spill] sm:$0xff] %v13161_v12  ;;  %16646 = vst [vmem:[#allocation24_spill] sm:$0xff] %v13163_v36  ;;  %v13172_v39 = vpop.f32.mrb[111].mxu0  ;;  %v13174_v35 = vpop.f32.mrb[111].mxu1  ;;  %v13179_v61 = vld [vmem:[%s16409_s3 + $0x78] sm:$0xff] }
 0x1bd   :  { %3602 = vmatmul.mubr.f32.gmra.mrb[172].mxu1 %v13168_v31  ;;  %9679 = vmatprep.subr.bf16.mxu0 %v16558_v54  ;;  %16647 = vst [vmem:[#allocation25_spill] sm:$0xff] %v13172_v39  ;;  %16648 = vst [vmem:[#allocation35_spill] sm:$0xff] %v13174_v35 }
 0x1be   :  { %9702 = vmatpush1.bf16.msra.mxu1 %v9701_v42  ;;  %8316 = vmatprep.mubr.msk.f32.mxu1 %vm2879_vm3, %v13179_v61  ;;  %v13193_v42 = vld [vmem:[%s16409_s3 + $0x70] sm:$0xff] }
 0x1bf   :  { %3449 = vmatmul.mubr.f32.gmra.mrb[188].mxu0 %v12531_v34  ;;  %9703 = vmatprep.subr.bf16.mxu1 %v16558_v54  ;;  %v9362_v55 = vpop.f32.mrb[112].mxu0  ;;  %v13188_v22 = vpop.f32.mrb[112].mxu1  ;;  %16649 = vst [vmem:[#allocation36_spill] sm:$0xff] %v13193_v42 }
 0x1c0   :  { %9681 = vmatpush1.bf16.msra.mxu0 %v13022_v23  ;;  %8308 = vmatprep.mubr.msk.f32.mxu0 %vm2879_vm3, %v12542_v0  ;;  %v2364_v34 = vmax.f32 %v12826_v18, %v9362_v55  ;;  %v2284_v52 = vpop.f32.mrb[113].mxu0  ;;  %v13200_v1 = vpop.f32.mrb[113].mxu1  ;;  %v13205_v0 = vld [vmem:[%s16409_s3 + $0x88] sm:$0xff] }
 0x1c1   :  { %3607 = vmatmul.mubr.f32.gmra.mrb[174].mxu1 %v13193_v42  ;;  %9682 = vmatprep.subr.bf16.mxu0 %v16558_v54  ;;  %16650 = vst [vmem:[#allocation37_spill] sm:$0xff] %v13205_v0  ;;  %v2363_v35 = vmax.f32 %v12840_v58, %v2284_v52  ;;  %v2671_v18 = vmax.f32 %v12842_v38, %v13200_v1  ;;  %v13222_v58 = vld [vmem:[%s16409_s3 + $0x80] sm:$0xff]  ;;  %v16654_v38 = vld [vmem:[#allocation3_spill] sm:$0xff] }
 0x1c2   :  { %9705 = vmatpush1.bf16.msra.mxu1 %v9704_v4  ;;  %8317 = vmatprep.mubr.msk.f32.mxu1 %vm2879_vm3, %v13205_v0  ;;  %v2380_v55 = vadd.f32 %v2364_v34, %v16586_v25  ;;  %16651 = vst [vmem:[#allocation26_spill] sm:$0xff] %v13222_v58  ;;  %v16656_v52 = vld [vmem:[#allocation19_spill] sm:$0xff] }
 0x1c3   :  { %3454 = vmatmul.mubr.f32.gmra.mrb[190].mxu0 %v16612_v24  ;;  %9706 = vmatprep.subr.bf16.mxu1 %v16558_v54  ;;  %v2379_v4 = vadd.f32 %v2363_v35, %v16589_v13  ;;  %v9365_v23 = vpop.f32.mrb[114].mxu0  ;;  %v9419_v39 = vpop.f32.mrb[114].mxu1  ;;  %v16652_v24 = vpack.c.bf16 %v13100_v46, %v13092_v63  ;;  %v16655_v35 = vld [vmem:[#allocation28_spill] sm:$0xff]  ;;  %v16657_v63 = vld [vmem:[#allocation18_spill] sm:$0xff]  ;;  %v16661_v42 = vld [vmem:[#allocation39_spill] sm:$0xff] }
 0x1c4   :  { %9684 = vmatpush1.bf16.msra.mxu0 %v13044_v50  ;;  %8325 = vmatprep.mubr.msk.f32.mxu0 %vm2879_vm3, %v16618_v33  ;;  %v13232_v33 = vld [vmem:[%s16409_s3 + $0x98] sm:$0xff]  ;;  %v2412_v50 = vmul.f32 0.01, %v2380_v55  ;;  %v2366_v34 = vmax.f32 %v16655_v35, %v9365_v23  ;;  %v2294_v36 = vpop.f32.mrb[115].mxu0  ;;  %v2602_v12 = vpop.f32.mrb[115].mxu1  ;;  %vm2396_vm7 = vcmp.gt.f32.partialorder %v2380_v55, 0.0 }
 0x1c5   :  { %3612 = vmatmul.mubr.f32.gmra.mrb[176].mxu1 %v13222_v58  ;;  %9721 = vmatprep.subr.bf16.mxu0 %v16558_v54  ;;  %16653 = vst [vmem:[#allocation38_spill] sm:$0xff] %v13232_v33  ;;  %v2411_v1 = vmul.f32 0.01, %v2379_v4  ;;  %v2674_v58 = vmax.f32 %v16656_v52, %v9419_v39  ;;  %vm2395_vm8 = vcmp.gt.f32.partialorder %v2379_v4, 0.0  ;;  %v2365_v46 = vmax.f32 %v12918_v37, %v2294_v36  ;;  %v16658_v23 = vld [vmem:[#allocation4_spill] sm:$0xff]  ;;  %v16659_v37 = vld [vmem:[#allocation2_spill] sm:$0xff] }
 0x1c6   :  { %9708 = vmatpush1.bf16.msra.mxu1 %v16652_v24  ;;  %8318 = vmatprep.mubr.msk.f32.mxu1 %vm2879_vm3, %v13232_v33  ;;  %v2673_v24 = vmax.f32 %v12920_v53, %v2602_v12  ;;  %v2382_v39 = vadd.f32 %v2366_v34, %v16658_v23  ;;  %v16660_v12 = vld [vmem:[#allocation21_spill] sm:$0xff]  ;;  %v16663_v34 = vld [vmem:[#allocation23_spill] sm:$0xff] }
 0x1c7   :  { %3765 = vmatmul.mubr.f32.vlgmr.msra.gmra.mrb[192].mxu0 %v16654_v38  ;;  %9709 = vmatprep.subr.bf16.mxu1 %v16558_v54  ;;  %v9368_v33 = vpop.f32.mrb[116].mxu0  ;;  %v13244_v38 = vpop.f32.mrb[116].mxu1  ;;  %v2381_v53 = vadd.f32 %v2365_v46, %v16659_v37 }
 0x1c8   :  { %8326 = vmatprep.mubr.msk.f32.mxu0 %vm2879_vm3, %v16657_v63  ;;  %v2368_v35 = vmax.f32 %v12947_v15, %v9368_v33  ;;  %v2304_v0 = vpop.f32.mrb[117].mxu0  ;;  %v13251_v63 = vpop.f32.mrb[117].mxu1  ;;  %v2427_v15 = vsel %vm2395_vm8, %v2379_v4, %v2411_v1  ;;  %v2428_v33 = vsel %vm2396_vm7, %v2380_v55, %v2412_v50  ;;  %v2414_v52 = vmul.f32 0.01, %v2382_v39 }
 0x1c9   :  { %3617 = vmatmul.mubr.f32.gmra.mrb[178].mxu1 %v16638_v40  ;;  %v2367_v36 = vmax.f32 %v16660_v12, %v2304_v0  ;;  %vm2397_vm11 = vcmp.gt.f32.partialorder %v2381_v53, 0.0  ;;  %v9710_v0 = vpack.c.bf16 %v2428_v33, %v2427_v15  ;;  %v16665_v40 = vld [vmem:[#allocation22_spill] sm:$0xff]  ;;  %vm2398_vm12 = vcmp.gt.f32.partialorder %v2382_v39, 0.0  ;;  %v16667_v15 = vld [vmem:[#allocation7_spill] sm:$0xff] }
 0x1ca   :  { %8319 = vmatprep.mubr.msk.f32.mxu1 %vm2879_vm3, %v16640_v30  ;;  %v2413_v30 = vmul.f32 0.01, %v2381_v53 }
 0x1cb   :  { %3770 = vmatmul.mubr.f32.gmra.mrb[194].mxu0 %v16662_v60  ;;  %v9371_v45 = vpop.f32.mrb[118].mxu0  ;;  %v13265_v46 = vpop.f32.mrb[118].mxu1  ;;  %v2383_v33 = vadd.f32 %v2367_v36, %v16667_v15  ;;  %9711 = vmatpush1.bf16.msra.mxu1 %v9710_v0 }
 0x1cc   :  { %8327 = vmatprep.mubr.msk.f32.mxu0 %vm2879_vm3, %v16663_v34  ;;  %v2370_v12 = vmax.f32 %v12996_v29, %v9371_v45  ;;  %v2678_v55 = vmax.f32 %v12998_v56, %v13265_v46  ;;  %v2314_v4 = vpop.f32.mrb[119].mxu0  ;;  %v13272_v50 = vpop.f32.mrb[119].mxu1  ;;  %v16666_v34 = vld [vmem:[#allocation6_spill] sm:$0xff]  ;;  %v13284_v29 = vadd.f32 %v2671_v18, %v16589_v13  ;;  %v13289_v45 = vadd.f32 %v2674_v58, %v16658_v23 }
 0x1cd   :  { %3622 = vmatmul.mubr.f32.gmra.mrb[180].mxu1 %v16641_v9  ;;  %v16664_v9 = vmax.f32 %v12828_v6, %v13188_v22  ;;  %9723 = vmatpush1.bf16.msra.mxu0 %v9710_v0  ;;  %v2429_v6 = vsel %vm2397_vm11, %v2381_v53, %v2413_v30  ;;  %v2677_v13 = vmax.f32 %v13019_v48, %v13272_v50  ;;  %v2415_v36 = vmul.f32 0.01, %v2383_v33  ;;  %v16668_v48 = vld [vmem:[#allocation8_spill] sm:$0xff] }
 0x1ce   :  { %8320 = vmatprep.mubr.msk.f32.mxu1 %vm2879_vm3, %v16642_v5  ;;  %v2384_v5 = vadd.f32 %v2368_v35, %v16666_v34  ;;  %9712 = vmatprep.subr.bf16.mxu1 %v16558_v54  ;;  %v2430_v18 = vsel %vm2398_vm12, %v2382_v39, %v2414_v52  ;;  %v13305_v53 = vadd.f32 %v2673_v24, %v16659_v37  ;;  %vm2399_vm1 = vcmp.gt.f32.partialorder %v2383_v33, 0.0  ;;  %v16669_v39 = vld [vmem:[#allocation9_spill] sm:$0xff] }
 0x1cf   :  { %v13278_v1 = vadd.f32 %v16664_v9, %v16586_v25  ;;  %3775 = vmatmul.mubr.f32.gmra.mrb[196].mxu0 %v16665_v40  ;;  %v2369_v25 = vmax.f32 %v13017_v16, %v2314_v4  ;;  %v9374_v22 = vpop.f32.mrb[120].mxu0  ;;  %v9428_v35 = vpop.f32.mrb[120].mxu1  ;;  %9724 = vmatprep.subr.bf16.mxu0 %v16558_v54  ;;  %v9713_v30 = vpack.c.bf16 %v2430_v18, %v2429_v6  ;;  %vm2703_vm2 = vcmp.gt.f32.partialorder %v13284_v29, 0.0 }
 0x1d0   :  { %8328 = vmatprep.mubr.msk.f32.mxu0 %vm2879_vm3, %v13013_v8  ;;  %v2372_v58 = vmax.f32 %v13054_v32, %v9374_v22  ;;  %v2632_v23 = vpop.f32.mrb[121].mxu1  ;;  %v2386_v32 = vadd.f32 %v2370_v12, %v16668_v48  ;;  %vm2400_vm14 = vcmp.gt.f32.partialorder %v2384_v5, 0.0  ;;  %v2680_v24 = vmax.f32 %v13056_v27, %v9428_v35 }
 0x1d1   :  { %3627 = vmatmul.mubr.f32.gmra.mrb[182].mxu1 %v12433_v19  ;;  %v2324_v19 = vpop.f32.mrb[121].mxu0  ;;  %v13302_v16 = vmul.f32 0.01, %v13278_v1  ;;  %v2385_v52 = vadd.f32 %v2369_v25, %v16669_v39  ;;  %v2679_v50 = vmax.f32 %v13076_v59, %v2632_v23  ;;  %v2719_v12 = vmul.f32 0.01, %v13284_v29  ;;  %9726 = vmatpush1.bf16.msra.mxu0 %v9713_v30 }
 0x1d2   :  { %8321 = vmatprep.mubr.msk.f32.mxu1 %vm2879_vm3, %v12447_v44  ;;  %v2416_v44 = vmul.f32 0.01, %v2384_v5  ;;  %v2371_v37 = vmax.f32 %v13074_v20, %v2324_v19  ;;  %v13326_v25 = vmul.f32 0.01, %v13289_v45  ;;  %9714 = vmatpush1.bf16.msra.mxu1 %v9713_v30  ;;  %vm2704_vm13 = vcmp.gt.f32.partialorder %v13278_v1, 0.0  ;;  %v13413_v30 = vld [vmem:[%s16409_s3 + $0xe0] sm:$0xff] }
 0x1d3   :  { %3780 = vmatmul.mubr.f32.gmra.mrb[198].mxu0 %v13061_v41  ;;  %v9377_v0 = vpop.f32.mrb[122].mxu0  ;;  %v13313_v4 = vpop.f32.mrb[122].mxu1  ;;  %v16670_v27 = vmax.f32 %v12949_v7, %v13244_v38  ;;  %v2417_v59 = vmul.f32 0.01, %v2385_v52  ;;  %9715 = vmatprep.subr.bf16.mxu1 %v16558_v54  ;;  %v2431_v6 = vsel %vm2399_vm1, %v2383_v33, %v2415_v36  ;;  %vm2401_vm0 = vcmp.gt.f32.partialorder %v2385_v52, 0.0 }
 0x1d4   :  { %8329 = vmatprep.mubr.msk.f32.mxu0 %vm2879_vm3, %v13082_v49  ;;  %v13319_v9 = vpop.f32.mrb[123].mxu0  ;;  %v13321_v22 = vpop.f32.mrb[123].mxu1  ;;  %v2432_v35 = vsel %vm2400_vm14, %v2384_v5, %v2416_v44  ;;  %v2374_v18 = vmax.f32 %v13106_v57, %v9377_v0  ;;  %vm2402_vm10 = vcmp.gt.f32.partialorder %v2386_v32, 0.0  ;;  %v13361_v33 = vadd.f32 %v2678_v55, %v16668_v48  ;;  %9727 = vmatprep.subr.bf16.mxu0 %v16558_v54  ;;  %v16672_v57 = vld [vmem:[#allocation10_spill] sm:$0xff] }
 0x1d5   :  { %3632 = vmatmul.mubr.f32.gmra.mrb[184].mxu1 %v12477_v11  ;;  %v13332_v11 = vmul.f32 0.01, %v13305_v53  ;;  %v13338_v20 = vadd.f32 %v16670_v27, %v16666_v34  ;;  %v16671_v34 = vmax.f32 %v16661_v42, %v13251_v63  ;;  %v13364_v5 = vadd.f32 %v2677_v13, %v16669_v39  ;;  %v16673_v63 = vld [vmem:[#allocation11_spill] sm:$0xff]  ;;  %v16675_v27 = vld [vmem:[#allocation13_spill] sm:$0xff] }
 0x1d6   :  { %8322 = vmatprep.mubr.msk.f32.mxu1 %vm2879_vm3, %v12488_v21  ;;  %v2418_v21 = vmul.f32 0.01, %v2386_v32  ;;  %v13369_v23 = vadd.f32 %v2372_v58, %v16672_v57  ;;  %v13372_v42 = vadd.f32 %v2680_v24, %v16672_v57  ;;  %v9716_v56 = vpack.c.bf16 %v2432_v35, %v2431_v6 }
 0x1d7   :  { %3785 = vmatmul.mubr.f32.gmra.mrb[200].mxu0 %v13113_v47  ;;  %v13347_v7 = vpop.f32.mrb[124].mxu0  ;;  %v13349_v38 = vpop.f32.mrb[124].mxu1  ;;  %v13355_v19 = vadd.f32 %v16671_v34, %v16667_v15  ;;  %v2387_v15 = vadd.f32 %v2371_v37, %v16673_v63  ;;  %v2373_v13 = vmax.f32 %v13117_v3, %v13319_v9  ;;  %v2681_v58 = vmax.f32 %v13119_v28, %v13321_v22  ;;  %v13430_v9 = vld [vmem:[%s16409_s3 + $0xf8] sm:$0xff] }
 0x1d8   :  { %8330 = vmatprep.mubr.msk.f32.mxu0 %vm2879_vm3, %v13125_v62  ;;  %v13377_v46 = vpop.f32.mrb[125].mxu0  ;;  %v13379_v55 = vpop.f32.mrb[125].mxu1  ;;  %v2433_v44 = vsel %vm2401_vm0, %v2385_v52, %v2417_v59  ;;  %v13393_v36 = vadd.f32 %v2679_v50, %v16673_v63  ;;  %9717 = vmatpush1.bf16.msra.mxu1 %v9716_v56  ;;  %v2376_v3 = vmax.f32 %v13134_v51, %v13347_v7  ;;  %v13408_v52 = vmul.f32 0.01, %v13361_v33  ;;  %v16676_v7 = vld [vmem:[#allocation14_spill] sm:$0xff]  ;;  %v16677_v34 = vld [vmem:[#allocation33_spill] sm:$0xff] }
 0x1d9   :  { %3637 = vmatmul.mubr.f32.gmra.mrb[186].mxu1 %v12504_v17  ;;  %v2682_v17 = vmax.f32 %v13108_v26, %v13313_v4  ;;  %v2434_v26 = vsel %vm2402_vm10, %v2386_v32, %v2418_v21  ;;  %v13405_v39 = vmul.f32 0.01, %v13355_v19  ;;  %9729 = vmatpush1.bf16.msra.mxu0 %v9716_v56  ;;  %v16674_v32 = vld [vmem:[#allocation12_spill] sm:$0xff]  ;;  %v2735_v0 = vsel %vm2703_vm2, %v13284_v29, %v2719_v12  ;;  %v16678_v63 = vld [vmem:[#allocation34_spill] sm:$0xff] }
 0x1da   :  { %8323 = vmatprep.mubr.msk.f32.mxu1 %vm2879_vm3, %v12515_v10  ;;  %v13390_v10 = vmul.f32 0.01, %v13338_v20  ;;  %v13417_v51 = vadd.f32 %v2374_v18, %v16674_v32  ;;  %v2420_v37 = vmul.f32 0.01, %v13369_v23  ;;  %v2419_v50 = vmul.f32 0.01, %v2387_v15  ;;  %9718 = vmatprep.subr.bf16.mxu1 %v16558_v54 }
 0x1db   :  { %3790 = vmatmul.mubr.f32.gmra.mrb[202].mxu0 %v13141_v43  ;;  %v13400_v48 = vpop.f32.mrb[126].mxu0  ;;  %v13402_v28 = vpop.f32.mrb[126].mxu1  ;;  %v9719_v22 = vpack.c.bf16 %v2434_v26, %v2433_v44  ;;  %v2684_v29 = vmax.f32 %v13136_v14, %v13349_v38  ;;  %vm2706_vm6 = vcmp.gt.f32.partialorder %v13289_v45, 0.0  ;;  %vm2705_vm9 = vcmp.gt.f32.partialorder %v13305_v53, 0.0  ;;  %9730 = vmatprep.subr.bf16.mxu0 %v16558_v54  ;;  %v13465_v18 = vld [vmem:[%s16409_s3 + $0xf0] sm:$0xff] }
 0x1dc   :  { %8331 = vmatprep.mubr.msk.f32.mxu0 %vm2879_vm3, %v13152_v2  ;;  %v13422_v4 = vpop.f32.mrb[127].mxu0  ;;  %v13424_v24 = vpop.f32.mrb[127].mxu1  ;;  %v13440_v12 = vmul.f32 0.01, %v13364_v5  ;;  %vm2404_vm15 = vcmp.gt.f32.partialorder %v13369_v23, 0.0  ;;  %vm2403_vm4 = vcmp.gt.f32.partialorder %v2387_v15, 0.0  ;;  %v2389_v59 = vadd.f32 %v2373_v13, %v16675_v27 }
 0x1dd   :  { %3642 = vmatmul.mubr.f32.gmra.mrb[188].mxu1 %v13413_v30  ;;  %v13447_v6 = vmul.f32 0.01, %v13372_v42  ;;  %v13450_v14 = vmul.f32 0.01, %v13393_v36  ;;  %v13453_v21 = vadd.f32 %v2682_v17, %v16674_v32  ;;  %v13456_v35 = vadd.f32 %v2681_v58, %v16675_v27  ;;  %9732 = vmatpush1.bf16.msra.mxu0 %v9719_v22  ;;  %v13478_v13 = vld [vmem:[%s16409_s3 + $0x8] sm:$0xff]  ;;  %v16679_v26 = vld [vmem:[#allocation36_spill] sm:$0xff] }
 0x1de   :  { %8324 = vmatprep.mubr.msk.f32.mxu1 %vm2879_vm3, %v13430_v9  ;;  %9720 = vmatpush1.bf16.msra.mxu1 %v9719_v22  ;;  %vm2707_vm5 = vcmp.gt.f32.partialorder %v13355_v19, 0.0  ;;  %vm2406_vm7 = vcmp.gt.f32.partialorder %v13417_v51, 0.0  ;;  %v2392_v38 = vadd.f32 %v2376_v3, %v16676_v7  ;;  %v2375_v57 = vmax.f32 %v16677_v34, %v13377_v46  ;;  %v16680_v32 = vld [vmem:[#allocation15_spill] sm:$0xff]  ;;  %v16683_v22 = vld [vmem:[#allocation24_spill] sm:$0xff] }
 0x1df   :  { %3795 = vmatmul.mubr.f32.gmra.mrb[204].mxu0 %v13168_v31  ;;  %v2683_v56 = vmax.f32 %v16678_v63, %v13379_v55  ;;  %vm2708_vm8 = vcmp.gt.f32.partialorder %v13338_v20, 0.0  ;;  %v2422_v17 = vmul.f32 0.01, %v13417_v51  ;;  %9733 = vmatprep.subr.bf16.mxu0 %v16558_v54  ;;  %v2435_v58 = vsel %vm2403_vm4, %v2387_v15, %v2419_v50  ;;  %v16684_v34 = vld [vmem:[#allocation3_spill] sm:$0xff]  ;;  %v16686_v63 = vld [vmem:[#allocation25_spill] sm:$0xff] }
 0x1e0   :  { %8332 = vmatprep.mubr.msk.f32.mxu0 %vm2879_vm3, %v13179_v61  ;;  %v2436_v46 = vsel %vm2404_vm15, %v13369_v23, %v2420_v37  ;;  %v2736_v55 = vsel %vm2704_vm13, %v13278_v1, %v13302_v16  ;;  %vm2709_vm11 = vcmp.gt.f32.partialorder %v13364_v5, 0.0  ;;  %vm2405_vm12 = vcmp.gt.f32.partialorder %v2389_v59, 0.0  ;;  %9757 = vmatprep.subr.bf16.mxu1 %v16558_v54  ;;  %v16681_v1 = vld [vmem:[#allocation37_spill] sm:$0xff] }
 0x1e1   :  { %3647 = vmatmul.mubr.f32.gmra.mrb[190].mxu1 %v13465_v18  ;;  %v2421_v44 = vmul.f32 0.01, %v2389_v59  ;;  %v13494_v3 = vadd.f32 %v2684_v29, %v16676_v7  ;;  %v2391_v15 = vadd.f32 %v2375_v57, %v16680_v32  ;;  %vm2710_vm1 = vcmp.gt.f32.partialorder %v13361_v33, 0.0  ;;  %v16682_v37 = vld [vmem:[#allocation5_spill] sm:$0xff] }
 0x1e2   :  { %8341 = vmatprep.mubr.msk.f32.mxu1 %vm2879_vm3, %v13478_v13  ;;  %vm2712_vm14 = vcmp.gt.f32.partialorder %v13372_v42, 0.0  ;;  %vm2711_vm2 = vcmp.gt.f32.partialorder %v13393_v36, 0.0  ;;  %v9734_v16 = vpack.c.bf16 %v2436_v46, %v2435_v58  ;;  %v13503_v23 = vpack.c.bf16 %v2736_v55, %v2735_v0  ;;  %v16687_v46 = vld [vmem:[#allocation26_spill] sm:$0xff]  ;;  %v16688_v55 = vld [vmem:[#allocation35_spill] sm:$0xff] }
 0x1e3   :  { %3800 = vmatmul.mubr.f32.gmra.mrb[206].mxu0 %v16679_v26  ;;  %v2378_v50 = vmax.f32 %v16682_v37, %v13400_v48  ;;  %v2686_v29 = vmax.f32 %v16683_v22, %v13402_v28  ;;  %v13510_v27 = vmul.f32 0.01, %v13453_v21  ;;  %vm2713_vm13 = vcmp.gt.f32.partialorder %v13456_v35, 0.0  ;;  %v16685_v48 = vld [vmem:[#allocation16_spill] sm:$0xff]  ;;  %v16689_v22 = vld [vmem:[#allocation18_spill] sm:$0xff] }
 0x1e4   :  { %8333 = vmatprep.mubr.msk.f32.mxu0 %vm2879_vm3, %v16681_v1  ;;  %vm2408_vm0 = vcmp.gt.f32.partialorder %v2392_v38, 0.0  ;;  %v2424_v7 = vmul.f32 0.01, %v2392_v38  ;;  %v2423_v57 = vmul.f32 0.01, %v2391_v15  ;;  %v13516_v0 = vadd.f32 %v2683_v56, %v16680_v32  ;;  %9735 = vmatpush1.bf16.msra.mxu0 %v9734_v16 }
 0x1e5   :  { %3958 = vmatmul.mubr.f32.vlgmr.msra.gmra.mrb[192].mxu1 %v16684_v34  ;;  %v2394_v28 = vadd.f32 %v2378_v50, %v16685_v48  ;;  %v2377_v58 = vmax.f32 %v16686_v63, %v13422_v4  ;;  %vm2407_vm15 = vcmp.gt.f32.partialorder %v2391_v15, 0.0  ;;  %v2685_v37 = vmax.f32 %v16688_v55, %v13424_v24  ;;  %v16690_v50 = vld [vmem:[#allocation38_spill] sm:$0xff]  ;;  %9736 = vmatprep.subr.bf16.mxu0 %v16558_v54  ;;  %v16691_v63 = vld [vmem:[#allocation17_spill] sm:$0xff] }
 0x1e6   :  { %9759 = vmatpush1.bf16.msra.mxu1 %v13503_v23  ;;  %8342 = vmatprep.mubr.msk.f32.mxu1 %vm2879_vm3, %v16689_v22  ;;  %v2437_v56 = vsel %vm2405_vm12, %v2389_v59, %v2421_v44  ;;  %v2438_v32 = vsel %vm2406_vm7, %v13417_v51, %v2422_v17  ;;  %v2729_v16 = vmul.f32 0.01, %v13456_v35  ;;  %vm2716_vm4 = vcmp.gt.f32.partialorder %v13494_v3, 0.0 }
 0x1e7   :  { %3805 = vmatmul.mubr.f32.gmra.mrb[208].mxu0 %v16687_v46  ;;  %vm2410_vm10 = vcmp.gt.f32.partialorder %v2394_v28, 0.0  ;;  %v13534_v4 = vadd.f32 %v2686_v29, %v16685_v48  ;;  %v2426_v24 = vmul.f32 0.01, %v2394_v28  ;;  %v2393_v59 = vadd.f32 %v2377_v58, %v16691_v63  ;;  %9760 = vmatprep.subr.bf16.mxu1 %v16558_v54  ;;  %v16692_v48 = vld [vmem:[#allocation23_spill] sm:$0xff] }
 0x1e8   :  { %8334 = vmatprep.mubr.msk.f32.mxu0 %vm2879_vm3, %v16690_v50  ;;  %v2701_v44 = vadd.f32 %v2685_v37, %v16691_v63  ;;  %v9737_v51 = vpack.c.bf16 %v2438_v32, %v2437_v56  ;;  %v2737_v17 = vsel %vm2705_vm9, %v13305_v53, %v13332_v11  ;;  %v2738_v29 = vsel %vm2706_vm6, %v13289_v45, %v13326_v25  ;;  %v13560_v53 = vld [vmem:[%s16409_s3 + $0x90] sm:$0xff]  ;;  %v13569_v11 = vld [vmem:[%s16409_s3 + $0xa8] sm:$0xff] }
 0x1e9   :  { %3963 = vmatmul.mubr.f32.gmra.mrb[194].mxu1 %v16662_v60  ;;  %v2439_v58 = vsel %vm2407_vm15, %v2391_v15, %v2423_v57  ;;  %v2440_v55 = vsel %vm2408_vm0, %v2392_v38, %v2424_v7  ;;  %v2732_v37 = vmul.f32 0.01, %v13494_v3  ;;  %vm2715_vm7 = vcmp.gt.f32.partialorder %v13516_v0, 0.0 }
 0x1ea   :  { %8343 = vmatprep.mubr.msk.f32.mxu1 %vm2879_vm3, %v16692_v48  ;;  %vm2409_vm12 = vcmp.gt.f32.partialorder %v2393_v59, 0.0  ;;  %v2425_v56 = vmul.f32 0.01, %v2393_v59  ;;  %v2731_v45 = vmul.f32 0.01, %v13516_v0  ;;  %9738 = vmatpush1.bf16.msra.mxu0 %v9737_v51  ;;  %v13564_v25 = vpack.c.bf16 %v2738_v29, %v2737_v17 }
 0x1eb   :  { %3810 = vmatmul.mubr.f32.gmra.mrb[210].mxu0 %v13560_v53  ;;  %v9740_v38 = vpack.c.bf16 %v2440_v55, %v2439_v58  ;;  %v2739_v15 = vsel %vm2707_vm5, %v13355_v19, %v13405_v39  ;;  %v2734_v7 = vmul.f32 0.01, %v13534_v4  ;;  %9739 = vmatprep.subr.bf16.mxu0 %v16558_v54  ;;  %v2740_v57 = vsel %vm2708_vm8, %v13338_v20, %v13390_v10  ;;  %v13595_v20 = vld [vmem:[%s16409_s3 + $0xa0] sm:$0xff]  ;;  %v13750_v58 = vpop.permute.xlu1 %2806 }
 0x1ec   :  { %8335 = vmatprep.mubr.msk.f32.mxu0 %vm2879_vm3, %v13569_v11  ;;  %v2441_v32 = vsel %vm2409_vm12, %v2393_v59, %v2425_v56  ;;  %v2442_v63 = vsel %vm2410_vm10, %v2394_v28, %v2426_v24  ;;  %v2733_v51 = vmul.f32 0.01, %v2701_v44  ;;  %9762 = vmatpush1.bf16.msra.mxu1 %v13564_v25  ;;  %v9752_v17 = vpack.c.bf16 %v2740_v57, %v2739_v15  ;;  %v13615_v28 = vld [vmem:[%s16409_s3 + $0xb8] sm:$0xff] }
 0x1ed   :  { %3968 = vmatmul.mubr.f32.gmra.mrb[196].mxu1 %v16665_v40  ;;  %v9743_v19 = vpack.c.bf16 %v2442_v63, %v2441_v32  ;;  %v2741_v39 = vsel %vm2709_vm11, %v13364_v5, %v13440_v12  ;;  %vm2717_vm6 = vcmp.gt.f32.partialorder %v2701_v44, 0.0  ;;  %9763 = vmatprep.subr.bf16.mxu1 %v16558_v54  ;;  %v2742_v10 = vsel %vm2710_vm1, %v13361_v33, %v13408_v52  ;;  %v13669_v59 = vld [vmem:[%s16409_s3 + $0xd8] sm:$0xff] }
 0x1ee   :  { %8344 = vmatprep.mubr.msk.f32.mxu1 %vm2879_vm3, %v13013_v8  ;;  %v2743_v5 = vsel %vm2711_vm2, %v13393_v36, %v13450_v14  ;;  %v2744_v12 = vsel %vm2712_vm14, %v13372_v42, %v13447_v6  ;;  %vm2718_vm9 = vcmp.gt.f32.partialorder %v13534_v4, 0.0  ;;  %9741 = vmatpush1.bf16.msra.mxu0 %v9740_v38  ;;  %v9755_v33 = vpack.c.bf16 %v2742_v10, %v2741_v39 }
 0x1ef   :  { %3815 = vmatmul.mubr.f32.gmra.mrb[212].mxu0 %v13595_v20  ;;  %v9770_v52 = vpack.c.bf16 %v2744_v12, %v2743_v5  ;;  %v2745_v36 = vsel %vm2713_vm13, %v13456_v35, %v2729_v16  ;;  %9742 = vmatprep.subr.bf16.mxu0 %v16558_v54  ;;  %vm16693_vm5 = vcmp.gt.f32.partialorder %v13453_v21, 0.0  ;;  %v2747_v6 = vsel %vm2715_vm7, %v13516_v0, %v2731_v45 }
 0x1f0   :  { %8336 = vmatprep.mubr.msk.f32.mxu0 %vm2879_vm3, %v13615_v28  ;;  %v2746_v42 = vsel %vm16693_vm5, %v13453_v21, %v13510_v27  ;;  %v2748_v14 = vsel %vm2716_vm4, %v13494_v3, %v2732_v37  ;;  %9765 = vmatpush1.bf16.msra.mxu1 %v9752_v17  ;;  %v2749_v24 = vsel %vm2717_vm6, %v2701_v44, %v2733_v51  ;;  %v13640_v21 = vld [vmem:[%s16409_s3 + $0xb0] sm:$0xff]  ;;  %v13650_v27 = vld [vmem:[%s16409_s3 + $0xc8] sm:$0xff] }
 0x1f1   :  { %3973 = vmatmul.mubr.f32.gmra.mrb[198].mxu1 %v13061_v41  ;;  %v9773_v35 = vpack.c.bf16 %v2746_v42, %v2745_v36  ;;  %v9776_v16 = vpack.c.bf16 %v2748_v14, %v2747_v6  ;;  %9766 = vmatprep.subr.bf16.mxu1 %v16558_v54  ;;  %v2750_v3 = vsel %vm2718_vm9, %v13534_v4, %v2734_v7  ;;  %v13661_v4 = vld [vmem:[%s16409_s3 + $0xc0] sm:$0xff]  ;;  %v13688_v44 = vld [vmem:[%s16409_s3 + $0xe8] sm:$0xff] }
 0x1f2   :  { %8345 = vmatprep.mubr.msk.f32.mxu1 %vm2879_vm3, %v13082_v49  ;;  %9744 = vmatpush1.bf16.msra.mxu0 %v9743_v19  ;;  %v9779_v0 = vpack.c.bf16 %v2750_v3, %v2749_v24  ;;  %v13770_v19 = vpop.permute.xlu1 %2816 }
 0x1f3   :  { %3820 = vmatmul.mubr.f32.gmra.mrb[214].mxu0 %v13640_v21  ;;  %9745 = vmatprep.subr.bf16.mxu0 %v16558_v54 }
 0x1f4   :  { %8337 = vmatprep.mubr.msk.f32.mxu0 %vm2879_vm3, %v13650_v27  ;;  %9768 = vmatpush1.bf16.msra.mxu1 %v9755_v33 }
 0x1f5   :  { %3978 = vmatmul.mubr.f32.gmra.mrb[200].mxu1 %v13113_v47  ;;  %9769 = vmatprep.subr.bf16.mxu1 %v16558_v54 }
 0x1f6   :  { %8346 = vmatprep.mubr.msk.f32.mxu1 %vm2879_vm3, %v13125_v62  ;;  %9747 = vmatpush1.bf16.msra.mxu0 %v13503_v23  ;;  %v13680_v23 = vld [vmem:[%s16409_s3 + $0xd0] sm:$0xff]  ;;  %v13793_v3 = vpop.permute.xlu1 %2826 }
 0x1f7   :  { %3825 = vmatmul.mubr.f32.gmra.mrb[216].mxu0 %v13661_v4  ;;  %9748 = vmatprep.subr.bf16.mxu0 %v16558_v54 }
 0x1f8   :  { %8338 = vmatprep.mubr.msk.f32.mxu0 %vm2879_vm3, %v13669_v59  ;;  %9771 = vmatpush1.bf16.msra.mxu1 %v9770_v52  ;;  %v10401_v52 = vld [vmem:[%s16409_s3 + $0x10] sm:$0xff] }
 0x1f9   :  { %3983 = vmatmul.mubr.f32.gmra.mrb[202].mxu1 %v13141_v43  ;;  %9772 = vmatprep.subr.bf16.mxu1 %v16558_v54 }
 0x1fa   :  { %8347 = vmatprep.mubr.msk.f32.mxu1 %vm2879_vm3, %v13152_v2  ;;  %9750 = vmatpush1.bf16.msra.mxu0 %v13564_v25 }
 0x1fb   :  { %3830 = vmatmul.mubr.f32.gmra.mrb[218].mxu0 %v13680_v23  ;;  %9751 = vmatprep.subr.bf16.mxu0 %v16558_v54 }
 0x1fc   :  { %8339 = vmatprep.mubr.msk.f32.mxu0 %vm2879_vm3, %v13688_v44  ;;  %9774 = vmatpush1.bf16.msra.mxu1 %v9773_v35 }
 0x1fd   :  { %3988 = vmatmul.mubr.f32.gmra.mrb[204].mxu1 %v13168_v31  ;;  %9775 = vmatprep.subr.bf16.mxu1 %v16558_v54 }
 0x1fe   :  { %8348 = vmatprep.mubr.msk.f32.mxu1 %vm2879_vm3, %v13179_v61  ;;  %9753 = vmatpush1.bf16.msra.mxu0 %v9752_v17  ;;  %v10399_v17 = vld [vmem:[%s16409_s3] sm:$0xff] }
 0x1ff   :  { %3835 = vmatmul.mubr.f32.gmra.mrb[220].mxu0 %v13413_v30  ;;  %9754 = vmatprep.subr.bf16.mxu0 %v16558_v54 }
 0x200   :  { %8340 = vmatprep.mubr.msk.f32.mxu0 %vm2879_vm3, %v13430_v9  ;;  %9777 = vmatpush1.bf16.msra.mxu1 %v9776_v16 }
 0x201   :  { %3993 = vmatmul.mubr.f32.gmra.mrb[206].mxu1 %v16679_v26  ;;  %9778 = vmatprep.subr.bf16.mxu1 %v16558_v54 }
 0x202   :  { %8349 = vmatprep.mubr.msk.f32.mxu1 %vm2879_vm3, %v16681_v1  ;;  %9756 = vmatpush1.bf16.msra.mxu0 %v9755_v33 }
 0x203   :  { %3840 = vmatmul.mubr.f32.gmra.mrb[222].mxu0 %v13465_v18  ;;  %9781 = vmatprep.subr.bf16.mxu0 %v16558_v54 }
 0x204   :  { %8357 = vmatprep.mubr.msk.f32.mxu0 %vm2879_vm3, %v13478_v13  ;;  %9780 = vmatpush1.bf16.msra.mxu1 %v9779_v0 }
 0x205   :  { %3998 = vmatmul.mubr.f32.gmra.mrb[208].mxu1 %v16687_v46  ;;  %9817 = vmatprep.subr.bf16.mxu1 %v16558_v54 }
 0x206   :  { %8350 = vmatprep.mubr.msk.f32.mxu1 %vm2879_vm3, %v16690_v50 }
 0x207   :  { %4151 = vmatmul.mubr.f32.vlgmr.msra.gmra.mrb[224].mxu0 %v16684_v34 }
 0x208   :  { %8358 = vmatprep.mubr.msk.f32.mxu0 %vm2879_vm3, %v16689_v22 }
 0x209   :  { %4003 = vmatmul.mubr.f32.gmra.mrb[210].mxu1 %v13560_v53 }
 0x20a   :  { %8351 = vmatprep.mubr.msk.f32.mxu1 %vm2879_vm3, %v13569_v11 }
 0x20b   :  { %4156 = vmatmul.mubr.f32.gmra.mrb[226].mxu0 %v16662_v60  ;;  %v13741_v60 = vpop.permute.xlu0 %2801 }
 0x20c   :  { %8359 = vmatprep.mubr.msk.f32.mxu0 %vm2879_vm3, %v16692_v48 }
 0x20d   :  { %4008 = vmatmul.mubr.f32.gmra.mrb[212].mxu1 %v13595_v20 }
 0x20e   :  { %8352 = vmatprep.mubr.msk.f32.mxu1 %vm2879_vm3, %v13615_v28 }
 0x20f   :  { %4161 = vmatmul.mubr.f32.gmra.mrb[228].mxu0 %v16665_v40  ;;  %v13759_v38 = vpop.permute.xlu0 %2811 }
 0x210   :  { %8360 = vmatprep.mubr.msk.f32.mxu0 %vm2879_vm3, %v13013_v8 }
 0x211   :  { %4013 = vmatmul.mubr.f32.gmra.mrb[214].mxu1 %v13640_v21 }
 0x212   :  { %8353 = vmatprep.mubr.msk.f32.mxu1 %vm2879_vm3, %v13650_v27 }
 0x213   :  { %4166 = vmatmul.mubr.f32.gmra.mrb[230].mxu0 %v13061_v41  ;;  %v13784_v36 = vpop.permute.xlu0 %2821 }
 0x214   :  { %8361 = vmatprep.mubr.msk.f32.mxu0 %vm2879_vm3, %v13082_v49 }
 0x215   :  { %4018 = vmatmul.mubr.f32.gmra.mrb[216].mxu1 %v13661_v4 }
 0x216   :  { %8354 = vmatprep.mubr.msk.f32.mxu1 %vm2879_vm3, %v13669_v59 }
 0x217   :  { %4171 = vmatmul.mubr.f32.gmra.mrb[232].mxu0 %v13113_v47 }
 0x218   :  { %8362 = vmatprep.mubr.msk.f32.mxu0 %vm2879_vm3, %v13125_v62  ;;  %v2994_v34 = vpop.f32.mrb[128].mxu0 }
 0x219   :  { %4023 = vmatmul.mubr.f32.gmra.mrb[218].mxu1 %v13680_v23  ;;  %v2995_v22 = vadd.f32 %v2994_v34, %v13741_v60  ;;  %v2996_v29 = vpop.f32.mrb[129].mxu0 }
 0x21a   :  { %8355 = vmatprep.mubr.msk.f32.mxu1 %vm2879_vm3, %v13688_v44  ;;  %v13803_v29 = vpop.permute.xlu0 %2831 }
 0x21b   :  { %4176 = vmatmul.mubr.f32.gmra.mrb[234].mxu0 %v13141_v43  ;;  %v3089_v37 = vmul.f32 0.01, %v2995_v22  ;;  %vm3073_vm8 = vcmp.gt.f32.partialorder %v2995_v22, 0.0 }
 0x21c   :  { %8363 = vmatprep.mubr.msk.f32.mxu0 %vm2879_vm3, %v13152_v2  ;;  %v2999_v55 = vpop.f32.mrb[130].mxu0 }
 0x21d   :  { %4028 = vmatmul.mubr.f32.gmra.mrb[220].mxu1 %v13413_v30  ;;  %v3000_v56 = vadd.f32 %v2999_v55, %v13750_v58  ;;  %v3001_v45 = vpop.f32.mrb[131].mxu0  ;;  %v3105_v7 = vsel %vm3073_vm8, %v2995_v22, %v3089_v37 }
 0x21e   :  { %8356 = vmatprep.mubr.msk.f32.mxu1 %vm2879_vm3, %v13430_v9 }
 0x21f   :  { %4181 = vmatmul.mubr.f32.gmra.mrb[236].mxu0 %v13168_v31  ;;  %vm3074_vm11 = vcmp.gt.f32.partialorder %v3000_v56, 0.0  ;;  %v3090_v25 = vmul.f32 0.01, %v3000_v56 }
 0x220   :  { %8364 = vmatprep.mubr.msk.f32.mxu0 %vm2879_vm3, %v13179_v61  ;;  %v3004_v15 = vpop.f32.mrb[132].mxu0 }
 0x221   :  { %4033 = vmatmul.mubr.f32.gmra.mrb[222].mxu1 %v13465_v18  ;;  %v3106_v57 = vsel %vm3074_vm11, %v3000_v56, %v3090_v25  ;;  %v3005_v32 = vadd.f32 %v3004_v15, %v13759_v38  ;;  %v3006_v63 = vpop.f32.mrb[133].mxu0  ;;  %v13811_v15 = vpop.permute.xlu1 %2836 }
 0x222   :  { %8373 = vmatprep.mubr.msk.f32.mxu1 %vm2879_vm3, %v13478_v13  ;;  %v9782_v51 = vpack.c.bf16 %v3106_v57, %v3105_v7  ;;  %v10400_v13 = vld [vmem:[%s16409_s3 + $0x18] sm:$0xff] }
 0x223   :  { %4186 = vmatmul.mubr.f32.gmra.mrb[238].mxu0 %v16679_v26  ;;  %v3091_v10 = vmul.f32 0.01, %v3005_v32  ;;  %vm3075_vm1 = vcmp.gt.f32.partialorder %v3005_v32, 0.0 }
 0x224   :  { %8365 = vmatprep.mubr.msk.f32.mxu0 %vm2879_vm3, %v16681_v1  ;;  %v3009_v39 = vpop.f32.mrb[134].mxu0  ;;  %9783 = vmatpush1.bf16.msra.mxu0 %v9782_v51 }
 0x225   :  { %4344 = vmatmul.mubr.f32.vlgmr.msra.gmra.mrb[224].mxu1 %v10399_v17  ;;  %v3010_v5 = vadd.f32 %v3009_v39, %v13770_v19  ;;  %v3011_v12 = vpop.f32.mrb[135].mxu0  ;;  %9784 = vmatprep.subr.bf16.mxu0 %v16558_v54  ;;  %v3107_v6 = vsel %vm3075_vm1, %v3005_v32, %v3091_v10 }
 0x226   :  { %8374 = vmatprep.mubr.msk.f32.mxu1 %vm2879_vm3, %v10400_v13 }
 0x227   :  { %4191 = vmatmul.mubr.f32.gmra.mrb[240].mxu0 %v16687_v46  ;;  %vm3076_vm14 = vcmp.gt.f32.partialorder %v3010_v5, 0.0  ;;  %v3092_v33 = vmul.f32 0.01, %v3010_v5 }
 0x228   :  { %8366 = vmatprep.mubr.msk.f32.mxu0 %vm2879_vm3, %v16690_v50  ;;  %v3014_v42 = vpop.f32.mrb[136].mxu0 }
 0x229   :  { %4349 = vmatmul.mubr.f32.gmra.mrb[226].mxu1 %v10401_v52  ;;  %v3108_v14 = vsel %vm3076_vm14, %v3010_v5, %v3092_v33  ;;  %v3015_v35 = vadd.f32 %v3014_v42, %v13784_v36  ;;  %v3016_v16 = vpop.f32.mrb[137].mxu0 }
 0x22a   :  { %8375 = vmatprep.mubr.msk.f32.mxu1 %vm2879_vm3, %v16692_v48  ;;  %v9785_v24 = vpack.c.bf16 %v3108_v14, %v3107_v6  ;;  %v13832_v6 = vpop.permute.xlu1 %2846 }
 0x22b   :  { %4196 = vmatmul.mubr.f32.gmra.mrb[242].mxu0 %v13560_v53  ;;  %v3093_v48 = vmul.f32 0.01, %v3015_v35  ;;  %vm3077_vm2 = vcmp.gt.f32.partialorder %v3015_v35, 0.0 }
 0x22c   :  { %8367 = vmatprep.mubr.msk.f32.mxu0 %vm2879_vm3, %v13569_v11  ;;  %v3019_v0 = vpop.f32.mrb[138].mxu0  ;;  %9786 = vmatpush1.bf16.msra.mxu0 %v9785_v24 }
 0x22d   :  { %4354 = vmatmul.mubr.f32.gmra.mrb[228].mxu1 %v16665_v40  ;;  %v3020_v34 = vadd.f32 %v3019_v0, %v13793_v3  ;;  %v3021_v22 = vpop.f32.mrb[139].mxu0  ;;  %9787 = vmatprep.subr.bf16.mxu0 %v16558_v54 }
 0x22e   :  { %8376 = vmatprep.mubr.msk.f32.mxu1 %vm2879_vm3, %v13013_v8  ;;  %v3109_v8 = vsel %vm3077_vm2, %v3015_v35, %v3093_v48 }
 0x22f   :  { %4201 = vmatmul.mubr.f32.gmra.mrb[244].mxu0 %v13595_v20  ;;  %vm3078_vm13 = vcmp.gt.f32.partialorder %v3020_v34, 0.0  ;;  %v3094_v40 = vmul.f32 0.01, %v3020_v34 }
 0x230   :  { %8368 = vmatprep.mubr.msk.f32.mxu0 %vm2879_vm3, %v13615_v28  ;;  %v3024_v55 = vpop.f32.mrb[140].mxu0 }
 0x231   :  { %4359 = vmatmul.mubr.f32.gmra.mrb[230].mxu1 %v13061_v41  ;;  %v3110_v37 = vsel %vm3078_vm13, %v3020_v34, %v3094_v40  ;;  %v3025_v56 = vadd.f32 %v3024_v55, %v13803_v29  ;;  %v3026_v45 = vpop.f32.mrb[141].mxu0 }
 0x232   :  { %8377 = vmatprep.mubr.msk.f32.mxu1 %vm2879_vm3, %v13082_v49  ;;  %v9788_v25 = vpack.c.bf16 %v3110_v37, %v3109_v8  ;;  %v13851_v8 = vld [vmem:[%s16410_s5 + $0x8] sm:$0xff] }
 0x233   :  { %4206 = vmatmul.mubr.f32.gmra.mrb[246].mxu0 %v13640_v21  ;;  %v3095_v41 = vmul.f32 0.01, %v3025_v56  ;;  %v3187_v57 = vpop.f32.mrb[128].mxu1  ;;  %vm3079_vm0 = vcmp.gt.f32.partialorder %v3025_v56, 0.0 }
 0x234   :  { %8369 = vmatprep.mubr.msk.f32.mxu0 %vm2879_vm3, %v13650_v27  ;;  %v3029_v7 = vpop.f32.mrb[142].mxu0  ;;  %9789 = vmatpush1.bf16.msra.mxu0 %v9788_v25  ;;  %v3188_v63 = vadd.f32 %v3187_v57, %v13741_v60  ;;  %v3189_v51 = vpop.f32.mrb[129].mxu1 }
 0x235   :  { %4364 = vmatmul.mubr.f32.gmra.mrb[232].mxu1 %v13113_v47  ;;  %v3030_v49 = vadd.f32 %v3029_v7, %v13811_v15  ;;  %v3031_v32 = vpop.f32.mrb[143].mxu0  ;;  %9790 = vmatprep.subr.bf16.mxu0 %v16558_v54  ;;  %v13822_v47 = vpop.permute.xlu0 %2841 }
 0x236   :  { %8378 = vmatprep.mubr.msk.f32.mxu1 %vm2879_vm3, %v13125_v62  ;;  %v3111_v62 = vsel %vm3079_vm0, %v3025_v56, %v3095_v41  ;;  %v3282_v13 = vmul.f32 0.01, %v3188_v63  ;;  %vm3266_vm15 = vcmp.gt.f32.partialorder %v3188_v63, 0.0 }
 0x237   :  { %4211 = vmatmul.mubr.f32.gmra.mrb[248].mxu0 %v13661_v4  ;;  %vm3080_vm10 = vcmp.gt.f32.partialorder %v3030_v49, 0.0  ;;  %v3096_v17 = vmul.f32 0.01, %v3030_v49 }
 0x238   :  { %8370 = vmatprep.mubr.msk.f32.mxu0 %vm2879_vm3, %v13669_v59  ;;  %v3034_v39 = vpop.f32.mrb[144].mxu0  ;;  %v3298_v35 = vsel %vm3266_vm15, %v3188_v63, %v3282_v13  ;;  %v13862_v63 = vpop.permute.xlu1 %2856 }
 0x239   :  { %4369 = vmatmul.mubr.f32.gmra.mrb[234].mxu1 %v13141_v43  ;;  %v3192_v10 = vpop.f32.mrb[130].mxu1  ;;  %v3112_v5 = vsel %vm3080_vm10, %v3030_v49, %v3096_v17  ;;  %v3035_v12 = vadd.f32 %v3034_v39, %v13822_v47  ;;  %v3036_v33 = vpop.f32.mrb[145].mxu0 }
 0x23a   :  { %8379 = vmatprep.mubr.msk.f32.mxu1 %vm2879_vm3, %v13152_v2  ;;  %v3193_v52 = vadd.f32 %v3192_v10, %v13750_v58  ;;  %v3194_v42 = vpop.f32.mrb[131].mxu1  ;;  %v9791_v43 = vpack.c.bf16 %v3112_v5, %v3111_v62  ;;  %v13845_v55 = vpop.permute.xlu0 %2851 }
 0x23b   :  { %4216 = vmatmul.mubr.f32.gmra.mrb[250].mxu0 %v13680_v23  ;;  %v3097_v2 = vmul.f32 0.01, %v3035_v12  ;;  %vm3081_vm7 = vcmp.gt.f32.partialorder %v3035_v12, 0.0 }
 0x23c   :  { %8371 = vmatprep.mubr.msk.f32.mxu0 %vm2879_vm3, %v13688_v44  ;;  %vm3267_vm4 = vcmp.gt.f32.partialorder %v3193_v52, 0.0  ;;  %v3283_v14 = vmul.f32 0.01, %v3193_v52  ;;  %9792 = vmatpush1.bf16.msra.mxu0 %v9791_v43 }
 0x23d   :  { %4374 = vmatmul.mubr.f32.gmra.mrb[236].mxu1 %v13168_v31  ;;  %v3039_v16 = vpop.f32.mrb[146].mxu0  ;;  %9793 = vmatprep.subr.bf16.mxu0 %v16558_v54  ;;  %v3113_v37 = vsel %vm3081_vm7, %v3035_v12, %v3097_v2 }
 0x23e   :  { %v3197_v24 = vpop.f32.mrb[132].mxu1  ;;  %8380 = vmatprep.mubr.msk.f32.mxu1 %vm2879_vm3, %v13179_v61  ;;  %v3040_v0 = vadd.f32 %v3039_v16, %v13832_v6  ;;  %v3299_v48 = vsel %vm3267_vm4, %v3193_v52, %v3283_v14  ;;  %v3041_v34 = vpop.f32.mrb[147].mxu0 }
 0x23f   :  { %4221 = vmatmul.mubr.f32.gmra.mrb[252].mxu0 %v13413_v30  ;;  %v3198_v22 = vadd.f32 %v3197_v24, %v13759_v38  ;;  %v3199_v40 = vpop.f32.mrb[133].mxu1  ;;  %v13843_v31 = vpack.c.bf16 %v3299_v48, %v3298_v35  ;;  %v13881_v34 = vpop.permute.xlu1 %2866 }
 0x240   :  { %8372 = vmatprep.mubr.msk.f32.mxu0 %vm2879_vm3, %v13430_v9  ;;  %vm3082_vm12 = vcmp.gt.f32.partialorder %v3040_v0, 0.0  ;;  %v3098_v61 = vmul.f32 0.01, %v3040_v0 }
 0x241   :  { %4379 = vmatmul.mubr.f32.gmra.mrb[238].mxu1 %v16679_v26  ;;  %v3044_v56 = vpop.f32.mrb[148].mxu0  ;;  %v3284_v45 = vmul.f32 0.01, %v3198_v22  ;;  %vm3268_vm6 = vcmp.gt.f32.partialorder %v3198_v22, 0.0 }
 0x242   :  { %v3202_v25 = vpop.f32.mrb[134].mxu1  ;;  %9819 = vmatpush1.bf16.msra.mxu1 %v13843_v31  ;;  %8381 = vmatprep.mubr.msk.f32.mxu1 %vm2879_vm3, %v16681_v1  ;;  %v3114_v41 = vsel %vm3082_vm12, %v3040_v0, %v3098_v61  ;;  %v3045_v7 = vadd.f32 %v3044_v56, %v13845_v55  ;;  %v3046_v26 = vpop.f32.mrb[149].mxu0 }
 0x243   :  { %4226 = vmatmul.mubr.f32.gmra.mrb[254].mxu0 %v13465_v18  ;;  %v3203_v57 = vadd.f32 %v3202_v25, %v13770_v19  ;;  %v3204_v49 = vpop.f32.mrb[135].mxu1  ;;  %v9794_v32 = vpack.c.bf16 %v3114_v41, %v3113_v37  ;;  %9820 = vmatprep.subr.bf16.mxu1 %v16558_v54  ;;  %v3300_v17 = vsel %vm3268_vm6, %v3198_v22, %v3284_v45 }
 0x244   :  { %8389 = vmatprep.mubr.msk.f32.mxu0 %vm2879_vm3, %v13851_v8  ;;  %v3099_v51 = vmul.f32 0.01, %v3045_v7  ;;  %vm3083_vm5 = vcmp.gt.f32.partialorder %v3045_v7, 0.0 }
 0x245   :  { %vm3269_vm9 = vcmp.gt.f32.partialorder %v3203_v57, 0.0  ;;  %v3285_v1 = vmul.f32 0.01, %v3203_v57  ;;  %4384 = vmatmul.mubr.f32.gmra.mrb[240].mxu1 %v16687_v46  ;;  %v3049_v62 = vpop.f32.mrb[150].mxu0  ;;  %9795 = vmatpush1.bf16.msra.mxu0 %v9794_v32  ;;  %v13872_v46 = vpop.permute.xlu0 %2861 }
 0x246   :  { %v3207_v39 = vpop.f32.mrb[136].mxu1  ;;  %8382 = vmatprep.mubr.msk.f32.mxu1 %vm2879_vm3, %v16690_v50  ;;  %v3050_v13 = vadd.f32 %v3049_v62, %v13862_v63  ;;  %v3051_v5 = vpop.f32.mrb[151].mxu0  ;;  %9796 = vmatprep.subr.bf16.mxu0 %v16558_v54  ;;  %v3115_v43 = vsel %vm3083_vm5, %v3045_v7, %v3099_v51 }
 0x247   :  { %v3301_v10 = vsel %vm3269_vm9, %v3203_v57, %v3285_v1  ;;  %v3208_v12 = vadd.f32 %v3207_v39, %v13784_v36  ;;  %v3209_v33 = vpop.f32.mrb[137].mxu1 }
 0x248   :  { %v13870_v52 = vpack.c.bf16 %v3301_v10, %v3300_v17  ;;  %vm3084_vm8 = vcmp.gt.f32.partialorder %v3050_v13, 0.0  ;;  %v3100_v42 = vmul.f32 0.01, %v3050_v13  ;;  %v13900_v10 = vpop.permute.xlu1 %2876 }
 0x249   :  { %4388 = vmatmul.mubr.f32.gmra.mrb[242].mxu1 %v13560_v53  ;;  %v3054_v50 = vpop.f32.mrb[152].mxu0  ;;  %v3286_v14 = vmul.f32 0.01, %v3208_v12  ;;  %vm3270_vm11 = vcmp.gt.f32.partialorder %v3208_v12, 0.0 }
 0x24a   :  { %v3212_v2 = vpop.f32.mrb[138].mxu1  ;;  %9822 = vmatpush1.bf16.msra.mxu1 %v13870_v52  ;;  %8383 = vmatprep.mubr.msk.f32.mxu1 %vm2879_vm3, %v13569_v11  ;;  %v3116_v35 = vsel %vm3084_vm8, %v3050_v13, %v3100_v42  ;;  %v3055_v16 = vadd.f32 %v3054_v50, %v13872_v46  ;;  %v3056_v24 = vpop.f32.mrb[153].mxu0 }
 0x24b   :  { %v3213_v0 = vadd.f32 %v3212_v2, %v13793_v3  ;;  %v3214_v48 = vpop.f32.mrb[139].mxu1  ;;  %9823 = vmatprep.subr.bf16.mxu1 %v16558_v54  ;;  %v9797_v53 = vpack.c.bf16 %v3116_v35, %v3115_v43  ;;  %v3302_v61 = vsel %vm3270_vm11, %v3208_v12, %v3286_v14 }
 0x24c   :  { %v3101_v40 = vmul.f32 0.01, %v3055_v16  ;;  %vm3085_vm14 = vcmp.gt.f32.partialorder %v3055_v16, 0.0 }
 0x24d   :  { %vm3271_vm1 = vcmp.gt.f32.partialorder %v3213_v0, 0.0  ;;  %v3287_v22 = vmul.f32 0.01, %v3213_v0  ;;  %4392 = vmatmul.mubr.f32.gmra.mrb[244].mxu1 %v13595_v20  ;;  %v3059_v11 = vpop.f32.mrb[154].mxu0  ;;  %9798 = vmatpush1.bf16.msra.mxu0 %v9797_v53  ;;  %v13891_v20 = vpop.permute.xlu0 %2871 }
 0x24e   :  { %v3217_v37 = vpop.f32.mrb[140].mxu1  ;;  %8384 = vmatprep.mubr.msk.f32.mxu1 %vm2879_vm3, %v13615_v28  ;;  %v3060_v56 = vadd.f32 %v3059_v11, %v13881_v34  ;;  %v3061_v25 = vpop.f32.mrb[155].mxu0  ;;  %9799 = vmatprep.subr.bf16.mxu0 %v16558_v54  ;;  %v3117_v49 = vsel %vm3085_vm14, %v3055_v16, %v3101_v40 }
 0x24f   :  { %v3303_v45 = vsel %vm3271_vm1, %v3213_v0, %v3287_v22  ;;  %v3218_v41 = vadd.f32 %v3217_v37, %v13803_v29  ;;  %v3219_v7 = vpop.f32.mrb[141].mxu1 }
 0x250   :  { %v13889_v26 = vpack.c.bf16 %v3303_v45, %v3302_v61  ;;  %vm3086_vm2 = vcmp.gt.f32.partialorder %v3060_v56, 0.0  ;;  %v3102_v57 = vmul.f32 0.01, %v3060_v56 }
 0x251   :  { %4396 = vmatmul.mubr.f32.gmra.mrb[246].mxu1 %v13640_v21  ;;  %v3064_v28 = vpop.f32.mrb[156].mxu0  ;;  %v3288_v32 = vmul.f32 0.01, %v3218_v41  ;;  %vm3272_vm13 = vcmp.gt.f32.partialorder %v3218_v41, 0.0 }
 0x252   :  { %v3222_v1 = vpop.f32.mrb[142].mxu1  ;;  %9825 = vmatpush1.bf16.msra.mxu1 %v13889_v26  ;;  %8385 = vmatprep.mubr.msk.f32.mxu1 %vm2879_vm3, %v13650_v27  ;;  %v3118_v51 = vsel %vm3086_vm2, %v3060_v56, %v3102_v57  ;;  %v3065_v17 = vadd.f32 %v3064_v28, %v13891_v20  ;;  %v3066_v62 = vpop.f32.mrb[157].mxu0 }
 0x253   :  { %v3223_v39 = vadd.f32 %v3222_v1, %v13811_v15  ;;  %v3224_v13 = vpop.f32.mrb[143].mxu1  ;;  %9826 = vmatprep.subr.bf16.mxu1 %v16558_v54  ;;  %v9800_v21 = vpack.c.bf16 %v3118_v51, %v3117_v49  ;;  %v3304_v33 = vsel %vm3272_vm13, %v3218_v41, %v3288_v32 }
 0x254   :  { %v3103_v12 = vmul.f32 0.01, %v3065_v17  ;;  %vm3087_vm10 = vcmp.gt.f32.partialorder %v3065_v17, 0.0 }
 0x255   :  { %vm3273_vm0 = vcmp.gt.f32.partialorder %v3223_v39, 0.0  ;;  %v3289_v5 = vmul.f32 0.01, %v3223_v39  ;;  %4400 = vmatmul.mubr.f32.gmra.mrb[248].mxu1 %v13661_v4  ;;  %v3069_v27 = vpop.f32.mrb[158].mxu0  ;;  %9801 = vmatpush1.bf16.msra.mxu0 %v9800_v21 }
 0x256   :  { %v3227_v42 = vpop.f32.mrb[144].mxu1  ;;  %8386 = vmatprep.mubr.msk.f32.mxu1 %vm2879_vm3, %v13669_v59  ;;  %v3070_v43 = vadd.f32 %v3069_v27, %v13900_v10  ;;  %v3071_v14 = vpop.f32.mrb[159].mxu0  ;;  %9802 = vmatprep.subr.bf16.mxu0 %v16558_v54  ;;  %v3119_v24 = vsel %vm3087_vm10, %v3065_v17, %v3103_v12 }
 0x257   :  { %v3305_v50 = vsel %vm3273_vm0, %v3223_v39, %v3289_v5  ;;  %v3228_v2 = vadd.f32 %v3227_v42, %v13822_v47  ;;  %v3229_v35 = vpop.f32.mrb[145].mxu1 }
 0x258   :  { %v13908_v16 = vpack.c.bf16 %v3305_v50, %v3304_v33  ;;  %vm3088_vm15 = vcmp.gt.f32.partialorder %v3070_v43, 0.0  ;;  %v3104_v4 = vmul.f32 0.01, %v3070_v43 }
 0x259   :  { %4404 = vmatmul.mubr.f32.gmra.mrb[250].mxu1 %v13680_v23  ;;  %v3290_v0 = vmul.f32 0.01, %v3228_v2  ;;  %v3380_v48 = vpop.f32.mrb[160].mxu0  ;;  %vm3274_vm4 = vcmp.gt.f32.partialorder %v3228_v2, 0.0 }
 0x25a   :  { %v3232_v59 = vpop.f32.mrb[146].mxu1  ;;  %9828 = vmatpush1.bf16.msra.mxu1 %v13908_v16  ;;  %8387 = vmatprep.mubr.msk.f32.mxu1 %vm2879_vm3, %v13688_v44  ;;  %v3120_v53 = vsel %vm3088_vm15, %v3070_v43, %v3104_v4  ;;  %v3381_v22 = vadd.f32 %v3380_v48, %v13741_v60  ;;  %v3382_v40 = vpop.f32.mrb[161].mxu0 }
 0x25b   :  { %v3233_v61 = vadd.f32 %v3232_v59, %v13832_v6  ;;  %v3234_v11 = vpop.f32.mrb[147].mxu1  ;;  %9829 = vmatprep.subr.bf16.mxu1 %v16558_v54  ;;  %v9803_v23 = vpack.c.bf16 %v3120_v53, %v3119_v24  ;;  %v3306_v56 = vsel %vm3274_vm4, %v3228_v2, %v3290_v0 }
 0x25c   :  { %v3475_v45 = vmul.f32 0.01, %v3381_v22  ;;  %vm3459_vm12 = vcmp.gt.f32.partialorder %v3381_v22, 0.0 }
 0x25d   :  { %vm3275_vm7 = vcmp.gt.f32.partialorder %v3233_v61, 0.0  ;;  %v3291_v37 = vmul.f32 0.01, %v3233_v61  ;;  %4408 = vmatmul.mubr.f32.gmra.mrb[252].mxu1 %v13413_v30  ;;  %v3385_v25 = vpop.f32.mrb[162].mxu0  ;;  %9804 = vmatpush1.bf16.msra.mxu0 %v9803_v23 }
 0x25e   :  { %v3237_v44 = vpop.f32.mrb[148].mxu1  ;;  %8388 = vmatprep.mubr.msk.f32.mxu1 %vm2879_vm3, %v13430_v9  ;;  %v3386_v7 = vadd.f32 %v3385_v25, %v13750_v58  ;;  %v3387_v57 = vpop.f32.mrb[163].mxu0  ;;  %9805 = vmatprep.subr.bf16.mxu0 %v16558_v54  ;;  %v3491_v1 = vsel %vm3459_vm12, %v3381_v22, %v3475_v45  ;;  %v13948_v45 = vld [vmem:[%s16410_s5] sm:$0xff] }
 0x25f   :  { %v3307_v41 = vsel %vm3275_vm7, %v3233_v61, %v3291_v37  ;;  %v3238_v49 = vadd.f32 %v3237_v44, %v13845_v55  ;;  %v3239_v28 = vpop.f32.mrb[149].mxu1 }
 0x260   :  { %v9830_v32 = vpack.c.bf16 %v3307_v41, %v3306_v56  ;;  %vm3460_vm6 = vcmp.gt.f32.partialorder %v3386_v7, 0.0  ;;  %v3476_v30 = vmul.f32 0.01, %v3386_v7 }
 0x261   :  { %4412 = vmatmul.mubr.f32.gmra.mrb[254].mxu1 %v13465_v18  ;;  %v3292_v51 = vmul.f32 0.01, %v3238_v49  ;;  %v3390_v17 = vpop.f32.mrb[164].mxu0  ;;  %9807 = vmatpush1.bf16.msra.mxu0 %v13843_v31  ;;  %vm3276_vm9 = vcmp.gt.f32.partialorder %v3238_v49, 0.0 }
 0x262   :  { %v3242_v9 = vpop.f32.mrb[150].mxu1  ;;  %9831 = vmatpush1.bf16.msra.mxu1 %v9830_v32  ;;  %v3492_v62 = vsel %vm3460_vm6, %v3386_v7, %v3476_v30  ;;  %v3391_v39 = vadd.f32 %v3390_v17, %v13759_v38  ;;  %v3392_v13 = vpop.f32.mrb[165].mxu0  ;;  %9808 = vmatprep.subr.bf16.mxu0 %v16558_v54  ;;  %v13965_v17 = vld [vmem:[%s16410_s5 + $0x10] sm:$0xff] }
 0x263   :  { %v3243_v21 = vadd.f32 %v3242_v9, %v13862_v63  ;;  %v3244_v5 = vpop.f32.mrb[151].mxu1  ;;  %9832 = vmatprep.subr.bf16.mxu1 %v16558_v54  ;;  %v13929_v18 = vpack.c.bf16 %v3492_v62, %v3491_v1  ;;  %8405 = vmatprep.mubr.msk.f32.mxu1 %vm2879_vm3, %v13851_v8  ;;  %v3308_v12 = vsel %vm3276_vm9, %v3238_v49, %v3292_v51  ;;  %v13956_v49 = vld [vmem:[%s16410_s5 + $0x18] sm:$0xff] }
 0x264   :  { %v3477_v33 = vmul.f32 0.01, %v3391_v39  ;;  %vm3461_vm8 = vcmp.gt.f32.partialorder %v3391_v39, 0.0  ;;  %v13973_v5 = vld [vmem:[%s16410_s5 + $0x28] sm:$0xff] }
 0x265   :  { %vm3277_vm5 = vcmp.gt.f32.partialorder %v3243_v21, 0.0  ;;  %v3293_v31 = vmul.f32 0.01, %v3243_v21  ;;  %v3395_v27 = vpop.f32.mrb[166].mxu0  ;;  %9810 = vmatpush1.bf16.msra.mxu0 %v13870_v52 }
 0x266   :  { %v3247_v42 = vpop.f32.mrb[152].mxu1  ;;  %v3396_v50 = vadd.f32 %v3395_v27, %v13770_v19  ;;  %v3397_v14 = vpop.f32.mrb[167].mxu0  ;;  %9811 = vmatprep.subr.bf16.mxu0 %v16558_v54  ;;  %v3493_v24 = vsel %vm3461_vm8, %v3391_v39, %v3477_v33 }
 0x267   :  { %v3309_v43 = vsel %vm3277_vm5, %v3243_v21, %v3293_v31  ;;  %v3248_v2 = vadd.f32 %v3247_v42, %v13872_v46  ;;  %v3249_v35 = vpop.f32.mrb[153].mxu1 }
 0x268   :  { %v9833_v4 = vpack.c.bf16 %v3309_v43, %v3308_v12  ;;  %vm3462_vm11 = vcmp.gt.f32.partialorder %v3396_v50, 0.0  ;;  %v3478_v8 = vmul.f32 0.01, %v3396_v50 }
 0x269   :  { %v3294_v0 = vmul.f32 0.01, %v3248_v2  ;;  %v3400_v48 = vpop.f32.mrb[168].mxu0  ;;  %9813 = vmatpush1.bf16.msra.mxu0 %v13889_v26  ;;  %vm3278_vm1 = vcmp.gt.f32.partialorder %v3248_v2, 0.0 }
 0x26a   :  { %v3252_v52 = vpop.f32.mrb[154].mxu1  ;;  %9834 = vmatpush1.bf16.msra.mxu1 %v9833_v4  ;;  %v3494_v59 = vsel %vm3462_vm11, %v3396_v50, %v3478_v8  ;;  %v3401_v53 = vadd.f32 %v3400_v48, %v13784_v36  ;;  %v3402_v22 = vpop.f32.mrb[169].mxu0  ;;  %9814 = vmatprep.subr.bf16.mxu0 %v16558_v54  ;;  %v13985_v50 = vld [vmem:[%s16410_s5 + $0x20] sm:$0xff] }
 0x26b   :  { %v3253_v40 = vadd.f32 %v3252_v52, %v13881_v34  ;;  %v3254_v61 = vpop.f32.mrb[155].mxu1  ;;  %9835 = vmatprep.subr.bf16.mxu1 %v16558_v54  ;;  %v13942_v11 = vpack.c.bf16 %v3494_v59, %v3493_v24  ;;  %v3310_v37 = vsel %vm3278_vm1, %v3248_v2, %v3294_v0  ;;  %v13993_v24 = vld [vmem:[%s16410_s5 + $0x38] sm:$0xff]  ;;  %v14002_v22 = vld [vmem:[%s16410_s5 + $0x30] sm:$0xff] }
 0x26c   :  { %v3479_v26 = vmul.f32 0.01, %v3401_v53  ;;  %vm3463_vm2 = vcmp.gt.f32.partialorder %v3401_v53, 0.0 }
 0x26d   :  { %vm3279_vm14 = vcmp.gt.f32.partialorder %v3253_v40, 0.0  ;;  %v3295_v23 = vmul.f32 0.01, %v3253_v40  ;;  %v3405_v56 = vpop.f32.mrb[170].mxu0  ;;  %9816 = vmatpush1.bf16.msra.mxu0 %v13908_v16 }
 0x26e   :  { %v3257_v25 = vpop.f32.mrb[156].mxu1  ;;  %v3406_v41 = vadd.f32 %v3405_v56, %v13793_v3  ;;  %v3407_v7 = vpop.f32.mrb[171].mxu0  ;;  %9853 = vmatprep.subr.bf16.mxu0 %v16558_v54  ;;  %v3495_v30 = vsel %vm3463_vm2, %v3401_v53, %v3479_v26 }
 0x26f   :  { %v3311_v44 = vsel %vm3279_vm14, %v3253_v40, %v3295_v23  ;;  %v3258_v57 = vadd.f32 %v3257_v25, %v13891_v20  ;;  %v3259_v16 = vpop.f32.mrb[157].mxu1  ;;  %v14010_v25 = vld [vmem:[%s16410_s5 + $0x48] sm:$0xff] }
 0x270   :  { %v9836_v28 = vpack.c.bf16 %v3311_v44, %v3310_v37  ;;  %vm3464_vm13 = vcmp.gt.f32.partialorder %v3406_v41, 0.0  ;;  %v3480_v32 = vmul.f32 0.01, %v3406_v41  ;;  %4681 = vmatmul.mubr.f32.vlgmr.msra.gmra.mrb[0].mxu0 %v13948_v45  ;;  %v14022_v16 = vld [vmem:[%s16410_s5 + $0x40] sm:$0xff] }
 0x271   :  { %v3296_v1 = vmul.f32 0.01, %v3258_v57  ;;  %v3410_v51 = vpop.f32.mrb[172].mxu0  ;;  %9855 = vmatpush1.bf16.msra.mxu0 %v13929_v18  ;;  %8390 = vmatprep.mubr.msk.f32.mxu0 %vm2879_vm3, %v13956_v49  ;;  %vm3280_vm0 = vcmp.gt.f32.partialorder %v3258_v57, 0.0 }
 0x272   :  { %v3262_v9 = vpop.f32.mrb[158].mxu1  ;;  %v3496_v62 = vsel %vm3464_vm13, %v3406_v41, %v3480_v32  ;;  %v3411_v39 = vadd.f32 %v3410_v51, %v13803_v29  ;;  %v3412_v13 = vpop.f32.mrb[173].mxu0  ;;  %9856 = vmatprep.subr.bf16.mxu0 %v16558_v54  ;;  %9837 = vmatpush1.bf16.msra.mxu1 %v9836_v28 }
 0x273   :  { %v3263_v21 = vadd.f32 %v3262_v9, %v13900_v10  ;;  %v3264_v31 = vpop.f32.mrb[159].mxu1  ;;  %v13975_v12 = vpack.c.bf16 %v3496_v62, %v3495_v30  ;;  %9838 = vmatprep.subr.bf16.mxu1 %v16558_v54  ;;  %v3312_v27 = vsel %vm3280_vm0, %v3258_v57, %v3296_v1  ;;  %v14028_v62 = vld [vmem:[%s16410_s5 + $0x58] sm:$0xff] }
 0x274   :  { %4686 = vmatmul.mubr.f32.gmra.mrb[2].mxu0 %v13965_v17  ;;  %v3481_v42 = vmul.f32 0.01, %v3411_v39  ;;  %vm3465_vm15 = vcmp.gt.f32.partialorder %v3411_v39, 0.0 }
 0x275   :  { %vm3281_vm10 = vcmp.gt.f32.partialorder %v3263_v21, 0.0  ;;  %v3297_v33 = vmul.f32 0.01, %v3263_v21  ;;  %v3415_v43 = vpop.f32.mrb[174].mxu0  ;;  %9858 = vmatpush1.bf16.msra.mxu0 %v13942_v11  ;;  %8391 = vmatprep.mubr.msk.f32.mxu0 %vm2879_vm3, %v13973_v5 }
 0x276   :  { %v3573_v14 = vpop.f32.mrb[160].mxu1  ;;  %v3416_v35 = vadd.f32 %v3415_v43, %v13811_v15  ;;  %v3417_v4 = vpop.f32.mrb[175].mxu0  ;;  %9859 = vmatprep.subr.bf16.mxu0 %v16558_v54  ;;  %v3497_v59 = vsel %vm3465_vm15, %v3411_v39, %v3481_v42 }
 0x277   :  { %v3313_v2 = vsel %vm3281_vm10, %v3263_v21, %v3297_v33  ;;  %v3574_v8 = vadd.f32 %v3573_v14, %v13741_v60  ;;  %v3575_v0 = vpop.f32.mrb[161].mxu1 }
 0x278   :  { %v9839_v48 = vpack.c.bf16 %v3313_v2, %v3312_v27  ;;  %vm3466_vm4 = vcmp.gt.f32.partialorder %v3416_v35, 0.0  ;;  %v3482_v52 = vmul.f32 0.01, %v3416_v35  ;;  %4691 = vmatmul.mubr.f32.gmra.mrb[4].mxu0 %v13985_v50  ;;  %v14042_v27 = vld [vmem:[%s16410_s5 + $0x50] sm:$0xff]  ;;  %v14048_v2 = vld [vmem:[%s16410_s5 + $0x68] sm:$0xff] }
 0x279   :  { %9861 = vmatpush1.bf16.msra.mxu0 %v13975_v12  ;;  %8392 = vmatprep.mubr.msk.f32.mxu0 %vm2879_vm3, %v13993_v24  ;;  %v3668_v37 = vmul.f32 0.01, %v3574_v8  ;;  %vm3652_vm7 = vcmp.gt.f32.partialorder %v3574_v8, 0.0 }
 0x27a   :  { %v3420_v53 = vpop.f32.mrb[176].mxu0  ;;  %v3578_v40 = vpop.f32.mrb[162].mxu1  ;;  %v3498_v61 = vsel %vm3466_vm4, %v3416_v35, %v3482_v52  ;;  %9862 = vmatprep.subr.bf16.mxu0 %v16558_v54  ;;  %9840 = vmatpush1.bf16.msra.mxu1 %v9839_v48 }
 0x27b   :  { %v3421_v23 = vadd.f32 %v3420_v53, %v13822_v47  ;;  %v3422_v26 = vpop.f32.mrb[177].mxu0  ;;  %v3579_v56 = vadd.f32 %v3578_v40, %v13750_v58  ;;  %v3580_v44 = vpop.f32.mrb[163].mxu1  ;;  %v14012_v41 = vpack.c.bf16 %v3498_v61, %v3497_v59  ;;  %9841 = vmatprep.subr.bf16.mxu1 %v16558_v54  ;;  %v3684_v30 = vsel %vm3652_vm7, %v3574_v8, %v3668_v37  ;;  %v14059_v59 = vld [vmem:[%s16410_s5 + $0x60] sm:$0xff] }
 0x27c   :  { %4696 = vmatmul.mubr.f32.gmra.mrb[6].mxu0 %v14002_v22  ;;  %16694 = vst [vmem:[#allocation27_spill] sm:$0xff] %v14059_v59 }
 0x27d   :  { %vm3653_vm12 = vcmp.gt.f32.partialorder %v3579_v56, 0.0  ;;  %v3669_v7 = vmul.f32 0.01, %v3579_v56  ;;  %9864 = vmatpush1.bf16.msra.mxu0 %v14012_v41  ;;  %8393 = vmatprep.mubr.msk.f32.mxu0 %vm2879_vm3, %v14010_v25  ;;  %v3483_v32 = vmul.f32 0.01, %v3421_v23  ;;  %vm3467_vm6 = vcmp.gt.f32.partialorder %v3421_v23, 0.0 }
 0x27e   :  { %v3425_v57 = vpop.f32.mrb[178].mxu0  ;;  %v3583_v28 = vpop.f32.mrb[164].mxu1  ;;  %9865 = vmatprep.subr.bf16.mxu0 %v16558_v54  ;;  %9843 = vmatpush1.bf16.msra.mxu1 %v13929_v18 }
 0x27f   :  { %v3426_v1 = vadd.f32 %v3425_v57, %v13832_v6  ;;  %v3685_v51 = vsel %vm3653_vm12, %v3579_v56, %v3669_v7  ;;  %v3427_v9 = vpop.f32.mrb[179].mxu0  ;;  %v3585_v39 = vpop.f32.mrb[165].mxu1  ;;  %v3584_v13 = vadd.f32 %v3583_v28, %v13759_v38  ;;  %9844 = vmatprep.subr.bf16.mxu1 %v16558_v54  ;;  %v3499_v42 = vsel %vm3467_vm6, %v3421_v23, %v3483_v32  ;;  %v14078_v32 = vld [vmem:[%s16410_s5 + $0x70] sm:$0xff] }
 0x280   :  { %v14033_v21 = vpack.c.bf16 %v3685_v51, %v3684_v30  ;;  %4701 = vmatmul.mubr.f32.gmra.mrb[8].mxu0 %v14022_v16  ;;  %v14086_v39 = vld [vmem:[%s16410_s5 + $0x88] sm:$0xff] }
 0x281   :  { %vm3468_vm9 = vcmp.gt.f32.partialorder %v3426_v1, 0.0  ;;  %v3484_v31 = vmul.f32 0.01, %v3426_v1  ;;  %8394 = vmatprep.mubr.msk.f32.mxu0 %vm2879_vm3, %v14028_v62  ;;  %v3670_v35 = vmul.f32 0.01, %v3584_v13  ;;  %vm3654_vm5 = vcmp.gt.f32.partialorder %v3584_v13, 0.0 }
 0x282   :  { %v3430_v33 = vpop.f32.mrb[180].mxu0  ;;  %9846 = vmatpush1.bf16.msra.mxu1 %v13942_v11  ;;  %v14064_v11 = vld [vmem:[%s16410_s5 + $0x78] sm:$0xff] }
 0x283   :  { %v3500_v43 = vsel %vm3468_vm9, %v3426_v1, %v3484_v31  ;;  %v3431_v18 = vadd.f32 %v3430_v33, %v13845_v55  ;;  %v3432_v14 = vpop.f32.mrb[181].mxu0  ;;  %9847 = vmatprep.subr.bf16.mxu1 %v16558_v54  ;;  %16695 = vst [vmem:[#allocation29_spill] sm:$0xff] %v14064_v11  ;;  %v3686_v37 = vsel %vm3654_vm5, %v3584_v13, %v3670_v35 }
 0x284   :  { %v3588_v4 = vpop.f32.mrb[166].mxu1  ;;  %v9866_v8 = vpack.c.bf16 %v3500_v43, %v3499_v42  ;;  %4706 = vmatmul.mubr.f32.gmra.mrb[10].mxu0 %v14042_v27  ;;  %v14097_v14 = vld [vmem:[%s16410_s5 + $0x80] sm:$0xff] }
 0x285   :  { %v3589_v0 = vadd.f32 %v3588_v4, %v13770_v19  ;;  %v3590_v48 = vpop.f32.mrb[167].mxu1  ;;  %8395 = vmatprep.mubr.msk.f32.mxu0 %vm2879_vm3, %v14048_v2  ;;  %v3485_v53 = vmul.f32 0.01, %v3431_v18  ;;  %vm3469_vm11 = vcmp.gt.f32.partialorder %v3431_v18, 0.0  ;;  %16696 = vst [vmem:[#allocation30_spill] sm:$0xff] %v14097_v14 }
 0x286   :  { %v3435_v52 = vpop.f32.mrb[182].mxu0  ;;  %9867 = vmatpush1.bf16.msra.mxu0 %v9866_v8  ;;  %9849 = vmatpush1.bf16.msra.mxu1 %v13975_v12 }
 0x287   :  { %v3436_v40 = vadd.f32 %v3435_v52, %v13862_v63  ;;  %vm3655_vm8 = vcmp.gt.f32.partialorder %v3589_v0, 0.0  ;;  %v3671_v61 = vmul.f32 0.01, %v3589_v0  ;;  %v3437_v23 = vpop.f32.mrb[183].mxu0  ;;  %9868 = vmatprep.subr.bf16.mxu0 %v16558_v54  ;;  %9850 = vmatprep.subr.bf16.mxu1 %v16558_v54  ;;  %v3501_v30 = vsel %vm3469_vm11, %v3431_v18, %v3485_v53 }
 0x288   :  { %v3593_v26 = vpop.f32.mrb[168].mxu1  ;;  %4711 = vmatmul.mubr.f32.gmra.mrb[12].mxu0 %v14059_v59 }
 0x289   :  { %vm3470_vm1 = vcmp.gt.f32.partialorder %v3436_v40, 0.0  ;;  %v3486_v56 = vmul.f32 0.01, %v3436_v40  ;;  %v3687_v44 = vsel %vm3655_vm8, %v3589_v0, %v3671_v61  ;;  %v3594_v7 = vadd.f32 %v3593_v26, %v13784_v36  ;;  %v3595_v57 = vpop.f32.mrb[169].mxu1  ;;  %8396 = vmatprep.mubr.msk.f32.mxu0 %vm2879_vm3, %v14064_v11  ;;  %v14119_v26 = vld [vmem:[%s16410_s5 + $0x90] sm:$0xff] }
 0x28a   :  { %v3440_v28 = vpop.f32.mrb[184].mxu0  ;;  %v14080_v12 = vpack.c.bf16 %v3687_v44, %v3686_v37  ;;  %9852 = vmatpush1.bf16.msra.mxu1 %v14012_v41  ;;  %v14102_v41 = vld [vmem:[%s16410_s5 + $0x98] sm:$0xff] }
 0x28b   :  { %v3502_v1 = vsel %vm3470_vm1, %v3436_v40, %v3486_v56  ;;  %v3441_v51 = vadd.f32 %v3440_v28, %v13872_v46  ;;  %v3442_v9 = vpop.f32.mrb[185].mxu0  ;;  %v3672_v13 = vmul.f32 0.01, %v3594_v7  ;;  %vm3656_vm14 = vcmp.gt.f32.partialorder %v3594_v7, 0.0  ;;  %9889 = vmatprep.subr.bf16.mxu1 %v16558_v54  ;;  %16697 = vst [vmem:[#allocation31_spill] sm:$0xff] %v14102_v41 }
 0x28c   :  { %v3598_v31 = vpop.f32.mrb[170].mxu1  ;;  %v9869_v33 = vpack.c.bf16 %v3502_v1, %v3501_v30  ;;  %4716 = vmatmul.mubr.f32.gmra.mrb[14].mxu0 %v14078_v32  ;;  %v14129_v30 = vld [vmem:[%s16410_s5 + $0xa8] sm:$0xff] }
 0x28d   :  { %v3599_v42 = vadd.f32 %v3598_v31, %v13793_v3  ;;  %v3600_v43 = vpop.f32.mrb[171].mxu1  ;;  %8397 = vmatprep.mubr.msk.f32.mxu0 %vm2879_vm3, %v14086_v39  ;;  %v3487_v35 = vmul.f32 0.01, %v3441_v51  ;;  %4874 = vmatmul.mubr.f32.vlgmr.msra.gmra.mrb[0].mxu1 %v13948_v45  ;;  %vm3471_vm13 = vcmp.gt.f32.partialorder %v3441_v51, 0.0  ;;  %v3688_v48 = vsel %vm3656_vm14, %v3594_v7, %v3672_v13 }
 0x28e   :  { %v3445_v18 = vpop.f32.mrb[186].mxu0  ;;  %9870 = vmatpush1.bf16.msra.mxu0 %v9869_v33  ;;  %9891 = vmatpush1.bf16.msra.mxu1 %v14033_v21  ;;  %v14147_v43 = vld [vmem:[%s16410_s5 + $0xb8] sm:$0xff] }
 0x28f   :  { %v3446_v4 = vadd.f32 %v3445_v18, %v13881_v34  ;;  %vm3657_vm2 = vcmp.gt.f32.partialorder %v3599_v42, 0.0  ;;  %v3673_v8 = vmul.f32 0.01, %v3599_v42  ;;  %v3447_v0 = vpop.f32.mrb[187].mxu0  ;;  %9871 = vmatprep.subr.bf16.mxu0 %v16558_v54  ;;  %8406 = vmatprep.mubr.msk.f32.mxu1 %vm2879_vm3, %v13956_v49  ;;  %v3503_v44 = vsel %vm3471_vm13, %v3441_v51, %v3487_v35  ;;  %16698 = vst [vmem:[#allocation32_spill] sm:$0xff] %v14147_v43 }
 0x290   :  { %v3603_v52 = vpop.f32.mrb[172].mxu1  ;;  %4721 = vmatmul.mubr.f32.gmra.mrb[16].mxu0 %v14097_v14  ;;  %9892 = vmatprep.subr.bf16.mxu1 %v16558_v54 }
 0x291   :  { %vm3472_vm0 = vcmp.gt.f32.partialorder %v3446_v4, 0.0  ;;  %v3488_v53 = vmul.f32 0.01, %v3446_v4  ;;  %v3689_v40 = vsel %vm3657_vm2, %v3599_v42, %v3673_v8  ;;  %v3604_v61 = vadd.f32 %v3603_v52, %v13803_v29  ;;  %v3605_v23 = vpop.f32.mrb[173].mxu1  ;;  %8398 = vmatprep.mubr.msk.f32.mxu0 %vm2879_vm3, %v14102_v41  ;;  %4879 = vmatmul.mubr.f32.gmra.mrb[2].mxu1 %v13965_v17  ;;  %v14142_v42 = vld [vmem:[%s16410_s5 + $0xa0] sm:$0xff] }
 0x292   :  { %v3450_v37 = vpop.f32.mrb[188].mxu0  ;;  %v14121_v56 = vpack.c.bf16 %v3689_v40, %v3688_v48  ;;  %9894 = vmatpush1.bf16.msra.mxu1 %v14080_v12  ;;  %8407 = vmatprep.mubr.msk.f32.mxu1 %vm2879_vm3, %v13973_v5 }
 0x293   :  { %v3504_v7 = vsel %vm3472_vm0, %v3446_v4, %v3488_v53  ;;  %v3451_v57 = vadd.f32 %v3450_v37, %v13891_v20  ;;  %v3452_v28 = vpop.f32.mrb[189].mxu0  ;;  %v3674_v1 = vmul.f32 0.01, %v3604_v61  ;;  %vm3658_vm10 = vcmp.gt.f32.partialorder %v3604_v61, 0.0  ;;  %9895 = vmatprep.subr.bf16.mxu1 %v16558_v54 }
 0x294   :  { %v3608_v9 = vpop.f32.mrb[174].mxu1  ;;  %v9872_v13 = vpack.c.bf16 %v3504_v7, %v3503_v44  ;;  %4726 = vmatmul.mubr.f32.gmra.mrb[18].mxu0 %v14119_v26 }
 0x295   :  { %v3609_v51 = vadd.f32 %v3608_v9, %v13811_v15  ;;  %v3610_v31 = vpop.f32.mrb[175].mxu1  ;;  %8399 = vmatprep.mubr.msk.f32.mxu0 %vm2879_vm3, %v14129_v30  ;;  %v3489_v18 = vmul.f32 0.01, %v3451_v57  ;;  %4884 = vmatmul.mubr.f32.gmra.mrb[4].mxu1 %v13985_v50  ;;  %vm3473_vm4 = vcmp.gt.f32.partialorder %v3451_v57, 0.0  ;;  %v3690_v0 = vsel %vm3658_vm10, %v3604_v61, %v3674_v1  ;;  %v14164_v61 = vld [vmem:[%s16410_s5 + $0xb0] sm:$0xff] }
 0x296   :  { %v3455_v33 = vpop.f32.mrb[190].mxu0  ;;  %9873 = vmatpush1.bf16.msra.mxu0 %v9872_v13  ;;  %9897 = vmatpush1.bf16.msra.mxu1 %v14121_v56  ;;  %v14174_v13 = vld [vmem:[%s16410_s5 + $0xc8] sm:$0xff] }
 0x297   :  { %v3456_v35 = vadd.f32 %v3455_v33, %v13900_v10  ;;  %vm3659_vm15 = vcmp.gt.f32.partialorder %v3609_v51, 0.0  ;;  %v3675_v4 = vmul.f32 0.01, %v3609_v51  ;;  %v3457_v8 = vpop.f32.mrb[191].mxu0  ;;  %9874 = vmatprep.subr.bf16.mxu0 %v16558_v54  ;;  %8408 = vmatprep.mubr.msk.f32.mxu1 %vm2879_vm3, %v13993_v24  ;;  %v3505_v7 = vsel %vm3473_vm4, %v3451_v57, %v3489_v18 }
 0x298   :  { %v3613_v48 = vpop.f32.mrb[176].mxu1  ;;  %4731 = vmatmul.mubr.f32.gmra.mrb[20].mxu0 %v14142_v42  ;;  %9898 = vmatprep.subr.bf16.mxu1 %v16558_v54  ;;  %v14192_v8 = vld [vmem:[%s16410_s5 + $0xd8] sm:$0xff] }
 0x299   :  { %vm3474_vm7 = vcmp.gt.f32.partialorder %v3456_v35, 0.0  ;;  %v3490_v52 = vmul.f32 0.01, %v3456_v35  ;;  %v3691_v53 = vsel %vm3659_vm15, %v3609_v51, %v3675_v4  ;;  %v3614_v40 = vadd.f32 %v3613_v48, %v13822_v47  ;;  %v3615_v23 = vpop.f32.mrb[177].mxu1  ;;  %8400 = vmatprep.mubr.msk.f32.mxu0 %vm2879_vm3, %v14147_v43  ;;  %4889 = vmatmul.mubr.f32.gmra.mrb[6].mxu1 %v14002_v22  ;;  %v14187_v4 = vld [vmem:[%s16410_s5 + $0xc0] sm:$0xff] }
 0x29a   :  { %v3766_v37 = vpop.f32.mrb[192].mxu0  ;;  %v14166_v44 = vpack.c.bf16 %v3691_v53, %v3690_v0  ;;  %8409 = vmatprep.mubr.msk.f32.mxu1 %vm2879_vm3, %v14010_v25 }
 0x29b   :  { %v3506_v28 = vsel %vm3474_vm7, %v3456_v35, %v3490_v52  ;;  %v3767_v1 = vadd.f32 %v3766_v37, %v13741_v60  ;;  %v3768_v9 = vpop.f32.mrb[193].mxu0  ;;  %v3676_v51 = vmul.f32 0.01, %v3614_v40  ;;  %vm3660_vm12 = vcmp.gt.f32.partialorder %v3614_v40, 0.0 }
 0x29c   :  { %v3618_v31 = vpop.f32.mrb[178].mxu1  ;;  %v9875_v33 = vpack.c.bf16 %v3506_v28, %v3505_v7  ;;  %9900 = vmatpush1.bf16.msra.mxu1 %v14166_v44  ;;  %4736 = vmatmul.mubr.f32.gmra.mrb[22].mxu0 %v14164_v61 }
 0x29d   :  { %v3619_v57 = vadd.f32 %v3618_v31, %v13832_v6  ;;  %v3620_v18 = vpop.f32.mrb[179].mxu1  ;;  %9901 = vmatprep.subr.bf16.mxu1 %v16558_v54  ;;  %8401 = vmatprep.mubr.msk.f32.mxu0 %vm2879_vm3, %v14174_v13  ;;  %v3861_v0 = vmul.f32 0.01, %v3767_v1  ;;  %v3692_v23 = vsel %vm3660_vm12, %v3614_v40, %v3676_v51  ;;  %vm3845_vm9 = vcmp.gt.f32.partialorder %v3767_v1, 0.0  ;;  %v14208_v40 = vld [vmem:[%s16410_s5 + $0xd0] sm:$0xff] }
 0x29e   :  { %v3771_v35 = vpop.f32.mrb[194].mxu0  ;;  %9876 = vmatpush1.bf16.msra.mxu0 %v9875_v33  ;;  %4894 = vmatmul.mubr.f32.gmra.mrb[8].mxu1 %v14022_v16 }
 0x29f   :  { %vm3661_vm6 = vcmp.gt.f32.partialorder %v3619_v57, 0.0  ;;  %v3677_v48 = vmul.f32 0.01, %v3619_v57  ;;  %v3772_v52 = vadd.f32 %v3771_v35, %v13750_v58  ;;  %v3773_v53 = vpop.f32.mrb[195].mxu0  ;;  %9877 = vmatprep.subr.bf16.mxu0 %v16558_v54  ;;  %8410 = vmatprep.mubr.msk.f32.mxu1 %vm2879_vm3, %v14028_v62 }
 0x2a0   :  { %v3623_v37 = vpop.f32.mrb[180].mxu1  ;;  %4741 = vmatmul.mubr.f32.gmra.mrb[24].mxu0 %v14187_v4 }
 0x2a1   :  { %v3693_v7 = vsel %vm3661_vm6, %v3619_v57, %v3677_v48  ;;  %vm3846_vm5 = vcmp.gt.f32.partialorder %v3772_v52, 0.0  ;;  %v3862_v28 = vmul.f32 0.01, %v3772_v52  ;;  %v3624_v9 = vadd.f32 %v3623_v37, %v13845_v55  ;;  %v3625_v31 = vpop.f32.mrb[181].mxu1  ;;  %8402 = vmatprep.mubr.msk.f32.mxu0 %vm2879_vm3, %v14192_v8 }
 0x2a2   :  { %v3776_v33 = vpop.f32.mrb[196].mxu0  ;;  %9879 = vmatpush1.bf16.msra.mxu0 %v14033_v21  ;;  %v9902_v51 = vpack.c.bf16 %v3693_v7, %v3692_v23  ;;  %v3877_v57 = vsel %vm3845_vm9, %v3767_v1, %v3861_v0  ;;  %4899 = vmatmul.mubr.f32.gmra.mrb[10].mxu1 %v14042_v27  ;;  %v14216_v21 = vld [vmem:[%s16410_s5 + $0xe8] sm:$0xff]  ;;  %v14231_v7 = vld [vmem:[%s16410_s5 + $0xe0] sm:$0xff] }
 0x2a3   :  { %v3878_v18 = vsel %vm3846_vm5, %v3772_v52, %v3862_v28  ;;  %v3777_v35 = vadd.f32 %v3776_v33, %v13759_v38  ;;  %v3778_v48 = vpop.f32.mrb[197].mxu0  ;;  %9880 = vmatprep.subr.bf16.mxu0 %v16558_v54  ;;  %v3678_v53 = vmul.f32 0.01, %v3624_v9  ;;  %8411 = vmatprep.mubr.msk.f32.mxu1 %vm2879_vm3, %v14048_v2  ;;  %vm3662_vm8 = vcmp.gt.f32.partialorder %v3624_v9, 0.0  ;;  %v14236_v28 = vld [vmem:[%s16410_s5 + $0xf8] sm:$0xff] }
 0x2a4   :  { %v3628_v37 = vpop.f32.mrb[182].mxu1  ;;  %9903 = vmatpush1.bf16.msra.mxu1 %v9902_v51  ;;  %v14220_v1 = vpack.c.bf16 %v3878_v18, %v3877_v57  ;;  %4746 = vmatmul.mubr.f32.gmra.mrb[26].mxu0 %v14208_v40  ;;  %16699 = vst [vmem:[#allocation28_spill] sm:$0xff] %v14236_v28 }
 0x2a5   :  { %v3629_v0 = vadd.f32 %v3628_v37, %v13862_v63  ;;  %v3630_v52 = vpop.f32.mrb[183].mxu1  ;;  %9904 = vmatprep.subr.bf16.mxu1 %v16558_v54  ;;  %8403 = vmatprep.mubr.msk.f32.mxu0 %vm2879_vm3, %v14216_v21  ;;  %v3863_v31 = vmul.f32 0.01, %v3777_v35  ;;  %vm3847_vm1 = vcmp.gt.f32.partialorder %v3777_v35, 0.0 }
 0x2a6   :  { %v3781_v23 = vpop.f32.mrb[198].mxu0  ;;  %9882 = vmatpush1.bf16.msra.mxu0 %v14080_v12  ;;  %4904 = vmatmul.mubr.f32.gmra.mrb[12].mxu1 %v14059_v59  ;;  %v3694_v12 = vsel %vm3662_vm8, %v3624_v9, %v3678_v53  ;;  %v14252_v9 = vld [vmem:[%s16410_s5 + $0xf0] sm:$0xff] }
 0x2a7   :  { %vm3663_vm11 = vcmp.gt.f32.partialorder %v3629_v0, 0.0  ;;  %v3679_v33 = vmul.f32 0.01, %v3629_v0  ;;  %v3782_v51 = vadd.f32 %v3781_v23, %v13770_v19  ;;  %v3783_v57 = vpop.f32.mrb[199].mxu0  ;;  %9883 = vmatprep.subr.bf16.mxu0 %v16558_v54  ;;  %8412 = vmatprep.mubr.msk.f32.mxu1 %vm2879_vm3, %v14064_v11 }
 0x2a8   :  { %v3633_v18 = vpop.f32.mrb[184].mxu1  ;;  %4751 = vmatmul.mubr.f32.gmra.mrb[28].mxu0 %v14231_v7 }
 0x2a9   :  { %v3695_v48 = vsel %vm3663_vm11, %v3629_v0, %v3679_v33  ;;  %vm3848_vm14 = vcmp.gt.f32.partialorder %v3782_v51, 0.0  ;;  %v3864_v37 = vmul.f32 0.01, %v3782_v51  ;;  %v3634_v52 = vadd.f32 %v3633_v18, %v13872_v46  ;;  %v3635_v23 = vpop.f32.mrb[185].mxu1  ;;  %8404 = vmatprep.mubr.msk.f32.mxu0 %vm2879_vm3, %v14236_v28 }
 0x2aa   :  { %v3786_v57 = vpop.f32.mrb[200].mxu0  ;;  %9885 = vmatpush1.bf16.msra.mxu0 %v14121_v56  ;;  %v9905_v53 = vpack.c.bf16 %v3695_v48, %v3694_v12  ;;  %v3879_v0 = vsel %vm3847_vm1, %v3777_v35, %v3863_v31  ;;  %4909 = vmatmul.mubr.f32.gmra.mrb[14].mxu1 %v14078_v32 }
 0x2ab   :  { %v3880_v33 = vsel %vm3848_vm14, %v3782_v51, %v3864_v37  ;;  %v3787_v11 = vadd.f32 %v3786_v57, %v13784_v36  ;;  %v3788_v59 = vpop.f32.mrb[201].mxu0  ;;  %9886 = vmatprep.subr.bf16.mxu0 %v16558_v54  ;;  %v3680_v18 = vmul.f32 0.01, %v3634_v52  ;;  %8413 = vmatprep.mubr.msk.f32.mxu1 %vm2879_vm3, %v14086_v39  ;;  %vm3664_vm2 = vcmp.gt.f32.partialorder %v3634_v52, 0.0  ;;  %v14268_v51 = vld [vmem:[%s16410_s5 + $0x8] sm:$0xff] }
 0x2ac   :  { %v3638_v56 = vpop.f32.mrb[186].mxu1  ;;  %9906 = vmatpush1.bf16.msra.mxu1 %v9905_v53  ;;  %v14259_v23 = vpack.c.bf16 %v3880_v33, %v3879_v0  ;;  %4756 = vmatmul.mubr.f32.gmra.mrb[30].mxu0 %v14252_v9 }
 0x2ad   :  { %v3639_v35 = vadd.f32 %v3638_v56, %v13881_v34  ;;  %v3640_v31 = vpop.f32.mrb[187].mxu1  ;;  %9907 = vmatprep.subr.bf16.mxu1 %v16558_v54  ;;  %8421 = vmatprep.mubr.msk.f32.mxu0 %vm2879_vm3, %v14268_v51  ;;  %v3865_v12 = vmul.f32 0.01, %v3787_v11  ;;  %vm3849_vm0 = vcmp.gt.f32.partialorder %v3787_v11, 0.0 }
 0x2ae   :  { %v3791_v59 = vpop.f32.mrb[202].mxu0  ;;  %9888 = vmatpush1.bf16.msra.mxu0 %v14166_v44  ;;  %4914 = vmatmul.mubr.f32.gmra.mrb[16].mxu1 %v14097_v14  ;;  %v3696_v44 = vsel %vm3664_vm2, %v3634_v52, %v3680_v18 }
 0x2af   :  { %vm3665_vm13 = vcmp.gt.f32.partialorder %v3639_v35, 0.0  ;;  %v3681_v48 = vmul.f32 0.01, %v3639_v35  ;;  %v3792_v37 = vadd.f32 %v3791_v59, %v13793_v3  ;;  %v3793_v57 = vpop.f32.mrb[203].mxu0  ;;  %9925 = vmatprep.subr.bf16.mxu0 %v16558_v54  ;;  %8414 = vmatprep.mubr.msk.f32.mxu1 %vm2879_vm3, %v14102_v41  ;;  %v3881_v18 = vsel %vm3849_vm0, %v3787_v11, %v3865_v12 }
 0x2b0   :  { %v3643_v53 = vpop.f32.mrb[188].mxu1 }
 0x2b1   :  { %v3697_v0 = vsel %vm3665_vm13, %v3639_v35, %v3681_v48  ;;  %vm3850_vm10 = vcmp.gt.f32.partialorder %v3792_v37, 0.0  ;;  %v3866_v33 = vmul.f32 0.01, %v3792_v37  ;;  %5067 = vmatmul.mubr.f32.vlgmr.msra.gmra.mrb[32].mxu0 %v13948_v45  ;;  %v3644_v56 = vadd.f32 %v3643_v53, %v13891_v20  ;;  %v3645_v31 = vpop.f32.mrb[189].mxu1 }
 0x2b2   :  { %v3796_v59 = vpop.f32.mrb[204].mxu0  ;;  %9927 = vmatpush1.bf16.msra.mxu0 %v14220_v1  ;;  %8422 = vmatprep.mubr.msk.f32.mxu0 %vm2879_vm3, %v13956_v49  ;;  %v9908_v52 = vpack.c.bf16 %v3697_v0, %v3696_v44 }
 0x2b3   :  { %v3882_v57 = vsel %vm3850_vm10, %v3792_v37, %v3866_v33  ;;  %v3797_v14 = vadd.f32 %v3796_v59, %v13803_v29  ;;  %v3798_v41 = vpop.f32.mrb[205].mxu0  ;;  %4919 = vmatmul.mubr.f32.gmra.mrb[18].mxu1 %v14119_v26  ;;  %9928 = vmatprep.subr.bf16.mxu0 %v16558_v54  ;;  %v3682_v35 = vmul.f32 0.01, %v3644_v56  ;;  %vm3666_vm15 = vcmp.gt.f32.partialorder %v3644_v56, 0.0 }
 0x2b4   :  { %v3648_v48 = vpop.f32.mrb[190].mxu1  ;;  %9909 = vmatpush1.bf16.msra.mxu1 %v9908_v52  ;;  %8415 = vmatprep.mubr.msk.f32.mxu1 %vm2879_vm3, %v14129_v30  ;;  %v14288_v53 = vpack.c.bf16 %v3882_v57, %v3881_v18 }
 0x2b5   :  { %5072 = vmatmul.mubr.f32.gmra.mrb[34].mxu0 %v13965_v17  ;;  %v3649_v11 = vadd.f32 %v3648_v48, %v13900_v10  ;;  %v3650_v12 = vpop.f32.mrb[191].mxu1  ;;  %9910 = vmatprep.subr.bf16.mxu1 %v16558_v54  ;;  %v3867_v37 = vmul.f32 0.01, %v3797_v14  ;;  %v3698_v31 = vsel %vm3666_vm15, %v3644_v56, %v3682_v35  ;;  %vm3851_vm7 = vcmp.gt.f32.partialorder %v3797_v14, 0.0 }
 0x2b6   :  { %v3801_v41 = vpop.f32.mrb[206].mxu0  ;;  %9930 = vmatpush1.bf16.msra.mxu0 %v14259_v23  ;;  %8423 = vmatprep.mubr.msk.f32.mxu0 %vm2879_vm3, %v13973_v5 }
 0x2b7   :  { %vm3667_vm4 = vcmp.gt.f32.partialorder %v3649_v11, 0.0  ;;  %v3683_v44 = vmul.f32 0.01, %v3649_v11  ;;  %v3802_v0 = vadd.f32 %v3801_v41, %v13811_v15  ;;  %v3803_v33 = vpop.f32.mrb[207].mxu0  ;;  %4924 = vmatmul.mubr.f32.gmra.mrb[20].mxu1 %v14142_v42  ;;  %9931 = vmatprep.subr.bf16.mxu0 %v16558_v54  ;;  %v3883_v35 = vsel %vm3851_vm7, %v3797_v14, %v3867_v37 }
 0x2b8   :  { %v3959_v59 = vpop.f32.mrb[192].mxu1  ;;  %8416 = vmatprep.mubr.msk.f32.mxu1 %vm2879_vm3, %v14147_v43 }
 0x2b9   :  { %v3699_v52 = vsel %vm3667_vm4, %v3649_v11, %v3683_v44  ;;  %vm3852_vm12 = vcmp.gt.f32.partialorder %v3802_v0, 0.0  ;;  %v3868_v18 = vmul.f32 0.01, %v3802_v0  ;;  %5077 = vmatmul.mubr.f32.gmra.mrb[36].mxu0 %v13985_v50  ;;  %v3960_v57 = vadd.f32 %v3959_v59, %v13741_v60  ;;  %v3961_v48 = vpop.f32.mrb[193].mxu1 }
 0x2ba   :  { %v3806_v12 = vpop.f32.mrb[208].mxu0  ;;  %9933 = vmatpush1.bf16.msra.mxu0 %v14288_v53  ;;  %8424 = vmatprep.mubr.msk.f32.mxu0 %vm2879_vm3, %v13993_v24  ;;  %v9911_v56 = vpack.c.bf16 %v3699_v52, %v3698_v31 }
 0x2bb   :  { %v3884_v41 = vsel %vm3852_vm12, %v3802_v0, %v3868_v18  ;;  %v3807_v33 = vadd.f32 %v3806_v12, %v13822_v47  ;;  %v3808_v43 = vpop.f32.mrb[209].mxu0  ;;  %4929 = vmatmul.mubr.f32.gmra.mrb[22].mxu1 %v14164_v61  ;;  %9934 = vmatprep.subr.bf16.mxu0 %v16558_v54  ;;  %v4054_v11 = vmul.f32 0.01, %v3960_v57  ;;  %vm4038_vm6 = vcmp.gt.f32.partialorder %v3960_v57, 0.0 }
 0x2bc   :  { %v3964_v44 = vpop.f32.mrb[194].mxu1  ;;  %9912 = vmatpush1.bf16.msra.mxu1 %v9911_v56  ;;  %v14309_v59 = vpack.c.bf16 %v3884_v41, %v3883_v35  ;;  %8417 = vmatprep.mubr.msk.f32.mxu1 %vm2879_vm3, %v14174_v13 }
 0x2bd   :  { %5082 = vmatmul.mubr.f32.gmra.mrb[38].mxu0 %v14002_v22  ;;  %v3965_v14 = vadd.f32 %v3964_v44, %v13750_v58  ;;  %v3966_v37 = vpop.f32.mrb[195].mxu1  ;;  %9913 = vmatprep.subr.bf16.mxu1 %v16558_v54  ;;  %v3869_v0 = vmul.f32 0.01, %v3807_v33  ;;  %vm3853_vm5 = vcmp.gt.f32.partialorder %v3807_v33, 0.0  ;;  %v4070_v48 = vsel %vm4038_vm6, %v3960_v57, %v4054_v11 }
 0x2be   :  { %v3811_v43 = vpop.f32.mrb[210].mxu0  ;;  %9936 = vmatpush1.bf16.msra.mxu0 %v14309_v59  ;;  %8425 = vmatprep.mubr.msk.f32.mxu0 %vm2879_vm3, %v14010_v25 }
 0x2bf   :  { %v3812_v31 = vadd.f32 %v3811_v43, %v13832_v6  ;;  %vm4039_vm9 = vcmp.gt.f32.partialorder %v3965_v14, 0.0  ;;  %v4055_v52 = vmul.f32 0.01, %v3965_v14  ;;  %v3813_v18 = vpop.f32.mrb[211].mxu0  ;;  %4934 = vmatmul.mubr.f32.gmra.mrb[24].mxu1 %v14187_v4  ;;  %9937 = vmatprep.subr.bf16.mxu0 %v16558_v54 }
 0x2c0   :  { %v3969_v12 = vpop.f32.mrb[196].mxu1  ;;  %9915 = vmatpush1.bf16.msra.mxu1 %v14220_v1  ;;  %8418 = vmatprep.mubr.msk.f32.mxu1 %vm2879_vm3, %v14192_v8  ;;  %v3885_v1 = vsel %vm3853_vm5, %v3807_v33, %v3869_v0 }
 0x2c1   :  { %vm3854_vm8 = vcmp.gt.f32.partialorder %v3812_v31, 0.0  ;;  %v3870_v56 = vmul.f32 0.01, %v3812_v31  ;;  %v4071_v35 = vsel %vm4039_vm9, %v3965_v14, %v4055_v52  ;;  %5087 = vmatmul.mubr.f32.gmra.mrb[40].mxu0 %v14022_v16  ;;  %v3970_v41 = vadd.f32 %v3969_v12, %v13759_v38  ;;  %v3971_v44 = vpop.f32.mrb[197].mxu1  ;;  %9916 = vmatprep.subr.bf16.mxu1 %v16558_v54 }
 0x2c2   :  { %v3816_v37 = vpop.f32.mrb[212].mxu0  ;;  %8426 = vmatprep.mubr.msk.f32.mxu0 %vm2879_vm3, %v14028_v62  ;;  %v14331_v57 = vpack.c.bf16 %v4071_v35, %v4070_v48 }
 0x2c3   :  { %v3886_v11 = vsel %vm3854_vm8, %v3812_v31, %v3870_v56  ;;  %v3817_v43 = vadd.f32 %v3816_v37, %v13845_v55  ;;  %v3818_v18 = vpop.f32.mrb[213].mxu0  ;;  %4939 = vmatmul.mubr.f32.gmra.mrb[26].mxu1 %v14208_v40  ;;  %v4056_v14 = vmul.f32 0.01, %v3970_v41  ;;  %vm4040_vm11 = vcmp.gt.f32.partialorder %v3970_v41, 0.0 }
 0x2c4   :  { %v3974_v52 = vpop.f32.mrb[198].mxu1  ;;  %9918 = vmatpush1.bf16.msra.mxu1 %v14259_v23  ;;  %v9938_v12 = vpack.c.bf16 %v3886_v11, %v3885_v1  ;;  %8419 = vmatprep.mubr.msk.f32.mxu1 %vm2879_vm3, %v14216_v21  ;;  %v16700_v18 = vld [vmem:[#allocation27_spill] sm:$0xff] }
 0x2c5   :  { %5092 = vmatmul.mubr.f32.gmra.mrb[42].mxu0 %v14042_v27  ;;  %v3975_v48 = vadd.f32 %v3974_v52, %v13770_v19  ;;  %v3976_v33 = vpop.f32.mrb[199].mxu1  ;;  %9919 = vmatprep.subr.bf16.mxu1 %v16558_v54  ;;  %v3871_v31 = vmul.f32 0.01, %v3817_v43  ;;  %vm3855_vm14 = vcmp.gt.f32.partialorder %v3817_v43, 0.0  ;;  %v4072_v44 = vsel %vm4040_vm11, %v3970_v41, %v4056_v14 }
 0x2c6   :  { %v3821_v0 = vpop.f32.mrb[214].mxu0  ;;  %9939 = vmatpush1.bf16.msra.mxu0 %v9938_v12  ;;  %8427 = vmatprep.mubr.msk.f32.mxu0 %vm2879_vm3, %v14048_v2 }
 0x2c7   :  { %v3822_v23 = vadd.f32 %v3821_v0, %v13862_v63  ;;  %vm4041_vm1 = vcmp.gt.f32.partialorder %v3975_v48, 0.0  ;;  %v4057_v56 = vmul.f32 0.01, %v3975_v48  ;;  %v3823_v35 = vpop.f32.mrb[215].mxu0  ;;  %4944 = vmatmul.mubr.f32.gmra.mrb[28].mxu1 %v14231_v7  ;;  %9940 = vmatprep.subr.bf16.mxu0 %v16558_v54  ;;  %v16701_v0 = vld [vmem:[#allocation29_spill] sm:$0xff] }
 0x2c8   :  { %v3979_v37 = vpop.f32.mrb[200].mxu1  ;;  %9921 = vmatpush1.bf16.msra.mxu1 %v14288_v53  ;;  %8420 = vmatprep.mubr.msk.f32.mxu1 %vm2879_vm3, %v14236_v28  ;;  %v3887_v53 = vsel %vm3855_vm14, %v3817_v43, %v3871_v31 }
 0x2c9   :  { %vm3856_vm2 = vcmp.gt.f32.partialorder %v3822_v23, 0.0  ;;  %v3872_v1 = vmul.f32 0.01, %v3822_v23  ;;  %v4073_v11 = vsel %vm4041_vm1, %v3975_v48, %v4057_v56  ;;  %5097 = vmatmul.mubr.f32.gmra.mrb[44].mxu0 %v16700_v18  ;;  %v3980_v52 = vadd.f32 %v3979_v37, %v13784_v36  ;;  %v3981_v12 = vpop.f32.mrb[201].mxu1  ;;  %9922 = vmatprep.subr.bf16.mxu1 %v16558_v54 }
 0x2ca   :  { %v3826_v33 = vpop.f32.mrb[216].mxu0  ;;  %8428 = vmatprep.mubr.msk.f32.mxu0 %vm2879_vm3, %v16701_v0  ;;  %v14355_v41 = vpack.c.bf16 %v4073_v11, %v4072_v44 }
 0x2cb   :  { %v3888_v14 = vsel %vm3856_vm2, %v3822_v23, %v3872_v1  ;;  %v3827_v35 = vadd.f32 %v3826_v33, %v13872_v46  ;;  %v3828_v28 = vpop.f32.mrb[217].mxu0  ;;  %4949 = vmatmul.mubr.f32.gmra.mrb[30].mxu1 %v14252_v9  ;;  %v4058_v48 = vmul.f32 0.01, %v3980_v52  ;;  %vm4042_vm13 = vcmp.gt.f32.partialorder %v3980_v52, 0.0 }
 0x2cc   :  { %v3984_v56 = vpop.f32.mrb[202].mxu1  ;;  %9924 = vmatpush1.bf16.msra.mxu1 %v14309_v59  ;;  %v9941_v37 = vpack.c.bf16 %v3888_v14, %v3887_v53  ;;  %8437 = vmatprep.mubr.msk.f32.mxu1 %vm2879_vm3, %v14268_v51  ;;  %v16702_v14 = vld [vmem:[#allocation30_spill] sm:$0xff] }
 0x2cd   :  { %5102 = vmatmul.mubr.f32.gmra.mrb[46].mxu0 %v14078_v32  ;;  %v3985_v44 = vadd.f32 %v3984_v56, %v13793_v3  ;;  %v3986_v43 = vpop.f32.mrb[203].mxu1  ;;  %9961 = vmatprep.subr.bf16.mxu1 %v16558_v54  ;;  %v3873_v28 = vmul.f32 0.01, %v3827_v35  ;;  %vm3857_vm10 = vcmp.gt.f32.partialorder %v3827_v35, 0.0  ;;  %v4074_v11 = vsel %vm4042_vm13, %v3980_v52, %v4058_v48 }
 0x2ce   :  { %v3831_v31 = vpop.f32.mrb[218].mxu0  ;;  %9942 = vmatpush1.bf16.msra.mxu0 %v9941_v37  ;;  %8429 = vmatprep.mubr.msk.f32.mxu0 %vm2879_vm3, %v14086_v39  ;;  %v16703_v43 = vld [vmem:[#allocation31_spill] sm:$0xff] }
 0x2cf   :  { %v3832_v59 = vadd.f32 %v3831_v31, %v13881_v34  ;;  %vm4043_vm0 = vcmp.gt.f32.partialorder %v3985_v44, 0.0  ;;  %v4059_v23 = vmul.f32 0.01, %v3985_v44  ;;  %v3833_v1 = vpop.f32.mrb[219].mxu0  ;;  %5260 = vmatmul.mubr.f32.vlgmr.msra.gmra.mrb[32].mxu1 %v13948_v45  ;;  %9943 = vmatprep.subr.bf16.mxu0 %v16558_v54  ;;  %v3889_v48 = vsel %vm3857_vm10, %v3827_v35, %v3873_v28 }
 0x2d0   :  { %v3989_v12 = vpop.f32.mrb[204].mxu1  ;;  %9963 = vmatpush1.bf16.msra.mxu1 %v14331_v57  ;;  %8438 = vmatprep.mubr.msk.f32.mxu1 %vm2879_vm3, %v13956_v49 }
 0x2d1   :  { %vm3858_vm15 = vcmp.gt.f32.partialorder %v3832_v59, 0.0  ;;  %v3874_v33 = vmul.f32 0.01, %v3832_v59  ;;  %v4075_v53 = vsel %vm4043_vm0, %v3985_v44, %v4059_v23  ;;  %5107 = vmatmul.mubr.f32.gmra.mrb[48].mxu0 %v16702_v14  ;;  %v3990_v56 = vadd.f32 %v3989_v12, %v13803_v29  ;;  %v3991_v37 = vpop.f32.mrb[205].mxu1  ;;  %9964 = vmatprep.subr.bf16.mxu1 %v16558_v54 }
 0x2d2   :  { %v3836_v45 = vpop.f32.mrb[220].mxu0  ;;  %8430 = vmatprep.mubr.msk.f32.mxu0 %vm2879_vm3, %v16703_v43  ;;  %v14379_v52 = vpack.c.bf16 %v4075_v53, %v4074_v11 }
 0x2d3   :  { %v3890_v31 = vsel %vm3858_vm15, %v3832_v59, %v3874_v33  ;;  %v3837_v49 = vadd.f32 %v3836_v45, %v13891_v20  ;;  %v3838_v1 = vpop.f32.mrb[221].mxu0  ;;  %5265 = vmatmul.mubr.f32.gmra.mrb[34].mxu1 %v13965_v17  ;;  %v4060_v44 = vmul.f32 0.01, %v3990_v56  ;;  %vm4044_vm4 = vcmp.gt.f32.partialorder %v3990_v56, 0.0 }
 0x2d4   :  { %v3994_v23 = vpop.f32.mrb[206].mxu1  ;;  %v9944_v14 = vpack.c.bf16 %v3890_v31, %v3889_v48  ;;  %9966 = vmatpush1.bf16.msra.mxu1 %v14355_v41  ;;  %8439 = vmatprep.mubr.msk.f32.mxu1 %vm2879_vm3, %v13973_v5  ;;  %v16704_v31 = vld [vmem:[#allocation32_spill] sm:$0xff] }
 0x2d5   :  { %5112 = vmatmul.mubr.f32.gmra.mrb[50].mxu0 %v14119_v26  ;;  %v3995_v11 = vadd.f32 %v3994_v23, %v13811_v15  ;;  %v3996_v35 = vpop.f32.mrb[207].mxu1  ;;  %9967 = vmatprep.subr.bf16.mxu1 %v16558_v54  ;;  %v3875_v17 = vmul.f32 0.01, %v3837_v49  ;;  %vm3859_vm12 = vcmp.gt.f32.partialorder %v3837_v49, 0.0  ;;  %v4076_v5 = vsel %vm4044_vm4, %v3990_v56, %v4060_v44 }
 0x2d6   :  { %v3841_v28 = vpop.f32.mrb[222].mxu0  ;;  %9945 = vmatpush1.bf16.msra.mxu0 %v9944_v14  ;;  %8431 = vmatprep.mubr.msk.f32.mxu0 %vm2879_vm3, %v14129_v30 }
 0x2d7   :  { %v3842_v59 = vadd.f32 %v3841_v28, %v13900_v10  ;;  %vm4045_vm7 = vcmp.gt.f32.partialorder %v3995_v11, 0.0  ;;  %v4061_v12 = vmul.f32 0.01, %v3995_v11  ;;  %v3843_v33 = vpop.f32.mrb[223].mxu0  ;;  %5270 = vmatmul.mubr.f32.gmra.mrb[36].mxu1 %v13985_v50  ;;  %9946 = vmatprep.subr.bf16.mxu0 %v16558_v54  ;;  %v3891_v1 = vsel %vm3859_vm12, %v3837_v49, %v3875_v17 }
 0x2d8   :  { %v3999_v53 = vpop.f32.mrb[208].mxu1  ;;  %9969 = vmatpush1.bf16.msra.mxu1 %v14379_v52  ;;  %8440 = vmatprep.mubr.msk.f32.mxu1 %vm2879_vm3, %v13993_v24 }
 0x2d9   :  { %vm3860_vm6 = vcmp.gt.f32.partialorder %v3842_v59, 0.0  ;;  %v3876_v14 = vmul.f32 0.01, %v3842_v59  ;;  %v4077_v37 = vsel %vm4045_vm7, %v3995_v11, %v4061_v12  ;;  %5117 = vmatmul.mubr.f32.gmra.mrb[52].mxu0 %v14142_v42  ;;  %v4000_v45 = vadd.f32 %v3999_v53, %v13822_v47  ;;  %v4001_v48 = vpop.f32.mrb[209].mxu1  ;;  %9970 = vmatprep.subr.bf16.mxu1 %v16558_v54 }
 0x2da   :  { %v4152_v50 = vpop.f32.mrb[224].mxu0  ;;  %8432 = vmatprep.mubr.msk.f32.mxu0 %vm2879_vm3, %v16704_v31  ;;  %v14403_v56 = vpack.c.bf16 %v4077_v37, %v4076_v5 }
 0x2db   :  { %v3892_v44 = vsel %vm3860_vm6, %v3842_v59, %v3876_v14  ;;  %v4153_v24 = vadd.f32 %v4152_v50, %v13741_v60  ;;  %v4154_v23 = vpop.f32.mrb[225].mxu0  ;;  %5275 = vmatmul.mubr.f32.gmra.mrb[38].mxu1 %v14002_v22  ;;  %v4062_v11 = vmul.f32 0.01, %v4000_v45  ;;  %vm4046_vm9 = vcmp.gt.f32.partialorder %v4000_v45, 0.0 }
 0x2dc   :  { %v4004_v35 = vpop.f32.mrb[210].mxu1  ;;  %v9947_v28 = vpack.c.bf16 %v3892_v44, %v3891_v1  ;;  %9972 = vmatpush1.bf16.msra.mxu1 %v14403_v56  ;;  %8441 = vmatprep.mubr.msk.f32.mxu1 %vm2879_vm3, %v14010_v25 }
 0x2dd   :  { %5122 = vmatmul.mubr.f32.gmra.mrb[54].mxu0 %v14164_v61  ;;  %v4005_v12 = vadd.f32 %v4004_v35, %v13832_v6  ;;  %v4006_v49 = vpop.f32.mrb[211].mxu1  ;;  %9973 = vmatprep.subr.bf16.mxu1 %v16558_v54  ;;  %v4247_v22 = vmul.f32 0.01, %v4153_v24  ;;  %v4078_v25 = vsel %vm4046_vm9, %v4000_v45, %v4062_v11  ;;  %vm4231_vm8 = vcmp.gt.f32.partialorder %v4153_v24, 0.0 }
 0x2de   :  { %v4157_v17 = vpop.f32.mrb[226].mxu0  ;;  %9948 = vmatpush1.bf16.msra.mxu0 %v9947_v28  ;;  %8433 = vmatprep.mubr.msk.f32.mxu0 %vm2879_vm3, %v14174_v13 }
 0x2df   :  { %vm4047_vm5 = vcmp.gt.f32.partialorder %v4005_v12, 0.0  ;;  %v4063_v59 = vmul.f32 0.01, %v4005_v12  ;;  %v4158_v33 = vadd.f32 %v4157_v17, %v13750_v58  ;;  %v4159_v5 = vpop.f32.mrb[227].mxu0  ;;  %5280 = vmatmul.mubr.f32.gmra.mrb[40].mxu1 %v14022_v16  ;;  %9949 = vmatprep.subr.bf16.mxu0 %v16558_v54  ;;  %v4263_v45 = vsel %vm4231_vm8, %v4153_v24, %v4247_v22 }
 0x2e0   :  { %v4009_v53 = vpop.f32.mrb[212].mxu1  ;;  %8442 = vmatprep.mubr.msk.f32.mxu1 %vm2879_vm3, %v14028_v62 }
 0x2e1   :  { %v4079_v14 = vsel %vm4047_vm5, %v4005_v12, %v4063_v59  ;;  %vm4232_vm11 = vcmp.gt.f32.partialorder %v4158_v33, 0.0  ;;  %v4248_v37 = vmul.f32 0.01, %v4158_v33  ;;  %5127 = vmatmul.mubr.f32.gmra.mrb[56].mxu0 %v14187_v4  ;;  %v4010_v48 = vadd.f32 %v4009_v53, %v13845_v55  ;;  %v4011_v50 = vpop.f32.mrb[213].mxu1 }
 0x2e2   :  { %v4162_v1 = vpop.f32.mrb[228].mxu0  ;;  %9951 = vmatpush1.bf16.msra.mxu0 %v14331_v57  ;;  %8434 = vmatprep.mubr.msk.f32.mxu0 %vm2879_vm3, %v14192_v8  ;;  %v9974_v16 = vpack.c.bf16 %v4079_v14, %v4078_v25 }
 0x2e3   :  { %v4264_v44 = vsel %vm4232_vm11, %v4158_v33, %v4248_v37  ;;  %v4163_v23 = vadd.f32 %v4162_v1, %v13759_v38  ;;  %v4164_v62 = vpop.f32.mrb[229].mxu0  ;;  %5285 = vmatmul.mubr.f32.gmra.mrb[42].mxu1 %v14042_v27  ;;  %9952 = vmatprep.subr.bf16.mxu0 %v16558_v54  ;;  %v4064_v11 = vmul.f32 0.01, %v4010_v48  ;;  %vm4048_vm1 = vcmp.gt.f32.partialorder %v4010_v48, 0.0 }
 0x2e4   :  { %v4014_v35 = vpop.f32.mrb[214].mxu1  ;;  %9975 = vmatpush1.bf16.msra.mxu1 %v9974_v16  ;;  %8443 = vmatprep.mubr.msk.f32.mxu1 %vm2879_vm3, %v14048_v2  ;;  %v14430_v57 = vpack.c.bf16 %v4264_v44, %v4263_v45 }
 0x2e5   :  { %5132 = vmatmul.mubr.f32.gmra.mrb[58].mxu0 %v14208_v40  ;;  %v4015_v24 = vadd.f32 %v4014_v35, %v13862_v63  ;;  %v4016_v28 = vpop.f32.mrb[215].mxu1  ;;  %9976 = vmatprep.subr.bf16.mxu1 %v16558_v54  ;;  %v4249_v27 = vmul.f32 0.01, %v4163_v23  ;;  %v4080_v22 = vsel %vm4048_vm1, %v4010_v48, %v4064_v11  ;;  %vm4233_vm2 = vcmp.gt.f32.partialorder %v4163_v23, 0.0  ;;  %v16706_v35 = vld [vmem:[#allocation30_spill] sm:$0xff] }
 0x2e6   :  { %v4167_v12 = vpop.f32.mrb[230].mxu0  ;;  %9954 = vmatpush1.bf16.msra.mxu0 %v14355_v41  ;;  %8435 = vmatprep.mubr.msk.f32.mxu0 %vm2879_vm3, %v14216_v21 }
 0x2e7   :  { %vm4049_vm14 = vcmp.gt.f32.partialorder %v4015_v24, 0.0  ;;  %v4065_v49 = vmul.f32 0.01, %v4015_v24  ;;  %v4168_v2 = vadd.f32 %v4167_v12, %v13770_v19  ;;  %v4169_v17 = vpop.f32.mrb[231].mxu0  ;;  %5290 = vmatmul.mubr.f32.gmra.mrb[44].mxu1 %v16700_v18  ;;  %9955 = vmatprep.subr.bf16.mxu0 %v16558_v54  ;;  %v16705_v18 = vld [vmem:[#allocation28_spill] sm:$0xff]  ;;  %v4265_v37 = vsel %vm4233_vm2, %v4163_v23, %v4249_v27  ;;  %v14469_v27 = vld [vmem:[%s16410_s5] sm:$0xff] }
 0x2e8   :  { %v4019_v59 = vpop.f32.mrb[216].mxu1  ;;  %8444 = vmatprep.mubr.msk.f32.mxu1 %vm2879_vm3, %v16701_v0 }
 0x2e9   :  { %v4081_v41 = vsel %vm4049_vm14, %v4015_v24, %v4065_v49  ;;  %vm4234_vm13 = vcmp.gt.f32.partialorder %v4168_v2, 0.0  ;;  %v4250_v33 = vmul.f32 0.01, %v4168_v2  ;;  %5137 = vmatmul.mubr.f32.gmra.mrb[60].mxu0 %v14231_v7  ;;  %v4020_v5 = vadd.f32 %v4019_v59, %v13872_v46  ;;  %v4021_v25 = vpop.f32.mrb[217].mxu1 }
 0x2ea   :  { %v4172_v53 = vpop.f32.mrb[232].mxu0  ;;  %9957 = vmatpush1.bf16.msra.mxu0 %v14379_v52  ;;  %8436 = vmatprep.mubr.msk.f32.mxu0 %vm2879_vm3, %v16705_v18  ;;  %v9977_v14 = vpack.c.bf16 %v4081_v41, %v4080_v22 }
 0x2eb   :  { %v4266_v48 = vsel %vm4234_vm13, %v4168_v2, %v4250_v33  ;;  %v4173_v50 = vadd.f32 %v4172_v53, %v13784_v36  ;;  %v4174_v0 = vpop.f32.mrb[233].mxu0  ;;  %5295 = vmatmul.mubr.f32.gmra.mrb[46].mxu1 %v14078_v32  ;;  %9958 = vmatprep.subr.bf16.mxu0 %v16558_v54  ;;  %v4066_v1 = vmul.f32 0.01, %v4020_v5  ;;  %vm4050_vm0 = vcmp.gt.f32.partialorder %v4020_v5, 0.0 }
 0x2ec   :  { %v4024_v16 = vpop.f32.mrb[218].mxu1  ;;  %9978 = vmatpush1.bf16.msra.mxu1 %v9977_v14  ;;  %8445 = vmatprep.mubr.msk.f32.mxu1 %vm2879_vm3, %v14086_v39  ;;  %v14453_v52 = vpack.c.bf16 %v4266_v48, %v4265_v37  ;;  %v14491_v37 = vld [vmem:[%s16410_s5 + $0x10] sm:$0xff] }
 0x2ed   :  { %5142 = vmatmul.mubr.f32.gmra.mrb[62].mxu0 %v14252_v9  ;;  %v4025_v45 = vadd.f32 %v4024_v16, %v13881_v34  ;;  %v4026_v44 = vpop.f32.mrb[219].mxu1  ;;  %9979 = vmatprep.subr.bf16.mxu1 %v16558_v54  ;;  %v4251_v32 = vmul.f32 0.01, %v4173_v50  ;;  %v4082_v24 = vsel %vm4050_vm0, %v4020_v5, %v4066_v1  ;;  %vm4235_vm15 = vcmp.gt.f32.partialorder %v4173_v50, 0.0 }
 0x2ee   :  { %v4177_v23 = vpop.f32.mrb[234].mxu0  ;;  %9960 = vmatpush1.bf16.msra.mxu0 %v14403_v56  ;;  %8453 = vmatprep.mubr.msk.f32.mxu0 %vm2879_vm3, %v14268_v51 }
 0x2ef   :  { %vm4051_vm10 = vcmp.gt.f32.partialorder %v4025_v45, 0.0  ;;  %v4067_v62 = vmul.f32 0.01, %v4025_v45  ;;  %v4178_v39 = vadd.f32 %v4177_v23, %v13793_v3  ;;  %v4179_v11 = vpop.f32.mrb[235].mxu0  ;;  %5300 = vmatmul.mubr.f32.gmra.mrb[48].mxu1 %v16706_v35  ;;  %9997 = vmatprep.subr.bf16.mxu0 %v16558_v54  ;;  %v4267_v59 = vsel %vm4235_vm15, %v4173_v50, %v4251_v32 }
 0x2f0   :  { %v4029_v28 = vpop.f32.mrb[220].mxu1  ;;  %8446 = vmatprep.mubr.msk.f32.mxu1 %vm2879_vm3, %v16703_v43  ;;  %v14477_v43 = vld [vmem:[%s16410_s5 + $0x18] sm:$0xff] }
 0x2f1   :  { %v4083_v56 = vsel %vm4051_vm10, %v4025_v45, %v4067_v62  ;;  %vm4236_vm4 = vcmp.gt.f32.partialorder %v4178_v39, 0.0  ;;  %v4252_v12 = vmul.f32 0.01, %v4178_v39  ;;  %5453 = vmatmul.mubr.f32.vlgmr.msra.gmra.mrb[64].mxu0 %v14469_v27  ;;  %v4030_v49 = vadd.f32 %v4029_v28, %v13891_v20  ;;  %v4031_v2 = vpop.f32.mrb[221].mxu1 }
 0x2f2   :  { %v4182_v17 = vpop.f32.mrb[236].mxu0  ;;  %9999 = vmatpush1.bf16.msra.mxu0 %v14430_v57  ;;  %8454 = vmatprep.mubr.msk.f32.mxu0 %vm2879_vm3, %v14477_v43  ;;  %v9980_v22 = vpack.c.bf16 %v4083_v56, %v4082_v24 }
 0x2f3   :  { %v4268_v41 = vsel %vm4236_vm4, %v4178_v39, %v4252_v12  ;;  %v4183_v33 = vadd.f32 %v4182_v17, %v13803_v29  ;;  %v4184_v5 = vpop.f32.mrb[237].mxu0  ;;  %5305 = vmatmul.mubr.f32.gmra.mrb[50].mxu1 %v14119_v26  ;;  %10000 = vmatprep.subr.bf16.mxu0 %v16558_v54  ;;  %v4068_v25 = vmul.f32 0.01, %v4030_v49  ;;  %vm4052_vm7 = vcmp.gt.f32.partialorder %v4030_v49, 0.0  ;;  %v14513_v39 = vld [vmem:[%s16410_s5 + $0x20] sm:$0xff] }
 0x2f4   :  { %v4034_v53 = vpop.f32.mrb[222].mxu1  ;;  %9981 = vmatpush1.bf16.msra.mxu1 %v9980_v22  ;;  %8447 = vmatprep.mubr.msk.f32.mxu1 %vm2879_vm3, %v14129_v30  ;;  %v14486_v14 = vpack.c.bf16 %v4268_v41, %v4267_v59  ;;  %v14500_v30 = vld [vmem:[%s16410_s5 + $0x28] sm:$0xff]  ;;  %v14535_v22 = vld [vmem:[%s16410_s5 + $0x30] sm:$0xff] }
 0x2f5   :  { %5458 = vmatmul.mubr.f32.gmra.mrb[66].mxu0 %v14491_v37  ;;  %v4035_v26 = vadd.f32 %v4034_v53, %v13900_v10  ;;  %v4036_v48 = vpop.f32.mrb[223].mxu1  ;;  %9982 = vmatprep.subr.bf16.mxu1 %v16558_v54  ;;  %v4253_v0 = vmul.f32 0.01, %v4183_v33  ;;  %v4084_v44 = vsel %vm4052_vm7, %v4030_v49, %v4068_v25  ;;  %vm4237_vm6 = vcmp.gt.f32.partialorder %v4183_v33, 0.0 }
 0x2f6   :  { %v4187_v50 = vpop.f32.mrb[238].mxu0  ;;  %10002 = vmatpush1.bf16.msra.mxu0 %v14453_v52  ;;  %8455 = vmatprep.mubr.msk.f32.mxu0 %vm2879_vm3, %v14500_v30 }
 0x2f7   :  { %vm4053_vm12 = vcmp.gt.f32.partialorder %v4035_v26, 0.0  ;;  %v4069_v1 = vmul.f32 0.01, %v4035_v26  ;;  %v4188_v16 = vadd.f32 %v4187_v50, %v13811_v15  ;;  %v4189_v45 = vpop.f32.mrb[239].mxu0  ;;  %5310 = vmatmul.mubr.f32.gmra.mrb[52].mxu1 %v14142_v42  ;;  %10003 = vmatprep.subr.bf16.mxu0 %v16558_v54  ;;  %v4269_v28 = vsel %vm4237_vm6, %v4183_v33, %v4253_v0 }
 0x2f8   :  { %v4345_v23 = vpop.f32.mrb[224].mxu1  ;;  %8448 = vmatprep.mubr.msk.f32.mxu1 %vm2879_vm3, %v16704_v31  ;;  %v14521_v31 = vld [vmem:[%s16410_s5 + $0x38] sm:$0xff] }
 0x2f9   :  { %v4085_v32 = vsel %vm4053_vm12, %v4035_v26, %v4069_v1  ;;  %vm4238_vm9 = vcmp.gt.f32.partialorder %v4188_v16, 0.0  ;;  %v4254_v62 = vmul.f32 0.01, %v4188_v16  ;;  %5463 = vmatmul.mubr.f32.gmra.mrb[68].mxu0 %v14513_v39  ;;  %v4346_v42 = vadd.f32 %v4345_v23, %v13741_v60  ;;  %v4347_v11 = vpop.f32.mrb[225].mxu1 }
 0x2fa   :  { %v4192_v35 = vpop.f32.mrb[240].mxu0  ;;  %10005 = vmatpush1.bf16.msra.mxu0 %v14486_v14  ;;  %8456 = vmatprep.mubr.msk.f32.mxu0 %vm2879_vm3, %v14521_v31  ;;  %v9983_v24 = vpack.c.bf16 %v4085_v32, %v4084_v44 }
 0x2fb   :  { %v4270_v56 = vsel %vm4238_vm9, %v4188_v16, %v4254_v62  ;;  %v4193_v12 = vadd.f32 %v4192_v35, %v13822_v47  ;;  %v4194_v49 = vpop.f32.mrb[241].mxu0  ;;  %5315 = vmatmul.mubr.f32.gmra.mrb[54].mxu1 %v14164_v61  ;;  %10006 = vmatprep.subr.bf16.mxu0 %v16558_v54  ;;  %v4424_v60 = vmul.f32 0.01, %v4346_v42  ;;  %vm4416_vm5 = vcmp.gt.f32.partialorder %v4346_v42, 0.0  ;;  %v14585_v62 = vld [vmem:[%s16410_s5 + $0x50] sm:$0xff] }
 0x2fc   :  { %v4350_v2 = vpop.f32.mrb[226].mxu1  ;;  %9984 = vmatpush1.bf16.msra.mxu1 %v9983_v24  ;;  %v14528_v17 = vpack.c.bf16 %v4270_v56, %v4269_v28  ;;  %8449 = vmatprep.mubr.msk.f32.mxu1 %vm2879_vm3, %v14174_v13  ;;  %v14544_v13 = vld [vmem:[%s16410_s5 + $0x48] sm:$0xff] }
 0x2fd   :  { %5468 = vmatmul.mubr.f32.gmra.mrb[70].mxu0 %v14535_v22  ;;  %v4351_v47 = vadd.f32 %v4350_v2, %v13750_v58  ;;  %v4352_v61 = vpop.f32.mrb[227].mxu1  ;;  %9985 = vmatprep.subr.bf16.mxu1 %v16558_v54  ;;  %v4255_v41 = vmul.f32 0.01, %v4193_v12  ;;  %vm4239_vm11 = vcmp.gt.f32.partialorder %v4193_v12, 0.0  ;;  %v14552_v25 = vsel %vm4416_vm5, %v4346_v42, %v4424_v60 }
 0x2fe   :  { %v4197_v59 = vpop.f32.mrb[242].mxu0  ;;  %10008 = vmatpush1.bf16.msra.mxu0 %v14528_v17  ;;  %8457 = vmatprep.mubr.msk.f32.mxu0 %vm2879_vm3, %v14544_v13 }
 0x2ff   :  { %v4198_v33 = vadd.f32 %v4197_v59, %v13832_v6  ;;  %vm4417_vm8 = vcmp.gt.f32.partialorder %v4351_v47, 0.0  ;;  %v4425_v5 = vmul.f32 0.01, %v4351_v47  ;;  %v4199_v58 = vpop.f32.mrb[243].mxu0  ;;  %5320 = vmatmul.mubr.f32.gmra.mrb[56].mxu1 %v14187_v4  ;;  %10009 = vmatprep.subr.bf16.mxu0 %v16558_v54  ;;  %v14562_v4 = vld [vmem:[%s16410_s5 + $0x40] sm:$0xff]  ;;  %v4271_v1 = vsel %vm4239_vm11, %v4193_v12, %v4255_v41 }
 0x300   :  { %v4355_v53 = vpop.f32.mrb[228].mxu1  ;;  %9987 = vmatpush1.bf16.msra.mxu1 %v14430_v57  ;;  %8450 = vmatprep.mubr.msk.f32.mxu1 %vm2879_vm3, %v14192_v8  ;;  %v14570_v8 = vld [vmem:[%s16410_s5 + $0x58] sm:$0xff] }
 0x301   :  { %vm4240_vm1 = vcmp.gt.f32.partialorder %v4198_v33, 0.0  ;;  %v4256_v26 = vmul.f32 0.01, %v4198_v33  ;;  %v14557_v6 = vsel %vm4417_vm8, %v4351_v47, %v4425_v5  ;;  %5473 = vmatmul.mubr.f32.gmra.mrb[72].mxu0 %v14562_v4  ;;  %v4356_v48 = vadd.f32 %v4355_v53, %v13759_v38  ;;  %v4357_v50 = vpop.f32.mrb[229].mxu1  ;;  %9988 = vmatprep.subr.bf16.mxu1 %v16558_v54  ;;  %v14634_v5 = vld [vmem:[%s16410_s5 + $0x70] sm:$0xff] }
 0x302   :  { %v4202_v57 = vpop.f32.mrb[244].mxu0  ;;  %8458 = vmatprep.mubr.msk.f32.mxu0 %vm2879_vm3, %v14570_v8  ;;  %v10022_v0 = vpack.c.bf16 %v14557_v6, %v14552_v25  ;;  %v14751_v25 = vld [vmem:[%s16410_s5 + $0xd0] sm:$0xff] }
 0x303   :  { %v4272_v16 = vsel %vm4240_vm1, %v4198_v33, %v4256_v26  ;;  %v4203_v38 = vadd.f32 %v4202_v57, %v13845_v55  ;;  %v4204_v45 = vpop.f32.mrb[245].mxu0  ;;  %5325 = vmatmul.mubr.f32.gmra.mrb[58].mxu1 %v14208_v40  ;;  %v4426_v44 = vmul.f32 0.01, %v4356_v48  ;;  %vm4418_vm14 = vcmp.gt.f32.partialorder %v4356_v48, 0.0 }
 0x304   :  { %v4360_v23 = vpop.f32.mrb[230].mxu1  ;;  %9990 = vmatpush1.bf16.msra.mxu1 %v14453_v52  ;;  %v10010_v32 = vpack.c.bf16 %v4272_v16, %v4271_v1  ;;  %8451 = vmatprep.mubr.msk.f32.mxu1 %vm2879_vm3, %v14216_v21  ;;  %v14593_v52 = vld [vmem:[%s16410_s5 + $0x68] sm:$0xff] }
 0x305   :  { %5478 = vmatmul.mubr.f32.gmra.mrb[74].mxu0 %v14585_v62  ;;  %v4361_v55 = vadd.f32 %v4360_v23, %v13770_v19  ;;  %v4362_v42 = vpop.f32.mrb[231].mxu1  ;;  %9991 = vmatprep.subr.bf16.mxu1 %v16558_v54  ;;  %v4257_v21 = vmul.f32 0.01, %v4203_v38  ;;  %vm4241_vm13 = vcmp.gt.f32.partialorder %v4203_v38, 0.0  ;;  %v14601_v19 = vsel %vm4418_vm14, %v4356_v48, %v4426_v44  ;;  %v14666_v44 = vld [vmem:[%s16410_s5 + $0x98] sm:$0xff] }
 0x306   :  { %v4207_v40 = vpop.f32.mrb[246].mxu0  ;;  %10011 = vmatpush1.bf16.msra.mxu0 %v10010_v32  ;;  %8459 = vmatprep.mubr.msk.f32.mxu0 %vm2879_vm3, %v14593_v52 }
 0x307   :  { %v4208_v11 = vadd.f32 %v4207_v40, %v13862_v63  ;;  %vm4419_vm2 = vcmp.gt.f32.partialorder %v4361_v55, 0.0  ;;  %v4427_v35 = vmul.f32 0.01, %v4361_v55  ;;  %v4209_v24 = vpop.f32.mrb[247].mxu0  ;;  %5330 = vmatmul.mubr.f32.gmra.mrb[60].mxu1 %v14231_v7  ;;  %10012 = vmatprep.subr.bf16.mxu0 %v16558_v54  ;;  %v14611_v7 = vld [vmem:[%s16410_s5 + $0x60] sm:$0xff]  ;;  %v4273_v2 = vsel %vm4241_vm13, %v4203_v38, %v4257_v21 }
 0x308   :  { %v4365_v28 = vpop.f32.mrb[232].mxu1  ;;  %9993 = vmatpush1.bf16.msra.mxu1 %v14486_v14  ;;  %8452 = vmatprep.mubr.msk.f32.mxu1 %vm2879_vm3, %v16705_v18  ;;  %v14619_v18 = vld [vmem:[%s16410_s5 + $0x78] sm:$0xff] }
 0x309   :  { %vm4242_vm0 = vcmp.gt.f32.partialorder %v4208_v11, 0.0  ;;  %v4258_v56 = vmul.f32 0.01, %v4208_v11  ;;  %v14606_v63 = vsel %vm4419_vm2, %v4361_v55, %v4427_v35  ;;  %5483 = vmatmul.mubr.f32.gmra.mrb[76].mxu0 %v14611_v7  ;;  %v4366_v12 = vadd.f32 %v4365_v28, %v13784_v36  ;;  %v4367_v49 = vpop.f32.mrb[233].mxu1  ;;  %9994 = vmatprep.subr.bf16.mxu1 %v16558_v54  ;;  %v14679_v35 = vld [vmem:[%s16410_s5 + $0x90] sm:$0xff] }
 0x30a   :  { %v4212_v14 = vpop.f32.mrb[248].mxu0  ;;  %8460 = vmatprep.mubr.msk.f32.mxu0 %vm2879_vm3, %v14619_v18  ;;  %v10025_v60 = vpack.c.bf16 %v14606_v63, %v14601_v19  ;;  %v14771_v19 = vld [vmem:[%s16410_s5 + $0xe0] sm:$0xff] }
 0x30b   :  { %v4274_v47 = vsel %vm4242_vm0, %v4208_v11, %v4258_v56  ;;  %v4213_v36 = vadd.f32 %v4212_v14, %v13872_v46  ;;  %v4214_v61 = vpop.f32.mrb[249].mxu0  ;;  %5335 = vmatmul.mubr.f32.gmra.mrb[62].mxu1 %v14252_v9  ;;  %v4428_v59 = vmul.f32 0.01, %v4366_v12  ;;  %vm4420_vm10 = vcmp.gt.f32.partialorder %v4366_v12, 0.0  ;;  %v14686_v56 = vld [vmem:[%s16410_s5 + $0xa8] sm:$0xff] }
 0x30c   :  { %v4370_v41 = vpop.f32.mrb[234].mxu1  ;;  %9996 = vmatpush1.bf16.msra.mxu1 %v14528_v17  ;;  %v10013_v33 = vpack.c.bf16 %v4274_v47, %v4273_v2  ;;  %8469 = vmatprep.mubr.msk.f32.mxu1 %vm2879_vm3, %v14268_v51  ;;  %v14642_v17 = vld [vmem:[%s16410_s5 + $0x88] sm:$0xff] }
 0x30d   :  { %5488 = vmatmul.mubr.f32.gmra.mrb[78].mxu0 %v14634_v5  ;;  %v4371_v46 = vadd.f32 %v4370_v41, %v13793_v3  ;;  %v4372_v58 = vpop.f32.mrb[235].mxu1  ;;  %10033 = vmatprep.subr.bf16.mxu1 %v16558_v54  ;;  %v4259_v51 = vmul.f32 0.01, %v4213_v36  ;;  %vm4243_vm4 = vcmp.gt.f32.partialorder %v4213_v36, 0.0  ;;  %v14650_v3 = vsel %vm4420_vm10, %v4366_v12, %v4428_v59  ;;  %v14704_v41 = vld [vmem:[%s16410_s5 + $0xb8] sm:$0xff] }
 0x30e   :  { %v4217_v9 = vpop.f32.mrb[250].mxu0  ;;  %10014 = vmatpush1.bf16.msra.mxu0 %v10013_v33  ;;  %8461 = vmatprep.mubr.msk.f32.mxu0 %vm2879_vm3, %v14642_v17 }
 0x30f   :  { %v4218_v53 = vadd.f32 %v4217_v9, %v13881_v34  ;;  %vm4421_vm15 = vcmp.gt.f32.partialorder %v4371_v46, 0.0  ;;  %v4429_v26 = vmul.f32 0.01, %v4371_v46  ;;  %v4219_v48 = vpop.f32.mrb[251].mxu0  ;;  %5646 = vmatmul.mubr.f32.vlgmr.msra.gmra.mrb[64].mxu1 %v14469_v27  ;;  %10015 = vmatprep.subr.bf16.mxu0 %v16558_v54  ;;  %v14659_v34 = vld [vmem:[%s16410_s5 + $0x80] sm:$0xff]  ;;  %v4275_v32 = vsel %vm4243_vm4, %v4213_v36, %v4259_v51 }
 0x310   :  { %v4375_v50 = vpop.f32.mrb[236].mxu1  ;;  %8470 = vmatprep.mubr.msk.f32.mxu1 %vm2879_vm3, %v14477_v43  ;;  %v14720_v48 = vld [vmem:[%s16410_s5 + $0xc8] sm:$0xff] }
 0x311   :  { %vm4244_vm7 = vcmp.gt.f32.partialorder %v4218_v53, 0.0  ;;  %v4260_v57 = vmul.f32 0.01, %v4218_v53  ;;  %v14654_v1 = vsel %vm4421_vm15, %v4371_v46, %v4429_v26  ;;  %5493 = vmatmul.mubr.f32.gmra.mrb[80].mxu0 %v14659_v34  ;;  %v4376_v16 = vadd.f32 %v4375_v50, %v13803_v29  ;;  %v4377_v38 = vpop.f32.mrb[237].mxu1 }
 0x312   :  { %v4222_v45 = vpop.f32.mrb[252].mxu0  ;;  %8462 = vmatprep.mubr.msk.f32.mxu0 %vm2879_vm3, %v14666_v44  ;;  %v10028_v23 = vpack.c.bf16 %v14654_v1, %v14650_v3  ;;  %v14740_v38 = vld [vmem:[%s16410_s5 + $0xd8] sm:$0xff]  ;;  %v14791_v3 = vld [vmem:[%s16410_s5 + $0xf0] sm:$0xff] }
 0x313   :  { %v4276_v55 = vsel %vm4244_vm7, %v4218_v53, %v4260_v57  ;;  %v4223_v42 = vadd.f32 %v4222_v45, %v13891_v20  ;;  %v4224_v40 = vpop.f32.mrb[253].mxu0  ;;  %5651 = vmatmul.mubr.f32.gmra.mrb[66].mxu1 %v14491_v37  ;;  %v4430_v11 = vmul.f32 0.01, %v4376_v16  ;;  %vm4422_vm12 = vcmp.gt.f32.partialorder %v4376_v16, 0.0  ;;  %v14714_v53 = vld [vmem:[%s16410_s5 + $0xb0] sm:$0xff]  ;;  %v14731_v57 = vld [vmem:[%s16410_s5 + $0xc0] sm:$0xff] }
 0x314   :  { %v4380_v29 = vpop.f32.mrb[238].mxu1  ;;  %v10016_v21 = vpack.c.bf16 %v4276_v55, %v4275_v32  ;;  %8471 = vmatprep.mubr.msk.f32.mxu1 %vm2879_vm3, %v14500_v30 }
 0x315   :  { %5498 = vmatmul.mubr.f32.gmra.mrb[82].mxu0 %v14679_v35  ;;  %v4381_v24 = vadd.f32 %v4380_v29, %v13811_v15  ;;  %v4382_v28 = vpop.f32.mrb[239].mxu1  ;;  %v4261_v12 = vmul.f32 0.01, %v4223_v42  ;;  %vm4245_vm9 = vcmp.gt.f32.partialorder %v4223_v42, 0.0  ;;  %v4438_v47 = vsel %vm4422_vm12, %v4376_v16, %v4430_v11 }
 0x316   :  { %v4227_v20 = vpop.f32.mrb[254].mxu0  ;;  %10017 = vmatpush1.bf16.msra.mxu0 %v10016_v21  ;;  %8463 = vmatprep.mubr.msk.f32.mxu0 %vm2879_vm3, %v14686_v56 }
 0x317   :  { %v4228_v49 = vadd.f32 %v4227_v20, %v13900_v10  ;;  %vm4423_vm6 = vcmp.gt.f32.partialorder %v4381_v24, 0.0  ;;  %v4431_v14 = vmul.f32 0.01, %v4381_v24  ;;  %5656 = vmatmul.mubr.f32.gmra.mrb[68].mxu1 %v14513_v39  ;;  %10018 = vmatprep.subr.bf16.mxu0 %v16558_v54  ;;  %v4229_v15 = vpop.f32.mrb[255].mxu0  ;;  %v14698_v10 = vld [vmem:[%s16410_s5 + $0xa0] sm:$0xff]  ;;  %v4277_v46 = vsel %vm4245_vm9, %v4223_v42, %v4261_v12 }
 0x318   :  { %8472 = vmatprep.mubr.msk.f32.mxu1 %vm2879_vm3, %v14521_v31  ;;  %v4385_v2 = vpop.f32.mrb[240].mxu1 }
 0x319   :  { %vm4246_vm5 = vcmp.gt.f32.partialorder %v4228_v49, 0.0  ;;  %v4262_v36 = vmul.f32 0.01, %v4228_v49  ;;  %v4439_v61 = vsel %vm4423_vm6, %v4381_v24, %v4431_v14  ;;  %5503 = vmatmul.mubr.f32.gmra.mrb[84].mxu0 %v14698_v10  ;;  %v4386_v59 = vpop.f32.mrb[241].mxu1 }
 0x31a   :  { %8464 = vmatprep.mubr.msk.f32.mxu0 %vm2879_vm3, %v14704_v41  ;;  %v10031_v33 = vpack.c.bf16 %v4439_v61, %v4438_v47 }
 0x31b   :  { %v4278_v58 = vsel %vm4246_vm5, %v4228_v49, %v4262_v36  ;;  %5661 = vmatmul.mubr.f32.gmra.mrb[70].mxu1 %v14535_v22 }
 0x31c   :  { %v10019_v9 = vpack.c.bf16 %v4278_v58, %v4277_v46  ;;  %8473 = vmatprep.mubr.msk.f32.mxu1 %vm2879_vm3, %v14544_v13  ;;  %v4389_v51 = vpop.f32.mrb[242].mxu1 }
 0x31d   :  { %5508 = vmatmul.mubr.f32.gmra.mrb[86].mxu0 %v14714_v53  ;;  %v4390_v26 = vpop.f32.mrb[243].mxu1 }
 0x31e   :  { %10020 = vmatpush1.bf16.msra.mxu0 %v10019_v9  ;;  %8465 = vmatprep.mubr.msk.f32.mxu0 %vm2879_vm3, %v14720_v48 }
 0x31f   :  { %5666 = vmatmul.mubr.f32.gmra.mrb[72].mxu1 %v14562_v4  ;;  %10021 = vmatprep.subr.bf16.mxu0 %v16558_v54 }
 0x320   :  { %8474 = vmatprep.mubr.msk.f32.mxu1 %vm2879_vm3, %v14570_v8  ;;  %v4393_v50 = vpop.f32.mrb[244].mxu1 }
 0x321   :  { %5513 = vmatmul.mubr.f32.gmra.mrb[88].mxu0 %v14731_v57  ;;  %v4394_v16 = vpop.f32.mrb[245].mxu1 }
 0x322   :  { %10023 = vmatpush1.bf16.msra.mxu0 %v10022_v0  ;;  %8466 = vmatprep.mubr.msk.f32.mxu0 %vm2879_vm3, %v14740_v38  ;;  %v14760_v0 = vld [vmem:[%s16410_s5 + $0xe8] sm:$0xff] }
 0x323   :  { %5671 = vmatmul.mubr.f32.gmra.mrb[74].mxu1 %v14585_v62  ;;  %10024 = vmatprep.subr.bf16.mxu0 %v16558_v54 }
 0x324   :  { %8475 = vmatprep.mubr.msk.f32.mxu1 %vm2879_vm3, %v14593_v52  ;;  %v4397_v45 = vpop.f32.mrb[246].mxu1 }
 0x325   :  { %5518 = vmatmul.mubr.f32.gmra.mrb[90].mxu0 %v14751_v25  ;;  %v4398_v6 = vpop.f32.mrb[247].mxu1 }
 0x326   :  { %10026 = vmatpush1.bf16.msra.mxu0 %v10025_v60  ;;  %8467 = vmatprep.mubr.msk.f32.mxu0 %vm2879_vm3, %v14760_v0  ;;  %v14780_v60 = vld [vmem:[%s16410_s5 + $0xf8] sm:$0xff] }
 0x327   :  { %5676 = vmatmul.mubr.f32.gmra.mrb[76].mxu1 %v14611_v7  ;;  %10027 = vmatprep.subr.bf16.mxu0 %v16558_v54 }
 0x328   :  { %8476 = vmatprep.mubr.msk.f32.mxu1 %vm2879_vm3, %v14619_v18  ;;  %v4401_v32 = vpop.f32.mrb[248].mxu1 }
 0x329   :  { %5523 = vmatmul.mubr.f32.gmra.mrb[92].mxu0 %v14771_v19  ;;  %v4402_v63 = vpop.f32.mrb[249].mxu1 }
 0x32a   :  { %10029 = vmatpush1.bf16.msra.mxu0 %v10028_v23  ;;  %8468 = vmatprep.mubr.msk.f32.mxu0 %vm2879_vm3, %v14780_v60  ;;  %v10434_v23 = vld [vmem:[%s16410_s5 + $0x8] sm:$0xff] }
 0x32b   :  { %5681 = vmatmul.mubr.f32.gmra.mrb[78].mxu1 %v14634_v5  ;;  %10030 = vmatprep.subr.bf16.mxu0 %v16558_v54 }
 0x32c   :  { %8477 = vmatprep.mubr.msk.f32.mxu1 %vm2879_vm3, %v14642_v17  ;;  %v4405_v55 = vpop.f32.mrb[250].mxu1 }
 0x32d   :  { %5528 = vmatmul.mubr.f32.gmra.mrb[94].mxu0 %v14791_v3  ;;  %v4406_v1 = vpop.f32.mrb[251].mxu1 }
 0x32e   :  { %10032 = vmatpush1.bf16.msra.mxu0 %v10031_v33  ;;  %8485 = vmatprep.mubr.msk.f32.mxu0 %vm2879_vm3, %v10434_v23 }
 0x32f   :  { %5686 = vmatmul.mubr.f32.gmra.mrb[80].mxu1 %v14659_v34  ;;  %10069 = vmatprep.subr.bf16.mxu0 %v16558_v54 }
 0x330   :  { %8478 = vmatprep.mubr.msk.f32.mxu1 %vm2879_vm3, %v14666_v44  ;;  %v4409_v42 = vpop.f32.mrb[252].mxu1 }
 0x331   :  { %5839 = vmatmul.mubr.f32.vlgmr.msra.gmra.mrb[96].mxu0 %v14469_v27  ;;  %v4410_v40 = vpop.f32.mrb[253].mxu1  ;;  %v14830_v27 = vpop.permute.xlu0 %4490 }
 0x332   :  { %8486 = vmatprep.mubr.msk.f32.mxu0 %vm2879_vm3, %v14477_v43 }
 0x333   :  { %5691 = vmatmul.mubr.f32.gmra.mrb[82].mxu1 %v14679_v35 }
 0x334   :  { %8479 = vmatprep.mubr.msk.f32.mxu1 %vm2879_vm3, %v14686_v56  ;;  %v4413_v29 = vpop.f32.mrb[254].mxu1 }
 0x335   :  { %5844 = vmatmul.mubr.f32.gmra.mrb[98].mxu0 %v14491_v37  ;;  %v4414_v21 = vpop.f32.mrb[255].mxu1 }
 0x336   :  { %8487 = vmatprep.mubr.msk.f32.mxu0 %vm2879_vm3, %v14500_v30 }
 0x337   :  { %5696 = vmatmul.mubr.f32.gmra.mrb[84].mxu1 %v14698_v10 }
 0x338   :  { %8480 = vmatprep.mubr.msk.f32.mxu1 %vm2879_vm3, %v14704_v41 }
 0x339   :  { %5849 = vmatmul.mubr.f32.gmra.mrb[100].mxu0 %v14513_v39  ;;  %v14839_v39 = vpop.permute.xlu1 %4495 }
 0x33a   :  { %8488 = vmatprep.mubr.msk.f32.mxu0 %vm2879_vm3, %v14521_v31 }
 0x33b   :  { %5701 = vmatmul.mubr.f32.gmra.mrb[86].mxu1 %v14714_v53 }
 0x33c   :  { %8481 = vmatprep.mubr.msk.f32.mxu1 %vm2879_vm3, %v14720_v48 }
 0x33d   :  { %5854 = vmatmul.mubr.f32.gmra.mrb[102].mxu0 %v14535_v22 }
 0x33e   :  { %8489 = vmatprep.mubr.msk.f32.mxu0 %vm2879_vm3, %v14544_v13 }
 0x33f   :  { %5706 = vmatmul.mubr.f32.gmra.mrb[88].mxu1 %v14731_v57 }
 0x340   :  { %8482 = vmatprep.mubr.msk.f32.mxu1 %vm2879_vm3, %v14740_v38 }
 0x341   :  { %5859 = vmatmul.mubr.f32.gmra.mrb[104].mxu0 %v14562_v4 }
 0x342   :  { %8490 = vmatprep.mubr.msk.f32.mxu0 %vm2879_vm3, %v14570_v8  ;;  %v14848_v8 = vld [vmem:[%s16411_s7 + $0x8] sm:$0xff] }
 0x343   :  { %5711 = vmatmul.mubr.f32.gmra.mrb[90].mxu1 %v14751_v25  ;;  %v4682_v43 = vpop.f32.mrb[0].mxu0 }
 0x344   :  { %8483 = vmatprep.mubr.msk.f32.mxu1 %vm2879_vm3, %v14760_v0  ;;  %v4683_v37 = vadd.f32 %v4682_v43, %v14830_v27  ;;  %v4684_v30 = vpop.f32.mrb[1].mxu0 }
 0x345   :  { %5864 = vmatmul.mubr.f32.gmra.mrb[106].mxu0 %v14585_v62 }
 0x346   :  { %8491 = vmatprep.mubr.msk.f32.mxu0 %vm2879_vm3, %v14593_v52  ;;  %v4777_v22 = vmul.f32 0.01, %v4683_v37  ;;  %vm4761_vm8 = vcmp.gt.f32.partialorder %v4683_v37, 0.0  ;;  %v14853_v52 = vpop.permute.xlu0 %4500 }
 0x347   :  { %5716 = vmatmul.mubr.f32.gmra.mrb[92].mxu1 %v14771_v19  ;;  %v4687_v31 = vpop.f32.mrb[2].mxu0 }
 0x348   :  { %8484 = vmatprep.mubr.msk.f32.mxu1 %vm2879_vm3, %v14780_v60  ;;  %v4688_v13 = vadd.f32 %v4687_v31, %v14839_v39  ;;  %v4689_v4 = vpop.f32.mrb[3].mxu0 }
 0x349   :  { %5869 = vmatmul.mubr.f32.gmra.mrb[108].mxu0 %v14611_v7  ;;  %v4793_v7 = vsel %vm4761_vm8, %v4683_v37, %v4777_v22 }
 0x34a   :  { %8492 = vmatprep.mubr.msk.f32.mxu0 %vm2879_vm3, %v14619_v18  ;;  %vm4762_vm11 = vcmp.gt.f32.partialorder %v4688_v13, 0.0  ;;  %v4778_v62 = vmul.f32 0.01, %v4688_v13  ;;  %v14861_v18 = vpop.permute.xlu1 %4505  ;;  %v14868_v47 = vpop.permute.xlu0 %4510 }
 0x34b   :  { %5721 = vmatmul.mubr.f32.gmra.mrb[94].mxu1 %v14791_v3  ;;  %v4692_v11 = vpop.f32.mrb[4].mxu0 }
 0x34c   :  { %8501 = vmatprep.mubr.msk.f32.mxu1 %vm2879_vm3, %v14848_v8  ;;  %v4794_v24 = vsel %vm4762_vm11, %v4688_v13, %v4778_v62  ;;  %v4693_v28 = vadd.f32 %v4692_v11, %v14853_v52  ;;  %v4694_v20 = vpop.f32.mrb[5].mxu0 }
 0x34d   :  { %5874 = vmatmul.mubr.f32.gmra.mrb[110].mxu0 %v14634_v5  ;;  %v10034_v12 = vpack.c.bf16 %v4794_v24, %v4793_v7 }
 0x34e   :  { %8493 = vmatprep.mubr.msk.f32.mxu0 %vm2879_vm3, %v14642_v17  ;;  %v4779_v14 = vmul.f32 0.01, %v4693_v28  ;;  %vm4763_vm1 = vcmp.gt.f32.partialorder %v4693_v28, 0.0  ;;  %v14874_v46 = vpop.permute.xlu1 %4515  ;;  %v14881_v26 = vpop.permute.xlu0 %4520 }
 0x34f   :  { %v4697_v49 = vpop.f32.mrb[6].mxu0  ;;  %10035 = vmatpush1.bf16.msra.mxu1 %v10034_v12 }
 0x350   :  { %v4698_v15 = vadd.f32 %v4697_v49, %v14861_v18  ;;  %v4699_v2 = vpop.f32.mrb[7].mxu0  ;;  %10036 = vmatprep.subr.bf16.mxu1 %v16558_v54  ;;  %v4795_v36 = vsel %vm4763_vm1, %v4693_v28, %v4779_v14 }
 0x351   :  { %5879 = vmatmul.mubr.f32.gmra.mrb[112].mxu0 %v14659_v34 }
 0x352   :  { %8494 = vmatprep.mubr.msk.f32.mxu0 %vm2879_vm3, %v14666_v44  ;;  %vm4764_vm14 = vcmp.gt.f32.partialorder %v4698_v15, 0.0  ;;  %v4780_v5 = vmul.f32 0.01, %v4698_v15  ;;  %v14887_v32 = vpop.permute.xlu1 %4525  ;;  %v14895_v40 = vpop.permute.xlu0 %4530 }
 0x353   :  { %v4702_v17 = vpop.f32.mrb[8].mxu0 }
 0x354   :  { %v4796_v61 = vsel %vm4764_vm14, %v4698_v15, %v4780_v5  ;;  %v4703_v59 = vadd.f32 %v4702_v17, %v14868_v47  ;;  %v4704_v33 = vpop.f32.mrb[9].mxu0 }
 0x355   :  { %5884 = vmatmul.mubr.f32.gmra.mrb[114].mxu0 %v14679_v35  ;;  %v10037_v34 = vpack.c.bf16 %v4796_v61, %v4795_v36 }
 0x356   :  { %8495 = vmatprep.mubr.msk.f32.mxu0 %vm2879_vm3, %v14686_v56  ;;  %v4781_v44 = vmul.f32 0.01, %v4703_v59  ;;  %vm4765_vm2 = vcmp.gt.f32.partialorder %v4703_v59, 0.0  ;;  %v14902_v4 = vpop.permute.xlu1 %4535  ;;  %v14910_v15 = vpop.permute.xlu0 %4540 }
 0x357   :  { %v4707_v58 = vpop.f32.mrb[10].mxu0  ;;  %10038 = vmatpush1.bf16.msra.mxu1 %v10037_v34 }
 0x358   :  { %v4708_v9 = vadd.f32 %v4707_v58, %v14874_v46  ;;  %v4709_v51 = vpop.f32.mrb[11].mxu0  ;;  %10039 = vmatprep.subr.bf16.mxu1 %v16558_v54  ;;  %v4797_v50 = vsel %vm4765_vm2, %v4703_v59, %v4781_v44 }
 0x359   :  { %5889 = vmatmul.mubr.f32.gmra.mrb[116].mxu0 %v14698_v10 }
 0x35a   :  { %8496 = vmatprep.mubr.msk.f32.mxu0 %vm2879_vm3, %v14704_v41  ;;  %vm4766_vm13 = vcmp.gt.f32.partialorder %v4708_v9, 0.0  ;;  %v4782_v35 = vmul.f32 0.01, %v4708_v9  ;;  %v14921_v44 = vpop.permute.xlu1 %4545 }
 0x35b   :  { %v4712_v56 = vpop.f32.mrb[12].mxu0  ;;  %16707 = vst [vmem:[#allocation19_spill] sm:$0xff] %v14921_v44 }
 0x35c   :  { %v4798_v16 = vsel %vm4766_vm13, %v4708_v9, %v4782_v35  ;;  %v4713_v45 = vadd.f32 %v4712_v56, %v14881_v26  ;;  %v4714_v6 = vpop.f32.mrb[13].mxu0 }
 0x35d   :  { %5894 = vmatmul.mubr.f32.gmra.mrb[118].mxu0 %v14714_v53  ;;  %v10040_v10 = vpack.c.bf16 %v4798_v16, %v4797_v50 }
 0x35e   :  { %8497 = vmatprep.mubr.msk.f32.mxu0 %vm2879_vm3, %v14720_v48  ;;  %v4783_v41 = vmul.f32 0.01, %v4713_v45  ;;  %vm4767_vm0 = vcmp.gt.f32.partialorder %v4713_v45, 0.0 }
 0x35f   :  { %v4717_v63 = vpop.f32.mrb[14].mxu0  ;;  %10041 = vmatpush1.bf16.msra.mxu1 %v10040_v10 }
 0x360   :  { %v4718_v55 = vadd.f32 %v4717_v63, %v14887_v32  ;;  %v4719_v1 = vpop.f32.mrb[15].mxu0  ;;  %10042 = vmatprep.subr.bf16.mxu1 %v16558_v54  ;;  %v4875_v23 = vpop.f32.mrb[0].mxu1  ;;  %v4799_v21 = vsel %vm4767_vm0, %v4713_v45, %v4783_v41 }
 0x361   :  { %5899 = vmatmul.mubr.f32.gmra.mrb[120].mxu0 %v14731_v57  ;;  %v4876_v48 = vadd.f32 %v4875_v23, %v14830_v27  ;;  %v4877_v42 = vpop.f32.mrb[1].mxu1  ;;  %v14926_v63 = vpop.permute.xlu0 %4550 }
 0x362   :  { %8498 = vmatprep.mubr.msk.f32.mxu0 %vm2879_vm3, %v14740_v38  ;;  %vm4768_vm10 = vcmp.gt.f32.partialorder %v4718_v55, 0.0  ;;  %v4784_v53 = vmul.f32 0.01, %v4718_v55 }
 0x363   :  { %v4722_v29 = vpop.f32.mrb[16].mxu0  ;;  %v4970_v31 = vmul.f32 0.01, %v4876_v48  ;;  %vm4954_vm15 = vcmp.gt.f32.partialorder %v4876_v48, 0.0 }
 0x364   :  { %v4800_v43 = vsel %vm4768_vm10, %v4718_v55, %v4784_v53  ;;  %v4723_v57 = vadd.f32 %v4722_v29, %v14895_v40  ;;  %v4724_v37 = vpop.f32.mrb[17].mxu0  ;;  %v4880_v22 = vpop.f32.mrb[2].mxu1 }
 0x365   :  { %5904 = vmatmul.mubr.f32.gmra.mrb[122].mxu0 %v14751_v25  ;;  %v10043_v30 = vpack.c.bf16 %v4800_v43, %v4799_v21  ;;  %v4881_v38 = vadd.f32 %v4880_v22, %v14839_v39  ;;  %v4882_v13 = vpop.f32.mrb[3].mxu1  ;;  %v14934_v37 = vpop.permute.xlu1 %4555 }
 0x366   :  { %8499 = vmatprep.mubr.msk.f32.mxu0 %vm2879_vm3, %v14760_v0  ;;  %v4785_v11 = vmul.f32 0.01, %v4723_v57  ;;  %vm4769_vm7 = vcmp.gt.f32.partialorder %v4723_v57, 0.0  ;;  %v4986_v0 = vsel %vm4954_vm15, %v4876_v48, %v4970_v31 }
 0x367   :  { %v4727_v62 = vpop.f32.mrb[18].mxu0  ;;  %10044 = vmatpush1.bf16.msra.mxu1 %v10043_v30  ;;  %vm4955_vm4 = vcmp.gt.f32.partialorder %v4881_v38, 0.0  ;;  %v4971_v25 = vmul.f32 0.01, %v4881_v38 }
 0x368   :  { %v4728_v7 = vadd.f32 %v4727_v62, %v14902_v4  ;;  %v4729_v24 = vpop.f32.mrb[19].mxu0  ;;  %10045 = vmatprep.subr.bf16.mxu1 %v16558_v54  ;;  %v4885_v28 = vpop.f32.mrb[4].mxu1  ;;  %v4801_v5 = vsel %vm4769_vm7, %v4723_v57, %v4785_v11 }
 0x369   :  { %5909 = vmatmul.mubr.f32.gmra.mrb[124].mxu0 %v14771_v19  ;;  %v4987_v12 = vsel %vm4955_vm4, %v4881_v38, %v4971_v25  ;;  %v4886_v49 = vadd.f32 %v4885_v28, %v14853_v52  ;;  %v4887_v14 = vpop.f32.mrb[5].mxu1  ;;  %v14939_v28 = vpop.permute.xlu0 %4560 }
 0x36a   :  { %8500 = vmatprep.mubr.msk.f32.mxu0 %vm2879_vm3, %v14780_v60  ;;  %vm4770_vm12 = vcmp.gt.f32.partialorder %v4728_v7, 0.0  ;;  %v4786_v20 = vmul.f32 0.01, %v4728_v7  ;;  %v14912_v2 = vpack.c.bf16 %v4987_v12, %v4986_v0 }
 0x36b   :  { %v4732_v19 = vpop.f32.mrb[20].mxu0  ;;  %v4972_v60 = vmul.f32 0.01, %v4886_v49  ;;  %vm4956_vm6 = vcmp.gt.f32.partialorder %v4886_v49, 0.0 }
 0x36c   :  { %v4802_v17 = vsel %vm4770_vm12, %v4728_v7, %v4786_v20  ;;  %v4733_v36 = vadd.f32 %v4732_v19, %v14910_v15  ;;  %v4734_v61 = vpop.f32.mrb[21].mxu0  ;;  %v4890_v33 = vpop.f32.mrb[6].mxu1  ;;  %10071 = vmatpush1.bf16.msra.mxu0 %v14912_v2 }
 0x36d   :  { %5914 = vmatmul.mubr.f32.gmra.mrb[126].mxu0 %v14791_v3  ;;  %v10046_v59 = vpack.c.bf16 %v4802_v17, %v4801_v5  ;;  %v4891_v34 = vadd.f32 %v4890_v33, %v14861_v18  ;;  %v4892_v58 = vpop.f32.mrb[7].mxu1  ;;  %10072 = vmatprep.subr.bf16.mxu0 %v16558_v54  ;;  %v14947_v33 = vpop.permute.xlu1 %4565 }
 0x36e   :  { %8517 = vmatprep.mubr.msk.f32.mxu0 %vm2879_vm3, %v14848_v8  ;;  %v4787_v3 = vmul.f32 0.01, %v4733_v36  ;;  %vm4771_vm5 = vcmp.gt.f32.partialorder %v4733_v36, 0.0  ;;  %v4988_v8 = vsel %vm4956_vm6, %v4886_v49, %v4972_v60 }
 0x36f   :  { %v4737_v9 = vpop.f32.mrb[22].mxu0  ;;  %10047 = vmatpush1.bf16.msra.mxu1 %v10046_v59  ;;  %vm4957_vm9 = vcmp.gt.f32.partialorder %v4891_v34, 0.0  ;;  %v4973_v35 = vmul.f32 0.01, %v4891_v34 }
 0x370   :  { %v4738_v51 = vadd.f32 %v4737_v9, %v14921_v44  ;;  %v4739_v56 = vpop.f32.mrb[23].mxu0  ;;  %10048 = vmatprep.subr.bf16.mxu1 %v16558_v54  ;;  %v4803_v1 = vsel %vm4771_vm5, %v4733_v36, %v4787_v3 }
 0x371   :  { %v4895_v50 = vpop.f32.mrb[8].mxu1  ;;  %v4989_v45 = vsel %vm4957_vm9, %v4891_v34, %v4973_v35 }
 0x372   :  { %vm4772_vm8 = vcmp.gt.f32.partialorder %v4738_v51, 0.0  ;;  %v4788_v16 = vmul.f32 0.01, %v4738_v51  ;;  %v4896_v6 = vadd.f32 %v4895_v50, %v14868_v47  ;;  %v4897_v10 = vpop.f32.mrb[9].mxu1  ;;  %v14928_v41 = vpack.c.bf16 %v4989_v45, %v4988_v8 }
 0x373   :  { %v4742_v55 = vpop.f32.mrb[24].mxu0 }
 0x374   :  { %v4804_v23 = vsel %vm4772_vm8, %v4738_v51, %v4788_v16  ;;  %v4743_v53 = vadd.f32 %v4742_v55, %v14926_v63  ;;  %v4744_v48 = vpop.f32.mrb[25].mxu0  ;;  %v4974_v29 = vmul.f32 0.01, %v4896_v6  ;;  %10074 = vmatpush1.bf16.msra.mxu0 %v14928_v41  ;;  %vm4958_vm11 = vcmp.gt.f32.partialorder %v4896_v6, 0.0 }
 0x375   :  { %v10049_v42 = vpack.c.bf16 %v4804_v23, %v4803_v1  ;;  %v4900_v21 = vpop.f32.mrb[10].mxu1  ;;  %10075 = vmatprep.subr.bf16.mxu0 %v16558_v54 }
 0x376   :  { %v4901_v43 = vadd.f32 %v4900_v21, %v14874_v46  ;;  %v4902_v57 = vpop.f32.mrb[11].mxu1  ;;  %v4789_v31 = vmul.f32 0.01, %v4743_v53  ;;  %vm4773_vm14 = vcmp.gt.f32.partialorder %v4743_v53, 0.0  ;;  %v4990_v62 = vsel %vm4958_vm11, %v4896_v6, %v4974_v29 }
 0x377   :  { %v4747_v30 = vpop.f32.mrb[26].mxu0  ;;  %10050 = vmatpush1.bf16.msra.mxu1 %v10049_v42 }
 0x378   :  { %v4748_v22 = vadd.f32 %v4747_v30, %v14934_v37  ;;  %vm4959_vm1 = vcmp.gt.f32.partialorder %v4901_v43, 0.0  ;;  %v4975_v38 = vmul.f32 0.01, %v4901_v43  ;;  %v4749_v13 = vpop.f32.mrb[27].mxu0  ;;  %10051 = vmatprep.subr.bf16.mxu1 %v16558_v54  ;;  %v4805_v49 = vsel %vm4773_vm14, %v4743_v53, %v4789_v31 }
 0x379   :  { %v4905_v11 = vpop.f32.mrb[12].mxu1 }
 0x37a   :  { %vm4774_vm2 = vcmp.gt.f32.partialorder %v4748_v22, 0.0  ;;  %v4790_v7 = vmul.f32 0.01, %v4748_v22  ;;  %v4991_v25 = vsel %vm4959_vm1, %v4901_v43, %v4975_v38  ;;  %v4906_v24 = vadd.f32 %v4905_v11, %v14881_v26  ;;  %v4907_v0 = vpop.f32.mrb[13].mxu1 }
 0x37b   :  { %v14941_v20 = vpack.c.bf16 %v4991_v25, %v4990_v62  ;;  %v4752_v12 = vpop.f32.mrb[28].mxu0 }
 0x37c   :  { %v4806_v14 = vsel %vm4774_vm2, %v4748_v22, %v4790_v7  ;;  %v4753_v19 = vadd.f32 %v4752_v12, %v14939_v28  ;;  %v4754_v5 = vpop.f32.mrb[29].mxu0  ;;  %v4976_v36 = vmul.f32 0.01, %v4906_v24  ;;  %vm4960_vm13 = vcmp.gt.f32.partialorder %v4906_v24, 0.0 }
 0x37d   :  { %v10052_v17 = vpack.c.bf16 %v4806_v14, %v4805_v49  ;;  %v4910_v61 = vpop.f32.mrb[14].mxu1  ;;  %10077 = vmatpush1.bf16.msra.mxu0 %v14941_v20 }
 0x37e   :  { %v4911_v59 = vadd.f32 %v4910_v61, %v14887_v32  ;;  %v4912_v60 = vpop.f32.mrb[15].mxu1  ;;  %10078 = vmatprep.subr.bf16.mxu0 %v16558_v54  ;;  %v4791_v58 = vmul.f32 0.01, %v4753_v19  ;;  %vm4775_vm10 = vcmp.gt.f32.partialorder %v4753_v19, 0.0  ;;  %v4992_v35 = vsel %vm4960_vm13, %v4906_v24, %v4976_v36 }
 0x37f   :  { %v4757_v34 = vpop.f32.mrb[30].mxu0  ;;  %10053 = vmatpush1.bf16.msra.mxu1 %v10052_v17 }
 0x380   :  { %v4758_v9 = vadd.f32 %v4757_v34, %v14947_v33  ;;  %vm4961_vm0 = vcmp.gt.f32.partialorder %v4911_v59, 0.0  ;;  %v4977_v3 = vmul.f32 0.01, %v4911_v59  ;;  %v4759_v51 = vpop.f32.mrb[31].mxu0  ;;  %10054 = vmatprep.subr.bf16.mxu1 %v16558_v54  ;;  %v4807_v55 = vsel %vm4775_vm10, %v4753_v19, %v4791_v58 }
 0x381   :  { %v4915_v56 = vpop.f32.mrb[16].mxu1 }
 0x382   :  { %vm4776_vm15 = vcmp.gt.f32.partialorder %v4758_v9, 0.0  ;;  %v4792_v8 = vmul.f32 0.01, %v4758_v9  ;;  %v4993_v50 = vsel %vm4961_vm0, %v4911_v59, %v4977_v3  ;;  %v4916_v16 = vadd.f32 %v4915_v56, %v14895_v40  ;;  %v4917_v45 = vpop.f32.mrb[17].mxu1 }
 0x383   :  { %v14952_v6 = vpack.c.bf16 %v4993_v50, %v4992_v35 }
 0x384   :  { %v5068_v10 = vpop.f32.mrb[32].mxu0  ;;  %v4808_v1 = vsel %vm4776_vm15, %v4758_v9, %v4792_v8  ;;  %v4978_v42 = vmul.f32 0.01, %v4916_v16  ;;  %vm4962_vm4 = vcmp.gt.f32.partialorder %v4916_v16, 0.0 }
 0x385   :  { %v5069_v23 = vadd.f32 %v5068_v10, %v14830_v27  ;;  %v5070_v53 = vpop.f32.mrb[33].mxu0  ;;  %v10055_v48 = vpack.c.bf16 %v4808_v1, %v4807_v55  ;;  %10080 = vmatpush1.bf16.msra.mxu0 %v14952_v6 }
 0x386   :  { %v4920_v29 = vpop.f32.mrb[18].mxu1  ;;  %10081 = vmatprep.subr.bf16.mxu0 %v16558_v54  ;;  %v4994_v13 = vsel %vm4962_vm4, %v4916_v16, %v4978_v42 }
 0x387   :  { %v4921_v21 = vadd.f32 %v4920_v29, %v14902_v4  ;;  %v4922_v43 = vpop.f32.mrb[19].mxu1  ;;  %10056 = vmatpush1.bf16.msra.mxu1 %v10055_v48  ;;  %v5163_v30 = vmul.f32 0.01, %v5069_v23  ;;  %vm5147_vm12 = vcmp.gt.f32.partialorder %v5069_v23, 0.0 }
 0x388   :  { %v5073_v57 = vpop.f32.mrb[34].mxu0  ;;  %10057 = vmatprep.subr.bf16.mxu1 %v16558_v54 }
 0x389   :  { %vm4963_vm7 = vcmp.gt.f32.partialorder %v4921_v21, 0.0  ;;  %v4979_v31 = vmul.f32 0.01, %v4921_v21  ;;  %v5074_v22 = vadd.f32 %v5073_v57, %v14839_v39  ;;  %v5075_v38 = vpop.f32.mrb[35].mxu0  ;;  %v5179_v49 = vsel %vm5147_vm12, %v5069_v23, %v5163_v30  ;;  %v14988_v57 = vld [vmem:[%s16411_s7 + $0x18] sm:$0xff] }
 0x38a   :  { %v4925_v62 = vpop.f32.mrb[20].mxu1 }
 0x38b   :  { %v4995_v11 = vsel %vm4963_vm7, %v4921_v21, %v4979_v31  ;;  %vm5148_vm6 = vcmp.gt.f32.partialorder %v5074_v22, 0.0  ;;  %v5164_v7 = vmul.f32 0.01, %v5074_v22  ;;  %v4926_v25 = vadd.f32 %v4925_v62, %v14910_v15  ;;  %v4927_v24 = vpop.f32.mrb[21].mxu1  ;;  %10059 = vmatpush1.bf16.msra.mxu1 %v14912_v2 }
 0x38c   :  { %v10082_v0 = vpack.c.bf16 %v4995_v11, %v4994_v13  ;;  %v5078_v12 = vpop.f32.mrb[36].mxu0  ;;  %10060 = vmatprep.subr.bf16.mxu1 %v16558_v54 }
 0x38d   :  { %v5180_v14 = vsel %vm5148_vm6, %v5074_v22, %v5164_v7  ;;  %v5079_v19 = vadd.f32 %v5078_v12, %v14853_v52  ;;  %v5080_v5 = vpop.f32.mrb[37].mxu0  ;;  %v4980_v36 = vmul.f32 0.01, %v4926_v25  ;;  %vm4964_vm9 = vcmp.gt.f32.partialorder %v4926_v25, 0.0  ;;  %v15000_v12 = vld [vmem:[%s16411_s7 + $0x10] sm:$0xff] }
 0x38e   :  { %v14964_v17 = vpack.c.bf16 %v5180_v14, %v5179_v49  ;;  %v4930_v61 = vpop.f32.mrb[22].mxu1  ;;  %10083 = vmatpush1.bf16.msra.mxu0 %v10082_v0 }
 0x38f   :  { %v4931_v59 = vadd.f32 %v4930_v61, %v14921_v44  ;;  %v4932_v60 = vpop.f32.mrb[23].mxu1  ;;  %10084 = vmatprep.subr.bf16.mxu0 %v16558_v54  ;;  %10062 = vmatpush1.bf16.msra.mxu1 %v14928_v41  ;;  %v5165_v2 = vmul.f32 0.01, %v5079_v19  ;;  %v4996_v51 = vsel %vm4964_vm9, %v4926_v25, %v4980_v36  ;;  %vm5149_vm8 = vcmp.gt.f32.partialorder %v5079_v19, 0.0  ;;  %v15007_v36 = vld [vmem:[%s16411_s7 + $0x28] sm:$0xff] }
 0x390   :  { %v5083_v34 = vpop.f32.mrb[38].mxu0  ;;  %10063 = vmatprep.subr.bf16.mxu1 %v16558_v54 }
 0x391   :  { %vm4965_vm5 = vcmp.gt.f32.partialorder %v4931_v59, 0.0  ;;  %v4981_v58 = vmul.f32 0.01, %v4931_v59  ;;  %v5084_v9 = vadd.f32 %v5083_v34, %v14861_v18  ;;  %v5085_v3 = vpop.f32.mrb[39].mxu0  ;;  %v5181_v41 = vsel %vm5149_vm8, %v5079_v19, %v5165_v2 }
 0x392   :  { %v4935_v35 = vpop.f32.mrb[24].mxu1  ;;  %v15025_v3 = vld [vmem:[%s16411_s7 + $0x38] sm:$0xff] }
 0x393   :  { %v4997_v56 = vsel %vm4965_vm5, %v4931_v59, %v4981_v58  ;;  %vm5150_vm11 = vcmp.gt.f32.partialorder %v5084_v9, 0.0  ;;  %v5166_v8 = vmul.f32 0.01, %v5084_v9  ;;  %v4936_v50 = vadd.f32 %v4935_v35, %v14926_v63  ;;  %v4937_v16 = vpop.f32.mrb[25].mxu1  ;;  %10065 = vmatpush1.bf16.msra.mxu1 %v14941_v20  ;;  %v14983_v20 = vld [vmem:[%s16411_s7] sm:$0xff] }
 0x394   :  { %v10085_v45 = vpack.c.bf16 %v4997_v56, %v4996_v51  ;;  %v5088_v10 = vpop.f32.mrb[40].mxu0  ;;  %10066 = vmatprep.subr.bf16.mxu1 %v16558_v54 }
 0x395   :  { %v5182_v55 = vsel %vm5150_vm11, %v5084_v9, %v5166_v8  ;;  %v5089_v1 = vadd.f32 %v5088_v10, %v14868_v47  ;;  %v5090_v23 = vpop.f32.mrb[41].mxu0  ;;  %v4982_v48 = vmul.f32 0.01, %v4936_v50  ;;  %vm4966_vm1 = vcmp.gt.f32.partialorder %v4936_v50, 0.0  ;;  %v15020_v9 = vld [vmem:[%s16411_s7 + $0x20] sm:$0xff] }
 0x396   :  { %v14975_v53 = vpack.c.bf16 %v5182_v55, %v5181_v41  ;;  %v4940_v42 = vpop.f32.mrb[26].mxu1  ;;  %10086 = vmatpush1.bf16.msra.mxu0 %v10085_v45 }
 0x397   :  { %v4941_v29 = vadd.f32 %v4940_v42, %v14934_v37  ;;  %v4942_v21 = vpop.f32.mrb[27].mxu1  ;;  %10087 = vmatprep.subr.bf16.mxu0 %v16558_v54  ;;  %10068 = vmatpush1.bf16.msra.mxu1 %v14952_v6  ;;  %v5167_v30 = vmul.f32 0.01, %v5089_v1  ;;  %v4998_v13 = vsel %vm4966_vm1, %v4936_v50, %v4982_v48  ;;  %vm5151_vm2 = vcmp.gt.f32.partialorder %v5089_v1, 0.0  ;;  %v15038_v48 = vld [vmem:[%s16411_s7 + $0x30] sm:$0xff] }
 0x398   :  { %v5093_v43 = vpop.f32.mrb[42].mxu0  ;;  %10105 = vmatprep.subr.bf16.mxu1 %v16558_v54 }
 0x399   :  { %vm4967_vm14 = vcmp.gt.f32.partialorder %v4941_v29, 0.0  ;;  %v4983_v31 = vmul.f32 0.01, %v4941_v29  ;;  %v5094_v22 = vadd.f32 %v5093_v43, %v14874_v46  ;;  %v5095_v38 = vpop.f32.mrb[43].mxu0  ;;  %v5183_v49 = vsel %vm5151_vm2, %v5089_v1, %v5167_v30  ;;  %v15045_v30 = vld [vmem:[%s16411_s7 + $0x48] sm:$0xff] }
 0x39a   :  { %v4945_v6 = vpop.f32.mrb[28].mxu1  ;;  %6120 = vmatmul.mubr.f32.vlgmr.msra.gmra.mrb[96].mxu1 %v14983_v20 }
 0x39b   :  { %v4999_v62 = vsel %vm4967_vm14, %v4941_v29, %v4983_v31  ;;  %vm5152_vm13 = vcmp.gt.f32.partialorder %v5094_v22, 0.0  ;;  %v5168_v11 = vmul.f32 0.01, %v5094_v22  ;;  %v4946_v7 = vadd.f32 %v4945_v6, %v14939_v28  ;;  %v4947_v25 = vpop.f32.mrb[29].mxu1  ;;  %10107 = vmatpush1.bf16.msra.mxu1 %v14964_v17  ;;  %8502 = vmatprep.mubr.msk.f32.mxu1 %vm2879_vm3, %v14988_v57 }
 0x39c   :  { %v10088_v24 = vpack.c.bf16 %v4999_v62, %v4998_v13  ;;  %v5098_v0 = vpop.f32.mrb[44].mxu0  ;;  %10108 = vmatprep.subr.bf16.mxu1 %v16558_v54 }
 0x39d   :  { %v5184_v14 = vsel %vm5152_vm13, %v5094_v22, %v5168_v11  ;;  %v5099_v19 = vadd.f32 %v5098_v0, %v14881_v26  ;;  %v5100_v5 = vpop.f32.mrb[45].mxu0  ;;  %v4984_v59 = vmul.f32 0.01, %v4946_v7  ;;  %vm4968_vm0 = vcmp.gt.f32.partialorder %v4946_v7, 0.0  ;;  %v15058_v11 = vld [vmem:[%s16411_s7 + $0x40] sm:$0xff] }
 0x39e   :  { %v15009_v61 = vpack.c.bf16 %v5184_v14, %v5183_v49  ;;  %v4950_v60 = vpop.f32.mrb[30].mxu1  ;;  %10089 = vmatpush1.bf16.msra.mxu0 %v10088_v24  ;;  %6125 = vmatmul.mubr.f32.gmra.mrb[98].mxu1 %v15000_v12 }
 0x39f   :  { %v4951_v34 = vadd.f32 %v4950_v60, %v14947_v33  ;;  %v4952_v2 = vpop.f32.mrb[31].mxu1  ;;  %10090 = vmatprep.subr.bf16.mxu0 %v16558_v54  ;;  %10110 = vmatpush1.bf16.msra.mxu1 %v14975_v53  ;;  %v5169_v51 = vmul.f32 0.01, %v5099_v19  ;;  %v5000_v50 = vsel %vm4968_vm0, %v4946_v7, %v4984_v59  ;;  %vm5153_vm15 = vcmp.gt.f32.partialorder %v5099_v19, 0.0  ;;  %v15063_v7 = vld [vmem:[%s16411_s7 + $0x58] sm:$0xff] }
 0x3a0   :  { %v5103_v58 = vpop.f32.mrb[46].mxu0  ;;  %8503 = vmatprep.mubr.msk.f32.mxu1 %vm2879_vm3, %v15007_v36  ;;  %10111 = vmatprep.subr.bf16.mxu1 %v16558_v54 }
 0x3a1   :  { %vm4969_vm10 = vcmp.gt.f32.partialorder %v4951_v34, 0.0  ;;  %v4985_v35 = vmul.f32 0.01, %v4951_v34  ;;  %v5104_v56 = vadd.f32 %v5103_v58, %v14887_v32  ;;  %v5105_v8 = vpop.f32.mrb[47].mxu0  ;;  %v5185_v42 = vsel %vm5153_vm15, %v5099_v19, %v5169_v51 }
 0x3a2   :  { %v5261_v16 = vpop.f32.mrb[32].mxu1  ;;  %6130 = vmatmul.mubr.f32.gmra.mrb[100].mxu1 %v15020_v9 }
 0x3a3   :  { %v5001_v45 = vsel %vm4969_vm10, %v4951_v34, %v4985_v35  ;;  %vm5154_vm4 = vcmp.gt.f32.partialorder %v5104_v56, 0.0  ;;  %v5170_v10 = vmul.f32 0.01, %v5104_v56  ;;  %v5262_v41 = vadd.f32 %v5261_v16, %v14830_v27  ;;  %v5263_v55 = vpop.f32.mrb[33].mxu1  ;;  %10113 = vmatpush1.bf16.msra.mxu1 %v15009_v61  ;;  %8504 = vmatprep.mubr.msk.f32.mxu1 %vm2879_vm3, %v15025_v3 }
 0x3a4   :  { %v10091_v1 = vpack.c.bf16 %v5001_v45, %v5000_v50  ;;  %v5108_v23 = vpop.f32.mrb[48].mxu0  ;;  %10114 = vmatprep.subr.bf16.mxu1 %v16558_v54  ;;  %v15085_v50 = vld [vmem:[%s16411_s7 + $0x68] sm:$0xff] }
 0x3a5   :  { %v5186_v29 = vsel %vm5154_vm4, %v5104_v56, %v5170_v10  ;;  %v5109_v21 = vadd.f32 %v5108_v23, %v14895_v40  ;;  %v5110_v43 = vpop.f32.mrb[49].mxu0  ;;  %v5356_v22 = vmul.f32 0.01, %v5262_v41  ;;  %vm5340_vm7 = vcmp.gt.f32.partialorder %v5262_v41, 0.0  ;;  %v15096_v23 = vld [vmem:[%s16411_s7 + $0x60] sm:$0xff] }
 0x3a6   :  { %v15047_v31 = vpack.c.bf16 %v5186_v29, %v5185_v42  ;;  %v5266_v38 = vpop.f32.mrb[34].mxu1  ;;  %10092 = vmatpush1.bf16.msra.mxu0 %v10091_v1  ;;  %6135 = vmatmul.mubr.f32.gmra.mrb[102].mxu1 %v15038_v48 }
 0x3a7   :  { %v5267_v13 = vadd.f32 %v5266_v38, %v14839_v39  ;;  %v5268_v6 = vpop.f32.mrb[35].mxu1  ;;  %10093 = vmatprep.subr.bf16.mxu0 %v16558_v54  ;;  %8505 = vmatprep.mubr.msk.f32.mxu1 %vm2879_vm3, %v15045_v30  ;;  %v5171_v25 = vmul.f32 0.01, %v5109_v21  ;;  %vm5155_vm6 = vcmp.gt.f32.partialorder %v5109_v21, 0.0  ;;  %v5372_v14 = vsel %vm5340_vm7, %v5262_v41, %v5356_v22 }
 0x3a8   :  { %v5113_v62 = vpop.f32.mrb[50].mxu0  ;;  %10116 = vmatpush1.bf16.msra.mxu1 %v15047_v31 }
 0x3a9   :  { %v5114_v24 = vadd.f32 %v5113_v62, %v14902_v4  ;;  %vm5341_vm12 = vcmp.gt.f32.partialorder %v5267_v13, 0.0  ;;  %v5357_v0 = vmul.f32 0.01, %v5267_v13  ;;  %v5115_v49 = vpop.f32.mrb[51].mxu0  ;;  %10117 = vmatprep.subr.bf16.mxu1 %v16558_v54  ;;  %v5187_v51 = vsel %vm5155_vm6, %v5109_v21, %v5171_v25 }
 0x3aa   :  { %v5271_v19 = vpop.f32.mrb[36].mxu1  ;;  %10095 = vmatpush1.bf16.msra.mxu0 %v14964_v17  ;;  %6140 = vmatmul.mubr.f32.gmra.mrb[104].mxu1 %v15058_v11  ;;  %v15079_v17 = vld [vmem:[%s16411_s7 + $0x50] sm:$0xff] }
 0x3ab   :  { %vm5156_vm9 = vcmp.gt.f32.partialorder %v5114_v24, 0.0  ;;  %v5172_v5 = vmul.f32 0.01, %v5114_v24  ;;  %v5373_v59 = vsel %vm5341_vm12, %v5267_v13, %v5357_v0  ;;  %v5272_v60 = vadd.f32 %v5271_v19, %v14853_v52  ;;  %v5273_v34 = vpop.f32.mrb[37].mxu1  ;;  %10096 = vmatprep.subr.bf16.mxu0 %v16558_v54  ;;  %8506 = vmatprep.mubr.msk.f32.mxu1 %vm2879_vm3, %v15063_v7 }
 0x3ac   :  { %v15072_v2 = vpack.c.bf16 %v5373_v59, %v5372_v14  ;;  %v5118_v58 = vpop.f32.mrb[52].mxu0  ;;  %v15123_v59 = vld [vmem:[%s16411_s7 + $0x88] sm:$0xff] }
 0x3ad   :  { %v5188_v35 = vsel %vm5156_vm9, %v5114_v24, %v5172_v5  ;;  %v5119_v56 = vadd.f32 %v5118_v58, %v14910_v15  ;;  %v5120_v8 = vpop.f32.mrb[53].mxu0  ;;  %v5358_v45 = vmul.f32 0.01, %v5272_v60  ;;  %vm5342_vm5 = vcmp.gt.f32.partialorder %v5272_v60, 0.0 }
 0x3ae   :  { %v10118_v16 = vpack.c.bf16 %v5188_v35, %v5187_v51  ;;  %v5276_v10 = vpop.f32.mrb[38].mxu1  ;;  %10098 = vmatpush1.bf16.msra.mxu0 %v14975_v53  ;;  %6145 = vmatmul.mubr.f32.gmra.mrb[106].mxu1 %v15079_v17  ;;  %v15101_v53 = vld [vmem:[%s16411_s7 + $0x78] sm:$0xff]  ;;  %v15134_v8 = vld [vmem:[%s16411_s7 + $0x80] sm:$0xff] }
 0x3af   :  { %v5277_v41 = vadd.f32 %v5276_v10, %v14861_v18  ;;  %v5278_v55 = vpop.f32.mrb[39].mxu1  ;;  %10099 = vmatprep.subr.bf16.mxu0 %v16558_v54  ;;  %8507 = vmatprep.mubr.msk.f32.mxu1 %vm2879_vm3, %v15085_v50  ;;  %16708 = vst [vmem:[#allocation4_spill] sm:$0xff] %v15101_v53  ;;  %v5173_v42 = vmul.f32 0.01, %v5119_v56  ;;  %vm5157_vm11 = vcmp.gt.f32.partialorder %v5119_v56, 0.0  ;;  %v5374_v22 = vsel %vm5342_vm5, %v5272_v60, %v5358_v45 }
 0x3b0   :  { %v5123_v1 = vpop.f32.mrb[54].mxu0  ;;  %10119 = vmatpush1.bf16.msra.mxu1 %v10118_v16  ;;  %16709 = vst [vmem:[#allocation2_spill] sm:$0xff] %v15134_v8 }
 0x3b1   :  { %v5124_v29 = vadd.f32 %v5123_v1, %v14921_v44  ;;  %vm5343_vm8 = vcmp.gt.f32.partialorder %v5277_v41, 0.0  ;;  %v5359_v21 = vmul.f32 0.01, %v5277_v41  ;;  %v5125_v43 = vpop.f32.mrb[55].mxu0  ;;  %10120 = vmatprep.subr.bf16.mxu1 %v16558_v54  ;;  %v5189_v49 = vsel %vm5157_vm11, %v5119_v56, %v5173_v42 }
 0x3b2   :  { %v5281_v38 = vpop.f32.mrb[40].mxu1  ;;  %10101 = vmatpush1.bf16.msra.mxu0 %v15009_v61  ;;  %6150 = vmatmul.mubr.f32.gmra.mrb[108].mxu1 %v15096_v23  ;;  %v15117_v61 = vld [vmem:[%s16411_s7 + $0x70] sm:$0xff] }
 0x3b3   :  { %vm5158_vm1 = vcmp.gt.f32.partialorder %v5124_v29, 0.0  ;;  %v5174_v13 = vmul.f32 0.01, %v5124_v29  ;;  %v5375_v6 = vsel %vm5343_vm8, %v5277_v41, %v5359_v21  ;;  %v5282_v62 = vadd.f32 %v5281_v38, %v14868_v47  ;;  %v5283_v25 = vpop.f32.mrb[41].mxu1  ;;  %10102 = vmatprep.subr.bf16.mxu0 %v16558_v54  ;;  %8508 = vmatprep.mubr.msk.f32.mxu1 %vm2879_vm3, %v15101_v53 }
 0x3b4   :  { %v15110_v24 = vpack.c.bf16 %v5375_v6, %v5374_v22  ;;  %v5128_v0 = vpop.f32.mrb[56].mxu0 }
 0x3b5   :  { %v5190_v14 = vsel %vm5158_vm1, %v5124_v29, %v5174_v13  ;;  %v5129_v19 = vadd.f32 %v5128_v0, %v14926_v63  ;;  %v5130_v5 = vpop.f32.mrb[57].mxu0  ;;  %v5360_v34 = vmul.f32 0.01, %v5282_v62  ;;  %vm5344_vm14 = vcmp.gt.f32.partialorder %v5282_v62, 0.0  ;;  %v15158_v13 = vld [vmem:[%s16411_s7 + $0x90] sm:$0xff] }
 0x3b6   :  { %v10121_v60 = vpack.c.bf16 %v5190_v14, %v5189_v49  ;;  %v5286_v58 = vpop.f32.mrb[42].mxu1  ;;  %10104 = vmatpush1.bf16.msra.mxu0 %v15047_v31  ;;  %6155 = vmatmul.mubr.f32.gmra.mrb[110].mxu1 %v15117_v61  ;;  %v15139_v31 = vld [vmem:[%s16411_s7 + $0x98] sm:$0xff]  ;;  %v15166_v49 = vld [vmem:[%s16411_s7 + $0xa8] sm:$0xff] }
 0x3b7   :  { %v5287_v51 = vadd.f32 %v5286_v58, %v14874_v46  ;;  %v5288_v35 = vpop.f32.mrb[43].mxu1  ;;  %10141 = vmatprep.subr.bf16.mxu0 %v16558_v54  ;;  %8509 = vmatprep.mubr.msk.f32.mxu1 %vm2879_vm3, %v15123_v59  ;;  %16710 = vst [vmem:[#allocation21_spill] sm:$0xff] %v15139_v31  ;;  %v5175_v16 = vmul.f32 0.01, %v5129_v19  ;;  %vm5159_vm13 = vcmp.gt.f32.partialorder %v5129_v19, 0.0  ;;  %v5376_v55 = vsel %vm5344_vm14, %v5282_v62, %v5360_v34 }
 0x3b8   :  { %v5133_v56 = vpop.f32.mrb[58].mxu0  ;;  %10122 = vmatpush1.bf16.msra.mxu1 %v10121_v60  ;;  %v15184_v35 = vld [vmem:[%s16411_s7 + $0xb8] sm:$0xff] }
 0x3b9   :  { %v5134_v45 = vadd.f32 %v5133_v56, %v14934_v37  ;;  %vm5345_vm2 = vcmp.gt.f32.partialorder %v5287_v51, 0.0  ;;  %v5361_v10 = vmul.f32 0.01, %v5287_v51  ;;  %v5135_v41 = vpop.f32.mrb[59].mxu0  ;;  %6345 = vmatmul.mubr.f32.vlgmr.msra.gmra.mrb[128].mxu0 %v14983_v20  ;;  %10123 = vmatprep.subr.bf16.mxu1 %v16558_v54  ;;  %v5191_v6 = vsel %vm5159_vm13, %v5129_v19, %v5175_v16  ;;  %16711 = vst [vmem:[#allocation39_spill] sm:$0xff] %v15184_v35 }
 0x3ba   :  { %v5291_v1 = vpop.f32.mrb[44].mxu1  ;;  %10143 = vmatpush1.bf16.msra.mxu0 %v15072_v2  ;;  %8518 = vmatprep.mubr.msk.f32.mxu0 %vm2879_vm3, %v14988_v57 }
 0x3bb   :  { %vm5160_vm0 = vcmp.gt.f32.partialorder %v5134_v45, 0.0  ;;  %v5176_v42 = vmul.f32 0.01, %v5134_v45  ;;  %v5377_v29 = vsel %vm5345_vm2, %v5287_v51, %v5361_v10  ;;  %6160 = vmatmul.mubr.f32.gmra.mrb[112].mxu1 %v15134_v8  ;;  %v5292_v21 = vadd.f32 %v5291_v1, %v14881_v26  ;;  %v5293_v43 = vpop.f32.mrb[45].mxu1  ;;  %10144 = vmatprep.subr.bf16.mxu0 %v16558_v54  ;;  %v15179_v51 = vld [vmem:[%s16411_s7 + $0xa0] sm:$0xff] }
 0x3bc   :  { %v15151_v22 = vpack.c.bf16 %v5377_v29, %v5376_v55  ;;  %v5138_v38 = vpop.f32.mrb[60].mxu0  ;;  %8510 = vmatprep.mubr.msk.f32.mxu1 %vm2879_vm3, %v15139_v31 }
 0x3bd   :  { %v5192_v62 = vsel %vm5160_vm0, %v5134_v45, %v5176_v42  ;;  %v5139_v25 = vadd.f32 %v5138_v38, %v14939_v28  ;;  %v5140_v0 = vpop.f32.mrb[61].mxu0  ;;  %6350 = vmatmul.mubr.f32.gmra.mrb[130].mxu0 %v15000_v12  ;;  %v5362_v5 = vmul.f32 0.01, %v5292_v21  ;;  %vm5346_vm10 = vcmp.gt.f32.partialorder %v5292_v21, 0.0 }
 0x3be   :  { %v10124_v14 = vpack.c.bf16 %v5192_v62, %v5191_v6  ;;  %v5296_v60 = vpop.f32.mrb[46].mxu1  ;;  %10146 = vmatpush1.bf16.msra.mxu0 %v15110_v24  ;;  %8519 = vmatprep.mubr.msk.f32.mxu0 %vm2879_vm3, %v15007_v36 }
 0x3bf   :  { %6165 = vmatmul.mubr.f32.gmra.mrb[114].mxu1 %v15158_v13  ;;  %v5297_v19 = vadd.f32 %v5296_v60, %v14887_v32  ;;  %v5298_v34 = vpop.f32.mrb[47].mxu1  ;;  %10147 = vmatprep.subr.bf16.mxu0 %v16558_v54  ;;  %v5177_v56 = vmul.f32 0.01, %v5139_v25  ;;  %vm5161_vm4 = vcmp.gt.f32.partialorder %v5139_v25, 0.0  ;;  %v5378_v41 = vsel %vm5346_vm10, %v5292_v21, %v5362_v5  ;;  %v15203_v21 = vld [vmem:[%s16411_s7 + $0xb0] sm:$0xff]  ;;  %v15211_v60 = vld [vmem:[%s16411_s7 + $0xc8] sm:$0xff] }
 0x3c0   :  { %v5143_v58 = vpop.f32.mrb[62].mxu0  ;;  %10125 = vmatpush1.bf16.msra.mxu1 %v10124_v14  ;;  %8511 = vmatprep.mubr.msk.f32.mxu1 %vm2879_vm3, %v15166_v49 }
 0x3c1   :  { %v5144_v16 = vadd.f32 %v5143_v58, %v14947_v33  ;;  %vm5347_vm15 = vcmp.gt.f32.partialorder %v5297_v19, 0.0  ;;  %v5363_v45 = vmul.f32 0.01, %v5297_v19  ;;  %v5145_v10 = vpop.f32.mrb[63].mxu0  ;;  %6355 = vmatmul.mubr.f32.gmra.mrb[132].mxu0 %v15020_v9  ;;  %10126 = vmatprep.subr.bf16.mxu1 %v16558_v54  ;;  %v5193_v62 = vsel %vm5161_vm4, %v5139_v25, %v5177_v56 }
 0x3c2   :  { %v5301_v55 = vpop.f32.mrb[48].mxu1  ;;  %10149 = vmatpush1.bf16.msra.mxu0 %v15151_v22  ;;  %8520 = vmatprep.mubr.msk.f32.mxu0 %vm2879_vm3, %v15025_v3  ;;  %v15229_v10 = vld [vmem:[%s16411_s7 + $0xd8] sm:$0xff] }
 0x3c3   :  { %vm5162_vm7 = vcmp.gt.f32.partialorder %v5144_v16, 0.0  ;;  %v5178_v1 = vmul.f32 0.01, %v5144_v16  ;;  %v5379_v42 = vsel %vm5347_vm15, %v5297_v19, %v5363_v45  ;;  %6170 = vmatmul.mubr.f32.gmra.mrb[116].mxu1 %v15179_v51  ;;  %v5302_v29 = vadd.f32 %v5301_v55, %v14895_v40  ;;  %v5303_v43 = vpop.f32.mrb[49].mxu1  ;;  %10150 = vmatprep.subr.bf16.mxu0 %v16558_v54  ;;  %v15224_v45 = vld [vmem:[%s16411_s7 + $0xc0] sm:$0xff]  ;;  %16712 = vst [vmem:[#allocation20_spill] sm:$0xff] %v15229_v10 }
 0x3c4   :  { %v15196_v38 = vpack.c.bf16 %v5379_v42, %v5378_v41  ;;  %v5454_v6 = vpop.f32.mrb[64].mxu0  ;;  %8512 = vmatprep.mubr.msk.f32.mxu1 %vm2879_vm3, %v15184_v35 }
 0x3c5   :  { %v5194_v0 = vsel %vm5162_vm7, %v5144_v16, %v5178_v1  ;;  %v5455_v14 = vadd.f32 %v5454_v6, %v14830_v27  ;;  %v5456_v5 = vpop.f32.mrb[65].mxu0  ;;  %6360 = vmatmul.mubr.f32.gmra.mrb[134].mxu0 %v15038_v48  ;;  %v5364_v34 = vmul.f32 0.01, %v5302_v29  ;;  %vm5348_vm12 = vcmp.gt.f32.partialorder %v5302_v29, 0.0 }
 0x3c6   :  { %v10127_v19 = vpack.c.bf16 %v5194_v0, %v5193_v62  ;;  %v5306_v58 = vpop.f32.mrb[50].mxu1  ;;  %10152 = vmatpush1.bf16.msra.mxu0 %v15196_v38  ;;  %8521 = vmatprep.mubr.msk.f32.mxu0 %vm2879_vm3, %v15045_v30 }
 0x3c7   :  { %6175 = vmatmul.mubr.f32.gmra.mrb[118].mxu1 %v15203_v21  ;;  %v5307_v25 = vadd.f32 %v5306_v58, %v14902_v4  ;;  %v5308_v56 = vpop.f32.mrb[51].mxu1  ;;  %10153 = vmatprep.subr.bf16.mxu0 %v16558_v54  ;;  %v5549_v41 = vmul.f32 0.01, %v5455_v14  ;;  %v5380_v43 = vsel %vm5348_vm12, %v5302_v29, %v5364_v34  ;;  %vm5533_vm9 = vcmp.gt.f32.partialorder %v5455_v14, 0.0  ;;  %v15245_v29 = vld [vmem:[%s16411_s7 + $0xd0] sm:$0xff] }
 0x3c8   :  { %v5459_v16 = vpop.f32.mrb[66].mxu0  ;;  %10128 = vmatpush1.bf16.msra.mxu1 %v10127_v19  ;;  %8513 = vmatprep.mubr.msk.f32.mxu1 %vm2879_vm3, %v15211_v60 }
 0x3c9   :  { %vm5349_vm6 = vcmp.gt.f32.partialorder %v5307_v25, 0.0  ;;  %v5365_v55 = vmul.f32 0.01, %v5307_v25  ;;  %v5460_v1 = vadd.f32 %v5459_v16, %v14839_v39  ;;  %v5461_v42 = vpop.f32.mrb[67].mxu0  ;;  %6365 = vmatmul.mubr.f32.gmra.mrb[136].mxu0 %v15058_v11  ;;  %10129 = vmatprep.subr.bf16.mxu1 %v16558_v54  ;;  %v5565_v34 = vsel %vm5533_vm9, %v5455_v14, %v5549_v41 }
 0x3ca   :  { %v5311_v6 = vpop.f32.mrb[52].mxu1  ;;  %8522 = vmatprep.mubr.msk.f32.mxu0 %vm2879_vm3, %v15063_v7 }
 0x3cb   :  { %v5381_v62 = vsel %vm5349_vm6, %v5307_v25, %v5365_v55  ;;  %vm5534_vm5 = vcmp.gt.f32.partialorder %v5460_v1, 0.0  ;;  %v5550_v0 = vmul.f32 0.01, %v5460_v1  ;;  %6180 = vmatmul.mubr.f32.gmra.mrb[120].mxu1 %v15224_v45  ;;  %v5312_v5 = vadd.f32 %v5311_v6, %v14910_v15  ;;  %v5313_v19 = vpop.f32.mrb[53].mxu1 }
 0x3cc   :  { %v10154_v58 = vpack.c.bf16 %v5381_v62, %v5380_v43  ;;  %v5464_v56 = vpop.f32.mrb[68].mxu0  ;;  %10131 = vmatpush1.bf16.msra.mxu1 %v15072_v2  ;;  %8514 = vmatprep.mubr.msk.f32.mxu1 %vm2879_vm3, %v15229_v10  ;;  %v15253_v2 = vld [vmem:[%s16411_s7 + $0xe8] sm:$0xff]  ;;  %v15268_v62 = vld [vmem:[%s16411_s7 + $0xe0] sm:$0xff] }
 0x3cd   :  { %v5566_v25 = vsel %vm5534_vm5, %v5460_v1, %v5550_v0  ;;  %v5465_v16 = vadd.f32 %v5464_v56, %v14853_v52  ;;  %v5466_v55 = vpop.f32.mrb[69].mxu0  ;;  %6370 = vmatmul.mubr.f32.gmra.mrb[138].mxu0 %v15079_v17  ;;  %10132 = vmatprep.subr.bf16.mxu1 %v16558_v54  ;;  %v5366_v43 = vmul.f32 0.01, %v5312_v5  ;;  %vm5350_vm8 = vcmp.gt.f32.partialorder %v5312_v5, 0.0  ;;  %v15273_v0 = vld [vmem:[%s16411_s7 + $0xf8] sm:$0xff] }
 0x3ce   :  { %v15255_v42 = vpack.c.bf16 %v5566_v25, %v5565_v34  ;;  %v5316_v6 = vpop.f32.mrb[54].mxu1  ;;  %10155 = vmatpush1.bf16.msra.mxu0 %v10154_v58  ;;  %8523 = vmatprep.mubr.msk.f32.mxu0 %vm2879_vm3, %v15085_v50  ;;  %16713 = vst [vmem:[#allocation22_spill] sm:$0xff] %v15273_v0 }
 0x3cf   :  { %6185 = vmatmul.mubr.f32.gmra.mrb[122].mxu1 %v15245_v29  ;;  %v5317_v14 = vadd.f32 %v5316_v6, %v14921_v44  ;;  %v5318_v41 = vpop.f32.mrb[55].mxu1  ;;  %10156 = vmatprep.subr.bf16.mxu0 %v16558_v54  ;;  %v5551_v19 = vmul.f32 0.01, %v5465_v16  ;;  %vm5535_vm1 = vcmp.gt.f32.partialorder %v5465_v16, 0.0 }
 0x3d0   :  { %v5469_v1 = vpop.f32.mrb[70].mxu0  ;;  %10134 = vmatpush1.bf16.msra.mxu1 %v15110_v24  ;;  %8515 = vmatprep.mubr.msk.f32.mxu1 %vm2879_vm3, %v15253_v2  ;;  %v5382_v24 = vsel %vm5350_vm8, %v5312_v5, %v5366_v43  ;;  %v15289_v5 = vld [vmem:[%s16411_s7 + $0xf0] sm:$0xff] }
 0x3d1   :  { %vm5351_vm11 = vcmp.gt.f32.partialorder %v5317_v14, 0.0  ;;  %v5367_v58 = vmul.f32 0.01, %v5317_v14  ;;  %v5470_v56 = vadd.f32 %v5469_v1, %v14861_v18  ;;  %v5471_v34 = vpop.f32.mrb[71].mxu0  ;;  %6375 = vmatmul.mubr.f32.gmra.mrb[140].mxu0 %v15096_v23  ;;  %10135 = vmatprep.subr.bf16.mxu1 %v16558_v54  ;;  %v5567_v43 = vsel %vm5535_vm1, %v5465_v16, %v5551_v19 }
 0x3d2   :  { %v5321_v25 = vpop.f32.mrb[56].mxu1  ;;  %8524 = vmatprep.mubr.msk.f32.mxu0 %vm2879_vm3, %v15101_v53 }
 0x3d3   :  { %v5383_v55 = vsel %vm5351_vm11, %v5317_v14, %v5367_v58  ;;  %vm5536_vm14 = vcmp.gt.f32.partialorder %v5470_v56, 0.0  ;;  %v5552_v6 = vmul.f32 0.01, %v5470_v56  ;;  %6190 = vmatmul.mubr.f32.gmra.mrb[124].mxu1 %v15268_v62  ;;  %v5322_v41 = vadd.f32 %v5321_v25, %v14926_v63  ;;  %v5323_v1 = vpop.f32.mrb[57].mxu1 }
 0x3d4   :  { %v10157_v34 = vpack.c.bf16 %v5383_v55, %v5382_v24  ;;  %v5474_v44 = vpop.f32.mrb[72].mxu0  ;;  %10137 = vmatpush1.bf16.msra.mxu1 %v15151_v22  ;;  %8516 = vmatprep.mubr.msk.f32.mxu1 %vm2879_vm3, %v15273_v0 }
 0x3d5   :  { %v5568_v14 = vsel %vm5536_vm14, %v5470_v56, %v5552_v6  ;;  %v5475_v58 = vadd.f32 %v5474_v44, %v14868_v47  ;;  %v5476_v53 = vpop.f32.mrb[73].mxu0  ;;  %6380 = vmatmul.mubr.f32.gmra.mrb[142].mxu0 %v15117_v61  ;;  %10138 = vmatprep.subr.bf16.mxu1 %v16558_v54  ;;  %v5368_v22 = vmul.f32 0.01, %v5322_v41  ;;  %vm5352_vm2 = vcmp.gt.f32.partialorder %v5322_v41, 0.0 }
 0x3d6   :  { %v15294_v24 = vpack.c.bf16 %v5568_v14, %v5567_v43  ;;  %v5326_v25 = vpop.f32.mrb[58].mxu1  ;;  %10158 = vmatpush1.bf16.msra.mxu0 %v10157_v34  ;;  %8525 = vmatprep.mubr.msk.f32.mxu0 %vm2879_vm3, %v15123_v59  ;;  %v15305_v53 = vld [vmem:[%s16411_s7 + $0x8] sm:$0xff] }
 0x3d7   :  { %6195 = vmatmul.mubr.f32.gmra.mrb[126].mxu1 %v15289_v5  ;;  %v5327_v16 = vadd.f32 %v5326_v25, %v14934_v37  ;;  %v5328_v19 = vpop.f32.mrb[59].mxu1  ;;  %10159 = vmatprep.subr.bf16.mxu0 %v16558_v54  ;;  %v5553_v56 = vmul.f32 0.01, %v5475_v58  ;;  %vm5537_vm0 = vcmp.gt.f32.partialorder %v5475_v58, 0.0 }
 0x3d8   :  { %v5479_v44 = vpop.f32.mrb[74].mxu0  ;;  %10140 = vmatpush1.bf16.msra.mxu1 %v15196_v38  ;;  %8533 = vmatprep.mubr.msk.f32.mxu1 %vm2879_vm3, %v15305_v53  ;;  %v5384_v38 = vsel %vm5352_vm2, %v5322_v41, %v5368_v22 }
 0x3d9   :  { %vm5353_vm13 = vcmp.gt.f32.partialorder %v5327_v16, 0.0  ;;  %v5369_v55 = vmul.f32 0.01, %v5327_v16  ;;  %v5480_v6 = vadd.f32 %v5479_v44, %v14874_v46  ;;  %v5481_v1 = vpop.f32.mrb[75].mxu0  ;;  %6385 = vmatmul.mubr.f32.gmra.mrb[144].mxu0 %v15134_v8  ;;  %10177 = vmatprep.subr.bf16.mxu1 %v16558_v54  ;;  %v5569_v41 = vsel %vm5537_vm0, %v5475_v58, %v5553_v56 }
 0x3da   :  { %v5331_v34 = vpop.f32.mrb[60].mxu1  ;;  %8526 = vmatprep.mubr.msk.f32.mxu0 %vm2879_vm3, %v15139_v31 }
 0x3db   :  { %v5385_v43 = vsel %vm5353_vm13, %v5327_v16, %v5369_v55  ;;  %vm5538_vm10 = vcmp.gt.f32.partialorder %v5480_v6, 0.0  ;;  %v5554_v14 = vmul.f32 0.01, %v5480_v6  ;;  %6530 = vmatmul.mubr.f32.vlgmr.msra.gmra.mrb[128].mxu1 %v14983_v20  ;;  %v5332_v25 = vadd.f32 %v5331_v34, %v14939_v28  ;;  %v5333_v19 = vpop.f32.mrb[61].mxu1 }
 0x3dc   :  { %v10160_v44 = vpack.c.bf16 %v5385_v43, %v5384_v38  ;;  %v5484_v1 = vpop.f32.mrb[76].mxu0  ;;  %10179 = vmatpush1.bf16.msra.mxu1 %v15255_v42  ;;  %8534 = vmatprep.mubr.msk.f32.mxu1 %vm2879_vm3, %v14988_v57 }
 0x3dd   :  { %v5570_v22 = vsel %vm5538_vm10, %v5480_v6, %v5554_v14  ;;  %v5485_v8 = vadd.f32 %v5484_v1, %v14881_v26  ;;  %v5486_v31 = vpop.f32.mrb[77].mxu0  ;;  %6390 = vmatmul.mubr.f32.gmra.mrb[146].mxu0 %v15158_v13  ;;  %10180 = vmatprep.subr.bf16.mxu1 %v16558_v54  ;;  %v5370_v55 = vmul.f32 0.01, %v5332_v25  ;;  %vm5354_vm15 = vcmp.gt.f32.partialorder %v5332_v25, 0.0 }
 0x3de   :  { %v15323_v16 = vpack.c.bf16 %v5570_v22, %v5569_v41  ;;  %v5336_v34 = vpop.f32.mrb[62].mxu1  ;;  %10161 = vmatpush1.bf16.msra.mxu0 %v10160_v44  ;;  %8527 = vmatprep.mubr.msk.f32.mxu0 %vm2879_vm3, %v15166_v49 }
 0x3df   :  { %6535 = vmatmul.mubr.f32.gmra.mrb[130].mxu1 %v15000_v12  ;;  %v5337_v58 = vadd.f32 %v5336_v34, %v14947_v33  ;;  %v5338_v56 = vpop.f32.mrb[63].mxu1  ;;  %10162 = vmatprep.subr.bf16.mxu0 %v16558_v54  ;;  %v5555_v6 = vmul.f32 0.01, %v5485_v8  ;;  %v5386_v19 = vsel %vm5354_vm15, %v5332_v25, %v5370_v55  ;;  %vm5539_vm7 = vcmp.gt.f32.partialorder %v5485_v8, 0.0 }
 0x3e0   :  { %v5489_v31 = vpop.f32.mrb[78].mxu0  ;;  %10182 = vmatpush1.bf16.msra.mxu1 %v15294_v24  ;;  %8535 = vmatprep.mubr.msk.f32.mxu1 %vm2879_vm3, %v15007_v36 }
 0x3e1   :  { %vm5355_vm4 = vcmp.gt.f32.partialorder %v5337_v58, 0.0  ;;  %v5371_v38 = vmul.f32 0.01, %v5337_v58  ;;  %v5490_v43 = vadd.f32 %v5489_v31, %v14887_v32  ;;  %v5491_v14 = vpop.f32.mrb[79].mxu0  ;;  %6395 = vmatmul.mubr.f32.gmra.mrb[148].mxu0 %v15179_v51  ;;  %10183 = vmatprep.subr.bf16.mxu1 %v16558_v54  ;;  %v5571_v25 = vsel %vm5539_vm7, %v5485_v8, %v5555_v6 }
 0x3e2   :  { %v5647_v44 = vpop.f32.mrb[64].mxu1  ;;  %8528 = vmatprep.mubr.msk.f32.mxu0 %vm2879_vm3, %v15184_v35 }
 0x3e3   :  { %v5387_v1 = vsel %vm5355_vm4, %v5337_v58, %v5371_v38  ;;  %vm5540_vm12 = vcmp.gt.f32.partialorder %v5490_v43, 0.0  ;;  %v5556_v41 = vmul.f32 0.01, %v5490_v43  ;;  %6540 = vmatmul.mubr.f32.gmra.mrb[132].mxu1 %v15020_v9  ;;  %v5648_v22 = vadd.f32 %v5647_v44, %v14830_v27  ;;  %v5649_v34 = vpop.f32.mrb[65].mxu1 }
 0x3e4   :  { %v10163_v56 = vpack.c.bf16 %v5387_v1, %v5386_v19  ;;  %v5494_v31 = vpop.f32.mrb[80].mxu0  ;;  %10185 = vmatpush1.bf16.msra.mxu1 %v15323_v16  ;;  %8536 = vmatprep.mubr.msk.f32.mxu1 %vm2879_vm3, %v15025_v3 }
 0x3e5   :  { %v5572_v55 = vsel %vm5540_vm12, %v5490_v43, %v5556_v41  ;;  %v5495_v14 = vadd.f32 %v5494_v31, %v14895_v40  ;;  %v5496_v35 = vpop.f32.mrb[81].mxu0  ;;  %6400 = vmatmul.mubr.f32.gmra.mrb[150].mxu0 %v15203_v21  ;;  %10186 = vmatprep.subr.bf16.mxu1 %v16558_v54  ;;  %v5742_v38 = vmul.f32 0.01, %v5648_v22  ;;  %vm5726_vm6 = vcmp.gt.f32.partialorder %v5648_v22, 0.0 }
 0x3e6   :  { %v15346_v58 = vpack.c.bf16 %v5572_v55, %v5571_v25  ;;  %v5652_v44 = vpop.f32.mrb[66].mxu1  ;;  %10164 = vmatpush1.bf16.msra.mxu0 %v10163_v56  ;;  %8529 = vmatprep.mubr.msk.f32.mxu0 %vm2879_vm3, %v15211_v60 }
 0x3e7   :  { %6545 = vmatmul.mubr.f32.gmra.mrb[134].mxu1 %v15038_v48  ;;  %v5653_v8 = vadd.f32 %v5652_v44, %v14839_v39  ;;  %v5654_v6 = vpop.f32.mrb[67].mxu1  ;;  %10165 = vmatprep.subr.bf16.mxu0 %v16558_v54  ;;  %v5557_v43 = vmul.f32 0.01, %v5495_v14  ;;  %vm5541_vm5 = vcmp.gt.f32.partialorder %v5495_v14, 0.0  ;;  %v5758_v34 = vsel %vm5726_vm6, %v5648_v22, %v5742_v38 }
 0x3e8   :  { %v5499_v35 = vpop.f32.mrb[82].mxu0  ;;  %10188 = vmatpush1.bf16.msra.mxu1 %v15346_v58  ;;  %8537 = vmatprep.mubr.msk.f32.mxu1 %vm2879_vm3, %v15045_v30 }
 0x3e9   :  { %v5500_v19 = vadd.f32 %v5499_v35, %v14902_v4  ;;  %vm5727_vm9 = vcmp.gt.f32.partialorder %v5653_v8, 0.0  ;;  %v5743_v1 = vmul.f32 0.01, %v5653_v8  ;;  %v5501_v41 = vpop.f32.mrb[83].mxu0  ;;  %6405 = vmatmul.mubr.f32.gmra.mrb[152].mxu0 %v15224_v45  ;;  %10189 = vmatprep.subr.bf16.mxu1 %v16558_v54 }
 0x3ea   :  { %v5657_v56 = vpop.f32.mrb[68].mxu1  ;;  %10167 = vmatpush1.bf16.msra.mxu0 %v15255_v42  ;;  %8530 = vmatprep.mubr.msk.f32.mxu0 %vm2879_vm3, %v15229_v10  ;;  %v5573_v42 = vsel %vm5541_vm5, %v5495_v14, %v5557_v43 }
 0x3eb   :  { %vm5542_vm8 = vcmp.gt.f32.partialorder %v5500_v19, 0.0  ;;  %v5558_v31 = vmul.f32 0.01, %v5500_v19  ;;  %v5759_v25 = vsel %vm5727_vm9, %v5653_v8, %v5743_v1  ;;  %6550 = vmatmul.mubr.f32.gmra.mrb[136].mxu1 %v15058_v11  ;;  %v5658_v55 = vadd.f32 %v5657_v56, %v14853_v52  ;;  %v5659_v44 = vpop.f32.mrb[69].mxu1  ;;  %10168 = vmatprep.subr.bf16.mxu0 %v16558_v54  ;;  %v16714_v56 = vld [vmem:[#allocation19_spill] sm:$0xff] }
 0x3ec   :  { %v15366_v6 = vpack.c.bf16 %v5759_v25, %v5758_v34  ;;  %v5504_v35 = vpop.f32.mrb[84].mxu0  ;;  %8538 = vmatprep.mubr.msk.f32.mxu1 %vm2879_vm3, %v15063_v7 }
 0x3ed   :  { %v5574_v22 = vsel %vm5542_vm8, %v5500_v19, %v5558_v31  ;;  %v5505_v38 = vadd.f32 %v5504_v35, %v14910_v15  ;;  %v5506_v41 = vpop.f32.mrb[85].mxu0  ;;  %6410 = vmatmul.mubr.f32.gmra.mrb[154].mxu0 %v15245_v29  ;;  %v5744_v1 = vmul.f32 0.01, %v5658_v55  ;;  %vm5728_vm11 = vcmp.gt.f32.partialorder %v5658_v55, 0.0 }
 0x3ee   :  { %v10190_v8 = vpack.c.bf16 %v5574_v22, %v5573_v42  ;;  %v5662_v10 = vpop.f32.mrb[70].mxu1  ;;  %10170 = vmatpush1.bf16.msra.mxu0 %v15294_v24  ;;  %8531 = vmatprep.mubr.msk.f32.mxu0 %vm2879_vm3, %v15253_v2 }
 0x3ef   :  { %6555 = vmatmul.mubr.f32.gmra.mrb[138].mxu1 %v15079_v17  ;;  %v5663_v34 = vadd.f32 %v5662_v10, %v14861_v18  ;;  %v5664_v14 = vpop.f32.mrb[71].mxu1  ;;  %10171 = vmatprep.subr.bf16.mxu0 %v16558_v54  ;;  %v5559_v19 = vmul.f32 0.01, %v5505_v38  ;;  %vm5543_vm14 = vcmp.gt.f32.partialorder %v5505_v38, 0.0  ;;  %v5760_v10 = vsel %vm5728_vm11, %v5658_v55, %v5744_v1  ;;  %v16715_v55 = vld [vmem:[#allocation4_spill] sm:$0xff] }
 0x3f0   :  { %v5509_v43 = vpop.f32.mrb[86].mxu0  ;;  %10191 = vmatpush1.bf16.msra.mxu1 %v10190_v8  ;;  %8539 = vmatprep.mubr.msk.f32.mxu1 %vm2879_vm3, %v15085_v50 }
 0x3f1   :  { %v5510_v31 = vadd.f32 %v5509_v43, %v16714_v56  ;;  %vm5729_vm1 = vcmp.gt.f32.partialorder %v5663_v34, 0.0  ;;  %v5745_v24 = vmul.f32 0.01, %v5663_v34  ;;  %v5511_v25 = vpop.f32.mrb[87].mxu0  ;;  %6415 = vmatmul.mubr.f32.gmra.mrb[156].mxu0 %v15268_v62  ;;  %10192 = vmatprep.subr.bf16.mxu1 %v16558_v54 }
 0x3f2   :  { %v5667_v44 = vpop.f32.mrb[72].mxu1  ;;  %10173 = vmatpush1.bf16.msra.mxu0 %v15323_v16  ;;  %8532 = vmatprep.mubr.msk.f32.mxu0 %vm2879_vm3, %v15273_v0  ;;  %v5575_v16 = vsel %vm5543_vm14, %v5505_v38, %v5559_v19 }
 0x3f3   :  { %vm5544_vm2 = vcmp.gt.f32.partialorder %v5510_v31, 0.0  ;;  %v5560_v35 = vmul.f32 0.01, %v5510_v31  ;;  %v5761_v42 = vsel %vm5729_vm1, %v5663_v34, %v5745_v24  ;;  %6560 = vmatmul.mubr.f32.gmra.mrb[140].mxu1 %v15096_v23  ;;  %v5668_v22 = vadd.f32 %v5667_v44, %v14868_v47  ;;  %v5669_v41 = vpop.f32.mrb[73].mxu1  ;;  %10174 = vmatprep.subr.bf16.mxu0 %v16558_v54 }
 0x3f4   :  { %v15390_v8 = vpack.c.bf16 %v5761_v42, %v5760_v10  ;;  %v5514_v14 = vpop.f32.mrb[88].mxu0  ;;  %8540 = vmatprep.mubr.msk.f32.mxu1 %vm2879_vm3, %v16715_v55 }
 0x3f5   :  { %v5576_v1 = vsel %vm5544_vm2, %v5510_v31, %v5560_v35  ;;  %v5515_v43 = vadd.f32 %v5514_v14, %v14926_v63  ;;  %v5516_v25 = vpop.f32.mrb[89].mxu0  ;;  %6420 = vmatmul.mubr.f32.gmra.mrb[158].mxu0 %v15289_v5  ;;  %v5746_v24 = vmul.f32 0.01, %v5668_v22  ;;  %vm5730_vm13 = vcmp.gt.f32.partialorder %v5668_v22, 0.0 }
 0x3f6   :  { %v10193_v34 = vpack.c.bf16 %v5576_v1, %v5575_v16  ;;  %v5672_v0 = vpop.f32.mrb[74].mxu1  ;;  %10176 = vmatpush1.bf16.msra.mxu0 %v15346_v58  ;;  %8549 = vmatprep.mubr.msk.f32.mxu0 %vm2879_vm3, %v15305_v53  ;;  %v16716_v16 = vld [vmem:[#allocation2_spill] sm:$0xff] }
 0x3f7   :  { %6565 = vmatmul.mubr.f32.gmra.mrb[142].mxu1 %v15117_v61  ;;  %v5673_v10 = vadd.f32 %v5672_v0, %v14874_v46  ;;  %v5674_v38 = vpop.f32.mrb[75].mxu1  ;;  %10213 = vmatprep.subr.bf16.mxu0 %v16558_v54  ;;  %v5561_v31 = vmul.f32 0.01, %v5515_v43  ;;  %vm5545_vm10 = vcmp.gt.f32.partialorder %v5515_v43, 0.0  ;;  %v5762_v0 = vsel %vm5730_vm13, %v5668_v22, %v5746_v24  ;;  %v16717_v22 = vld [vmem:[#allocation21_spill] sm:$0xff] }
 0x3f8   :  { %v5519_v19 = vpop.f32.mrb[90].mxu0  ;;  %10194 = vmatpush1.bf16.msra.mxu1 %v10193_v34  ;;  %8541 = vmatprep.mubr.msk.f32.mxu1 %vm2879_vm3, %v15123_v59 }
 0x3f9   :  { %v5520_v44 = vadd.f32 %v5519_v19, %v14934_v37  ;;  %vm5731_vm0 = vcmp.gt.f32.partialorder %v5673_v10, 0.0  ;;  %v5747_v58 = vmul.f32 0.01, %v5673_v10  ;;  %v5521_v35 = vpop.f32.mrb[91].mxu0  ;;  %6715 = vmatmul.mubr.f32.vlgmr.msra.gmra.mrb[160].mxu0 %v14983_v20  ;;  %10195 = vmatprep.subr.bf16.mxu1 %v16558_v54  ;;  %v5577_v24 = vsel %vm5545_vm10, %v5515_v43, %v5561_v31 }
 0x3fa   :  { %v5677_v42 = vpop.f32.mrb[76].mxu1  ;;  %10215 = vmatpush1.bf16.msra.mxu0 %v15366_v6  ;;  %8550 = vmatprep.mubr.msk.f32.mxu0 %vm2879_vm3, %v14988_v57 }
 0x3fb   :  { %vm5546_vm15 = vcmp.gt.f32.partialorder %v5520_v44, 0.0  ;;  %v5562_v41 = vmul.f32 0.01, %v5520_v44  ;;  %v5763_v14 = vsel %vm5731_vm0, %v5673_v10, %v5747_v58  ;;  %6570 = vmatmul.mubr.f32.gmra.mrb[144].mxu1 %v16716_v16  ;;  %v5678_v1 = vadd.f32 %v5677_v42, %v14881_v26  ;;  %v5679_v25 = vpop.f32.mrb[77].mxu1  ;;  %10216 = vmatprep.subr.bf16.mxu0 %v16558_v54 }
 0x3fc   :  { %v15414_v20 = vpack.c.bf16 %v5763_v14, %v5762_v0  ;;  %v5524_v34 = vpop.f32.mrb[92].mxu0  ;;  %8542 = vmatprep.mubr.msk.f32.mxu1 %vm2879_vm3, %v16717_v22 }
 0x3fd   :  { %v5578_v38 = vsel %vm5546_vm15, %v5520_v44, %v5562_v41  ;;  %v5525_v57 = vadd.f32 %v5524_v34, %v14939_v28  ;;  %v5526_v19 = vpop.f32.mrb[93].mxu0  ;;  %6720 = vmatmul.mubr.f32.gmra.mrb[162].mxu0 %v15000_v12  ;;  %v5748_v58 = vmul.f32 0.01, %v5678_v1  ;;  %vm5732_vm4 = vcmp.gt.f32.partialorder %v5678_v1, 0.0 }
 0x3fe   :  { %v10196_v10 = vpack.c.bf16 %v5578_v38, %v5577_v24  ;;  %v5682_v35 = vpop.f32.mrb[78].mxu1  ;;  %10218 = vmatpush1.bf16.msra.mxu0 %v15390_v8  ;;  %8551 = vmatprep.mubr.msk.f32.mxu0 %vm2879_vm3, %v15007_v36 }
 0x3ff   :  { %6575 = vmatmul.mubr.f32.gmra.mrb[146].mxu1 %v15158_v13  ;;  %v5683_v0 = vadd.f32 %v5682_v35, %v14887_v32  ;;  %v5684_v43 = vpop.f32.mrb[79].mxu1  ;;  %10219 = vmatprep.subr.bf16.mxu0 %v16558_v54  ;;  %v5563_v12 = vmul.f32 0.01, %v5525_v57  ;;  %vm5547_vm12 = vcmp.gt.f32.partialorder %v5525_v57, 0.0  ;;  %v5764_v36 = vsel %vm5732_vm4, %v5678_v1, %v5748_v58  ;;  %v16718_v1 = vld [vmem:[#allocation39_spill] sm:$0xff] }
 0x400   :  { %v5529_v31 = vpop.f32.mrb[94].mxu0  ;;  %10197 = vmatpush1.bf16.msra.mxu1 %v10196_v10  ;;  %8543 = vmatprep.mubr.msk.f32.mxu1 %vm2879_vm3, %v15166_v49 }
 0x401   :  { %v5530_v44 = vadd.f32 %v5529_v31, %v14947_v33  ;;  %vm5733_vm7 = vcmp.gt.f32.partialorder %v5683_v0, 0.0  ;;  %v5749_v42 = vmul.f32 0.01, %v5683_v0  ;;  %v5531_v41 = vpop.f32.mrb[95].mxu0  ;;  %6725 = vmatmul.mubr.f32.gmra.mrb[164].mxu0 %v15020_v9  ;;  %10198 = vmatprep.subr.bf16.mxu1 %v16558_v54  ;;  %v5579_v10 = vsel %vm5547_vm12, %v5525_v57, %v5563_v12 }
 0x402   :  { %v5687_v14 = vpop.f32.mrb[80].mxu1  ;;  %10221 = vmatpush1.bf16.msra.mxu0 %v15414_v20  ;;  %8552 = vmatprep.mubr.msk.f32.mxu0 %vm2879_vm3, %v15025_v3 }
 0x403   :  { %vm5548_vm6 = vcmp.gt.f32.partialorder %v5530_v44, 0.0  ;;  %v5564_v25 = vmul.f32 0.01, %v5530_v44  ;;  %v5765_v34 = vsel %vm5733_vm7, %v5683_v0, %v5749_v42  ;;  %6580 = vmatmul.mubr.f32.gmra.mrb[148].mxu1 %v15179_v51  ;;  %v5688_v24 = vadd.f32 %v5687_v14, %v14895_v40  ;;  %v5689_v38 = vpop.f32.mrb[81].mxu1  ;;  %10222 = vmatprep.subr.bf16.mxu0 %v16558_v54 }
 0x404   :  { %v15438_v9 = vpack.c.bf16 %v5765_v34, %v5764_v36  ;;  %v5840_v19 = vpop.f32.mrb[96].mxu0  ;;  %8544 = vmatprep.mubr.msk.f32.mxu1 %vm2879_vm3, %v16718_v1 }
 0x405   :  { %v5580_v58 = vsel %vm5548_vm6, %v5530_v44, %v5564_v25  ;;  %v5841_v3 = vadd.f32 %v5840_v19, %v14830_v27  ;;  %v5842_v35 = vpop.f32.mrb[97].mxu0  ;;  %6730 = vmatmul.mubr.f32.gmra.mrb[166].mxu0 %v15038_v48  ;;  %v5750_v43 = vmul.f32 0.01, %v5688_v24  ;;  %vm5734_vm9 = vcmp.gt.f32.partialorder %v5688_v24, 0.0 }
 0x406   :  { %v10199_v0 = vpack.c.bf16 %v5580_v58, %v5579_v10  ;;  %v5692_v31 = vpop.f32.mrb[82].mxu1  ;;  %10224 = vmatpush1.bf16.msra.mxu0 %v15438_v9  ;;  %8553 = vmatprep.mubr.msk.f32.mxu0 %vm2879_vm3, %v15045_v30 }
 0x407   :  { %6585 = vmatmul.mubr.f32.gmra.mrb[150].mxu1 %v15203_v21  ;;  %v5693_v42 = vadd.f32 %v5692_v31, %v14902_v4  ;;  %v5694_v57 = vpop.f32.mrb[83].mxu1  ;;  %10225 = vmatprep.subr.bf16.mxu0 %v16558_v54  ;;  %v5935_v48 = vmul.f32 0.01, %v5841_v3  ;;  %v5766_v30 = vsel %vm5734_vm9, %v5688_v24, %v5750_v43  ;;  %vm5919_vm8 = vcmp.gt.f32.partialorder %v5841_v3, 0.0 }
 0x408   :  { %v5845_v27 = vpop.f32.mrb[98].mxu0  ;;  %10200 = vmatpush1.bf16.msra.mxu1 %v10199_v0  ;;  %8545 = vmatprep.mubr.msk.f32.mxu1 %vm2879_vm3, %v15211_v60 }
 0x409   :  { %vm5735_vm5 = vcmp.gt.f32.partialorder %v5693_v42, 0.0  ;;  %v5751_v12 = vmul.f32 0.01, %v5693_v42  ;;  %v5846_v44 = vadd.f32 %v5845_v27, %v14839_v39  ;;  %v5847_v41 = vpop.f32.mrb[99].mxu0  ;;  %6735 = vmatmul.mubr.f32.gmra.mrb[168].mxu0 %v15058_v11  ;;  %10201 = vmatprep.subr.bf16.mxu1 %v16558_v54  ;;  %v16719_v11 = vld [vmem:[#allocation20_spill] sm:$0xff]  ;;  %v5951_v24 = vsel %vm5919_vm8, %v5841_v3, %v5935_v48 }
 0x40a   :  { %v5697_v36 = vpop.f32.mrb[84].mxu1  ;;  %8554 = vmatprep.mubr.msk.f32.mxu0 %vm2879_vm3, %v15063_v7 }
 0x40b   :  { %v5767_v14 = vsel %vm5735_vm5, %v5693_v42, %v5751_v12  ;;  %vm5920_vm11 = vcmp.gt.f32.partialorder %v5846_v44, 0.0  ;;  %v5936_v25 = vmul.f32 0.01, %v5846_v44  ;;  %6590 = vmatmul.mubr.f32.gmra.mrb[152].mxu1 %v15224_v45  ;;  %v5698_v34 = vadd.f32 %v5697_v36, %v14910_v15  ;;  %v5699_v38 = vpop.f32.mrb[85].mxu1 }
 0x40c   :  { %v10226_v39 = vpack.c.bf16 %v5767_v14, %v5766_v30  ;;  %v5850_v19 = vpop.f32.mrb[100].mxu0  ;;  %10203 = vmatpush1.bf16.msra.mxu1 %v15366_v6  ;;  %8546 = vmatprep.mubr.msk.f32.mxu1 %vm2879_vm3, %v16719_v11 }
 0x40d   :  { %v5952_v10 = vsel %vm5920_vm11, %v5846_v44, %v5936_v25  ;;  %v5851_v58 = vadd.f32 %v5850_v19, %v14853_v52  ;;  %v5852_v7 = vpop.f32.mrb[101].mxu0  ;;  %6740 = vmatmul.mubr.f32.gmra.mrb[170].mxu0 %v15079_v17  ;;  %10204 = vmatprep.subr.bf16.mxu1 %v16558_v54  ;;  %v5752_v0 = vmul.f32 0.01, %v5698_v34  ;;  %vm5736_vm1 = vcmp.gt.f32.partialorder %v5698_v34, 0.0 }
 0x40e   :  { %v15465_v35 = vpack.c.bf16 %v5952_v10, %v5951_v24  ;;  %v5702_v43 = vpop.f32.mrb[86].mxu1  ;;  %10227 = vmatpush1.bf16.msra.mxu0 %v10226_v39  ;;  %8555 = vmatprep.mubr.msk.f32.mxu0 %vm2879_vm3, %v15085_v50 }
 0x40f   :  { %6595 = vmatmul.mubr.f32.gmra.mrb[154].mxu1 %v15245_v29  ;;  %v5703_v6 = vadd.f32 %v5702_v43, %v16714_v56  ;;  %v5704_v3 = vpop.f32.mrb[87].mxu1  ;;  %10228 = vmatprep.subr.bf16.mxu0 %v16558_v54  ;;  %v5937_v17 = vmul.f32 0.01, %v5851_v58  ;;  %v5768_v57 = vsel %vm5736_vm1, %v5698_v34, %v5752_v0  ;;  %vm5921_vm2 = vcmp.gt.f32.partialorder %v5851_v58, 0.0  ;;  %v15506_v0 = vld [vmem:[%s16411_s7] sm:$0xff] }
 0x410   :  { %v5855_v52 = vpop.f32.mrb[102].mxu0  ;;  %10206 = vmatpush1.bf16.msra.mxu1 %v15390_v8  ;;  %8547 = vmatprep.mubr.msk.f32.mxu1 %vm2879_vm3, %v15253_v2 }
 0x411   :  { %vm5737_vm14 = vcmp.gt.f32.partialorder %v5703_v6, 0.0  ;;  %v5753_v31 = vmul.f32 0.01, %v5703_v6  ;;  %v5856_v42 = vadd.f32 %v5855_v52, %v14861_v18  ;;  %v5857_v50 = vpop.f32.mrb[103].mxu0  ;;  %6745 = vmatmul.mubr.f32.gmra.mrb[172].mxu0 %v15096_v23  ;;  %10207 = vmatprep.subr.bf16.mxu1 %v16558_v54  ;;  %v16720_v23 = vld [vmem:[#allocation22_spill] sm:$0xff]  ;;  %v5953_v30 = vsel %vm5921_vm2, %v5851_v58, %v5937_v17 }
 0x412   :  { %v5707_v27 = vpop.f32.mrb[88].mxu1  ;;  %8556 = vmatprep.mubr.msk.f32.mxu0 %vm2879_vm3, %v16715_v55 }
 0x413   :  { %v5769_v8 = vsel %vm5737_vm14, %v5703_v6, %v5753_v31  ;;  %vm5922_vm13 = vcmp.gt.f32.partialorder %v5856_v42, 0.0  ;;  %v5938_v48 = vmul.f32 0.01, %v5856_v42  ;;  %6600 = vmatmul.mubr.f32.gmra.mrb[156].mxu1 %v15268_v62  ;;  %v5708_v12 = vadd.f32 %v5707_v27, %v14926_v63  ;;  %v5709_v44 = vpop.f32.mrb[89].mxu1  ;;  %v15528_v27 = vld [vmem:[%s16411_s7 + $0x10] sm:$0xff] }
 0x414   :  { %v10229_v18 = vpack.c.bf16 %v5769_v8, %v5768_v57  ;;  %v5860_v41 = vpop.f32.mrb[104].mxu0  ;;  %10209 = vmatpush1.bf16.msra.mxu1 %v15414_v20  ;;  %8548 = vmatprep.mubr.msk.f32.mxu1 %vm2879_vm3, %v16720_v23 }
 0x415   :  { %v5954_v36 = vsel %vm5922_vm13, %v5856_v42, %v5938_v48  ;;  %v5861_v14 = vadd.f32 %v5860_v41, %v14868_v47  ;;  %v5862_v55 = vpop.f32.mrb[105].mxu0  ;;  %6750 = vmatmul.mubr.f32.gmra.mrb[174].mxu0 %v15117_v61  ;;  %10210 = vmatprep.subr.bf16.mxu1 %v16558_v54  ;;  %v5754_v34 = vmul.f32 0.01, %v5708_v12  ;;  %vm5738_vm0 = vcmp.gt.f32.partialorder %v5708_v12, 0.0 }
 0x416   :  { %v15488_v25 = vpack.c.bf16 %v5954_v36, %v5953_v30  ;;  %v5712_v38 = vpop.f32.mrb[90].mxu1  ;;  %10230 = vmatpush1.bf16.msra.mxu0 %v10229_v18  ;;  %8557 = vmatprep.mubr.msk.f32.mxu0 %vm2879_vm3, %v15123_v59 }
 0x417   :  { %6605 = vmatmul.mubr.f32.gmra.mrb[158].mxu1 %v15289_v5  ;;  %v5713_v20 = vadd.f32 %v5712_v38, %v14934_v37  ;;  %v5714_v39 = vpop.f32.mrb[91].mxu1  ;;  %10231 = vmatprep.subr.bf16.mxu0 %v16558_v54  ;;  %v5939_v61 = vmul.f32 0.01, %v5861_v14  ;;  %v5770_v10 = vsel %vm5738_vm0, %v5708_v12, %v5754_v34  ;;  %vm5923_vm15 = vcmp.gt.f32.partialorder %v5861_v14, 0.0 }
 0x418   :  { %v5865_v47 = vpop.f32.mrb[106].mxu0  ;;  %10212 = vmatpush1.bf16.msra.mxu1 %v15438_v9  ;;  %8565 = vmatprep.mubr.msk.f32.mxu1 %vm2879_vm3, %v15305_v53 }
 0x419   :  { %vm5739_vm10 = vcmp.gt.f32.partialorder %v5713_v20, 0.0  ;;  %v5755_v19 = vmul.f32 0.01, %v5713_v20  ;;  %v5866_v24 = vadd.f32 %v5865_v47, %v14874_v46  ;;  %v5867_v59 = vpop.f32.mrb[107].mxu0  ;;  %6755 = vmatmul.mubr.f32.gmra.mrb[176].mxu0 %v16716_v16  ;;  %10249 = vmatprep.subr.bf16.mxu1 %v16558_v54  ;;  %v5955_v3 = vsel %vm5923_vm15, %v5861_v14, %v5939_v61  ;;  %v15549_v14 = vld [vmem:[%s16411_s7 + $0x20] sm:$0xff]  ;;  %v15570_v47 = vld [vmem:[%s16411_s7 + $0x30] sm:$0xff] }
 0x41a   :  { %v5717_v58 = vpop.f32.mrb[92].mxu1  ;;  %8558 = vmatprep.mubr.msk.f32.mxu0 %vm2879_vm3, %v16717_v22  ;;  %v15514_v22 = vld [vmem:[%s16411_s7 + $0x18] sm:$0xff]  ;;  %v15591_v59 = vld [vmem:[%s16411_s7 + $0x40] sm:$0xff] }
 0x41b   :  { %v5771_v9 = vsel %vm5739_vm10, %v5713_v20, %v5755_v19  ;;  %vm5924_vm4 = vcmp.gt.f32.partialorder %v5866_v24, 0.0  ;;  %v5940_v7 = vmul.f32 0.01, %v5866_v24  ;;  %6900 = vmatmul.mubr.f32.vlgmr.msra.gmra.mrb[160].mxu1 %v15506_v0  ;;  %v5718_v46 = vadd.f32 %v5717_v58, %v14939_v28  ;;  %v5719_v16 = vpop.f32.mrb[93].mxu1 }
 0x41c   :  { %v10232_v43 = vpack.c.bf16 %v5771_v9, %v5770_v10  ;;  %v5870_v6 = vpop.f32.mrb[108].mxu0  ;;  %10251 = vmatpush1.bf16.msra.mxu1 %v15465_v35  ;;  %8566 = vmatprep.mubr.msk.f32.mxu1 %vm2879_vm3, %v15514_v22 }
 0x41d   :  { %v5956_v52 = vsel %vm5924_vm4, %v5866_v24, %v5940_v7  ;;  %v5871_v17 = vadd.f32 %v5870_v6, %v14881_v26  ;;  %v5872_v31 = vpop.f32.mrb[109].mxu0  ;;  %6760 = vmatmul.mubr.f32.gmra.mrb[178].mxu0 %v15158_v13  ;;  %10252 = vmatprep.subr.bf16.mxu1 %v16558_v54  ;;  %v5756_v57 = vmul.f32 0.01, %v5718_v46  ;;  %vm5740_vm7 = vcmp.gt.f32.partialorder %v5718_v46, 0.0  ;;  %v15610_v7 = vld [vmem:[%s16411_s7 + $0x50] sm:$0xff] }
 0x41e   :  { %v15521_v42 = vpack.c.bf16 %v5956_v52, %v5955_v3  ;;  %v5722_v50 = vpop.f32.mrb[94].mxu1  ;;  %10233 = vmatpush1.bf16.msra.mxu0 %v10232_v43  ;;  %8559 = vmatprep.mubr.msk.f32.mxu0 %vm2879_vm3, %v15166_v49  ;;  %v15537_v49 = vld [vmem:[%s16411_s7 + $0x28] sm:$0xff]  ;;  %v15630_v43 = vld [vmem:[%s16411_s7 + $0x60] sm:$0xff]  ;;  %v15649_v31 = vld [vmem:[%s16411_s7 + $0x70] sm:$0xff] }
 0x41f   :  { %6905 = vmatmul.mubr.f32.gmra.mrb[162].mxu1 %v15528_v27  ;;  %v5723_v26 = vadd.f32 %v5722_v50, %v14947_v33  ;;  %10234 = vmatprep.subr.bf16.mxu0 %v16558_v54  ;;  %v5724_v13 = vpop.f32.mrb[95].mxu1  ;;  %v5941_v48 = vmul.f32 0.01, %v5871_v17  ;;  %vm5925_vm6 = vcmp.gt.f32.partialorder %v5871_v17, 0.0  ;;  %v5772_v41 = vsel %vm5740_vm7, %v5718_v46, %v5756_v57 }
 0x420   :  { %v5875_v8 = vpop.f32.mrb[110].mxu0  ;;  %10254 = vmatpush1.bf16.msra.mxu1 %v15488_v25  ;;  %8567 = vmatprep.mubr.msk.f32.mxu1 %vm2879_vm3, %v15537_v49  ;;  %v15667_v13 = vld [vmem:[%s16411_s7 + $0x80] sm:$0xff] }
 0x421   :  { %vm5741_vm12 = vcmp.gt.f32.partialorder %v5723_v26, 0.0  ;;  %v5757_v12 = vmul.f32 0.01, %v5723_v26  ;;  %v5876_v44 = vadd.f32 %v5875_v8, %v14887_v32  ;;  %v5877_v18 = vpop.f32.mrb[111].mxu0  ;;  %6765 = vmatmul.mubr.f32.gmra.mrb[180].mxu0 %v15179_v51  ;;  %10255 = vmatprep.subr.bf16.mxu1 %v16558_v54  ;;  %v15556_v51 = vld [vmem:[%s16411_s7 + $0x38] sm:$0xff] }
 0x422   :  { %8560 = vmatprep.mubr.msk.f32.mxu0 %vm2879_vm3, %v16718_v1  ;;  %v5957_v1 = vsel %vm5925_vm6, %v5871_v17, %v5941_v48 }
 0x423   :  { %v5773_v30 = vsel %vm5741_vm12, %v5723_v26, %v5757_v12  ;;  %vm5926_vm9 = vcmp.gt.f32.partialorder %v5876_v44, 0.0  ;;  %v5942_v36 = vmul.f32 0.01, %v5876_v44  ;;  %6910 = vmatmul.mubr.f32.gmra.mrb[164].mxu1 %v15549_v14 }
 0x424   :  { %v10235_v32 = vpack.c.bf16 %v5773_v30, %v5772_v41  ;;  %v5880_v55 = vpop.f32.mrb[112].mxu0  ;;  %10257 = vmatpush1.bf16.msra.mxu1 %v15521_v42  ;;  %8568 = vmatprep.mubr.msk.f32.mxu1 %vm2879_vm3, %v15556_v51  ;;  %v15684_v30 = vld [vmem:[%s16411_s7 + $0x90] sm:$0xff] }
 0x425   :  { %v5958_v34 = vsel %vm5926_vm9, %v5876_v44, %v5942_v36  ;;  %v5881_v38 = vadd.f32 %v5880_v55, %v14895_v40  ;;  %v5882_v20 = vpop.f32.mrb[113].mxu0  ;;  %6770 = vmatmul.mubr.f32.gmra.mrb[182].mxu0 %v15203_v21  ;;  %10258 = vmatprep.subr.bf16.mxu1 %v16558_v54  ;;  %v15578_v21 = vld [vmem:[%s16411_s7 + $0x48] sm:$0xff] }
 0x426   :  { %v15563_v39 = vpack.c.bf16 %v5958_v34, %v5957_v1  ;;  %10236 = vmatpush1.bf16.msra.mxu0 %v10235_v32  ;;  %8561 = vmatprep.mubr.msk.f32.mxu0 %vm2879_vm3, %v15211_v60 }
 0x427   :  { %6915 = vmatmul.mubr.f32.gmra.mrb[166].mxu1 %v15570_v47  ;;  %10237 = vmatprep.subr.bf16.mxu0 %v16558_v54  ;;  %v5943_v60 = vmul.f32 0.01, %v5881_v38  ;;  %vm5927_vm5 = vcmp.gt.f32.partialorder %v5881_v38, 0.0 }
 0x428   :  { %v5885_v40 = vpop.f32.mrb[114].mxu0  ;;  %10260 = vmatpush1.bf16.msra.mxu1 %v15563_v39  ;;  %8569 = vmatprep.mubr.msk.f32.mxu1 %vm2879_vm3, %v15578_v21 }
 0x429   :  { %v5886_v61 = vadd.f32 %v5885_v40, %v14902_v4  ;;  %v5887_v19 = vpop.f32.mrb[115].mxu0  ;;  %6775 = vmatmul.mubr.f32.gmra.mrb[184].mxu0 %v15224_v45  ;;  %10261 = vmatprep.subr.bf16.mxu1 %v16558_v54  ;;  %v15598_v45 = vld [vmem:[%s16411_s7 + $0x58] sm:$0xff] }
 0x42a   :  { %10239 = vmatpush1.bf16.msra.mxu0 %v15465_v35  ;;  %8562 = vmatprep.mubr.msk.f32.mxu0 %vm2879_vm3, %v16719_v11  ;;  %v5959_v11 = vsel %vm5927_vm5, %v5881_v38, %v5943_v60  ;;  %v15702_v38 = vld [vmem:[%s16411_s7 + $0xa0] sm:$0xff]  ;;  %v15718_v60 = vld [vmem:[%s16411_s7 + $0xb0] sm:$0xff] }
 0x42b   :  { %vm5928_vm8 = vcmp.gt.f32.partialorder %v5886_v61, 0.0  ;;  %v5944_v24 = vmul.f32 0.01, %v5886_v61  ;;  %6920 = vmatmul.mubr.f32.gmra.mrb[168].mxu1 %v15591_v59  ;;  %10240 = vmatprep.subr.bf16.mxu0 %v16558_v54  ;;  %v15735_v19 = vld [vmem:[%s16411_s7 + $0xc0] sm:$0xff] }
 0x42c   :  { %v5890_v4 = vpop.f32.mrb[116].mxu0  ;;  %8570 = vmatprep.mubr.msk.f32.mxu1 %vm2879_vm3, %v15598_v45 }
 0x42d   :  { %v5960_v35 = vsel %vm5928_vm8, %v5886_v61, %v5944_v24  ;;  %v5891_v10 = vadd.f32 %v5890_v4, %v14910_v15  ;;  %v5892_v58 = vpop.f32.mrb[117].mxu0  ;;  %6780 = vmatmul.mubr.f32.gmra.mrb[186].mxu0 %v15245_v29  ;;  %v15617_v15 = vld [vmem:[%s16411_s7 + $0x68] sm:$0xff]  ;;  %v15741_v24 = vld [vmem:[%s16411_s7 + $0xd8] sm:$0xff]  ;;  %v15751_v4 = vld [vmem:[%s16411_s7 + $0xd0] sm:$0xff] }
 0x42e   :  { %v10262_v9 = vpack.c.bf16 %v5960_v35, %v5959_v11  ;;  %10242 = vmatpush1.bf16.msra.mxu0 %v15488_v25  ;;  %8563 = vmatprep.mubr.msk.f32.mxu0 %vm2879_vm3, %v15253_v2  ;;  %v15724_v61 = vld [vmem:[%s16411_s7 + $0xc8] sm:$0xff]  ;;  %v15767_v35 = vld [vmem:[%s16411_s7 + $0xe0] sm:$0xff]  ;;  %v15783_v58 = vld [vmem:[%s16411_s7 + $0xf0] sm:$0xff] }
 0x42f   :  { %6925 = vmatmul.mubr.f32.gmra.mrb[170].mxu1 %v15610_v7  ;;  %10243 = vmatprep.subr.bf16.mxu0 %v16558_v54  ;;  %v5945_v29 = vmul.f32 0.01, %v5891_v10  ;;  %vm5929_vm11 = vcmp.gt.f32.partialorder %v5891_v10, 0.0  ;;  %v15757_v11 = vld [vmem:[%s16411_s7 + $0xe8] sm:$0xff] }
 0x430   :  { %v5895_v46 = vpop.f32.mrb[118].mxu0  ;;  %10263 = vmatpush1.bf16.msra.mxu1 %v10262_v9  ;;  %8571 = vmatprep.mubr.msk.f32.mxu1 %vm2879_vm3, %v15617_v15 }
 0x431   :  { %v5896_v2 = vadd.f32 %v5895_v46, %v16714_v56  ;;  %v5897_v25 = vpop.f32.mrb[119].mxu0  ;;  %6785 = vmatmul.mubr.f32.gmra.mrb[188].mxu0 %v15268_v62  ;;  %10264 = vmatprep.subr.bf16.mxu1 %v16558_v54  ;;  %v15637_v56 = vld [vmem:[%s16411_s7 + $0x78] sm:$0xff] }
 0x432   :  { %10245 = vmatpush1.bf16.msra.mxu0 %v15521_v42  ;;  %8564 = vmatprep.mubr.msk.f32.mxu0 %vm2879_vm3, %v16720_v23  ;;  %v5961_v23 = vsel %vm5929_vm11, %v5891_v10, %v5945_v29  ;;  %v15773_v10 = vld [vmem:[%s16411_s7 + $0xf8] sm:$0xff] }
 0x433   :  { %vm5930_vm1 = vcmp.gt.f32.partialorder %v5896_v2, 0.0  ;;  %v5946_v16 = vmul.f32 0.01, %v5896_v2  ;;  %6930 = vmatmul.mubr.f32.gmra.mrb[172].mxu1 %v15630_v43  ;;  %10246 = vmatprep.subr.bf16.mxu0 %v16558_v54 }
 0x434   :  { %v5900_v62 = vpop.f32.mrb[120].mxu0  ;;  %8572 = vmatprep.mubr.msk.f32.mxu1 %vm2879_vm3, %v15637_v56 }
 0x435   :  { %v5962_v6 = vsel %vm5930_vm1, %v5896_v2, %v5946_v16  ;;  %v5901_v3 = vadd.f32 %v5900_v62, %v14926_v63  ;;  %v5902_v52 = vpop.f32.mrb[121].mxu0  ;;  %6790 = vmatmul.mubr.f32.gmra.mrb[190].mxu0 %v15289_v5  ;;  %v15655_v63 = vld [vmem:[%s16411_s7 + $0x88] sm:$0xff] }
 0x436   :  { %v10265_v17 = vpack.c.bf16 %v5962_v6, %v5961_v23  ;;  %10248 = vmatpush1.bf16.msra.mxu0 %v15563_v39  ;;  %8581 = vmatprep.mubr.msk.f32.mxu0 %vm2879_vm3, %v15305_v53 }
 0x437   :  { %6935 = vmatmul.mubr.f32.gmra.mrb[174].mxu1 %v15649_v31  ;;  %v5947_v5 = vmul.f32 0.01, %v5901_v3  ;;  %vm5931_vm14 = vcmp.gt.f32.partialorder %v5901_v3, 0.0 }
 0x438   :  { %v5905_v42 = vpop.f32.mrb[122].mxu0  ;;  %10266 = vmatpush1.bf16.msra.mxu1 %v10265_v17  ;;  %8573 = vmatprep.mubr.msk.f32.mxu1 %vm2879_vm3, %v15655_v63 }
 0x439   :  { %v5906_v50 = vadd.f32 %v5905_v42, %v14934_v37  ;;  %v5907_v57 = vpop.f32.mrb[123].mxu0  ;;  %7085 = vmatmul.mubr.f32.vlgmr.msra.gmra.mrb[192].mxu0 %v15506_v0  ;;  %10267 = vmatprep.subr.bf16.mxu1 %v16558_v54  ;;  %v15673_v37 = vld [vmem:[%s16411_s7 + $0x98] sm:$0xff]  ;;  %v5963_v48 = vsel %vm5931_vm14, %v5901_v3, %v5947_v5  ;;  %v15868_v42 = vpop.permute.xlu1 %6215 }
 0x43a   :  { %8582 = vmatprep.mubr.msk.f32.mxu0 %vm2879_vm3, %v15514_v22 }
 0x43b   :  { %vm5932_vm2 = vcmp.gt.f32.partialorder %v5906_v50, 0.0  ;;  %v5948_v26 = vmul.f32 0.01, %v5906_v50  ;;  %6940 = vmatmul.mubr.f32.gmra.mrb[176].mxu1 %v15667_v13 }
 0x43c   :  { %v5910_v8 = vpop.f32.mrb[124].mxu0  ;;  %8574 = vmatprep.mubr.msk.f32.mxu1 %vm2879_vm3, %v15673_v37 }
 0x43d   :  { %v5964_v12 = vsel %vm5932_vm2, %v5906_v50, %v5948_v26  ;;  %v5911_v44 = vadd.f32 %v5910_v8, %v14939_v28  ;;  %v5912_v18 = vpop.f32.mrb[125].mxu0  ;;  %7090 = vmatmul.mubr.f32.gmra.mrb[194].mxu0 %v15528_v27  ;;  %v15690_v28 = vld [vmem:[%s16411_s7 + $0xa8] sm:$0xff] }
 0x43e   :  { %v10268_v41 = vpack.c.bf16 %v5964_v12, %v5963_v48  ;;  %8583 = vmatprep.mubr.msk.f32.mxu0 %vm2879_vm3, %v15537_v49 }
 0x43f   :  { %6945 = vmatmul.mubr.f32.gmra.mrb[178].mxu1 %v15684_v30  ;;  %v5949_v32 = vmul.f32 0.01, %v5911_v44  ;;  %vm5933_vm13 = vcmp.gt.f32.partialorder %v5911_v44, 0.0 }
 0x440   :  { %v5915_v36 = vpop.f32.mrb[126].mxu0  ;;  %10269 = vmatpush1.bf16.msra.mxu1 %v10268_v41  ;;  %8575 = vmatprep.mubr.msk.f32.mxu1 %vm2879_vm3, %v15690_v28 }
 0x441   :  { %v5916_v55 = vadd.f32 %v5915_v36, %v14947_v33  ;;  %7095 = vmatmul.mubr.f32.gmra.mrb[196].mxu0 %v15549_v14  ;;  %10270 = vmatprep.subr.bf16.mxu1 %v16558_v54  ;;  %v5917_v1 = vpop.f32.mrb[127].mxu0  ;;  %v15708_v33 = vld [vmem:[%s16411_s7 + $0xb8] sm:$0xff]  ;;  %v5965_v20 = vsel %vm5933_vm13, %v5911_v44, %v5949_v32 }
 0x442   :  { %8584 = vmatprep.mubr.msk.f32.mxu0 %vm2879_vm3, %v15556_v51  ;;  %v15887_v1 = vpop.permute.xlu1 %6225 }
 0x443   :  { %vm5934_vm0 = vcmp.gt.f32.partialorder %v5916_v55, 0.0  ;;  %v5950_v34 = vmul.f32 0.01, %v5916_v55  ;;  %6950 = vmatmul.mubr.f32.gmra.mrb[180].mxu1 %v15702_v38 }
 0x444   :  { %8576 = vmatprep.mubr.msk.f32.mxu1 %vm2879_vm3, %v15708_v33 }
 0x445   :  { %v5966_v39 = vsel %vm5934_vm0, %v5916_v55, %v5950_v34  ;;  %7100 = vmatmul.mubr.f32.gmra.mrb[198].mxu0 %v15570_v47 }
 0x446   :  { %v10271_v40 = vpack.c.bf16 %v5966_v39, %v5965_v20  ;;  %8585 = vmatprep.mubr.msk.f32.mxu0 %vm2879_vm3, %v15578_v21 }
 0x447   :  { %6955 = vmatmul.mubr.f32.gmra.mrb[182].mxu1 %v15718_v60 }
 0x448   :  { %10272 = vmatpush1.bf16.msra.mxu1 %v10271_v40  ;;  %8577 = vmatprep.mubr.msk.f32.mxu1 %vm2879_vm3, %v15724_v61  ;;  %v7349_v40 = vld [vmem:[%s16412_s9 + $0x8] sm:$0xff] }
 0x449   :  { %7105 = vmatmul.mubr.f32.gmra.mrb[200].mxu0 %v15591_v59  ;;  %10305 = vmatprep.subr.bf16.mxu1 %v16558_v54 }
 0x44a   :  { %8586 = vmatprep.mubr.msk.f32.mxu0 %vm2879_vm3, %v15598_v45 }
 0x44b   :  { %6960 = vmatmul.mubr.f32.gmra.mrb[184].mxu1 %v15735_v19 }
 0x44c   :  { %8578 = vmatprep.mubr.msk.f32.mxu1 %vm2879_vm3, %v15741_v24 }
 0x44d   :  { %7110 = vmatmul.mubr.f32.gmra.mrb[202].mxu0 %v15610_v7 }
 0x44e   :  { %8587 = vmatprep.mubr.msk.f32.mxu0 %vm2879_vm3, %v15617_v15 }
 0x44f   :  { %6965 = vmatmul.mubr.f32.gmra.mrb[186].mxu1 %v15751_v4 }
 0x450   :  { %8579 = vmatprep.mubr.msk.f32.mxu1 %vm2879_vm3, %v15757_v11 }
 0x451   :  { %7115 = vmatmul.mubr.f32.gmra.mrb[204].mxu0 %v15630_v43 }
 0x452   :  { %8588 = vmatprep.mubr.msk.f32.mxu0 %vm2879_vm3, %v15637_v56 }
 0x453   :  { %6970 = vmatmul.mubr.f32.gmra.mrb[188].mxu1 %v15767_v35 }
 0x454   :  { %8580 = vmatprep.mubr.msk.f32.mxu1 %vm2879_vm3, %v15773_v10 }
 0x455   :  { %7120 = vmatmul.mubr.f32.gmra.mrb[206].mxu0 %v15649_v31 }
 0x456   :  { %8589 = vmatprep.mubr.msk.f32.mxu0 %vm2879_vm3, %v15655_v63 }
 0x457   :  { %6975 = vmatmul.mubr.f32.gmra.mrb[190].mxu1 %v15783_v58 }
 0x458   :  { %8597 = vmatprep.mubr.msk.f32.mxu1 %vm2879_vm3, %v15305_v53 }
 0x459   :  { %7125 = vmatmul.mubr.f32.gmra.mrb[208].mxu0 %v15667_v13 }
 0x45a   :  { %8590 = vmatprep.mubr.msk.f32.mxu0 %vm2879_vm3, %v15673_v37 }
 0x45b   :  { %7270 = vmatmul.mubr.f32.vlgmr.msra.gmra.mrb[192].mxu1 %v15506_v0 }
 0x45c   :  { %8598 = vmatprep.mubr.msk.f32.mxu1 %vm2879_vm3, %v15514_v22 }
 0x45d   :  { %7130 = vmatmul.mubr.f32.gmra.mrb[210].mxu0 %v15684_v30 }
 0x45e   :  { %8591 = vmatprep.mubr.msk.f32.mxu0 %vm2879_vm3, %v15690_v28 }
 0x45f   :  { %7275 = vmatmul.mubr.f32.gmra.mrb[194].mxu1 %v15528_v27 }
 0x460   :  { %8599 = vmatprep.mubr.msk.f32.mxu1 %vm2879_vm3, %v15537_v49 }
 0x461   :  { %7135 = vmatmul.mubr.f32.gmra.mrb[212].mxu0 %v15702_v38 }
 0x462   :  { %8592 = vmatprep.mubr.msk.f32.mxu0 %vm2879_vm3, %v15708_v33 }
 0x463   :  { %7280 = vmatmul.mubr.f32.gmra.mrb[196].mxu1 %v15549_v14 }
 0x464   :  { %8600 = vmatprep.mubr.msk.f32.mxu1 %vm2879_vm3, %v15556_v51 }
 0x465   :  { %7140 = vmatmul.mubr.f32.gmra.mrb[214].mxu0 %v15718_v60 }
 0x466   :  { %8593 = vmatprep.mubr.msk.f32.mxu0 %vm2879_vm3, %v15724_v61 }
 0x467   :  { %7284 = vmatmul.mubr.f32.gmra.mrb[198].mxu1 %v15570_v47 }
 0x468   :  { %8601 = vmatprep.mubr.msk.f32.mxu1 %vm2879_vm3, %v15578_v21 }
 0x469   :  { %7145 = vmatmul.mubr.f32.gmra.mrb[216].mxu0 %v15735_v19 }
 0x46a   :  { %8594 = vmatprep.mubr.msk.f32.mxu0 %vm2879_vm3, %v15741_v24 }
 0x46b   :  { %7288 = vmatmul.mubr.f32.gmra.mrb[200].mxu1 %v15591_v59 }
 0x46c   :  { %8602 = vmatprep.mubr.msk.f32.mxu1 %vm2879_vm3, %v15598_v45 }
 0x46d   :  { %7150 = vmatmul.mubr.f32.gmra.mrb[218].mxu0 %v15751_v4  ;;  %v6121_v53 = vpop.f32.mrb[96].mxu1 }
 0x46e   :  { %8595 = vmatprep.mubr.msk.f32.mxu0 %vm2879_vm3, %v15757_v11  ;;  %v6123_v0 = vpop.f32.mrb[97].mxu1 }
 0x46f   :  { %7292 = vmatmul.mubr.f32.gmra.mrb[202].mxu1 %v15610_v7 }
 0x470   :  { %8603 = vmatprep.mubr.msk.f32.mxu1 %vm2879_vm3, %v15617_v15 }
 0x471   :  { %7155 = vmatmul.mubr.f32.gmra.mrb[220].mxu0 %v15767_v35  ;;  %v6126_v22 = vpop.f32.mrb[98].mxu1 }
 0x472   :  { %8596 = vmatprep.mubr.msk.f32.mxu0 %vm2879_vm3, %v15773_v10  ;;  %v6128_v27 = vpop.f32.mrb[99].mxu1 }
 0x473   :  { %7296 = vmatmul.mubr.f32.gmra.mrb[204].mxu1 %v15630_v43 }
 0x474   :  { %8604 = vmatprep.mubr.msk.f32.mxu1 %vm2879_vm3, %v15637_v56  ;;  %v15860_v56 = vpop.permute.xlu0 %6210 }
 0x475   :  { %7160 = vmatmul.mubr.f32.gmra.mrb[222].mxu0 %v15783_v58  ;;  %v6131_v49 = vpop.f32.mrb[100].mxu1 }
 0x476   :  { %v6133_v14 = vpop.f32.mrb[101].mxu1  ;;  %7621 = vmatprep.mubr.f32.mxu0 %v7349_v40 }
 0x477   :  { %7300 = vmatmul.mubr.f32.gmra.mrb[206].mxu1 %v15649_v31 }
 0x478   :  { %8605 = vmatprep.mubr.msk.f32.mxu1 %vm2879_vm3, %v15655_v63  ;;  %v15876_v48 = vpop.permute.xlu0 %6220 }
 0x479   :  { %v6136_v51 = vpop.f32.mrb[102].mxu1 }
 0x47a   :  { %v6138_v47 = vpop.f32.mrb[103].mxu1 }
 0x47b   :  { %7304 = vmatmul.mubr.f32.gmra.mrb[208].mxu1 %v15667_v13 }
 0x47c   :  { %8606 = vmatprep.mubr.msk.f32.mxu1 %vm2879_vm3, %v15673_v37 }
 0x47d   :  { %v15837_v21 = vpop.f32.mrb[104].mxu1 }
 0x47e   :  { %v6143_v59 = vpop.f32.mrb[105].mxu1 }
 0x47f   :  { %7309 = vmatmul.mubr.f32.gmra.mrb[210].mxu1 %v15684_v30 }
 0x480   :  { %8607 = vmatprep.mubr.msk.f32.mxu1 %vm2879_vm3, %v15690_v28 }
 0x481   :  { %v15842_v45 = vpop.f32.mrb[106].mxu1 }
 0x482   :  { %v6148_v9 = vpop.f32.mrb[107].mxu1 }
 0x483   :  { %7314 = vmatmul.mubr.f32.gmra.mrb[212].mxu1 %v15702_v38 }
 0x484   :  { %8608 = vmatprep.mubr.msk.f32.mxu1 %vm2879_vm3, %v15708_v33 }
 0x485   :  { %v15847_v7 = vpop.f32.mrb[108].mxu1 }
 0x486   :  { %v6153_v46 = vpop.f32.mrb[109].mxu1 }
 0x487   :  { %7318 = vmatmul.mubr.f32.gmra.mrb[214].mxu1 %v15718_v60 }
 0x488   :  { %8609 = vmatprep.mubr.msk.f32.mxu1 %vm2879_vm3, %v15724_v61 }
 0x489   :  { %v15852_v15 = vpop.f32.mrb[110].mxu1 }
 0x48a   :  { %v6158_v29 = vpop.f32.mrb[111].mxu1 }
 0x48b   :  { %7322 = vmatmul.mubr.f32.gmra.mrb[216].mxu1 %v15735_v19 }
 0x48c   :  { %v15855_v2 = vpop.f32.mrb[128].mxu0  ;;  %8610 = vmatprep.mubr.msk.f32.mxu1 %vm2879_vm3, %v15741_v24  ;;  %v15896_v24 = vpop.permute.xlu0 %6230 }
 0x48d   :  { %v6348_v25 = vpop.f32.mrb[129].mxu0 }
 0x48e   :  { %v6161_v16 = vpop.f32.mrb[112].mxu1 }
 0x48f   :  { %v6200_v43 = vmax.f32 %v6121_v53, %v6161_v16  ;;  %v6163_v62 = vpop.f32.mrb[113].mxu1  ;;  %7326 = vmatmul.mubr.f32.gmra.mrb[218].mxu1 %v15751_v4 }
 0x490   :  { %v15862_v23 = vpop.f32.mrb[130].mxu0  ;;  %8611 = vmatprep.mubr.msk.f32.mxu1 %vm2879_vm3, %v15757_v11  ;;  %v15914_v25 = vpop.permute.xlu0 %6240 }
 0x491   :  { %v6248_v6 = vadd.f32 %v15860_v56, %v6200_v43  ;;  %v6353_v3 = vpop.f32.mrb[131].mxu0 }
 0x492   :  { %v6166_v52 = vpop.f32.mrb[114].mxu1 }
 0x493   :  { %v6201_v17 = vmax.f32 %v6126_v22, %v6166_v52  ;;  %v6168_v31 = vpop.f32.mrb[115].mxu1  ;;  %7330 = vmatmul.mubr.f32.gmra.mrb[220].mxu1 %v15767_v35  ;;  %v6264_v5 = vmul.f32 0.01, %v6248_v6  ;;  %vm6256_vm10 = vcmp.gt.f32.partialorder %v6248_v6, 0.0 }
 0x494   :  { %v15870_v63 = vpop.f32.mrb[132].mxu0  ;;  %8612 = vmatprep.mubr.msk.f32.mxu1 %vm2879_vm3, %v15773_v10 }
 0x495   :  { %v6249_v50 = vadd.f32 %v15868_v42, %v6201_v17  ;;  %v6358_v57 = vpop.f32.mrb[133].mxu0  ;;  %v15880_v44 = vsel %vm6256_vm10, %v6248_v6, %v6264_v5 }
 0x496   :  { %v6171_v26 = vpop.f32.mrb[116].mxu1 }
 0x497   :  { %vm6257_vm15 = vcmp.gt.f32.partialorder %v6249_v50, 0.0  ;;  %v6265_v13 = vmul.f32 0.01, %v6249_v50  ;;  %v6202_v8 = vmax.f32 %v6131_v49, %v6171_v26  ;;  %v6173_v37 = vpop.f32.mrb[117].mxu1  ;;  %7334 = vmatmul.mubr.f32.gmra.mrb[222].mxu1 %v15783_v58  ;;  %v15908_v49 = vpop.permute.xlu1 %6235 }
 0x498   :  { %v15878_v12 = vpop.f32.mrb[134].mxu0 }
 0x499   :  { %v15882_v18 = vsel %vm6257_vm15, %v6249_v50, %v6265_v13  ;;  %v6250_v41 = vadd.f32 %v15876_v48, %v6202_v8  ;;  %v6363_v30 = vpop.f32.mrb[135].mxu0 }
 0x49a   :  { %v6176_v36 = vpop.f32.mrb[118].mxu1  ;;  %v10275_v28 = vpack.c.bf16 %v15882_v18, %v15880_v44 }
 0x49b   :  { %v6203_v32 = vmax.f32 %v6136_v51, %v6176_v36  ;;  %v6178_v55 = vpop.f32.mrb[119].mxu1  ;;  %v6266_v38 = vmul.f32 0.01, %v6250_v41  ;;  %vm6258_vm3 = vcmp.gt.f32.partialorder %v6250_v41, 0.0 }
 0x49c   :  { %v15889_v34 = vpop.f32.mrb[136].mxu0 }
 0x49d   :  { %v6251_v33 = vadd.f32 %v15887_v1, %v6203_v32  ;;  %v6368_v20 = vpop.f32.mrb[137].mxu0  ;;  %v15900_v11 = vsel %vm6258_vm3, %v6250_v41, %v6266_v38  ;;  %vm7508_vm3 = vcmask 130048  }
 0x49e   :  { %v6181_v39 = vpop.f32.mrb[120].mxu1 }
 0x49f   :  { %vm6259_vm4 = vcmp.gt.f32.partialorder %v6251_v33, 0.0  ;;  %v6267_v60 = vmul.f32 0.01, %v6251_v33  ;;  %v6204_v61 = vmax.f32 %v15837_v21, %v6181_v39  ;;  %v6183_v19 = vpop.f32.mrb[121].mxu1 }
 0x4a0   :  { %v15898_v4 = vpop.f32.mrb[138].mxu0 }
 0x4a1   :  { %v15902_v35 = vsel %vm6259_vm4, %v6251_v33, %v6267_v60  ;;  %v6252_v10 = vadd.f32 %v15896_v24, %v6204_v61  ;;  %v6373_v58 = vpop.f32.mrb[139].mxu0 }
 0x4a2   :  { %v6186_v53 = vpop.f32.mrb[122].mxu1  ;;  %v10279_v0 = vpack.c.bf16 %v15902_v35, %v15900_v11 }
 0x4a3   :  { %v6205_v22 = vmax.f32 %v15842_v45, %v6186_v53  ;;  %v6188_v27 = vpop.f32.mrb[123].mxu1  ;;  %v6268_v51 = vmul.f32 0.01, %v6252_v10  ;;  %vm6260_vm7 = vcmp.gt.f32.partialorder %v6252_v10, 0.0 }
 0x4a4   :  { %v15910_v14 = vpop.f32.mrb[140].mxu0 }
 0x4a5   :  { %v6253_v47 = vadd.f32 %v15908_v49, %v6205_v22  ;;  %v6378_v21 = vpop.f32.mrb[141].mxu0  ;;  %v15918_v45 = vsel %vm6260_vm7, %v6252_v10, %v6268_v51 }
 0x4a6   :  { %v6191_v59 = vpop.f32.mrb[124].mxu1 }
 0x4a7   :  { %vm6261_vm12 = vcmp.gt.f32.partialorder %v6253_v47, 0.0  ;;  %v6269_v9 = vmul.f32 0.01, %v6253_v47  ;;  %v6206_v46 = vmax.f32 %v15847_v7, %v6191_v59  ;;  %v6193_v29 = vpop.f32.mrb[125].mxu1  ;;  %v15926_v7 = vpop.permute.xlu1 %6245 }
 0x4a8   :  { %v15916_v16 = vpop.f32.mrb[142].mxu0 }
 0x4a9   :  { %v15920_v43 = vsel %vm6261_vm12, %v6253_v47, %v6269_v9  ;;  %v6254_v62 = vadd.f32 %v15914_v25, %v6206_v46  ;;  %v6383_v6 = vpop.f32.mrb[143].mxu0 }
 0x4aa   :  { %v6196_v3 = vpop.f32.mrb[126].mxu1  ;;  %v10283_v52 = vpack.c.bf16 %v15920_v43, %v15918_v45 }
 0x4ab   :  { %v6207_v17 = vmax.f32 %v15852_v15, %v6196_v3  ;;  %v6198_v31 = vpop.f32.mrb[127].mxu1  ;;  %v6270_v50 = vmul.f32 0.01, %v6254_v62  ;;  %vm6262_vm6 = vcmp.gt.f32.partialorder %v6254_v62, 0.0 }
 0x4ac   :  { %v6386_v5 = vpop.f32.mrb[144].mxu0 }
 0x4ad   :  { %v6255_v57 = vadd.f32 %v15926_v7, %v6207_v17  ;;  %v6425_v26 = vmax.f32 %v15855_v2, %v6386_v5  ;;  %v6388_v13 = vpop.f32.mrb[145].mxu0  ;;  %v15933_v15 = vsel %vm6262_vm6, %v6254_v62, %v6270_v50 }
 0x4ae   :  { %v15930_v8 = vpop.f32.mrb[128].mxu1 }
 0x4af   :  { %vm6263_vm9 = vcmp.gt.f32.partialorder %v6255_v57, 0.0  ;;  %v6271_v37 = vmul.f32 0.01, %v6255_v57  ;;  %v6433_v41 = vadd.f32 %v6425_v26, %v15860_v56  ;;  %v6533_v30 = vpop.f32.mrb[129].mxu1 }
 0x4b0   :  { %v6391_v36 = vpop.f32.mrb[146].mxu0 }
 0x4b1   :  { %v15935_v32 = vsel %vm6263_vm9, %v6255_v57, %v6271_v37  ;;  %v6426_v55 = vmax.f32 %v15862_v23, %v6391_v36  ;;  %v6393_v38 = vpop.f32.mrb[147].mxu0  ;;  %v6449_v20 = vmul.f32 0.01, %v6433_v41  ;;  %vm6441_vm5 = vcmp.gt.f32.partialorder %v6433_v41, 0.0 }
 0x4b2   :  { %v15938_v33 = vpop.f32.mrb[130].mxu1  ;;  %v10287_v2 = vpack.c.bf16 %v15935_v32, %v15933_v15 }
 0x4b3   :  { %v6434_v39 = vadd.f32 %v6426_v55, %v15868_v42  ;;  %v6538_v40 = vpop.f32.mrb[131].mxu1  ;;  %v15946_v23 = vsel %vm6441_vm5, %v6433_v41, %v6449_v20 }
 0x4b4   :  { %v6396_v60 = vpop.f32.mrb[148].mxu0 }
 0x4b5   :  { %vm6442_vm8 = vcmp.gt.f32.partialorder %v6434_v39, 0.0  ;;  %v6450_v61 = vmul.f32 0.01, %v6434_v39  ;;  %v6427_v19 = vmax.f32 %v15870_v63, %v6396_v60  ;;  %v6398_v10 = vpop.f32.mrb[149].mxu0 }
 0x4b6   :  { %v15944_v58 = vpop.f32.mrb[132].mxu1 }
 0x4b7   :  { %v15948_v53 = vsel %vm6442_vm8, %v6434_v39, %v6450_v61  ;;  %v6435_v22 = vadd.f32 %v6427_v19, %v15876_v48  ;;  %v6543_v27 = vpop.f32.mrb[133].mxu1 }
 0x4b8   :  { %v6401_v51 = vpop.f32.mrb[150].mxu0  ;;  %v10291_v47 = vpack.c.bf16 %v15948_v53, %v15946_v23 }
 0x4b9   :  { %v6428_v21 = vmax.f32 %v15878_v12, %v6401_v51  ;;  %v6403_v59 = vpop.f32.mrb[151].mxu0  ;;  %v6451_v63 = vmul.f32 0.01, %v6435_v22  ;;  %vm6443_vm11 = vcmp.gt.f32.partialorder %v6435_v22, 0.0 }
 0x4ba   :  { %v15954_v9 = vpop.f32.mrb[134].mxu1 }
 0x4bb   :  { %v6436_v46 = vadd.f32 %v6428_v21, %v15887_v1  ;;  %v6548_v29 = vpop.f32.mrb[135].mxu1  ;;  %v15960_v5 = vsel %vm6443_vm11, %v6435_v22, %v6451_v63 }
 0x4bc   :  { %v6406_v62 = vpop.f32.mrb[152].mxu0 }
 0x4bd   :  { %vm6444_vm1 = vcmp.gt.f32.partialorder %v6436_v46, 0.0  ;;  %v6452_v6 = vmul.f32 0.01, %v6436_v46  ;;  %v6429_v3 = vmax.f32 %v15889_v34, %v6406_v62  ;;  %v6408_v17 = vpop.f32.mrb[153].mxu0 }
 0x4be   :  { %v15958_v31 = vpop.f32.mrb[136].mxu1 }
 0x4bf   :  { %v15962_v50 = vsel %vm6444_vm1, %v6436_v46, %v6452_v6  ;;  %v6437_v12 = vadd.f32 %v6429_v3, %v15896_v24  ;;  %v6553_v57 = vpop.f32.mrb[137].mxu1 }
 0x4c0   :  { %v6411_v26 = vpop.f32.mrb[154].mxu0  ;;  %v10295_v13 = vpack.c.bf16 %v15962_v50, %v15960_v5 }
 0x4c1   :  { %v6430_v37 = vmax.f32 %v15898_v4, %v6411_v26  ;;  %v6413_v41 = vpop.f32.mrb[155].mxu0  ;;  %v6453_v34 = vmul.f32 0.01, %v6437_v12  ;;  %vm6445_vm14 = vcmp.gt.f32.partialorder %v6437_v12, 0.0 }
 0x4c2   :  { %v15968_v30 = vpop.f32.mrb[138].mxu1 }
 0x4c3   :  { %v6438_v36 = vadd.f32 %v6430_v37, %v15908_v49  ;;  %v6558_v55 = vpop.f32.mrb[139].mxu1  ;;  %v15974_v61 = vsel %vm6445_vm14, %v6437_v12, %v6453_v34 }
 0x4c4   :  { %v6416_v38 = vpop.f32.mrb[156].mxu0 }
 0x4c5   :  { %vm6446_vm2 = vcmp.gt.f32.partialorder %v6438_v36, 0.0  ;;  %v6454_v20 = vmul.f32 0.01, %v6438_v36  ;;  %v6431_v39 = vmax.f32 %v15910_v14, %v6416_v38  ;;  %v6418_v40 = vpop.f32.mrb[157].mxu0 }
 0x4c6   :  { %v15972_v60 = vpop.f32.mrb[140].mxu1 }
 0x4c7   :  { %v15976_v19 = vsel %vm6446_vm2, %v6438_v36, %v6454_v20  ;;  %v6439_v4 = vadd.f32 %v6431_v39, %v15914_v25  ;;  %v6563_v10 = vpop.f32.mrb[141].mxu1 }
 0x4c8   :  { %v6421_v22 = vpop.f32.mrb[158].mxu0  ;;  %v10299_v27 = vpack.c.bf16 %v15976_v19, %v15974_v61 }
 0x4c9   :  { %v6432_v51 = vmax.f32 %v15916_v16, %v6421_v22  ;;  %v6423_v21 = vpop.f32.mrb[159].mxu0  ;;  %v6455_v14 = vmul.f32 0.01, %v6439_v4  ;;  %vm6447_vm13 = vcmp.gt.f32.partialorder %v6439_v4, 0.0 }
 0x4ca   :  { %v15982_v59 = vpop.f32.mrb[142].mxu1 }
 0x4cb   :  { %v6440_v63 = vadd.f32 %v6432_v51, %v15926_v7  ;;  %v6568_v46 = vpop.f32.mrb[143].mxu1  ;;  %v15987_v17 = vsel %vm6447_vm13, %v6439_v4, %v6455_v14 }
 0x4cc   :  { %v15985_v29 = vpop.f32.mrb[160].mxu0 }
 0x4cd   :  { %vm6448_vm0 = vcmp.gt.f32.partialorder %v6440_v63, 0.0  ;;  %v6456_v62 = vmul.f32 0.01, %v6440_v63  ;;  %v6718_v6 = vpop.f32.mrb[161].mxu0 }
 0x4ce   :  { %v6571_v3 = vpop.f32.mrb[144].mxu1 }
 0x4cf   :  { %v15989_v12 = vsel %vm6448_vm0, %v6440_v63, %v6456_v62  ;;  %v6610_v16 = vmax.f32 %v15930_v8, %v6571_v3  ;;  %v6573_v57 = vpop.f32.mrb[145].mxu1 }
 0x4d0   :  { %v15992_v26 = vpop.f32.mrb[162].mxu0  ;;  %v10303_v37 = vpack.c.bf16 %v15989_v12, %v15987_v17 }
 0x4d1   :  { %v6618_v41 = vadd.f32 %v6610_v16, %v15860_v56  ;;  %v6723_v34 = vpop.f32.mrb[163].mxu0 }
 0x4d2   :  { %v6576_v36 = vpop.f32.mrb[146].mxu1 }
 0x4d3   :  { %v6611_v55 = vmax.f32 %v15938_v33, %v6576_v36  ;;  %v6578_v38 = vpop.f32.mrb[147].mxu1  ;;  %v6634_v39 = vmul.f32 0.01, %v6618_v41  ;;  %vm6626_vm10 = vcmp.gt.f32.partialorder %v6618_v41, 0.0 }
 0x4d4   :  { %v15998_v20 = vpop.f32.mrb[164].mxu0 }
 0x4d5   :  { %v6619_v40 = vadd.f32 %v6611_v55, %v15868_v42  ;;  %v6728_v4 = vpop.f32.mrb[165].mxu0  ;;  %v6642_v63 = vsel %vm6626_vm10, %v6618_v41, %v6634_v39 }
 0x4d6   :  { %v6581_v8 = vpop.f32.mrb[148].mxu1 }
 0x4d7   :  { %vm6627_vm15 = vcmp.gt.f32.partialorder %v6619_v40, 0.0  ;;  %v6635_v10 = vmul.f32 0.01, %v6619_v40  ;;  %v6612_v22 = vmax.f32 %v15944_v58, %v6581_v8  ;;  %v6583_v51 = vpop.f32.mrb[149].mxu1  ;;  %v7351_v58 = vld [vmem:[%s16412_s9 + $0x18] sm:$0xff] }
 0x4d8   :  { %v16002_v21 = vpop.f32.mrb[166].mxu0  ;;  %8613 = vmatprep.mubr.msk.f32.mxu1 %vm7508_vm3, %v7351_v58 }
 0x4d9   :  { %v6620_v14 = vadd.f32 %v6612_v22, %v15876_v48  ;;  %v6643_v33 = vsel %vm6627_vm15, %v6619_v40, %v6635_v10  ;;  %v6733_v46 = vpop.f32.mrb[167].mxu0 }
 0x4da   :  { %v6586_v62 = vpop.f32.mrb[150].mxu1  ;;  %v10273_v6 = vpack.c.bf16 %v6643_v33, %v6642_v63 }
 0x4db   :  { %v6613_v3 = vmax.f32 %v15954_v9, %v6586_v62  ;;  %v6588_v16 = vpop.f32.mrb[151].mxu1  ;;  %v6636_v34 = vmul.f32 0.01, %v6620_v14  ;;  %vm6628_vm4 = vcmp.gt.f32.partialorder %v6620_v14, 0.0 }
 0x4dc   :  { %10274 = vmatprep.subr.bf16.mxu0 %v10273_v6  ;;  %v16006_v57 = vpop.f32.mrb[168].mxu0 }
 0x4dd   :  { %v6621_v36 = vadd.f32 %v6613_v3, %v15887_v1  ;;  %10276 = vmatpush3.bf16.msra.mxu0 %v10275_v28  ;;  %v6738_v41 = vpop.f32.mrb[169].mxu0  ;;  %v6644_v8 = vsel %vm6628_vm4, %v6620_v14, %v6636_v34 }
 0x4de   :  { %v6591_v9 = vpop.f32.mrb[152].mxu1 }
 0x4df   :  { %vm6629_vm7 = vcmp.gt.f32.partialorder %v6621_v36, 0.0  ;;  %v6637_v55 = vmul.f32 0.01, %v6621_v36  ;;  %v6614_v38 = vmax.f32 %v15958_v31, %v6591_v9  ;;  %v6593_v39 = vpop.f32.mrb[153].mxu1 }
 0x4e0   :  { %v16017_v40 = vpop.f32.mrb[170].mxu0 }
 0x4e1   :  { %v6622_v4 = vadd.f32 %v6614_v38, %v15896_v24  ;;  %v6645_v10 = vsel %vm6629_vm7, %v6621_v36, %v6637_v55  ;;  %v6743_v22 = vpop.f32.mrb[171].mxu0 }
 0x4e2   :  { %v6596_v51 = vpop.f32.mrb[154].mxu1  ;;  %v10277_v44 = vpack.c.bf16 %v6645_v10, %v6644_v8 }
 0x4e3   :  { %v6615_v18 = vmax.f32 %v15968_v30, %v6596_v51  ;;  %v6598_v28 = vpop.f32.mrb[155].mxu1  ;;  %v6638_v33 = vmul.f32 0.01, %v6622_v4  ;;  %vm6630_vm12 = vcmp.gt.f32.partialorder %v6622_v4, 0.0 }
 0x4e4   :  { %10278 = vmatprep.subr.bf16.mxu0 %v10277_v44  ;;  %v16021_v63 = vpop.f32.mrb[172].mxu0 }
 0x4e5   :  { %v6623_v46 = vadd.f32 %v6615_v18, %v15908_v49  ;;  %10280 = vmatpush3.bf16.msra.mxu0 %v10279_v0  ;;  %v6748_v31 = vpop.f32.mrb[173].mxu0  ;;  %v6646_v58 = vsel %vm6630_vm12, %v6622_v4, %v6638_v33 }
 0x4e6   :  { %v6601_v14 = vpop.f32.mrb[156].mxu1 }
 0x4e7   :  { %vm6631_vm6 = vcmp.gt.f32.partialorder %v6623_v46, 0.0  ;;  %v6639_v62 = vmul.f32 0.01, %v6623_v46  ;;  %v6616_v6 = vmax.f32 %v15972_v60, %v6601_v14  ;;  %v6603_v3 = vpop.f32.mrb[157].mxu1 }
 0x4e8   :  { %v16028_v30 = vpop.f32.mrb[174].mxu0 }
 0x4e9   :  { %v6624_v16 = vadd.f32 %v6616_v6, %v15914_v25  ;;  %v6647_v34 = vsel %vm6631_vm6, %v6623_v46, %v6639_v62  ;;  %v6753_v36 = vpop.f32.mrb[175].mxu0 }
 0x4ea   :  { %v6606_v41 = vpop.f32.mrb[158].mxu1  ;;  %v10281_v9 = vpack.c.bf16 %v6647_v34, %v6646_v58 }
 0x4eb   :  { %v6617_v11 = vmax.f32 %v15982_v59, %v6606_v41  ;;  %v6608_v35 = vpop.f32.mrb[159].mxu1  ;;  %v6640_v55 = vmul.f32 0.01, %v6624_v16  ;;  %vm6632_vm9 = vcmp.gt.f32.partialorder %v6624_v16, 0.0 }
 0x4ec   :  { %10282 = vmatprep.subr.bf16.mxu0 %v10281_v9  ;;  %v6756_v0 = vpop.f32.mrb[176].mxu0 }
 0x4ed   :  { %v6625_v38 = vadd.f32 %v6617_v11, %v15926_v7  ;;  %10284 = vmatpush3.bf16.msra.mxu0 %v10283_v52  ;;  %v6795_v60 = vmax.f32 %v15985_v29, %v6756_v0  ;;  %v6758_v39 = vpop.f32.mrb[177].mxu0  ;;  %v6648_v44 = vsel %vm6632_vm9, %v6624_v16, %v6640_v55 }
 0x4ee   :  { %v16037_v4 = vpop.f32.mrb[160].mxu1 }
 0x4ef   :  { %vm6633_vm5 = vcmp.gt.f32.partialorder %v6625_v38, 0.0  ;;  %v6641_v8 = vmul.f32 0.01, %v6625_v38  ;;  %v6803_v59 = vadd.f32 %v6795_v60, %v15860_v56  ;;  %v6903_v10 = vpop.f32.mrb[161].mxu1 }
 0x4f0   :  { %v6761_v22 = vpop.f32.mrb[178].mxu0 }
 0x4f1   :  { %v6796_v51 = vmax.f32 %v15992_v26, %v6761_v22  ;;  %v6649_v18 = vsel %vm6633_vm5, %v6625_v38, %v6641_v8  ;;  %v6763_v28 = vpop.f32.mrb[179].mxu0  ;;  %v6819_v43 = vmul.f32 0.01, %v6803_v59  ;;  %vm6811_vm8 = vcmp.gt.f32.partialorder %v6803_v59, 0.0 }
 0x4f2   :  { %v10285_v33 = vpack.c.bf16 %v6649_v18, %v6648_v44  ;;  %v16041_v45 = vpop.f32.mrb[162].mxu1 }
 0x4f3   :  { %v6804_v52 = vadd.f32 %v6796_v51, %v15868_v42  ;;  %v6908_v29 = vpop.f32.mrb[163].mxu1  ;;  %v6827_v3 = vsel %vm6811_vm8, %v6803_v59, %v6819_v43 }
 0x4f4   :  { %10286 = vmatprep.subr.bf16.mxu0 %v10285_v33  ;;  %v6766_v46 = vpop.f32.mrb[180].mxu0 }
 0x4f5   :  { %vm6812_vm11 = vcmp.gt.f32.partialorder %v6804_v52, 0.0  ;;  %v6820_v31 = vmul.f32 0.01, %v6804_v52  ;;  %10288 = vmatpush3.bf16.msra.mxu0 %v10287_v2  ;;  %v6797_v26 = vmax.f32 %v15998_v20, %v6766_v46  ;;  %v6768_v14 = vpop.f32.mrb[181].mxu0 }
 0x4f6   :  { %v16048_v62 = vpop.f32.mrb[164].mxu1 }
 0x4f7   :  { %v6805_v6 = vadd.f32 %v6797_v26, %v15876_v48  ;;  %v6828_v16 = vsel %vm6812_vm11, %v6804_v52, %v6820_v31  ;;  %v6913_v58 = vpop.f32.mrb[165].mxu1 }
 0x4f8   :  { %v6771_v34 = vpop.f32.mrb[182].mxu0  ;;  %v10289_v36 = vpack.c.bf16 %v6828_v16, %v6827_v3 }
 0x4f9   :  { %v6798_v41 = vmax.f32 %v16002_v21, %v6771_v34  ;;  %v6773_v9 = vpop.f32.mrb[183].mxu0  ;;  %v6821_v15 = vmul.f32 0.01, %v6805_v6  ;;  %vm6813_vm1 = vcmp.gt.f32.partialorder %v6805_v6, 0.0 }
 0x4fa   :  { %10290 = vmatprep.subr.bf16.mxu0 %v10289_v36  ;;  %v16052_v11 = vpop.f32.mrb[166].mxu1 }
 0x4fb   :  { %v6806_v32 = vadd.f32 %v6798_v41, %v15887_v1  ;;  %10292 = vmatpush3.bf16.msra.mxu0 %v10291_v47  ;;  %v6918_v2 = vpop.f32.mrb[167].mxu1  ;;  %v6829_v60 = vsel %vm6813_vm1, %v6805_v6, %v6821_v15 }
 0x4fc   :  { %v6776_v20 = vpop.f32.mrb[184].mxu0 }
 0x4fd   :  { %vm6814_vm14 = vcmp.gt.f32.partialorder %v6806_v32, 0.0  ;;  %v6822_v35 = vmul.f32 0.01, %v6806_v32  ;;  %v6799_v0 = vmax.f32 %v16006_v57, %v6776_v20  ;;  %v6778_v55 = vpop.f32.mrb[185].mxu0 }
 0x4fe   :  { %v16059_v21 = vpop.f32.mrb[168].mxu1 }
 0x4ff   :  { %v6807_v38 = vadd.f32 %v6799_v0, %v15896_v24  ;;  %v6830_v39 = vsel %vm6814_vm14, %v6806_v32, %v6822_v35  ;;  %v6923_v8 = vpop.f32.mrb[169].mxu1  ;;  %v7353_v35 = vld [vmem:[%s16412_s9 + $0x28] sm:$0xff] }
 0x500   :  { %v6781_v59 = vpop.f32.mrb[186].mxu0  ;;  %v10293_v10 = vpack.c.bf16 %v6830_v39, %v6829_v60  ;;  %v7352_v39 = vld [vmem:[%s16412_s9 + $0x20] sm:$0xff]  ;;  %v7357_v8 = vld [vmem:[%s16412_s9 + $0x48] sm:$0xff] }
 0x501   :  { %v6800_v23 = vmax.f32 %v16017_v40, %v6781_v59  ;;  %v6783_v53 = vpop.f32.mrb[187].mxu0  ;;  %v6823_v22 = vmul.f32 0.01, %v6807_v38  ;;  %vm6815_vm2 = vcmp.gt.f32.partialorder %v6807_v38, 0.0 }
 0x502   :  { %10294 = vmatprep.subr.bf16.mxu0 %v10293_v10  ;;  %v16063_v47 = vpop.f32.mrb[170].mxu1 }
 0x503   :  { %v6808_v51 = vadd.f32 %v6800_v23, %v15908_v49  ;;  %10296 = vmatpush3.bf16.msra.mxu0 %v10295_v13  ;;  %v6928_v57 = vpop.f32.mrb[171].mxu1  ;;  %v6831_v29 = vsel %vm6815_vm2, %v6807_v38, %v6823_v22 }
 0x504   :  { %v6786_v44 = vpop.f32.mrb[188].mxu0 }
 0x505   :  { %vm6816_vm13 = vcmp.gt.f32.partialorder %v6808_v51, 0.0  ;;  %v6824_v18 = vmul.f32 0.01, %v6808_v51  ;;  %v6801_v28 = vmax.f32 %v16021_v63, %v6786_v44  ;;  %v6788_v33 = vpop.f32.mrb[189].mxu0 }
 0x506   :  { %v16070_v40 = vpop.f32.mrb[172].mxu1 }
 0x507   :  { %v6809_v43 = vadd.f32 %v6801_v28, %v15914_v25  ;;  %v6933_v52 = vpop.f32.mrb[173].mxu1  ;;  %v6832_v46 = vsel %vm6816_vm13, %v6808_v51, %v6824_v18  ;;  %v7356_v18 = vld [vmem:[%s16412_s9 + $0x40] sm:$0xff]  ;;  %v7361_v28 = vld [vmem:[%s16412_s9 + $0x68] sm:$0xff] }
 0x508   :  { %v6791_v31 = vpop.f32.mrb[190].mxu0  ;;  %v10297_v26 = vpack.c.bf16 %v6832_v46, %v6831_v29 }
 0x509   :  { %v6802_v5 = vmax.f32 %v16028_v30, %v6791_v31  ;;  %v6793_v50 = vpop.f32.mrb[191].mxu0  ;;  %v6825_v14 = vmul.f32 0.01, %v6809_v43  ;;  %vm6817_vm0 = vcmp.gt.f32.partialorder %v6809_v43, 0.0 }
 0x50a   :  { %v16074_v13 = vpop.f32.mrb[174].mxu1  ;;  %10298 = vmatprep.subr.bf16.mxu0 %v10297_v26  ;;  %v7365_v50 = vld [vmem:[%s16412_s9 + $0x88] sm:$0xff] }
 0x50b   :  { %v6810_v6 = vadd.f32 %v6802_v5, %v15926_v7  ;;  %v6938_v63 = vpop.f32.mrb[175].mxu1  ;;  %10300 = vmatpush3.bf16.msra.mxu0 %v10299_v27  ;;  %v6833_v41 = vsel %vm6817_vm0, %v6809_v43, %v6825_v14  ;;  %v7360_v5 = vld [vmem:[%s16412_s9 + $0x60] sm:$0xff] }
 0x50c   :  { %v16080_v3 = vpop.f32.mrb[192].mxu0 }
 0x50d   :  { %vm6818_vm10 = vcmp.gt.f32.partialorder %v6810_v6, 0.0  ;;  %v6826_v16 = vmul.f32 0.01, %v6810_v6  ;;  %v7088_v58 = vpop.f32.mrb[193].mxu0 }
 0x50e   :  { %v6941_v34 = vpop.f32.mrb[176].mxu1 }
 0x50f   :  { %v6980_v30 = vmax.f32 %v16037_v4, %v6941_v34  ;;  %v6943_v36 = vpop.f32.mrb[177].mxu1  ;;  %v6834_v9 = vsel %vm6818_vm10, %v6810_v6, %v6826_v16  ;;  %v7348_v4 = vld [vmem:[%s16412_s9] sm:$0xff] }
 0x510   :  { %v10301_v15 = vpack.c.bf16 %v6834_v9, %v6833_v41  ;;  %v16083_v32 = vpop.f32.mrb[194].mxu0  ;;  %v7364_v41 = vld [vmem:[%s16412_s9 + $0x80] sm:$0xff] }
 0x511   :  { %v6988_v2 = vadd.f32 %v6980_v30, %v15860_v56  ;;  %v7093_v20 = vpop.f32.mrb[195].mxu0 }
 0x512   :  { %v6946_v61 = vpop.f32.mrb[178].mxu1  ;;  %10302 = vmatprep.subr.bf16.mxu0 %v10301_v15  ;;  %v7369_v15 = vld [vmem:[%s16412_s9 + $0xa8] sm:$0xff] }
 0x513   :  { %v6981_v19 = vmax.f32 %v16041_v45, %v6946_v61  ;;  %v6948_v27 = vpop.f32.mrb[179].mxu1  ;;  %10304 = vmatpush3.bf16.msra.mxu0 %v10303_v37  ;;  %v7004_v55 = vmul.f32 0.01, %v6988_v2  ;;  %vm6996_vm15 = vcmp.gt.f32.partialorder %v6988_v2, 0.0 }
 0x514   :  { %v16096_v0 = vpop.f32.mrb[196].mxu0  ;;  %10332 = vmatprep.subr.bf16.mxu0 %v16558_v54 }
 0x515   :  { %v6989_v45 = vadd.f32 %v6981_v19, %v15868_v42  ;;  %v7098_v38 = vpop.f32.mrb[197].mxu0  ;;  %v7012_v10 = vsel %vm6996_vm15, %v6988_v2, %v7004_v55 }
 0x516   :  { %v6951_v60 = vpop.f32.mrb[180].mxu1  ;;  %7622 = vmatmul.mubr.f32.vlgmr.msra.gmra.mrb[224].mxu0 %v7348_v4 }
 0x517   :  { %vm6997_vm4 = vcmp.gt.f32.partialorder %v6989_v45, 0.0  ;;  %v7005_v17 = vmul.f32 0.01, %v6989_v45  ;;  %v6982_v12 = vmax.f32 %v16048_v62, %v6951_v60  ;;  %v6953_v37 = vpop.f32.mrb[181].mxu1  ;;  %7626 = vmatprep.mubr.f32.mxu0 %v7353_v35  ;;  %v7368_v35 = vld [vmem:[%s16412_s9 + $0xa0] sm:$0xff] }
 0x518   :  { %v16107_v59 = vpop.f32.mrb[198].mxu0 }
 0x519   :  { %v7013_v23 = vsel %vm6997_vm4, %v6989_v45, %v7005_v17  ;;  %v6990_v53 = vadd.f32 %v6982_v12, %v15876_v48  ;;  %v7103_v22 = vpop.f32.mrb[199].mxu0  ;;  %v7373_v45 = vld [vmem:[%s16412_s9 + $0xc8] sm:$0xff] }
 0x51a   :  { %v6956_v51 = vpop.f32.mrb[182].mxu1  ;;  %7627 = vmatmul.mubr.f32.gmra.mrb[226].mxu0 %v7352_v39  ;;  %v10306_v62 = vpack.c.bf16 %v7013_v23, %v7012_v10 }
 0x51b   :  { %v6983_v57 = vmax.f32 %v16052_v11, %v6956_v51  ;;  %v6958_v44 = vpop.f32.mrb[183].mxu1  ;;  %7631 = vmatprep.mubr.f32.mxu0 %v7357_v8  ;;  %v7006_v43 = vmul.f32 0.01, %v6990_v53  ;;  %vm6998_vm7 = vcmp.gt.f32.partialorder %v6990_v53, 0.0  ;;  %v7372_v8 = vld [vmem:[%s16412_s9 + $0xc0] sm:$0xff] }
 0x51c   :  { %10307 = vmatpush1.bf16.msra.mxu1 %v10306_v62  ;;  %v16117_v33 = vpop.f32.mrb[200].mxu0 }
 0x51d   :  { %v6991_v52 = vadd.f32 %v6983_v57, %v15887_v1  ;;  %10308 = vmatprep.subr.bf16.mxu1 %v16558_v54  ;;  %v7108_v29 = vpop.f32.mrb[201].mxu0  ;;  %v7014_v6 = vsel %vm6998_vm7, %v6990_v53, %v7006_v43  ;;  %v7377_v53 = vld [vmem:[%s16412_s9 + $0xe8] sm:$0xff] }
 0x51e   :  { %v6961_v11 = vpop.f32.mrb[184].mxu1  ;;  %7632 = vmatmul.mubr.f32.gmra.mrb[228].mxu0 %v7356_v18 }
 0x51f   :  { %vm6999_vm12 = vcmp.gt.f32.partialorder %v6991_v52, 0.0  ;;  %v7007_v46 = vmul.f32 0.01, %v6991_v52  ;;  %v6984_v31 = vmax.f32 %v16059_v21, %v6961_v11  ;;  %v6963_v26 = vpop.f32.mrb[185].mxu1  ;;  %7636 = vmatprep.mubr.f32.mxu0 %v7361_v28  ;;  %v7376_v28 = vld [vmem:[%s16412_s9 + $0xe0] sm:$0xff] }
 0x520   :  { %v16128_v14 = vpop.f32.mrb[202].mxu0 }
 0x521   :  { %v7015_v63 = vsel %vm6999_vm12, %v6991_v52, %v7007_v46  ;;  %v6992_v16 = vadd.f32 %v6984_v31, %v15896_v24  ;;  %v7113_v58 = vpop.f32.mrb[203].mxu0  ;;  %vm10469_vm12 = vmmov 0  }
 0x522   :  { %v6966_v34 = vpop.f32.mrb[186].mxu1  ;;  %7637 = vmatmul.mubr.f32.gmra.mrb[230].mxu0 %v7360_v5  ;;  %v10309_v21 = vpack.c.bf16 %v7015_v63, %v7014_v6  ;;  %v7380_v63 = vld [vmem:[%s16412_s9 + $0x100] sm:$0xff] }
 0x523   :  { %v6985_v30 = vmax.f32 %v16063_v47, %v6966_v34  ;;  %v6968_v36 = vpop.f32.mrb[187].mxu1  ;;  %7641 = vmatprep.mubr.f32.mxu0 %v7365_v50  ;;  %v7008_v2 = vmul.f32 0.01, %v6992_v16  ;;  %vm7000_vm6 = vcmp.gt.f32.partialorder %v6992_v16, 0.0 }
 0x524   :  { %10310 = vmatpush1.bf16.msra.mxu1 %v10309_v21  ;;  %v16135_v9 = vpop.f32.mrb[204].mxu0 }
 0x525   :  { %v6993_v20 = vadd.f32 %v6985_v30, %v15908_v49  ;;  %v7118_v61 = vpop.f32.mrb[205].mxu0  ;;  %10311 = vmatprep.subr.bf16.mxu1 %v16558_v54  ;;  %v7016_v38 = vsel %vm7000_vm6, %v6992_v16, %v7008_v2 }
 0x526   :  { %v6971_v47 = vpop.f32.mrb[188].mxu1  ;;  %7642 = vmatmul.mubr.f32.gmra.mrb[232].mxu0 %v7364_v41 }
 0x527   :  { %vm7001_vm9 = vcmp.gt.f32.partialorder %v6993_v20, 0.0  ;;  %v7009_v19 = vmul.f32 0.01, %v6993_v20  ;;  %v6986_v27 = vmax.f32 %v16070_v40, %v6971_v47  ;;  %v6973_v4 = vpop.f32.mrb[189].mxu1  ;;  %7646 = vmatprep.mubr.f32.mxu0 %v7369_v15 }
 0x528   :  { %v16146_v55 = vpop.f32.mrb[206].mxu0 }
 0x529   :  { %v7017_v60 = vsel %vm7001_vm9, %v6993_v20, %v7009_v19  ;;  %v6994_v17 = vadd.f32 %v6986_v27, %v15914_v25  ;;  %v7123_v12 = vpop.f32.mrb[207].mxu0  ;;  %v7384_v20 = vld [vmem:[%s16412_s9 + $0x120] sm:$0xff] }
 0x52a   :  { %v6976_v37 = vpop.f32.mrb[190].mxu1  ;;  %7647 = vmatmul.mubr.f32.gmra.mrb[234].mxu0 %v7368_v35  ;;  %v10312_v40 = vpack.c.bf16 %v7017_v60, %v7016_v38  ;;  %v7388_v38 = vld [vmem:[%s16412_s9 + $0x140] sm:$0xff] }
 0x52b   :  { %v6987_v39 = vmax.f32 %v16074_v13, %v6976_v37  ;;  %7651 = vmatprep.mubr.f32.mxu0 %v7373_v45  ;;  %v6978_v10 = vpop.f32.mrb[191].mxu1  ;;  %v7010_v22 = vmul.f32 0.01, %v6994_v17  ;;  %vm7002_vm5 = vcmp.gt.f32.partialorder %v6994_v17, 0.0 }
 0x52c   :  { %10313 = vmatpush1.bf16.msra.mxu1 %v10312_v40  ;;  %v7126_v23 = vpop.f32.mrb[208].mxu0 }
 0x52d   :  { %v6995_v51 = vadd.f32 %v6987_v39, %v15926_v7  ;;  %v7165_v62 = vmax.f32 %v16080_v3, %v7126_v23  ;;  %v7128_v57 = vpop.f32.mrb[209].mxu0  ;;  %10314 = vmatprep.subr.bf16.mxu1 %v16558_v54  ;;  %v7381_v3 = vld [vmem:[%s16412_s9 + $0x108] sm:$0xff]  ;;  %v7018_v29 = vsel %vm7002_vm5, %v6994_v17, %v7010_v22  ;;  %v7392_v23 = vld [vmem:[%s16412_s9 + $0x160] sm:$0xff] }
 0x52e   :  { %7652 = vmatmul.mubr.f32.gmra.mrb[236].mxu0 %v7372_v8  ;;  %v16162_v13 = vpop.f32.mrb[192].mxu1 }
 0x52f   :  { %vm7003_vm8 = vcmp.gt.f32.partialorder %v6995_v51, 0.0  ;;  %v7011_v44 = vmul.f32 0.01, %v6995_v51  ;;  %v7173_v18 = vadd.f32 %v7165_v62, %v15860_v56  ;;  %7656 = vmatprep.mubr.f32.mxu0 %v7377_v53  ;;  %v7273_v43 = vpop.f32.mrb[193].mxu1  ;;  %v7397_v62 = vld [vmem:[%s16412_s9 + $0x188] sm:$0xff] }
 0x530   :  { %v7131_v52 = vpop.f32.mrb[210].mxu0 }
 0x531   :  { %v7019_v11 = vsel %vm7003_vm8, %v6995_v51, %v7011_v44  ;;  %v7166_v46 = vmax.f32 %v16083_v32, %v7131_v52  ;;  %v7133_v31 = vpop.f32.mrb[211].mxu0  ;;  %v7189_v50 = vmul.f32 0.01, %v7173_v18  ;;  %vm7181_vm11 = vcmp.gt.f32.partialorder %v7173_v18, 0.0  ;;  %v7385_v32 = vld [vmem:[%s16412_s9 + $0x128] sm:$0xff] }
 0x532   :  { %7657 = vmatmul.mubr.f32.gmra.mrb[238].mxu0 %v7376_v28  ;;  %v10315_v26 = vpack.c.bf16 %v7019_v11, %v7018_v29  ;;  %v16172_v5 = vpop.f32.mrb[194].mxu1  ;;  %v7396_v28 = vld [vmem:[%s16412_s9 + $0x180] sm:$0xff] }
 0x533   :  { %v7174_v6 = vadd.f32 %v7166_v46, %v15868_v42  ;;  %7661 = vmatprep.mubr.f32.mxu0 %v7381_v3  ;;  %v7278_v16 = vpop.f32.mrb[195].mxu1  ;;  %v7197_v41 = vsel %vm7181_vm11, %v7173_v18, %v7189_v50 }
 0x534   :  { %10316 = vmatpush1.bf16.msra.mxu1 %v10315_v26  ;;  %v7136_v58 = vpop.f32.mrb[212].mxu0 }
 0x535   :  { %vm7182_vm1 = vcmp.gt.f32.partialorder %v7174_v6, 0.0  ;;  %v7190_v34 = vmul.f32 0.01, %v7174_v6  ;;  %v7167_v21 = vmax.f32 %v16096_v0, %v7136_v58  ;;  %v7138_v30 = vpop.f32.mrb[213].mxu0  ;;  %10317 = vmatprep.subr.bf16.mxu1 %v16558_v54  ;;  %v7389_v0 = vld [vmem:[%s16412_s9 + $0x148] sm:$0xff] }
 0x536   :  { %7662 = vmatmul.mubr.f32.gmra.mrb[240].mxu0 %v7380_v63  ;;  %v7281_v36 = vpop.f32.mrb[196].mxu1  ;;  %v7405_v58 = vld [vmem:[%s16412_s9 + $0x1c8] sm:$0xff] }
 0x537   :  { %v7198_v15 = vsel %vm7182_vm1, %v7174_v6, %v7190_v34  ;;  %v7175_v2 = vadd.f32 %v7167_v21, %v15876_v48  ;;  %7666 = vmatprep.mubr.f32.mxu0 %v7385_v32  ;;  %v7282_v61 = vpop.f32.mrb[197].mxu1  ;;  %v7400_v6 = vld [vmem:[%s16412_s9 + $0x1a0] sm:$0xff] }
 0x538   :  { %v7141_v47 = vpop.f32.mrb[214].mxu0  ;;  %v10318_v19 = vpack.c.bf16 %v7198_v15, %v7197_v41  ;;  %v7404_v36 = vld [vmem:[%s16412_s9 + $0x1c0] sm:$0xff] }
 0x539   :  { %v7168_v27 = vmax.f32 %v16107_v59, %v7141_v47  ;;  %v7143_v4 = vpop.f32.mrb[215].mxu0  ;;  %v7191_v45 = vmul.f32 0.01, %v7175_v2  ;;  %vm7183_vm14 = vcmp.gt.f32.partialorder %v7175_v2, 0.0  ;;  %v7393_v59 = vld [vmem:[%s16412_s9 + $0x168] sm:$0xff]  ;;  %v7408_v47 = vld [vmem:[%s16412_s9 + $0x1e0] sm:$0xff] }
 0x53a   :  { %7667 = vmatmul.mubr.f32.gmra.mrb[242].mxu0 %v7384_v20  ;;  %10319 = vmatpush1.bf16.msra.mxu1 %v10318_v19  ;;  %v7285_v35 = vpop.f32.mrb[198].mxu1 }
 0x53b   :  { %v7176_v48 = vadd.f32 %v7168_v27, %v15887_v1  ;;  %7671 = vmatprep.mubr.f32.mxu0 %v7389_v0  ;;  %10320 = vmatprep.subr.bf16.mxu1 %v16558_v54  ;;  %v7286_v60 = vpop.f32.mrb[199].mxu1  ;;  %v7199_v39 = vsel %vm7183_vm14, %v7175_v2, %v7191_v45 }
 0x53c   :  { %v7146_v17 = vpop.f32.mrb[216].mxu0 }
 0x53d   :  { %vm7184_vm2 = vcmp.gt.f32.partialorder %v7176_v48, 0.0  ;;  %v7192_v12 = vmul.f32 0.01, %v7176_v48  ;;  %v7169_v37 = vmax.f32 %v16117_v33, %v7146_v17  ;;  %v7148_v40 = vpop.f32.mrb[217].mxu0 }
 0x53e   :  { %7672 = vmatmul.mubr.f32.gmra.mrb[244].mxu0 %v7388_v38  ;;  %v7289_v1 = vpop.f32.mrb[200].mxu1  ;;  %v7355_v40 = vld [vmem:[%s16412_s9 + $0x38] sm:$0xff] }
 0x53f   :  { %v7200_v8 = vsel %vm7184_vm2, %v7176_v48, %v7192_v12  ;;  %v7177_v10 = vadd.f32 %v7169_v37, %v15896_v24  ;;  %7676 = vmatprep.mubr.f32.mxu0 %v7393_v59  ;;  %v7290_v53 = vpop.f32.mrb[201].mxu1 }
 0x540   :  { %v7151_v22 = vpop.f32.mrb[218].mxu0  ;;  %v10321_v51 = vpack.c.bf16 %v7200_v8, %v7199_v39  ;;  %v7354_v39 = vld [vmem:[%s16412_s9 + $0x30] sm:$0xff]  ;;  %v7359_v8 = vld [vmem:[%s16412_s9 + $0x58] sm:$0xff] }
 0x541   :  { %v7170_v33 = vmax.f32 %v16128_v14, %v7151_v22  ;;  %v7153_v57 = vpop.f32.mrb[219].mxu0  ;;  %v7193_v18 = vmul.f32 0.01, %v7177_v10  ;;  %vm7185_vm13 = vcmp.gt.f32.partialorder %v7177_v10, 0.0  ;;  %v7401_v14 = vld [vmem:[%s16412_s9 + $0x1a8] sm:$0xff]  ;;  %v7358_v53 = vld [vmem:[%s16412_s9 + $0x50] sm:$0xff] }
 0x542   :  { %7677 = vmatmul.mubr.f32.gmra.mrb[246].mxu0 %v7392_v23  ;;  %10322 = vmatpush1.bf16.msra.mxu1 %v10321_v51  ;;  %v7293_v44 = vpop.f32.mrb[202].mxu1  ;;  %v7363_v22 = vld [vmem:[%s16412_s9 + $0x78] sm:$0xff] }
 0x543   :  { %v7178_v24 = vadd.f32 %v7170_v33, %v15908_v49  ;;  %7681 = vmatprep.mubr.f32.mxu0 %v7397_v62  ;;  %v7294_v43 = vpop.f32.mrb[203].mxu1  ;;  %10323 = vmatprep.subr.bf16.mxu1 %v16558_v54  ;;  %v7201_v46 = vsel %vm7185_vm13, %v7177_v10, %v7193_v18  ;;  %v7362_v33 = vld [vmem:[%s16412_s9 + $0x70] sm:$0xff]  ;;  %v7367_v57 = vld [vmem:[%s16412_s9 + $0x98] sm:$0xff] }
 0x544   :  { %v7156_v52 = vpop.f32.mrb[220].mxu0  ;;  %v7370_v43 = vld [vmem:[%s16412_s9 + $0xb0] sm:$0xff] }
 0x545   :  { %vm7186_vm0 = vcmp.gt.f32.partialorder %v7178_v24, 0.0  ;;  %v7194_v3 = vmul.f32 0.01, %v7178_v24  ;;  %v7171_v29 = vmax.f32 %v16135_v9, %v7156_v52  ;;  %v7158_v11 = vpop.f32.mrb[221].mxu0  ;;  %v7375_v52 = vld [vmem:[%s16412_s9 + $0xd8] sm:$0xff] }
 0x546   :  { %7682 = vmatmul.mubr.f32.gmra.mrb[248].mxu0 %v7396_v28  ;;  %v7297_v49 = vpop.f32.mrb[204].mxu1  ;;  %v7371_v28 = vld [vmem:[%s16412_s9 + $0xb8] sm:$0xff] }
 0x547   :  { %v7202_v31 = vsel %vm7186_vm0, %v7178_v24, %v7194_v3  ;;  %v7179_v26 = vadd.f32 %v7171_v29, %v15914_v25  ;;  %v7298_v50 = vpop.f32.mrb[205].mxu1  ;;  %7686 = vmatprep.mubr.f32.mxu0 %v7401_v14  ;;  %v7366_v24 = vld [vmem:[%s16412_s9 + $0x90] sm:$0xff]  ;;  %v7379_v3 = vld [vmem:[%s16412_s9 + $0xf8] sm:$0xff] }
 0x548   :  { %v7161_v63 = vpop.f32.mrb[222].mxu0  ;;  %v10324_v16 = vpack.c.bf16 %v7202_v31, %v7201_v46  ;;  %v7374_v14 = vld [vmem:[%s16412_s9 + $0xd0] sm:$0xff]  ;;  %v7383_v11 = vld [vmem:[%s16412_s9 + $0x118] sm:$0xff] }
 0x549   :  { %v7172_v9 = vmax.f32 %v16146_v55, %v7161_v63  ;;  %v7163_v32 = vpop.f32.mrb[223].mxu0  ;;  %v7195_v21 = vmul.f32 0.01, %v7179_v26  ;;  %vm7187_vm10 = vcmp.gt.f32.partialorder %v7179_v26, 0.0  ;;  %v7409_v55 = vld [vmem:[%s16412_s9 + $0x1e8] sm:$0xff]  ;;  %v7378_v29 = vld [vmem:[%s16412_s9 + $0xf0] sm:$0xff] }
 0x54a   :  { %v7301_v34 = vpop.f32.mrb[206].mxu1  ;;  %7687 = vmatmul.mubr.f32.gmra.mrb[250].mxu0 %v7400_v6  ;;  %10325 = vmatpush1.bf16.msra.mxu1 %v10324_v16  ;;  %v7382_v49 = vld [vmem:[%s16412_s9 + $0x110] sm:$0xff]  ;;  %v7387_v46 = vld [vmem:[%s16412_s9 + $0x138] sm:$0xff] }
 0x54b   :  { %v7180_v25 = vadd.f32 %v7172_v9, %v15926_v7  ;;  %v7302_v30 = vpop.f32.mrb[207].mxu1  ;;  %7691 = vmatprep.mubr.f32.mxu0 %v7405_v58  ;;  %10326 = vmatprep.subr.bf16.mxu1 %v16558_v54  ;;  %v7203_v2 = vsel %vm7187_vm10, %v7179_v26, %v7195_v21  ;;  %v7386_v31 = vld [vmem:[%s16412_s9 + $0x130] sm:$0xff]  ;;  %v7391_v26 = vld [vmem:[%s16412_s9 + $0x158] sm:$0xff] }
 0x54c   :  { %v7390_v50 = vld [vmem:[%s16412_s9 + $0x150] sm:$0xff]  ;;  %v7395_v6 = vld [vmem:[%s16412_s9 + $0x178] sm:$0xff] }
 0x54d   :  { %vm7188_vm15 = vcmp.gt.f32.partialorder %v7180_v25, 0.0  ;;  %v7196_v41 = vmul.f32 0.01, %v7180_v25  ;;  %v7394_v63 = vld [vmem:[%s16412_s9 + $0x170] sm:$0xff]  ;;  %v7399_v16 = vld [vmem:[%s16412_s9 + $0x198] sm:$0xff] }
 0x54e   :  { %v7305_v15 = vpop.f32.mrb[208].mxu1  ;;  %7692 = vmatmul.mubr.f32.gmra.mrb[252].mxu0 %v7404_v36  ;;  %v7398_v58 = vld [vmem:[%s16412_s9 + $0x190] sm:$0xff]  ;;  %v7403_v9 = vld [vmem:[%s16412_s9 + $0x1b8] sm:$0xff] }
 0x54f   :  { %v7204_v20 = vsel %vm7188_vm15, %v7180_v25, %v7196_v41  ;;  %v7338_v7 = vmax.f32 %v16162_v13, %v7305_v15  ;;  %v7307_v61 = vpop.f32.mrb[209].mxu1  ;;  %7696 = vmatprep.mubr.f32.mxu0 %v7409_v55  ;;  %v7402_v32 = vld [vmem:[%s16412_s9 + $0x1b0] sm:$0xff]  ;;  %v7407_v34 = vld [vmem:[%s16412_s9 + $0x1d8] sm:$0xff] }
 0x550   :  { %v10327_v19 = vpack.c.bf16 %v7204_v20, %v7203_v2  ;;  %v7406_v21 = vld [vmem:[%s16412_s9 + $0x1d0] sm:$0xff]  ;;  %v7411_v25 = vld [vmem:[%s16412_s9 + $0x1f8] sm:$0xff] }
 0x551   :  { %v7340_v0 = vadd.f32 %v7338_v7, %v15860_v56  ;;  %v7410_v30 = vld [vmem:[%s16412_s9 + $0x1f0] sm:$0xff] }
 0x552   :  { %v7310_v27 = vpop.f32.mrb[210].mxu1  ;;  %7697 = vmatmul.mubr.f32.gmra.mrb[254].mxu0 %v7408_v47  ;;  %10328 = vmatpush1.bf16.msra.mxu1 %v10327_v19 }
 0x553   :  { %v7339_v4 = vmax.f32 %v16172_v5, %v7310_v27  ;;  %10329 = vmatprep.subr.bf16.mxu1 %v16558_v54  ;;  %v7312_v35 = vpop.f32.mrb[211].mxu1  ;;  %v7344_v45 = vmul.f32 0.01, %v7340_v0  ;;  %vm7342_vm4 = vcmp.gt.f32.partialorder %v7340_v0, 0.0  ;;  %v7350_v5 = vld [vmem:[%s16412_s9 + $0x10] sm:$0xff] }
 0x555   :  { %v7341_v13 = vadd.f32 %v7339_v4, %v15868_v42  ;;  %v7346_v17 = vsel %vm7342_vm4, %v7340_v0, %v7344_v45  ;;  %v10470_v4 = vmov 0.0  }
 0x556   :  { %v7315_v48 = vpop.f32.mrb[212].mxu1  ;;  %9470 = vmatprep.mubr.msk.f32.mxu0 %vm10469_vm12, %v10470_v4 }
 0x557   :  { %vm7343_vm7 = vcmp.gt.f32.partialorder %v7341_v13, 0.0  ;;  %v7345_v38 = vmul.f32 0.01, %v7341_v13  ;;  %v7316_v60 = vpop.f32.mrb[213].mxu1 }
 0x559   :  { %v7347_v59 = vsel %vm7343_vm7, %v7341_v13, %v7345_v38 }
 0x55a   :  { %v10330_v12 = vpack.c.bf16 %v7347_v59, %v7346_v17  ;;  %v7319_v56 = vpop.f32.mrb[214].mxu1 }
 0x55b   :  { %v7320_v37 = vpop.f32.mrb[215].mxu1 }
 0x55c   :  { %10331 = vmatpush1.bf16.msra.mxu1 %v10330_v12 }
 0x55e   :  { %v7323_v42 = vpop.f32.mrb[216].mxu1 }
 0x55f   :  { %7767 = vmatmul.mubr.f32.vlgmr.msra.gmra.mrb[224].mxu1 %v7350_v5  ;;  %v7324_v1 = vpop.f32.mrb[217].mxu1 }
 0x560   :  { %8614 = vmatprep.mubr.msk.f32.mxu1 %vm7508_vm3, %v7355_v40 }
 0x562   :  { %v7327_v10 = vpop.f32.mrb[218].mxu1 }
 0x563   :  { %7772 = vmatmul.mubr.f32.gmra.mrb[226].mxu1 %v7354_v39  ;;  %v7328_v23 = vpop.f32.mrb[219].mxu1 }
 0x564   :  { %8615 = vmatprep.mubr.msk.f32.mxu1 %vm7508_vm3, %v7359_v8 }
 0x566   :  { %v7331_v51 = vpop.f32.mrb[220].mxu1 }
 0x567   :  { %7777 = vmatmul.mubr.f32.gmra.mrb[228].mxu1 %v7358_v53  ;;  %v7332_v62 = vpop.f32.mrb[221].mxu1 }
 0x568   :  { %8616 = vmatprep.mubr.msk.f32.mxu1 %vm7508_vm3, %v7363_v22 }
 0x56a   :  { %v7335_v44 = vpop.f32.mrb[222].mxu1 }
 0x56b   :  { %7782 = vmatmul.mubr.f32.gmra.mrb[230].mxu1 %v7362_v33  ;;  %v7336_v18 = vpop.f32.mrb[223].mxu1 }
 0x56c   :  { %8617 = vmatprep.mubr.msk.f32.mxu1 %vm7508_vm3, %v7367_v57 }
 0x56f   :  { %7787 = vmatmul.mubr.f32.gmra.mrb[232].mxu1 %v7366_v24 }
 0x570   :  { %8618 = vmatprep.mubr.msk.f32.mxu1 %vm7508_vm3, %v7371_v28 }
 0x573   :  { %7792 = vmatmul.mubr.f32.gmra.mrb[234].mxu1 %v7370_v43 }
 0x574   :  { %8619 = vmatprep.mubr.msk.f32.mxu1 %vm7508_vm3, %v7375_v52 }
 0x577   :  { %7797 = vmatmul.mubr.f32.gmra.mrb[236].mxu1 %v7374_v14 }
 0x578   :  { %8620 = vmatprep.mubr.msk.f32.mxu1 %vm7508_vm3, %v7379_v3 }
 0x57b   :  { %7802 = vmatmul.mubr.f32.gmra.mrb[238].mxu1 %v7378_v29 }
 0x57c   :  { %8621 = vmatprep.mubr.msk.f32.mxu1 %vm7508_vm3, %v7383_v11 }
 0x57f   :  { %7807 = vmatmul.mubr.f32.gmra.mrb[240].mxu1 %v7382_v49 }
 0x580   :  { %8622 = vmatprep.mubr.msk.f32.mxu1 %vm7508_vm3, %v7387_v46  ;;  %v7431_v46 = vpop.permute.xlu0 %7430 }
 0x583   :  { %7812 = vmatmul.mubr.f32.gmra.mrb[242].mxu1 %v7386_v31 }
 0x584   :  { %8623 = vmatprep.mubr.msk.f32.mxu1 %vm7508_vm3, %v7391_v26 }
 0x587   :  { %7817 = vmatmul.mubr.f32.gmra.mrb[244].mxu1 %v7390_v50 }
 0x588   :  { %8624 = vmatprep.mubr.msk.f32.mxu1 %vm7508_vm3, %v7395_v6 }
 0x58b   :  { %7822 = vmatmul.mubr.f32.gmra.mrb[246].mxu1 %v7394_v63  ;;  %v7436_v63 = vpop.permute.xlu1 %7435 }
 0x58c   :  { %8625 = vmatprep.mubr.msk.f32.mxu1 %vm7508_vm3, %v7399_v16 }
 0x58f   :  { %7827 = vmatmul.mubr.f32.gmra.mrb[248].mxu1 %v7398_v58 }
 0x590   :  { %8626 = vmatprep.mubr.msk.f32.mxu1 %vm7508_vm3, %v7403_v9 }
 0x593   :  { %7832 = vmatmul.mubr.f32.gmra.mrb[250].mxu1 %v7402_v32 }
 0x594   :  { %8627 = vmatprep.mubr.msk.f32.mxu1 %vm7508_vm3, %v7407_v34 }
 0x597   :  { %7837 = vmatmul.mubr.f32.gmra.mrb[252].mxu1 %v7406_v21  ;;  %v7441_v21 = vpop.permute.xlu0 %7440 }
 0x598   :  { %8628 = vmatprep.mubr.msk.f32.mxu1 %vm7508_vm3, %v7411_v25 }
 0x59b   :  { %7842 = vmatmul.mubr.f32.gmra.mrb[254].mxu1 %v7410_v30 }
 0x5e9   :  { %v8941_v36 = vpop.f32.mrb[224].mxu0 }
 0x5ea   :  { %v8942_v55 = vpop.f32.mrb[225].mxu0 }
 0x5eb   :  { %v8943_v41 = vadd.f32 %v8942_v55, %v8941_v36 }
 0x5ed   :  { %v8944_v15 = vpop.f32.mrb[226].mxu0  ;;  %v7624_v31 = vadd.f32 %v8943_v41, %v7431_v46  ;;  %v7446_v41 = vpop.permute.xlu1 %7445 }
 0x5ee   :  { %v8945_v2 = vpop.f32.mrb[227].mxu0 }
 0x5ef   :  { %v8946_v20 = vadd.f32 %v8945_v2, %v8944_v15 }
 0x5f1   :  { %v8947_v7 = vpop.f32.mrb[228].mxu0  ;;  %v7629_v16 = vadd.f32 %v8946_v20, %v7436_v63 }
 0x5f2   :  { %v8948_v61 = vpop.f32.mrb[229].mxu0 }
 0x5f3   :  { %v8949_v47 = vadd.f32 %v8948_v61, %v8947_v7 }
 0x5f5   :  { %v8950_v19 = vpop.f32.mrb[230].mxu0  ;;  %v7634_v30 = vadd.f32 %v8949_v47, %v7441_v21 }
 0x5f6   :  { %v8951_v0 = vpop.f32.mrb[231].mxu0 }
 0x5f7   :  { %v16349_v27 = vadd.f32 %v8951_v0, %v8950_v19 }
 0x5f9   :  { %v8953_v35 = vpop.f32.mrb[232].mxu0  ;;  %v7639_v19 = vadd.f32 %v16349_v27, %v7446_v41 }
 0x5fa   :  { %v8954_v45 = vpop.f32.mrb[233].mxu0 }
 0x5fb   :  { %v16351_v13 = vadd.f32 %v8954_v45, %v8953_v35  ;;  %v7451_v45 = vpop.permute.xlu0 %7450 }
 0x5fd   :  { %v8956_v48 = vpop.f32.mrb[234].mxu0 }
 0x5fe   :  { %v8957_v38 = vpop.f32.mrb[235].mxu0 }
 0x5ff   :  { %v16353_v60 = vadd.f32 %v8957_v38, %v8956_v48  ;;  %v7644_v48 = vadd.f32 %v16351_v13, %v7451_v45 }
 0x601   :  { %v8959_v17 = vpop.f32.mrb[236].mxu0 }
 0x602   :  { %v8960_v59 = vpop.f32.mrb[237].mxu0 }
 0x603   :  { %v16355_v12 = vadd.f32 %v8960_v59, %v8959_v17 }
 0x605   :  { %v8962_v56 = vpop.f32.mrb[238].mxu0 }
 0x606   :  { %v8963_v37 = vpop.f32.mrb[239].mxu0 }
 0x607   :  { %v16357_v5 = vadd.f32 %v8963_v37, %v8962_v56 }
 0x609   :  { %v8965_v40 = vpop.f32.mrb[240].mxu0 }
 0x60a   :  { %v8966_v42 = vpop.f32.mrb[241].mxu0 }
 0x60b   :  { %v16359_v1 = vadd.f32 %v8966_v42, %v8965_v40  ;;  %v7456_v40 = vpop.permute.xlu1 %7455 }
 0x60c   :  { %v7649_v42 = vadd.f32 %v16353_v60, %v7456_v40 }
 0x60d   :  { %v8968_v39 = vpop.f32.mrb[242].mxu0 }
 0x60e   :  { %v8969_v8 = vpop.f32.mrb[243].mxu0 }
 0x60f   :  { %v16361_v10 = vadd.f32 %v8969_v8, %v8968_v39 }
 0x611   :  { %v8971_v23 = vpop.f32.mrb[244].mxu0 }
 0x612   :  { %v8972_v53 = vpop.f32.mrb[245].mxu0 }
 0x613   :  { %v16363_v22 = vadd.f32 %v8972_v53, %v8971_v23 }
 0x615   :  { %v8974_v51 = vpop.f32.mrb[246].mxu0 }
 0x616   :  { %v8975_v62 = vpop.f32.mrb[247].mxu0 }
 0x617   :  { %v16365_v33 = vadd.f32 %v8975_v62, %v8974_v51  ;;  %v7461_v51 = vpop.permute.xlu0 %7460 }
 0x618   :  { %v7654_v62 = vadd.f32 %v16355_v12, %v7461_v51 }
 0x619   :  { %v8977_v57 = vpop.f32.mrb[248].mxu0 }
 0x61a   :  { %v8978_v44 = vpop.f32.mrb[249].mxu0 }
 0x61b   :  { %v16367_v18 = vadd.f32 %v8978_v44, %v8977_v57 }
 0x61d   :  { %v8980_v24 = vpop.f32.mrb[250].mxu0 }
 0x61e   :  { %v8981_v28 = vpop.f32.mrb[251].mxu0 }
 0x61f   :  { %v16369_v43 = vadd.f32 %v8981_v28, %v8980_v24 }
 0x621   :  { %v8983_v52 = vpop.f32.mrb[252].mxu0 }
 0x622   :  { %v8984_v14 = vpop.f32.mrb[253].mxu0 }
 0x623   :  { %v16371_v3 = vadd.f32 %v8984_v14, %v8983_v52  ;;  %v7466_v14 = vpop.permute.xlu1 %7465 }
 0x625   :  { %v8986_v29 = vpop.f32.mrb[254].mxu0 }
 0x626   :  { %v8987_v11 = vpop.f32.mrb[255].mxu0 }
 0x627   :  { %v16373_v49 = vadd.f32 %v8987_v11, %v8986_v29  ;;  %v7659_v29 = vadd.f32 %v16357_v5, %v7466_v14 }
 0x632   :  { %v7768_v26 = vpop.f32.mrb[224].mxu1 }
 0x633   :  { %v7769_v50 = vadd.f32 %v7768_v26, %v7624_v31  ;;  %v7770_v6 = vpop.f32.mrb[225].mxu1 }
 0x635   :  { %v7863_v9 = vmul.f32 0.01, %v7769_v50  ;;  %vm7847_vm3 = vcmp.gt.f32.partialorder %v7769_v50, 0.0 }
 0x636   :  { %v7773_v58 = vpop.f32.mrb[226].mxu1 }
 0x637   :  { %v7774_v32 = vadd.f32 %v7773_v58, %v7629_v16  ;;  %v7775_v34 = vpop.f32.mrb[227].mxu1  ;;  %v7879_v55 = vsel %vm7847_vm3, %v7769_v50, %v7863_v9  ;;  %v7471_v50 = vpop.permute.xlu0 %7470  ;;  %vm7972_vm3 = vcmask 1044480  }
 0x638   :  { %v7664_v6 = vadd.f32 %v16359_v1, %v7471_v50  ;;  %v7476_v34 = vpop.permute.xlu1 %7475 }
 0x639   :  { %vm7848_vm6 = vcmp.gt.f32.partialorder %v7774_v32, 0.0  ;;  %v7864_v25 = vmul.f32 0.01, %v7774_v32  ;;  %v7669_v21 = vadd.f32 %v16361_v10, %v7476_v34 }
 0x63a   :  { %v7778_v36 = vpop.f32.mrb[228].mxu1 }
 0x63b   :  { %v7880_v15 = vsel %vm7848_vm6, %v7774_v32, %v7864_v25  ;;  %v7779_v2 = vadd.f32 %v7778_v36, %v7634_v30  ;;  %v7780_v7 = vpop.f32.mrb[229].mxu1 }
 0x63c   :  { %v10333_v61 = vpack.c.bf16 %v7880_v15, %v7879_v55  ;;  %v7481_v15 = vpop.permute.xlu0 %7480 }
 0x63d   :  { %v7865_v20 = vmul.f32 0.01, %v7779_v2  ;;  %vm7849_vm9 = vcmp.gt.f32.partialorder %v7779_v2, 0.0 }
 0x63e   :  { %v7783_v0 = vpop.f32.mrb[230].mxu1  ;;  %10334 = vmatpush3.bf16.msra.mxu0 %v10333_v61 }
 0x63f   :  { %v7784_v4 = vadd.f32 %v7783_v0, %v7639_v19  ;;  %v7785_v35 = vpop.f32.mrb[231].mxu1  ;;  %10335 = vmatprep.subr.bf16.mxu0 %v16558_v54  ;;  %v7881_v17 = vsel %vm7849_vm9, %v7779_v2, %v7865_v20  ;;  %v7674_v2 = vadd.f32 %v16363_v22, %v7481_v15  ;;  %v7486_v20 = vpop.permute.xlu1 %7485 }
 0x641   :  { %vm7850_vm5 = vcmp.gt.f32.partialorder %v7784_v4, 0.0  ;;  %v7866_v47 = vmul.f32 0.01, %v7784_v4 }
 0x642   :  { %v7788_v38 = vpop.f32.mrb[232].mxu1 }
 0x643   :  { %v7882_v59 = vsel %vm7850_vm5, %v7784_v4, %v7866_v47  ;;  %v7789_v56 = vadd.f32 %v7788_v38, %v7644_v48  ;;  %v7790_v37 = vpop.f32.mrb[233].mxu1  ;;  %v7679_v4 = vadd.f32 %v16365_v33, %v7486_v20  ;;  %v7491_v38 = vpop.permute.xlu0 %7490 }
 0x644   :  { %v10336_v27 = vpack.c.bf16 %v7882_v59, %v7881_v17  ;;  %v7684_v17 = vadd.f32 %v16367_v18, %v7491_v38 }
 0x645   :  { %v7867_v8 = vmul.f32 0.01, %v7789_v56  ;;  %vm7851_vm8 = vcmp.gt.f32.partialorder %v7789_v56, 0.0 }
 0x646   :  { %v7793_v39 = vpop.f32.mrb[234].mxu1  ;;  %10337 = vmatpush3.bf16.msra.mxu0 %v10336_v27 }
 0x647   :  { %v7794_v23 = vadd.f32 %v7793_v39, %v7649_v42  ;;  %v7795_v53 = vpop.f32.mrb[235].mxu1  ;;  %10338 = vmatprep.subr.bf16.mxu0 %v16558_v54  ;;  %v7883_v44 = vsel %vm7851_vm8, %v7789_v56, %v7867_v8  ;;  %v7496_v42 = vpop.permute.xlu1 %7495 }
 0x648   :  { %v7689_v39 = vadd.f32 %v16369_v43, %v7496_v42 }
 0x649   :  { %vm7852_vm11 = vcmp.gt.f32.partialorder %v7794_v23, 0.0  ;;  %v7868_v13 = vmul.f32 0.01, %v7794_v23 }
 0x64a   :  { %v7798_v57 = vpop.f32.mrb[236].mxu1 }
 0x64b   :  { %v7884_v24 = vsel %vm7852_vm11, %v7794_v23, %v7868_v13  ;;  %v7799_v28 = vadd.f32 %v7798_v57, %v7654_v62  ;;  %v7800_v52 = vpop.f32.mrb[237].mxu1  ;;  %v7501_v13 = vpop.permute.xlu0 %7500 }
 0x64c   :  { %v10339_v60 = vpack.c.bf16 %v7884_v24, %v7883_v44  ;;  %v7694_v62 = vadd.f32 %v16371_v3, %v7501_v13  ;;  %v7506_v14 = vpop.permute.xlu1 %7505 }
 0x64d   :  { %v7869_v46 = vmul.f32 0.01, %v7799_v28  ;;  %vm7853_vm1 = vcmp.gt.f32.partialorder %v7799_v28, 0.0 }
 0x64e   :  { %v7803_v11 = vpop.f32.mrb[238].mxu1  ;;  %10340 = vmatpush3.bf16.msra.mxu0 %v10339_v60  ;;  %v7699_v60 = vadd.f32 %v16373_v49, %v7506_v14 }
 0x64f   :  { %v7804_v31 = vadd.f32 %v7803_v11, %v7659_v29  ;;  %v7805_v26 = vpop.f32.mrb[239].mxu1  ;;  %10341 = vmatprep.subr.bf16.mxu0 %v16558_v54  ;;  %v7885_v16 = vsel %vm7853_vm1, %v7799_v28, %v7869_v46  ;;  %v7900_v49 = vpop.permute.xlu0 %7899 }
 0x651   :  { %vm7854_vm14 = vcmp.gt.f32.partialorder %v7804_v31, 0.0  ;;  %v7870_v12 = vmul.f32 0.01, %v7804_v31 }
 0x652   :  { %v7808_v63 = vpop.f32.mrb[240].mxu1 }
 0x653   :  { %v7886_v58 = vsel %vm7854_vm14, %v7804_v31, %v7870_v12  ;;  %v7809_v9 = vadd.f32 %v7808_v63, %v7664_v6  ;;  %v7810_v32 = vpop.f32.mrb[241].mxu1  ;;  %v7895_v6 = vld [vmem:[%s16413_s11] sm:$0x1f] }
 0x654   :  { %v10342_v5 = vpack.c.bf16 %v7886_v58, %v7885_v16 }
 0x655   :  { %v7871_v30 = vmul.f32 0.01, %v7809_v9  ;;  %vm7855_vm2 = vcmp.gt.f32.partialorder %v7809_v9, 0.0 }
 0x656   :  { %v7813_v25 = vpop.f32.mrb[242].mxu1  ;;  %10343 = vmatpush3.bf16.msra.mxu0 %v10342_v5 }
 0x657   :  { %v7814_v36 = vadd.f32 %v7813_v25, %v7669_v21  ;;  %v7815_v55 = vpop.f32.mrb[243].mxu1  ;;  %10344 = vmatprep.subr.bf16.mxu0 %v16558_v54  ;;  %v7887_v41 = vsel %vm7855_vm2, %v7809_v9, %v7871_v30 }
 0x659   :  { %vm7856_vm13 = vcmp.gt.f32.partialorder %v7814_v36, 0.0  ;;  %v7872_v1 = vmul.f32 0.01, %v7814_v36 }
 0x65a   :  { %v7818_v7 = vpop.f32.mrb[244].mxu1 }
 0x65b   :  { %v7888_v61 = vsel %vm7856_vm13, %v7814_v36, %v7872_v1  ;;  %v7819_v19 = vadd.f32 %v7818_v7, %v7674_v2  ;;  %v7820_v0 = vpop.f32.mrb[245].mxu1 }
 0x65c   :  { %v10345_v10 = vpack.c.bf16 %v7888_v61, %v7887_v41 }
 0x65d   :  { %v7873_v45 = vmul.f32 0.01, %v7819_v19  ;;  %vm7857_vm0 = vcmp.gt.f32.partialorder %v7819_v19, 0.0 }
 0x65e   :  { %v7823_v35 = vpop.f32.mrb[246].mxu1  ;;  %10346 = vmatpush3.bf16.msra.mxu0 %v10345_v10 }
 0x65f   :  { %v7824_v47 = vadd.f32 %v7823_v35, %v7679_v4  ;;  %v7825_v48 = vpop.f32.mrb[247].mxu1  ;;  %10347 = vmatprep.subr.bf16.mxu0 %v16558_v54  ;;  %v7889_v56 = vsel %vm7857_vm0, %v7819_v19, %v7873_v45 }
 0x661   :  { %vm7858_vm10 = vcmp.gt.f32.partialorder %v7824_v47, 0.0  ;;  %v7874_v22 = vmul.f32 0.01, %v7824_v47 }
 0x662   :  { %v7828_v59 = vpop.f32.mrb[248].mxu1 }
 0x663   :  { %v7890_v37 = vsel %vm7858_vm10, %v7824_v47, %v7874_v22  ;;  %v7829_v40 = vadd.f32 %v7828_v59, %v7684_v17  ;;  %v7830_v27 = vpop.f32.mrb[249].mxu1 }
 0x664   :  { %v10348_v33 = vpack.c.bf16 %v7890_v37, %v7889_v56 }
 0x665   :  { %v7875_v23 = vmul.f32 0.01, %v7829_v40  ;;  %vm7859_vm15 = vcmp.gt.f32.partialorder %v7829_v40, 0.0 }
 0x666   :  { %v7833_v8 = vpop.f32.mrb[250].mxu1  ;;  %10349 = vmatpush3.bf16.msra.mxu0 %v10348_v33 }
 0x667   :  { %v7834_v53 = vadd.f32 %v7833_v8, %v7689_v39  ;;  %v7835_v51 = vpop.f32.mrb[251].mxu1  ;;  %10350 = vmatprep.subr.bf16.mxu0 %v16558_v54  ;;  %v7891_v44 = vsel %vm7859_vm15, %v7829_v40, %v7875_v23 }
 0x669   :  { %vm7860_vm4 = vcmp.gt.f32.partialorder %v7834_v53, 0.0  ;;  %v7876_v18 = vmul.f32 0.01, %v7834_v53 }
 0x66a   :  { %v7838_v57 = vpop.f32.mrb[252].mxu1 }
 0x66b   :  { %v7892_v24 = vsel %vm7860_vm4, %v7834_v53, %v7876_v18  ;;  %v7839_v28 = vadd.f32 %v7838_v57, %v7694_v62  ;;  %v7840_v52 = vpop.f32.mrb[253].mxu1 }
 0x66c   :  { %v10351_v43 = vpack.c.bf16 %v7892_v24, %v7891_v44 }
 0x66d   :  { %v7877_v11 = vmul.f32 0.01, %v7839_v28  ;;  %vm7861_vm7 = vcmp.gt.f32.partialorder %v7839_v28, 0.0 }
 0x66e   :  { %v7843_v29 = vpop.f32.mrb[254].mxu1  ;;  %10352 = vmatpush3.bf16.msra.mxu0 %v10351_v43 }
 0x66f   :  { %v7844_v46 = vadd.f32 %v7843_v29, %v7699_v60  ;;  %10353 = vmatprep.subr.bf16.mxu0 %v16558_v54  ;;  %v7845_v31 = vpop.f32.mrb[255].mxu1  ;;  %v7893_v3 = vsel %vm7861_vm7, %v7839_v28, %v7877_v11 }
 0x671   :  { %vm7862_vm12 = vcmp.gt.f32.partialorder %v7844_v46, 0.0  ;;  %v7878_v26 = vmul.f32 0.01, %v7844_v46 }
 0x673   :  { %v7894_v50 = vsel %vm7862_vm12, %v7844_v46, %v7878_v26 }
 0x674   :  { %v10354_v12 = vpack.c.bf16 %v7894_v50, %v7893_v3 }
 0x676   :  { %10355 = vmatpush3.bf16.msra.mxu0 %v10354_v12 }
 0x679   :  { %9471 = vmatmul.mubr.f32.vlgmr.msra.gmra.mrb[0].mxu0 %v7895_v6 }
 0x74c   :  { %v7968_v63 = vpop.f32.mrb[0].mxu0 }
 0x74d   :  { %v7969_v16 = vadd.f32 %v7968_v63, %v7900_v49  ;;  %v9472_v58 = vpop.f32.mrb[1].mxu0 }
 0x74f   :  { %v7973_v9 = vsel %vm7972_vm3, %v7969_v16, -inf }
 0x750   :  { %v7974_v54 = vrot.slane %v7973_v9, 4 }
 0x752   :  { %v7975_v32 = vmax.f32 %v7973_v9, %v7974_v54 }
 0x754   :  { %v7976_v34 = vrot.slane %v7975_v32, 2 }
 0x756   :  { %v7977_v5 = vmax.f32 %v7975_v32, %v7976_v34 }
 0x758   :  { %v7978_v21 = vrot.slane %v7977_v5, 1 }
 0x75a   :  { %v7979_v25 = vmax.f32 %v7977_v5, %v7978_v21 }
 0x75c   :  { %v7980_v30 = vsub.f32 %v7969_v16, %v7979_v25 }
 0x75e   :  { %v7981_v36 = vmul.f32 1.442695, %v7980_v30 }
 0x760   :  { %10362 = vpow2.f32 %v7981_v36 }
 0x76a   :  { %v10363_v55 = vpop.eup %10362 }
 0x76b   :  { %v7983_v15 = vsel %vm7972_vm3, %v10363_v55, 0.0 }
 0x76c   :  { %v7984_v1 = vrot.slane %v7983_v15, 4 }
 0x76e   :  { %v7985_v2 = vadd.f32 %v7984_v1, %v7983_v15 }
 0x770   :  { %v7986_v7 = vrot.slane %v7985_v2, 2 }
 0x772   :  { %v7987_v41 = vadd.f32 %v7986_v7, %v7985_v2 }
 0x774   :  { %v7988_v61 = vrot.slane %v7987_v41, 1 }
 0x776   :  { %v7989_v19 = vadd.f32 %v7988_v61, %v7987_v41 }
 0x778   :  { %10364 = vrcp.f32 %v7989_v19 }
 0x782   :  { %v10365_v0 = vpop.eup %10364 }
 0x783   :  { %v7991_v20 = vmul.f32 %v10365_v0, %v10363_v55 }
 0x785   :  { %7992 = vst [vmem:[%s16414_s13] sm:$0x1f] %v7991_v20 }

</bundles_post_ra>
